<compile_context>
chip_gen: v6e
topology: v6e:2x2x1
jax: 0.10.0
libtpu: 0.0.40
codegen_flags: <defaults>
</compile_context>

<pallas_src>
import jax
import jax.numpy as jnp
from jax.experimental import pallas as pl
from jax.experimental.pallas import tpu as pltpu

EPS = 1e-5


# ----------------------------------------------------------------------------
# Pallas kernel: tiled matmul + fused BN-bias / PReLU / residual epilogue
# ----------------------------------------------------------------------------
def _make_kernel(use_prelu, use_res):
    def kernel(*refs):
        x_ref, w_ref, b_ref = refs[0], refs[1], refs[2]
        idx = 3
        a_ref = None
        r_ref = None
        if use_prelu:
            a_ref = refs[idx]; idx += 1
        if use_res:
            r_ref = refs[idx]; idx += 1
        o_ref = refs[idx]
        acc_ref = refs[idx + 1]

        k = pl.program_id(2)

        @pl.when(k == 0)
        def _():
            acc_ref[...] = jnp.zeros_like(acc_ref)

        # bf16 x bf16 -> f32 accumulation on the MXU
        acc_ref[...] += jnp.dot(x_ref[...], w_ref[...],
                                preferred_element_type=jnp.float32)

        @pl.when(k == pl.num_programs(2) - 1)
        def _():
            y = acc_ref[...] + b_ref[...]          # BN bias (scale folded in W)
            if use_prelu:
                a = a_ref[...]
                y = jnp.where(y >= 0.0, y, a * y)  # per-channel PReLU
            if use_res:
                y = y + r_ref[...].astype(jnp.float32)   # residual add
            o_ref[...] = y.astype(o_ref.dtype)
    return kernel


def _round_up(x, m):
    return (x + m - 1) // m * m


def _pick_tk(kp):
    for t in (512, 384, 256, 128):
        if kp % t == 0:
            return t
    return kp


def conv_bn_fused(x_nhwc, w_hwio_q, bias, stride, padding,
                  prelu_alpha=None, residual_nhwc=None):
    """conv2d (bias=False, BN-scale pre-folded into w) + bias [+PReLU] [+res]."""
    x_nhwc = x_nhwc.astype(jnp.bfloat16)
    N, H, W, Cin = x_nhwc.shape
    KH, KW, _, Cout = w_hwio_q.shape
    Ho = (H + 2 * padding - KH) // stride + 1
    Wo = (W + 2 * padding - KW) // stride + 1
    M = N * Ho * Wo
    K = KH * KW * Cin

    # --- glue: zero-pad + im2col in bf16 (pure data movement, static strides)
    xp = jnp.pad(x_nhwc, ((0, 0), (padding, padding), (padding, padding), (0, 0)))
    cols = []
    for kh in range(KH):
        for kw in range(KW):
            cols.append(xp[:, kh:kh + (Ho - 1) * stride + 1:stride,
                           kw:kw + (Wo - 1) * stride + 1:stride, :])
    xcol = jnp.concatenate(cols, axis=-1).reshape(M, K)
    wmat = w_hwio_q.reshape(K, Cout)

    # --- tile sizes (lane-dense Cout, 128/256-aligned K, sublane-aligned M)
    Kp = _round_up(K, 128)
    tk = _pick_tk(Kp)
    Coutp = _round_up(Cout, 128)
    tn = 256 if Coutp % 256 == 0 else 128
    tm = 512 if M >= 512 else _round_up(M, 16)
    Mp = _round_up(M, tm)

    xcol = jnp.pad(xcol, ((0, Mp - M), (0, Kp - K)))
    wmat = jnp.pad(wmat, ((0, Kp - K), (0, Coutp - Cout)))
    bias_p = jnp.pad(bias.reshape(1, Cout).astype(jnp.float32),
                     ((0, 0), (0, Coutp - Cout)))

    use_prelu = prelu_alpha is not None
    use_res = residual_nhwc is not None

    args = [xcol, wmat, bias_p]
    in_specs = [
        pl.BlockSpec((tm, tk), lambda i, j, k: (i, k)),
        pl.BlockSpec((tk, tn), lambda i, j, k: (k, j)),
        pl.BlockSpec((1, tn), lambda i, j, k: (0, j)),   # resident across i, k
    ]
    if use_prelu:
        alpha_p = jnp.pad(prelu_alpha.reshape(1, Cout).astype(jnp.float32),
                          ((0, 0), (0, Coutp - Cout)))
        args.append(alpha_p)
        in_specs.append(pl.BlockSpec((1, tn), lambda i, j, k: (0, j)))
    if use_res:
        res2d = residual_nhwc.astype(jnp.bfloat16).reshape(M, Cout)
        res2d = jnp.pad(res2d, ((0, Mp - M), (0, Coutp - Cout)))
        args.append(res2d)
        in_specs.append(pl.BlockSpec((tm, tn), lambda i, j, k: (i, j)))

    grid = (Mp // tm, Coutp // tn, Kp // tk)
    out2d = pl.pallas_call(
        _make_kernel(use_prelu, use_res),
        out_shape=jax.ShapeDtypeStruct((Mp, Coutp), jnp.bfloat16),
        grid_spec=pltpu.PrefetchScalarGridSpec(
            num_scalar_prefetch=0,
            grid=grid,
            in_specs=in_specs,
            out_specs=pl.BlockSpec((tm, tn), lambda i, j, k: (i, j)),
            scratch_shapes=[pltpu.VMEM((tm, tn), jnp.float32)]),
        compiler_params=pltpu.CompilerParams(
            dimension_semantics=("parallel", "parallel", "arbitrary")),
    )(*args)
    return out2d[:M, :Cout].reshape(N, Ho, Wo, Cout)


# ----------------------------------------------------------------------------
# Parameter init (deterministic, mirrors IResNet.__init__ / _make_layer)
# ----------------------------------------------------------------------------
def _conv_w(key, kh, kw, cin, cout):
    # nn.init.normal_(m.weight, 0, 0.1); stored as HWIO
    return 0.1 * jax.random.normal(key, (kh, kw, cin, cout), jnp.float32)


def _bn_params(c):
    gamma = jnp.ones((c,), jnp.float32)
    beta = jnp.zeros((c,), jnp.float32)
    mean = jnp.zeros((c,), jnp.float32)
    var = jnp.ones((c,), jnp.float32)
    scale = gamma / jnp.sqrt(var + EPS)
    bias = beta - mean * scale
    return (scale, bias)


def _prelu_alpha(c):
    return jnp.full((c,), 0.25, jnp.float32)   # nn.PReLU default


def init_iresnet_params(key, layers=(1, 1, 1, 1)):
    keys = iter(jax.random.split(key, 128))
    p = {}
    p['conv1_w'] = _conv_w(next(keys), 3, 3, 3, 64)
    p['bn1'] = _bn_params(64)
    p['prelu'] = _prelu_alpha(64)
    inplanes = 64
    for li, (planes, blocks) in enumerate(zip((64, 128, 256, 512), layers), 1):
        layer = []
        for b in range(blocks):
            stride = 2 if b == 0 else 1
            blk = {
                'bn1': _bn_params(inplanes),
                'conv1_w': _conv_w(next(keys), 3, 3, inplanes, planes),
                'bn2': _bn_params(planes),
                'prelu': _prelu_alpha(planes),
                'conv2_w': _conv_w(next(keys), 3, 3, planes, planes),
                'bn3': _bn_params(planes),
            }
            if stride != 1 or inplanes != planes:
                blk['down_w'] = _conv_w(next(keys), 1, 1, inplanes, planes)
                blk['down_bn'] = _bn_params(planes)
            inplanes = planes
            layer.append(blk)
        p[f'layer{li}'] = layer
    return p


def prepare_params(p):
    """Fold post-conv BN scale into bf16 weights; keep biases/alphas in f32."""
    def fold(w, bn):
        scale, bias = bn
        return {'wq': (w * scale[None, None, None, :]).astype(jnp.bfloat16),
                'bias': bias.astype(jnp.float32)}
    prep = {'stem': {**fold(p['conv1_w'], p['bn1']),
                     'alpha': p['prelu'].astype(jnp.float32)}}
    layers = []
    for li in range(1, 5):
        lay = []
        for blk in p[f'layer{li}']:
            b = {
                'bn1_scale': blk['bn1'][0].astype(jnp.float32),
                'bn1_bias': blk['bn1'][1].astype(jnp.float32),
                'conv1': {**fold(blk['conv1_w'], blk['bn2']),
                          'alpha': blk['prelu'].astype(jnp.float32)},
                'conv2': fold(blk['conv2_w'], blk['bn3']),
            }
            if 'down_w' in blk:
                b['down'] = fold(blk['down_w'], blk['down_bn'])
            lay.append(b)
        layers.append(lay)
    prep['layers'] = layers
    return prep


# ----------------------------------------------------------------------------
# Forward (Pallas)
# ----------------------------------------------------------------------------
def _ibasic_block(x, blk, stride):
    if 'down' in blk:
        identity = conv_bn_fused(x, blk['down']['wq'], blk['down']['bias'],
                                 stride, 0)
    else:
        identity = x
    # block.bn1 is applied BEFORE zero padding (PyTorch order); done here as a
    # plain-JAX FMA so XLA fuses it into conv1's im2col gather (no extra
    # Pallas/HBM round-trip).
    t = x.astype(jnp.float32) * blk['bn1_scale'] + blk['bn1_bias']
    t = conv_bn_fused(t, blk['conv1']['wq'], blk['conv1']['bias'], 1, 1,
                      prelu_alpha=blk['conv1']['alpha'])
    out = conv_bn_fused(t, blk['conv2']['wq'], blk['conv2']['bias'], stride, 1,
                        residual_nhwc=identity)
    return out


def iresnet_forward(x_nchw, prep):
    x = jnp.transpose(x_nchw, (0, 2, 3, 1))                       # NCHW->NHWC
    st = prep['stem']
    x = conv_bn_fused(x, st['wq'], st['bias'], 1, 1, prelu_alpha=st['alpha'])
    for layer in prep['layers']:
        for b, blk in enumerate(layer):
            x = _ibasic_block(x, blk, 2 if b == 0 else 1)
    return jnp.transpose(x, (0, 3, 1, 2)).astype(jnp.float32)     # NHWC->NCHW


# ----------------------------------------------------------------------------
# References (correctness checks only)
# ----------------------------------------------------------------------------
def _ref_conv_f32(x, w, stride, padding):
    return jax.lax.conv_general_dilated(
        x, w, (stride, stride), [(padding, padding)] * 2,
        dimension_numbers=('NHWC', 'HWIO', 'NHWC'),
        precision=jax.lax.Precision.HIGHEST)


def ref_forward_f32(x_nchw, params):
    """Faithful f32 implementation of the PyTorch graph."""
    x = jnp.transpose(x_nchw, (0, 2, 3, 1)).astype(jnp.float32)
    s, b = params['bn1']
    x = _ref_conv_f32(x, params['conv1_w'], 1, 1) * s + b
    x = jnp.where(x >= 0, x, params['prelu'] * x)
    for li in range(1, 5):
        for bi, blk in enumerate(params[f'layer{li}']):
            stride = 2 if bi == 0 else 1
            identity = x
            if 'down_w' in blk:
                ds, db = blk['down_bn']
                identity = _ref_conv_f32(x, blk['down_w'], stride, 0) * ds + db
            s1, b1 = blk['bn1']
            out = x * s1 + b1
            out = _ref_conv_f32(out, blk['conv1_w'], 1, 1)
            s2, b2 = blk['bn2']
            out = out * s2 + b2
            out = jnp.where(out >= 0, out, blk['prelu'] * out)
            out = _ref_conv_f32(out, blk['conv2_w'], stride, 1)
            s3, b3 = blk['bn3']
            out = out * s3 + b3
            x = out + identity
    return jnp.transpose(x, (0, 3, 1, 2))


def ref_forward_matched(x_nchw, prep):
    """Same math/precision path as the Pallas kernels, via lax.conv."""
    bf = jnp.bfloat16

    def conv(xq, wq, stride, pad):
        return jax.lax.conv_general_dilated(
            xq, wq, (stride, stride), [(pad, pad)] * 2,
            dimension_numbers=('NHWC', 'HWIO', 'NHWC'),
            preferred_element_type=jnp.float32)

    x = jnp.transpose(x_nchw, (0, 2, 3, 1)).astype(bf)
    st = prep['stem']
    y = conv(x, st['wq'], 1, 1) + st['bias']
    y = jnp.where(y >= 0, y, st['alpha'] * y)
    x = y.astype(bf)
    for layer in prep['layers']:
        for bi, blk in enumerate(layer):
            stride = 2 if bi == 0 else 1
            if 'down' in blk:
                identity = (conv(x, blk['down']['wq'], stride, 0)
                            + blk['down']['bias']).astype(bf)
            else:
                identity = x
            t = (x.astype(jnp.float32) * blk['bn1_scale']
                 + blk['bn1_bias']).astype(bf)
            y = conv(t, blk['conv1']['wq'], 1, 1) + blk['conv1']['bias']
            y = jnp.where(y >= 0, y, blk['conv1']['alpha'] * y)
            t = y.astype(bf)
            y = (conv(t, blk['conv2']['wq'], stride, 1) + blk['conv2']['bias']
                 + identity.astype(jnp.float32))
            x = y.astype(bf)
    return jnp.transpose(x, (0, 3, 1, 2)).astype(jnp.float32)


# ----------------------------------------------------------------------------
if __name__ == "__main__":
    key = jax.random.PRNGKey(0)
    kx, kp = jax.random.split(key)
    x = jax.random.normal(kx, (2, 3, 16, 16), jnp.float32)   # NCHW, like PyTorch
    params = init_iresnet_params(kp, layers=(1, 1, 1, 1))
    prep = prepare_params(params)

    fwd = jax.jit(iresnet_forward)
    out = jax.block_until_ready(fwd(x, prep))
    assert out.shape == (2, 512, 1, 1), out.shape
    assert out.dtype == jnp.float32, out.dtype

    # Tight check vs a matched-precision (bf16-operand, f32-accumulate)
    # reference -> validates im2col / tiling / epilogue logic.
    ref_m = jax.block_until_ready(jax.jit(ref_forward_matched)(x, prep))
    err_m = float(jnp.max(jnp.abs(out - ref_m)) /
                  (jnp.max(jnp.abs(ref_m)) + 1e-6))
    assert err_m < 1e-2, f"mismatch vs matched-precision reference: {err_m}"

    # Loose check vs the pure-f32 PyTorch-graph reference -> validates the
    # BN-scale folding / semantics (difference is just bf16 MXU rounding).
    ref_f = jax.block_until_ready(jax.jit(ref_forward_f32)(x, params))
    err_f = float(jnp.max(jnp.abs(out - ref_f)) /
                  (jnp.max(jnp.abs(ref_f)) + 1e-6))
    assert err_f < 0.25, f"mismatch vs f32 reference: {err_f}"

    print("KERNEL_OK")
</pallas_src>

<mosaic_0001>
module attributes {stable_mosaic.version = 11 : i64} {
  func.func @kernel(%arg0: i32, %arg1: i32, %arg2: i32, %arg3: memref<512x128xbf16, #tpu.memory_space<vmem>>, %arg4: memref<128x128xbf16, #tpu.memory_space<vmem>>, %arg5: memref<1x128xf32, #tpu.memory_space<vmem>>, %arg6: memref<1x128xf32, #tpu.memory_space<vmem>>, %arg7: memref<512x128xbf16, #tpu.memory_space<vmem>>, %arg8: memref<512x128xf32, #tpu.memory_space<vmem>>) attributes {dimension_semantics = [#tpu.dimension_semantics<parallel>, #tpu.dimension_semantics<parallel>, #tpu.dimension_semantics<arbitrary>], iteration_bounds = array<i64: 1, 1, 1>, scalar_prefetch = 0 : i64, scratch_operands = 1 : i64, tpu.core_type = #tpu.core_type<tc>, window_params = [{transform_indices = @transform_0, window_bounds = array<i64: 512, 128>}, {transform_indices = @transform_1, window_bounds = array<i64: 128, 128>}, {transform_indices = @transform_2, window_bounds = array<i64: 1, 128>}, {transform_indices = @transform_3, window_bounds = array<i64: 1, 128>}, {transform_indices = @transform_4, window_bounds = array<i64: 512, 128>}]} {
    %c0_i32 = arith.constant 0 : i32
    %0 = arith.cmpi eq, %arg2, %c0_i32 : i32
    %1 = arith.extui %0 : i1 to i32
    %c0_i32_0 = arith.constant 0 : i32
    %2 = arith.cmpi ne, %1, %c0_i32_0 : i32
    scf.if %2 {
      %cst_10 = arith.constant 0.000000e+00 : f32
      %12 = vector.broadcast %cst_10 : f32 to vector<512x128xf32>
      %c0_11 = arith.constant 0 : index
      %c0_12 = arith.constant 0 : index
      %13 = vector.load %arg8[%c0_11, %c0_12] : memref<512x128xf32, #tpu.memory_space<vmem>>, vector<512x128xf32>
      tpu.vector_store %arg8[%c0_11, %c0_12], %12 {strides = array<i32>} : memref<512x128xf32, #tpu.memory_space<vmem>>, vector<512x128xf32>,
    } else {
    }
    %c0 = arith.constant 0 : index
    %c0_1 = arith.constant 0 : index
    %3 = vector.load %arg8[%c0, %c0_1] : memref<512x128xf32, #tpu.memory_space<vmem>>, vector<512x128xf32>
    %c0_2 = arith.constant 0 : index
    %c0_3 = arith.constant 0 : index
    %4 = vector.load %arg3[%c0_2, %c0_3] : memref<512x128xbf16, #tpu.memory_space<vmem>>, vector<512x128xbf16>
    %c0_4 = arith.constant 0 : index
    %c0_5 = arith.constant 0 : index
    %5 = vector.load %arg4[%c0_4, %c0_5] : memref<128x128xbf16, #tpu.memory_space<vmem>>, vector<128x128xbf16>
    %cst = arith.constant dense<0.000000e+00> : vector<512x128xf32>
    %6 = tpu.matmul %4, %5, %cst {dimension_numbers = #tpu.dot_dimension_numbers<[1], [0], [0], [1], [0, 0, 1, 1], [], []>} : vector<512x128xbf16>, vector<128x128xbf16>, vector<512x128xf32> -> vector<512x128xf32>
    %7 = arith.addf %3, %6 : vector<512x128xf32>
    %c0_6 = arith.constant 0 : index
    %c0_7 = arith.constant 0 : index
    %8 = vector.load %arg8[%c0_6, %c0_7] : memref<512x128xf32, #tpu.memory_space<vmem>>, vector<512x128xf32>
    tpu.vector_store %arg8[%c0_6, %c0_7], %7 {strides = array<i32>} : memref<512x128xf32, #tpu.memory_space<vmem>>, vector<512x128xf32>,
    %c0_i32_8 = arith.constant 0 : i32
    %9 = arith.cmpi eq, %arg2, %c0_i32_8 : i32
    %10 = arith.extui %9 : i1 to i32
    %c0_i32_9 = arith.constant 0 : i32
    %11 = arith.cmpi ne, %10, %c0_i32_9 : i32
    scf.if %11 {
      %c0_10 = arith.constant 0 : index
      %c0_11 = arith.constant 0 : index
      %12 = vector.load %arg8[%c0_10, %c0_11] : memref<512x128xf32, #tpu.memory_space<vmem>>, vector<512x128xf32>
      %c0_12 = arith.constant 0 : index
      %c0_13 = arith.constant 0 : index
      %13 = vector.load %arg5[%c0_12, %c0_13] : memref<1x128xf32, #tpu.memory_space<vmem>>, vector<1x128xf32>
      %14 = vector.broadcast %13 : vector<1x128xf32> to vector<512x128xf32>
      %15 = arith.addf %12, %14 : vector<512x128xf32>
      %c0_14 = arith.constant 0 : index
      %c0_15 = arith.constant 0 : index
      %16 = vector.load %arg6[%c0_14, %c0_15] : memref<1x128xf32, #tpu.memory_space<vmem>>, vector<1x128xf32>
      %cst_16 = arith.constant 0.000000e+00 : f32
      %17 = vector.broadcast %cst_16 : f32 to vector<512x128xf32>
      %18 = arith.cmpf oge, %15, %17 : vector<512x128xf32>
      %19 = vector.broadcast %16 : vector<1x128xf32> to vector<512x128xf32>
      %20 = arith.mulf %19, %15 : vector<512x128xf32>
      %21 = arith.select %18, %15, %20 : vector<512x128xi1>, vector<512x128xf32>
      %22 = arith.truncf %21 : vector<512x128xf32> to vector<512x128xbf16>
      %c0_17 = arith.constant 0 : index
      %c0_18 = arith.constant 0 : index
      %23 = vector.load %arg7[%c0_17, %c0_18] : memref<512x128xbf16, #tpu.memory_space<vmem>>, vector<512x128xbf16>
      tpu.vector_store %arg7[%c0_17, %c0_18], %22 {strides = array<i32>} : memref<512x128xbf16, #tpu.memory_space<vmem>>, vector<512x128xbf16>,
    } else {
    }
    return
  }
  func.func @transform_0(%arg0: i32, %arg1: i32, %arg2: i32) -> (i32, i32) {
    %c0_i32 = arith.constant 0 : i32
    return %arg0, %arg2 : i32, i32
  }
  func.func @transform_1(%arg0: i32, %arg1: i32, %arg2: i32) -> (i32, i32) {
    %c0_i32 = arith.constant 0 : i32
    return %arg2, %arg1 : i32, i32
  }
  func.func @transform_2(%arg0: i32, %arg1: i32, %arg2: i32) -> (i32, i32) {
    %c0_i32 = arith.constant 0 : i32
    %c0_i32_0 = arith.constant 0 : i32
    return %c0_i32, %arg1 : i32, i32
  }
  func.func @transform_3(%arg0: i32, %arg1: i32, %arg2: i32) -> (i32, i32) {
    %c0_i32 = arith.constant 0 : i32
    %c0_i32_0 = arith.constant 0 : i32
    return %c0_i32, %arg1 : i32, i32
  }
  func.func @transform_4(%arg0: i32, %arg1: i32, %arg2: i32) -> (i32, i32) {
    %c0_i32 = arith.constant 0 : i32
    return %arg0, %arg1 : i32, i32
  }
}

module attributes {stable_mosaic.version = 11 : i64} {
  func.func @kernel(%arg0: i32, %arg1: i32, %arg2: i32, %arg3: memref<512x128xbf16, #tpu.memory_space<vmem>>, %arg4: memref<128x128xbf16, #tpu.memory_space<vmem>>, %arg5: memref<1x128xf32, #tpu.memory_space<vmem>>, %arg6: memref<1x128xf32, #tpu.memory_space<vmem>>, %arg7: memref<512x128xbf16, #tpu.memory_space<vmem>>, %arg8: memref<512x128xf32, #tpu.memory_space<vmem>>) attributes {dimension_semantics = [#tpu.dimension_semantics<parallel>, #tpu.dimension_semantics<parallel>, #tpu.dimension_semantics<arbitrary>], iteration_bounds = array<i64: 1, 1, 5>, scalar_prefetch = 0 : i64, scratch_operands = 1 : i64, tpu.core_type = #tpu.core_type<tc>, window_params = [{transform_indices = @transform_0, window_bounds = array<i64: 512, 128>}, {transform_indices = @transform_1, window_bounds = array<i64: 128, 128>}, {transform_indices = @transform_2, window_bounds = array<i64: 1, 128>}, {transform_indices = @transform_3, window_bounds = array<i64: 1, 128>}, {transform_indices = @transform_4, window_bounds = array<i64: 512, 128>}]} {
    %c0_i32 = arith.constant 0 : i32
    %0 = arith.cmpi eq, %arg2, %c0_i32 : i32
    %1 = arith.extui %0 : i1 to i32
    %c0_i32_0 = arith.constant 0 : i32
    %2 = arith.cmpi ne, %1, %c0_i32_0 : i32
    scf.if %2 {
      %cst_9 = arith.constant 0.000000e+00 : f32
      %12 = vector.broadcast %cst_9 : f32 to vector<512x128xf32>
      %c0_10 = arith.constant 0 : index
      %c0_11 = arith.constant 0 : index
      %13 = vector.load %arg8[%c0_10, %c0_11] : memref<512x128xf32, #tpu.memory_space<vmem>>, vector<512x128xf32>
      tpu.vector_store %arg8[%c0_10, %c0_11], %12 {strides = array<i32>} : memref<512x128xf32, #tpu.memory_space<vmem>>, vector<512x128xf32>,
    } else {
    }
    %c0 = arith.constant 0 : index
    %c0_1 = arith.constant 0 : index
    %3 = vector.load %arg8[%c0, %c0_1] : memref<512x128xf32, #tpu.memory_space<vmem>>, vector<512x128xf32>
    %c0_2 = arith.constant 0 : index
    %c0_3 = arith.constant 0 : index
    %4 = vector.load %arg3[%c0_2, %c0_3] : memref<512x128xbf16, #tpu.memory_space<vmem>>, vector<512x128xbf16>
    %c0_4 = arith.constant 0 : index
    %c0_5 = arith.constant 0 : index
    %5 = vector.load %arg4[%c0_4, %c0_5] : memref<128x128xbf16, #tpu.memory_space<vmem>>, vector<128x128xbf16>
    %cst = arith.constant dense<0.000000e+00> : vector<512x128xf32>
    %6 = tpu.matmul %4, %5, %cst {dimension_numbers = #tpu.dot_dimension_numbers<[1], [0], [0], [1], [0, 0, 1, 1], [], []>} : vector<512x128xbf16>, vector<128x128xbf16>, vector<512x128xf32> -> vector<512x128xf32>
    %7 = arith.addf %3, %6 : vector<512x128xf32>
    %c0_6 = arith.constant 0 : index
    %c0_7 = arith.constant 0 : index
    %8 = vector.load %arg8[%c0_6, %c0_7] : memref<512x128xf32, #tpu.memory_space<vmem>>, vector<512x128xf32>
    tpu.vector_store %arg8[%c0_6, %c0_7], %7 {strides = array<i32>} : memref<512x128xf32, #tpu.memory_space<vmem>>, vector<512x128xf32>,
    %c4_i32 = arith.constant 4 : i32
    %9 = arith.cmpi eq, %arg2, %c4_i32 : i32
    %10 = arith.extui %9 : i1 to i32
    %c0_i32_8 = arith.constant 0 : i32
    %11 = arith.cmpi ne, %10, %c0_i32_8 : i32
    scf.if %11 {
      %c0_9 = arith.constant 0 : index
      %c0_10 = arith.constant 0 : index
      %12 = vector.load %arg8[%c0_9, %c0_10] : memref<512x128xf32, #tpu.memory_space<vmem>>, vector<512x128xf32>
      %c0_11 = arith.constant 0 : index
      %c0_12 = arith.constant 0 : index
      %13 = vector.load %arg5[%c0_11, %c0_12] : memref<1x128xf32, #tpu.memory_space<vmem>>, vector<1x128xf32>
      %14 = vector.broadcast %13 : vector<1x128xf32> to vector<512x128xf32>
      %15 = arith.addf %12, %14 : vector<512x128xf32>
      %c0_13 = arith.constant 0 : index
      %c0_14 = arith.constant 0 : index
      %16 = vector.load %arg6[%c0_13, %c0_14] : memref<1x128xf32, #tpu.memory_space<vmem>>, vector<1x128xf32>
      %cst_15 = arith.constant 0.000000e+00 : f32
      %17 = vector.broadcast %cst_15 : f32 to vector<512x128xf32>
      %18 = arith.cmpf oge, %15, %17 : vector<512x128xf32>
      %19 = vector.broadcast %16 : vector<1x128xf32> to vector<512x128xf32>
      %20 = arith.mulf %19, %15 : vector<512x128xf32>
      %21 = arith.select %18, %15, %20 : vector<512x128xi1>, vector<512x128xf32>
      %22 = arith.truncf %21 : vector<512x128xf32> to vector<512x128xbf16>
      %c0_16 = arith.constant 0 : index
      %c0_17 = arith.constant 0 : index
      %23 = vector.load %arg7[%c0_16, %c0_17] : memref<512x128xbf16, #tpu.memory_space<vmem>>, vector<512x128xbf16>
      tpu.vector_store %arg7[%c0_16, %c0_17], %22 {strides = array<i32>} : memref<512x128xbf16, #tpu.memory_space<vmem>>, vector<512x128xbf16>,
    } else {
    }
    return
  }
  func.func @transform_0(%arg0: i32, %arg1: i32, %arg2: i32) -> (i32, i32) {
    %c0_i32 = arith.constant 0 : i32
    return %arg0, %arg2 : i32, i32
  }
  func.func @transform_1(%arg0: i32, %arg1: i32, %arg2: i32) -> (i32, i32) {
    %c0_i32 = arith.constant 0 : i32
    return %arg2, %arg1 : i32, i32
  }
  func.func @transform_2(%arg0: i32, %arg1: i32, %arg2: i32) -> (i32, i32) {
    %c0_i32 = arith.constant 0 : i32
    %c0_i32_0 = arith.constant 0 : i32
    return %c0_i32, %arg1 : i32, i32
  }
  func.func @transform_3(%arg0: i32, %arg1: i32, %arg2: i32) -> (i32, i32) {
    %c0_i32 = arith.constant 0 : i32
    %c0_i32_0 = arith.constant 0 : i32
    return %c0_i32, %arg1 : i32, i32
  }
  func.func @transform_4(%arg0: i32, %arg1: i32, %arg2: i32) -> (i32, i32) {
    %c0_i32 = arith.constant 0 : i32
    return %arg0, %arg1 : i32, i32
  }
}

module attributes {stable_mosaic.version = 11 : i64} {
  func.func @kernel(%arg0: i32, %arg1: i32, %arg2: i32, %arg3: memref<128x128xbf16, #tpu.memory_space<vmem>>, %arg4: memref<128x128xbf16, #tpu.memory_space<vmem>>, %arg5: memref<1x128xf32, #tpu.memory_space<vmem>>, %arg6: memref<128x128xbf16, #tpu.memory_space<vmem>>, %arg7: memref<128x128xf32, #tpu.memory_space<vmem>>) attributes {dimension_semantics = [#tpu.dimension_semantics<parallel>, #tpu.dimension_semantics<parallel>, #tpu.dimension_semantics<arbitrary>], iteration_bounds = array<i64: 1, 1, 1>, scalar_prefetch = 0 : i64, scratch_operands = 1 : i64, tpu.core_type = #tpu.core_type<tc>, window_params = [{transform_indices = @transform_0, window_bounds = array<i64: 128, 128>}, {transform_indices = @transform_1, window_bounds = array<i64: 128, 128>}, {transform_indices = @transform_2, window_bounds = array<i64: 1, 128>}, {transform_indices = @transform_3, window_bounds = array<i64: 128, 128>}]} {
    %c0_i32 = arith.constant 0 : i32
    %0 = arith.cmpi eq, %arg2, %c0_i32 : i32
    %1 = arith.extui %0 : i1 to i32
    %c0_i32_0 = arith.constant 0 : i32
    %2 = arith.cmpi ne, %1, %c0_i32_0 : i32
    scf.if %2 {
      %cst_10 = arith.constant 0.000000e+00 : f32
      %12 = vector.broadcast %cst_10 : f32 to vector<128x128xf32>
      %c0_11 = arith.constant 0 : index
      %c0_12 = arith.constant 0 : index
      %13 = vector.load %arg7[%c0_11, %c0_12] : memref<128x128xf32, #tpu.memory_space<vmem>>, vector<128x128xf32>
      tpu.vector_store %arg7[%c0_11, %c0_12], %12 {strides = array<i32>} : memref<128x128xf32, #tpu.memory_space<vmem>>, vector<128x128xf32>,
    } else {
    }
    %c0 = arith.constant 0 : index
    %c0_1 = arith.constant 0 : index
    %3 = vector.load %arg7[%c0, %c0_1] : memref<128x128xf32, #tpu.memory_space<vmem>>, vector<128x128xf32>
    %c0_2 = arith.constant 0 : index
    %c0_3 = arith.constant 0 : index
    %4 = vector.load %arg3[%c0_2, %c0_3] : memref<128x128xbf16, #tpu.memory_space<vmem>>, vector<128x128xbf16>
    %c0_4 = arith.constant 0 : index
    %c0_5 = arith.constant 0 : index
    %5 = vector.load %arg4[%c0_4, %c0_5] : memref<128x128xbf16, #tpu.memory_space<vmem>>, vector<128x128xbf16>
    %cst = arith.constant dense<0.000000e+00> : vector<128x128xf32>
    %6 = tpu.matmul %4, %5, %cst {dimension_numbers = #tpu.dot_dimension_numbers<[1], [0], [0], [1], [0, 0, 1, 1], [], []>} : vector<128x128xbf16>, vector<128x128xbf16>, vector<128x128xf32> -> vector<128x128xf32>
    %7 = arith.addf %3, %6 : vector<128x128xf32>
    %c0_6 = arith.constant 0 : index
    %c0_7 = arith.constant 0 : index
    %8 = vector.load %arg7[%c0_6, %c0_7] : memref<128x128xf32, #tpu.memory_space<vmem>>, vector<128x128xf32>
    tpu.vector_store %arg7[%c0_6, %c0_7], %7 {strides = array<i32>} : memref<128x128xf32, #tpu.memory_space<vmem>>, vector<128x128xf32>,
    %c0_i32_8 = arith.constant 0 : i32
    %9 = arith.cmpi eq, %arg2, %c0_i32_8 : i32
    %10 = arith.extui %9 : i1 to i32
    %c0_i32_9 = arith.constant 0 : i32
    %11 = arith.cmpi ne, %10, %c0_i32_9 : i32
    scf.if %11 {
      %c0_10 = arith.constant 0 : index
      %c0_11 = arith.constant 0 : index
      %12 = vector.load %arg7[%c0_10, %c0_11] : memref<128x128xf32, #tpu.memory_space<vmem>>, vector<128x128xf32>
      %c0_12 = arith.constant 0 : index
      %c0_13 = arith.constant 0 : index
      %13 = vector.load %arg5[%c0_12, %c0_13] : memref<1x128xf32, #tpu.memory_space<vmem>>, vector<1x128xf32>
      %14 = vector.broadcast %13 : vector<1x128xf32> to vector<128x128xf32>
      %15 = arith.addf %12, %14 : vector<128x128xf32>
      %16 = arith.truncf %15 : vector<128x128xf32> to vector<128x128xbf16>
      %c0_14 = arith.constant 0 : index
      %c0_15 = arith.constant 0 : index
      %17 = vector.load %arg6[%c0_14, %c0_15] : memref<128x128xbf16, #tpu.memory_space<vmem>>, vector<128x128xbf16>
      tpu.vector_store %arg6[%c0_14, %c0_15], %16 {strides = array<i32>} : memref<128x128xbf16, #tpu.memory_space<vmem>>, vector<128x128xbf16>,
    } else {
    }
    return
  }
  func.func @transform_0(%arg0: i32, %arg1: i32, %arg2: i32) -> (i32, i32) {
    %c0_i32 = arith.constant 0 : i32
    return %arg0, %arg2 : i32, i32
  }
  func.func @transform_1(%arg0: i32, %arg1: i32, %arg2: i32) -> (i32, i32) {
    %c0_i32 = arith.constant 0 : i32
    return %arg2, %arg1 : i32, i32
  }
  func.func @transform_2(%arg0: i32, %arg1: i32, %arg2: i32) -> (i32, i32) {
    %c0_i32 = arith.constant 0 : i32
    %c0_i32_0 = arith.constant 0 : i32
    return %c0_i32, %arg1 : i32, i32
  }
  func.func @transform_3(%arg0: i32, %arg1: i32, %arg2: i32) -> (i32, i32) {
    %c0_i32 = arith.constant 0 : i32
    return %arg0, %arg1 : i32, i32
  }
}

module attributes {stable_mosaic.version = 11 : i64} {
  func.func @kernel(%arg0: i32, %arg1: i32, %arg2: i32, %arg3: memref<128x128xbf16, #tpu.memory_space<vmem>>, %arg4: memref<128x128xbf16, #tpu.memory_space<vmem>>, %arg5: memref<1x128xf32, #tpu.memory_space<vmem>>, %arg6: memref<128x128xbf16, #tpu.memory_space<vmem>>, %arg7: memref<128x128xbf16, #tpu.memory_space<vmem>>, %arg8: memref<128x128xf32, #tpu.memory_space<vmem>>) attributes {dimension_semantics = [#tpu.dimension_semantics<parallel>, #tpu.dimension_semantics<parallel>, #tpu.dimension_semantics<arbitrary>], iteration_bounds = array<i64: 1, 1, 5>, scalar_prefetch = 0 : i64, scratch_operands = 1 : i64, tpu.core_type = #tpu.core_type<tc>, window_params = [{transform_indices = @transform_0, window_bounds = array<i64: 128, 128>}, {transform_indices = @transform_1, window_bounds = array<i64: 128, 128>}, {transform_indices = @transform_2, window_bounds = array<i64: 1, 128>}, {transform_indices = @transform_3, window_bounds = array<i64: 128, 128>}, {transform_indices = @transform_4, window_bounds = array<i64: 128, 128>}]} {
    %c0_i32 = arith.constant 0 : i32
    %0 = arith.cmpi eq, %arg2, %c0_i32 : i32
    %1 = arith.extui %0 : i1 to i32
    %c0_i32_0 = arith.constant 0 : i32
    %2 = arith.cmpi ne, %1, %c0_i32_0 : i32
    scf.if %2 {
      %cst_9 = arith.constant 0.000000e+00 : f32
      %12 = vector.broadcast %cst_9 : f32 to vector<128x128xf32>
      %c0_10 = arith.constant 0 : index
      %c0_11 = arith.constant 0 : index
      %13 = vector.load %arg8[%c0_10, %c0_11] : memref<128x128xf32, #tpu.memory_space<vmem>>, vector<128x128xf32>
      tpu.vector_store %arg8[%c0_10, %c0_11], %12 {strides = array<i32>} : memref<128x128xf32, #tpu.memory_space<vmem>>, vector<128x128xf32>,
    } else {
    }
    %c0 = arith.constant 0 : index
    %c0_1 = arith.constant 0 : index
    %3 = vector.load %arg8[%c0, %c0_1] : memref<128x128xf32, #tpu.memory_space<vmem>>, vector<128x128xf32>
    %c0_2 = arith.constant 0 : index
    %c0_3 = arith.constant 0 : index
    %4 = vector.load %arg3[%c0_2, %c0_3] : memref<128x128xbf16, #tpu.memory_space<vmem>>, vector<128x128xbf16>
    %c0_4 = arith.constant 0 : index
    %c0_5 = arith.constant 0 : index
    %5 = vector.load %arg4[%c0_4, %c0_5] : memref<128x128xbf16, #tpu.memory_space<vmem>>, vector<128x128xbf16>
    %cst = arith.constant dense<0.000000e+00> : vector<128x128xf32>
    %6 = tpu.matmul %4, %5, %cst {dimension_numbers = #tpu.dot_dimension_numbers<[1], [0], [0], [1], [0, 0, 1, 1], [], []>} : vector<128x128xbf16>, vector<128x128xbf16>, vector<128x128xf32> -> vector<128x128xf32>
    %7 = arith.addf %3, %6 : vector<128x128xf32>
    %c0_6 = arith.constant 0 : index
    %c0_7 = arith.constant 0 : index
    %8 = vector.load %arg8[%c0_6, %c0_7] : memref<128x128xf32, #tpu.memory_space<vmem>>, vector<128x128xf32>
    tpu.vector_store %arg8[%c0_6, %c0_7], %7 {strides = array<i32>} : memref<128x128xf32, #tpu.memory_space<vmem>>, vector<128x128xf32>,
    %c4_i32 = arith.constant 4 : i32
    %9 = arith.cmpi eq, %arg2, %c4_i32 : i32
    %10 = arith.extui %9 : i1 to i32
    %c0_i32_8 = arith.constant 0 : i32
    %11 = arith.cmpi ne, %10, %c0_i32_8 : i32
    scf.if %11 {
      %c0_9 = arith.constant 0 : index
      %c0_10 = arith.constant 0 : index
      %12 = vector.load %arg8[%c0_9, %c0_10] : memref<128x128xf32, #tpu.memory_space<vmem>>, vector<128x128xf32>
      %c0_11 = arith.constant 0 : index
      %c0_12 = arith.constant 0 : index
      %13 = vector.load %arg5[%c0_11, %c0_12] : memref<1x128xf32, #tpu.memory_space<vmem>>, vector<1x128xf32>
      %14 = vector.broadcast %13 : vector<1x128xf32> to vector<128x128xf32>
      %15 = arith.addf %12, %14 : vector<128x128xf32>
      %c0_13 = arith.constant 0 : index
      %c0_14 = arith.constant 0 : index
      %16 = vector.load %arg6[%c0_13, %c0_14] : memref<128x128xbf16, #tpu.memory_space<vmem>>, vector<128x128xbf16>
      %17 = arith.extf %16 : vector<128x128xbf16> to vector<128x128xf32>
      %18 = arith.addf %15, %17 : vector<128x128xf32>
      %19 = arith.truncf %18 : vector<128x128xf32> to vector<128x128xbf16>
      %c0_15 = arith.constant 0 : index
      %c0_16 = arith.constant 0 : index
      %20 = vector.load %arg7[%c0_15, %c0_16] : memref<128x128xbf16, #tpu.memory_space<vmem>>, vector<128x128xbf16>
      tpu.vector_store %arg7[%c0_15, %c0_16], %19 {strides = array<i32>} : memref<128x128xbf16, #tpu.memory_space<vmem>>, vector<128x128xbf16>,
    } else {
    }
    return
  }
  func.func @transform_0(%arg0: i32, %arg1: i32, %arg2: i32) -> (i32, i32) {
    %c0_i32 = arith.constant 0 : i32
    return %arg0, %arg2 : i32, i32
  }
  func.func @transform_1(%arg0: i32, %arg1: i32, %arg2: i32) -> (i32, i32) {
    %c0_i32 = arith.constant 0 : i32
    return %arg2, %arg1 : i32, i32
  }
  func.func @transform_2(%arg0: i32, %arg1: i32, %arg2: i32) -> (i32, i32) {
    %c0_i32 = arith.constant 0 : i32
    %c0_i32_0 = arith.constant 0 : i32
    return %c0_i32, %arg1 : i32, i32
  }
  func.func @transform_3(%arg0: i32, %arg1: i32, %arg2: i32) -> (i32, i32) {
    %c0_i32 = arith.constant 0 : i32
    return %arg0, %arg1 : i32, i32
  }
  func.func @transform_4(%arg0: i32, %arg1: i32, %arg2: i32) -> (i32, i32) {
    %c0_i32 = arith.constant 0 : i32
    return %arg0, %arg1 : i32, i32
  }
}

module attributes {stable_mosaic.version = 11 : i64} {
  func.func @kernel(%arg0: i32, %arg1: i32, %arg2: i32, %arg3: memref<128x128xbf16, #tpu.memory_space<vmem>>, %arg4: memref<128x128xbf16, #tpu.memory_space<vmem>>, %arg5: memref<1x128xf32, #tpu.memory_space<vmem>>, %arg6: memref<1x128xf32, #tpu.memory_space<vmem>>, %arg7: memref<128x128xbf16, #tpu.memory_space<vmem>>, %arg8: memref<128x128xf32, #tpu.memory_space<vmem>>) attributes {dimension_semantics = [#tpu.dimension_semantics<parallel>, #tpu.dimension_semantics<parallel>, #tpu.dimension_semantics<arbitrary>], iteration_bounds = array<i64: 1, 1, 5>, scalar_prefetch = 0 : i64, scratch_operands = 1 : i64, tpu.core_type = #tpu.core_type<tc>, window_params = [{transform_indices = @transform_0, window_bounds = array<i64: 128, 128>}, {transform_indices = @transform_1, window_bounds = array<i64: 128, 128>}, {transform_indices = @transform_2, window_bounds = array<i64: 1, 128>}, {transform_indices = @transform_3, window_bounds = array<i64: 1, 128>}, {transform_indices = @transform_4, window_bounds = array<i64: 128, 128>}]} {
    %c0_i32 = arith.constant 0 : i32
    %0 = arith.cmpi eq, %arg2, %c0_i32 : i32
    %1 = arith.extui %0 : i1 to i32
    %c0_i32_0 = arith.constant 0 : i32
    %2 = arith.cmpi ne, %1, %c0_i32_0 : i32
    scf.if %2 {
      %cst_9 = arith.constant 0.000000e+00 : f32
      %12 = vector.broadcast %cst_9 : f32 to vector<128x128xf32>
      %c0_10 = arith.constant 0 : index
      %c0_11 = arith.constant 0 : index
      %13 = vector.load %arg8[%c0_10, %c0_11] : memref<128x128xf32, #tpu.memory_space<vmem>>, vector<128x128xf32>
      tpu.vector_store %arg8[%c0_10, %c0_11], %12 {strides = array<i32>} : memref<128x128xf32, #tpu.memory_space<vmem>>, vector<128x128xf32>,
    } else {
    }
    %c0 = arith.constant 0 : index
    %c0_1 = arith.constant 0 : index
    %3 = vector.load %arg8[%c0, %c0_1] : memref<128x128xf32, #tpu.memory_space<vmem>>, vector<128x128xf32>
    %c0_2 = arith.constant 0 : index
    %c0_3 = arith.constant 0 : index
    %4 = vector.load %arg3[%c0_2, %c0_3] : memref<128x128xbf16, #tpu.memory_space<vmem>>, vector<128x128xbf16>
    %c0_4 = arith.constant 0 : index
    %c0_5 = arith.constant 0 : index
    %5 = vector.load %arg4[%c0_4, %c0_5] : memref<128x128xbf16, #tpu.memory_space<vmem>>, vector<128x128xbf16>
    %cst = arith.constant dense<0.000000e+00> : vector<128x128xf32>
    %6 = tpu.matmul %4, %5, %cst {dimension_numbers = #tpu.dot_dimension_numbers<[1], [0], [0], [1], [0, 0, 1, 1], [], []>} : vector<128x128xbf16>, vector<128x128xbf16>, vector<128x128xf32> -> vector<128x128xf32>
    %7 = arith.addf %3, %6 : vector<128x128xf32>
    %c0_6 = arith.constant 0 : index
    %c0_7 = arith.constant 0 : index
    %8 = vector.load %arg8[%c0_6, %c0_7] : memref<128x128xf32, #tpu.memory_space<vmem>>, vector<128x128xf32>
    tpu.vector_store %arg8[%c0_6, %c0_7], %7 {strides = array<i32>} : memref<128x128xf32, #tpu.memory_space<vmem>>, vector<128x128xf32>,
    %c4_i32 = arith.constant 4 : i32
    %9 = arith.cmpi eq, %arg2, %c4_i32 : i32
    %10 = arith.extui %9 : i1 to i32
    %c0_i32_8 = arith.constant 0 : i32
    %11 = arith.cmpi ne, %10, %c0_i32_8 : i32
    scf.if %11 {
      %c0_9 = arith.constant 0 : index
      %c0_10 = arith.constant 0 : index
      %12 = vector.load %arg8[%c0_9, %c0_10] : memref<128x128xf32, #tpu.memory_space<vmem>>, vector<128x128xf32>
      %c0_11 = arith.constant 0 : index
      %c0_12 = arith.constant 0 : index
      %13 = vector.load %arg5[%c0_11, %c0_12] : memref<1x128xf32, #tpu.memory_space<vmem>>, vector<1x128xf32>
      %14 = vector.broadcast %13 : vector<1x128xf32> to vector<128x128xf32>
      %15 = arith.addf %12, %14 : vector<128x128xf32>
      %c0_13 = arith.constant 0 : index
      %c0_14 = arith.constant 0 : index
      %16 = vector.load %arg6[%c0_13, %c0_14] : memref<1x128xf32, #tpu.memory_space<vmem>>, vector<1x128xf32>
      %cst_15 = arith.constant 0.000000e+00 : f32
      %17 = vector.broadcast %cst_15 : f32 to vector<128x128xf32>
      %18 = arith.cmpf oge, %15, %17 : vector<128x128xf32>
      %19 = vector.broadcast %16 : vector<1x128xf32> to vector<128x128xf32>
      %20 = arith.mulf %19, %15 : vector<128x128xf32>
      %21 = arith.select %18, %15, %20 : vector<128x128xi1>, vector<128x128xf32>
      %22 = arith.truncf %21 : vector<128x128xf32> to vector<128x128xbf16>
      %c0_16 = arith.constant 0 : index
      %c0_17 = arith.constant 0 : index
      %23 = vector.load %arg7[%c0_16, %c0_17] : memref<128x128xbf16, #tpu.memory_space<vmem>>, vector<128x128xbf16>
      tpu.vector_store %arg7[%c0_16, %c0_17], %22 {strides = array<i32>} : memref<128x128xbf16, #tpu.memory_space<vmem>>, vector<128x128xbf16>,
    } else {
    }
    return
  }
  func.func @transform_0(%arg0: i32, %arg1: i32, %arg2: i32) -> (i32, i32) {
    %c0_i32 = arith.constant 0 : i32
    return %arg0, %arg2 : i32, i32
  }
  func.func @transform_1(%arg0: i32, %arg1: i32, %arg2: i32) -> (i32, i32) {
    %c0_i32 = arith.constant 0 : i32
    return %arg2, %arg1 : i32, i32
  }
  func.func @transform_2(%arg0: i32, %arg1: i32, %arg2: i32) -> (i32, i32) {
    %c0_i32 = arith.constant 0 : i32
    %c0_i32_0 = arith.constant 0 : i32
    return %c0_i32, %arg1 : i32, i32
  }
  func.func @transform_3(%arg0: i32, %arg1: i32, %arg2: i32) -> (i32, i32) {
    %c0_i32 = arith.constant 0 : i32
    %c0_i32_0 = arith.constant 0 : i32
    return %c0_i32, %arg1 : i32, i32
  }
  func.func @transform_4(%arg0: i32, %arg1: i32, %arg2: i32) -> (i32, i32) {
    %c0_i32 = arith.constant 0 : i32
    return %arg0, %arg1 : i32, i32
  }
}

module attributes {stable_mosaic.version = 11 : i64} {
  func.func @kernel(%arg0: i32, %arg1: i32, %arg2: i32, %arg3: memref<32x384xbf16, #tpu.memory_space<vmem>>, %arg4: memref<384x128xbf16, #tpu.memory_space<vmem>>, %arg5: memref<1x128xf32, #tpu.memory_space<vmem>>, %arg6: memref<32x128xbf16, #tpu.memory_space<vmem>>, %arg7: memref<32x128xbf16, #tpu.memory_space<vmem>>, %arg8: memref<32x128xf32, #tpu.memory_space<vmem>>) attributes {dimension_semantics = [#tpu.dimension_semantics<parallel>, #tpu.dimension_semantics<parallel>, #tpu.dimension_semantics<arbitrary>], iteration_bounds = array<i64: 1, 1, 3>, scalar_prefetch = 0 : i64, scratch_operands = 1 : i64, tpu.core_type = #tpu.core_type<tc>, window_params = [{transform_indices = @transform_0, window_bounds = array<i64: 32, 384>}, {transform_indices = @transform_1, window_bounds = array<i64: 384, 128>}, {transform_indices = @transform_2, window_bounds = array<i64: 1, 128>}, {transform_indices = @transform_3, window_bounds = array<i64: 32, 128>}, {transform_indices = @transform_4, window_bounds = array<i64: 32, 128>}]} {
    %c0_i32 = arith.constant 0 : i32
    %0 = arith.cmpi eq, %arg2, %c0_i32 : i32
    %1 = arith.extui %0 : i1 to i32
    %c0_i32_0 = arith.constant 0 : i32
    %2 = arith.cmpi ne, %1, %c0_i32_0 : i32
    scf.if %2 {
      %cst_9 = arith.constant 0.000000e+00 : f32
      %12 = vector.broadcast %cst_9 : f32 to vector<32x128xf32>
      %c0_10 = arith.constant 0 : index
      %c0_11 = arith.constant 0 : index
      %13 = vector.load %arg8[%c0_10, %c0_11] : memref<32x128xf32, #tpu.memory_space<vmem>>, vector<32x128xf32>
      tpu.vector_store %arg8[%c0_10, %c0_11], %12 {strides = array<i32>} : memref<32x128xf32, #tpu.memory_space<vmem>>, vector<32x128xf32>,
    } else {
    }
    %c0 = arith.constant 0 : index
    %c0_1 = arith.constant 0 : index
    %3 = vector.load %arg8[%c0, %c0_1] : memref<32x128xf32, #tpu.memory_space<vmem>>, vector<32x128xf32>
    %c0_2 = arith.constant 0 : index
    %c0_3 = arith.constant 0 : index
    %4 = vector.load %arg3[%c0_2, %c0_3] : memref<32x384xbf16, #tpu.memory_space<vmem>>, vector<32x384xbf16>
    %c0_4 = arith.constant 0 : index
    %c0_5 = arith.constant 0 : index
    %5 = vector.load %arg4[%c0_4, %c0_5] : memref<384x128xbf16, #tpu.memory_space<vmem>>, vector<384x128xbf16>
    %cst = arith.constant dense<0.000000e+00> : vector<32x128xf32>
    %6 = tpu.matmul %4, %5, %cst {dimension_numbers = #tpu.dot_dimension_numbers<[1], [0], [0], [1], [0, 0, 1, 1], [], []>} : vector<32x384xbf16>, vector<384x128xbf16>, vector<32x128xf32> -> vector<32x128xf32>
    %7 = arith.addf %3, %6 : vector<32x128xf32>
    %c0_6 = arith.constant 0 : index
    %c0_7 = arith.constant 0 : index
    %8 = vector.load %arg8[%c0_6, %c0_7] : memref<32x128xf32, #tpu.memory_space<vmem>>, vector<32x128xf32>
    tpu.vector_store %arg8[%c0_6, %c0_7], %7 {strides = array<i32>} : memref<32x128xf32, #tpu.memory_space<vmem>>, vector<32x128xf32>,
    %c2_i32 = arith.constant 2 : i32
    %9 = arith.cmpi eq, %arg2, %c2_i32 : i32
    %10 = arith.extui %9 : i1 to i32
    %c0_i32_8 = arith.constant 0 : i32
    %11 = arith.cmpi ne, %10, %c0_i32_8 : i32
    scf.if %11 {
      %c0_9 = arith.constant 0 : index
      %c0_10 = arith.constant 0 : index
      %12 = vector.load %arg8[%c0_9, %c0_10] : memref<32x128xf32, #tpu.memory_space<vmem>>, vector<32x128xf32>
      %c0_11 = arith.constant 0 : index
      %c0_12 = arith.constant 0 : index
      %13 = vector.load %arg5[%c0_11, %c0_12] : memref<1x128xf32, #tpu.memory_space<vmem>>, vector<1x128xf32>
      %14 = vector.broadcast %13 : vector<1x128xf32> to vector<32x128xf32>
      %15 = arith.addf %12, %14 : vector<32x128xf32>
      %c0_13 = arith.constant 0 : index
      %c0_14 = arith.constant 0 : index
      %16 = vector.load %arg6[%c0_13, %c0_14] : memref<32x128xbf16, #tpu.memory_space<vmem>>, vector<32x128xbf16>
      %17 = arith.extf %16 : vector<32x128xbf16> to vector<32x128xf32>
      %18 = arith.addf %15, %17 : vector<32x128xf32>
      %19 = arith.truncf %18 : vector<32x128xf32> to vector<32x128xbf16>
      %c0_15 = arith.constant 0 : index
      %c0_16 = arith.constant 0 : index
      %20 = vector.load %arg7[%c0_15, %c0_16] : memref<32x128xbf16, #tpu.memory_space<vmem>>, vector<32x128xbf16>
      tpu.vector_store %arg7[%c0_15, %c0_16], %19 {strides = array<i32>} : memref<32x128xbf16, #tpu.memory_space<vmem>>, vector<32x128xbf16>,
    } else {
    }
    return
  }
  func.func @transform_0(%arg0: i32, %arg1: i32, %arg2: i32) -> (i32, i32) {
    %c0_i32 = arith.constant 0 : i32
    return %arg0, %arg2 : i32, i32
  }
  func.func @transform_1(%arg0: i32, %arg1: i32, %arg2: i32) -> (i32, i32) {
    %c0_i32 = arith.constant 0 : i32
    return %arg2, %arg1 : i32, i32
  }
  func.func @transform_2(%arg0: i32, %arg1: i32, %arg2: i32) -> (i32, i32) {
    %c0_i32 = arith.constant 0 : i32
    %c0_i32_0 = arith.constant 0 : i32
    return %c0_i32, %arg1 : i32, i32
  }
  func.func @transform_3(%arg0: i32, %arg1: i32, %arg2: i32) -> (i32, i32) {
    %c0_i32 = arith.constant 0 : i32
    return %arg0, %arg1 : i32, i32
  }
  func.func @transform_4(%arg0: i32, %arg1: i32, %arg2: i32) -> (i32, i32) {
    %c0_i32 = arith.constant 0 : i32
    return %arg0, %arg1 : i32, i32
  }
}

module attributes {stable_mosaic.version = 11 : i64} {
  func.func @kernel(%arg0: i32, %arg1: i32, %arg2: i32, %arg3: memref<32x128xbf16, #tpu.memory_space<vmem>>, %arg4: memref<128x128xbf16, #tpu.memory_space<vmem>>, %arg5: memref<1x128xf32, #tpu.memory_space<vmem>>, %arg6: memref<32x128xbf16, #tpu.memory_space<vmem>>, %arg7: memref<32x128xf32, #tpu.memory_space<vmem>>) attributes {dimension_semantics = [#tpu.dimension_semantics<parallel>, #tpu.dimension_semantics<parallel>, #tpu.dimension_semantics<arbitrary>], iteration_bounds = array<i64: 1, 1, 1>, scalar_prefetch = 0 : i64, scratch_operands = 1 : i64, tpu.core_type = #tpu.core_type<tc>, window_params = [{transform_indices = @transform_0, window_bounds = array<i64: 32, 128>}, {transform_indices = @transform_1, window_bounds = array<i64: 128, 128>}, {transform_indices = @transform_2, window_bounds = array<i64: 1, 128>}, {transform_indices = @transform_3, window_bounds = array<i64: 32, 128>}]} {
    %c0_i32 = arith.constant 0 : i32
    %0 = arith.cmpi eq, %arg2, %c0_i32 : i32
    %1 = arith.extui %0 : i1 to i32
    %c0_i32_0 = arith.constant 0 : i32
    %2 = arith.cmpi ne, %1, %c0_i32_0 : i32
    scf.if %2 {
      %cst_10 = arith.constant 0.000000e+00 : f32
      %12 = vector.broadcast %cst_10 : f32 to vector<32x128xf32>
      %c0_11 = arith.constant 0 : index
      %c0_12 = arith.constant 0 : index
      %13 = vector.load %arg7[%c0_11, %c0_12] : memref<32x128xf32, #tpu.memory_space<vmem>>, vector<32x128xf32>
      tpu.vector_store %arg7[%c0_11, %c0_12], %12 {strides = array<i32>} : memref<32x128xf32, #tpu.memory_space<vmem>>, vector<32x128xf32>,
    } else {
    }
    %c0 = arith.constant 0 : index
    %c0_1 = arith.constant 0 : index
    %3 = vector.load %arg7[%c0, %c0_1] : memref<32x128xf32, #tpu.memory_space<vmem>>, vector<32x128xf32>
    %c0_2 = arith.constant 0 : index
    %c0_3 = arith.constant 0 : index
    %4 = vector.load %arg3[%c0_2, %c0_3] : memref<32x128xbf16, #tpu.memory_space<vmem>>, vector<32x128xbf16>
    %c0_4 = arith.constant 0 : index
    %c0_5 = arith.constant 0 : index
    %5 = vector.load %arg4[%c0_4, %c0_5] : memref<128x128xbf16, #tpu.memory_space<vmem>>, vector<128x128xbf16>
    %cst = arith.constant dense<0.000000e+00> : vector<32x128xf32>
    %6 = tpu.matmul %4, %5, %cst {dimension_numbers = #tpu.dot_dimension_numbers<[1], [0], [0], [1], [0, 0, 1, 1], [], []>} : vector<32x128xbf16>, vector<128x128xbf16>, vector<32x128xf32> -> vector<32x128xf32>
    %7 = arith.addf %3, %6 : vector<32x128xf32>
    %c0_6 = arith.constant 0 : index
    %c0_7 = arith.constant 0 : index
    %8 = vector.load %arg7[%c0_6, %c0_7] : memref<32x128xf32, #tpu.memory_space<vmem>>, vector<32x128xf32>
    tpu.vector_store %arg7[%c0_6, %c0_7], %7 {strides = array<i32>} : memref<32x128xf32, #tpu.memory_space<vmem>>, vector<32x128xf32>,
    %c0_i32_8 = arith.constant 0 : i32
    %9 = arith.cmpi eq, %arg2, %c0_i32_8 : i32
    %10 = arith.extui %9 : i1 to i32
    %c0_i32_9 = arith.constant 0 : i32
    %11 = arith.cmpi ne, %10, %c0_i32_9 : i32
    scf.if %11 {
      %c0_10 = arith.constant 0 : index
      %c0_11 = arith.constant 0 : index
      %12 = vector.load %arg7[%c0_10, %c0_11] : memref<32x128xf32, #tpu.memory_space<vmem>>, vector<32x128xf32>
      %c0_12 = arith.constant 0 : index
      %c0_13 = arith.constant 0 : index
      %13 = vector.load %arg5[%c0_12, %c0_13] : memref<1x128xf32, #tpu.memory_space<vmem>>, vector<1x128xf32>
      %14 = vector.broadcast %13 : vector<1x128xf32> to vector<32x128xf32>
      %15 = arith.addf %12, %14 : vector<32x128xf32>
      %16 = arith.truncf %15 : vector<32x128xf32> to vector<32x128xbf16>
      %c0_14 = arith.constant 0 : index
      %c0_15 = arith.constant 0 : index
      %17 = vector.load %arg6[%c0_14, %c0_15] : memref<32x128xbf16, #tpu.memory_space<vmem>>, vector<32x128xbf16>
      tpu.vector_store %arg6[%c0_14, %c0_15], %16 {strides = array<i32>} : memref<32x128xbf16, #tpu.memory_space<vmem>>, vector<32x128xbf16>,
    } else {
    }
    return
  }
  func.func @transform_0(%arg0: i32, %arg1: i32, %arg2: i32) -> (i32, i32) {
    %c0_i32 = arith.constant 0 : i32
    return %arg0, %arg2 : i32, i32
  }
  func.func @transform_1(%arg0: i32, %arg1: i32, %arg2: i32) -> (i32, i32) {
    %c0_i32 = arith.constant 0 : i32
    return %arg2, %arg1 : i32, i32
  }
  func.func @transform_2(%arg0: i32, %arg1: i32, %arg2: i32) -> (i32, i32) {
    %c0_i32 = arith.constant 0 : i32
    %c0_i32_0 = arith.constant 0 : i32
    return %c0_i32, %arg1 : i32, i32
  }
  func.func @transform_3(%arg0: i32, %arg1: i32, %arg2: i32) -> (i32, i32) {
    %c0_i32 = arith.constant 0 : i32
    return %arg0, %arg1 : i32, i32
  }
}

module attributes {stable_mosaic.version = 11 : i64} {
  func.func @kernel(%arg0: i32, %arg1: i32, %arg2: i32, %arg3: memref<32x384xbf16, #tpu.memory_space<vmem>>, %arg4: memref<384x256xbf16, #tpu.memory_space<vmem>>, %arg5: memref<1x256xf32, #tpu.memory_space<vmem>>, %arg6: memref<1x256xf32, #tpu.memory_space<vmem>>, %arg7: memref<32x256xbf16, #tpu.memory_space<vmem>>, %arg8: memref<32x256xf32, #tpu.memory_space<vmem>>) attributes {dimension_semantics = [#tpu.dimension_semantics<parallel>, #tpu.dimension_semantics<parallel>, #tpu.dimension_semantics<arbitrary>], iteration_bounds = array<i64: 1, 1, 3>, scalar_prefetch = 0 : i64, scratch_operands = 1 : i64, tpu.core_type = #tpu.core_type<tc>, window_params = [{transform_indices = @transform_0, window_bounds = array<i64: 32, 384>}, {transform_indices = @transform_1, window_bounds = array<i64: 384, 256>}, {transform_indices = @transform_2, window_bounds = array<i64: 1, 256>}, {transform_indices = @transform_3, window_bounds = array<i64: 1, 256>}, {transform_indices = @transform_4, window_bounds = array<i64: 32, 256>}]} {
    %c0_i32 = arith.constant 0 : i32
    %0 = arith.cmpi eq, %arg2, %c0_i32 : i32
    %1 = arith.extui %0 : i1 to i32
    %c0_i32_0 = arith.constant 0 : i32
    %2 = arith.cmpi ne, %1, %c0_i32_0 : i32
    scf.if %2 {
      %cst_9 = arith.constant 0.000000e+00 : f32
      %12 = vector.broadcast %cst_9 : f32 to vector<32x256xf32>
      %c0_10 = arith.constant 0 : index
      %c0_11 = arith.constant 0 : index
      %13 = vector.load %arg8[%c0_10, %c0_11] : memref<32x256xf32, #tpu.memory_space<vmem>>, vector<32x256xf32>
      tpu.vector_store %arg8[%c0_10, %c0_11], %12 {strides = array<i32>} : memref<32x256xf32, #tpu.memory_space<vmem>>, vector<32x256xf32>,
    } else {
    }
    %c0 = arith.constant 0 : index
    %c0_1 = arith.constant 0 : index
    %3 = vector.load %arg8[%c0, %c0_1] : memref<32x256xf32, #tpu.memory_space<vmem>>, vector<32x256xf32>
    %c0_2 = arith.constant 0 : index
    %c0_3 = arith.constant 0 : index
    %4 = vector.load %arg3[%c0_2, %c0_3] : memref<32x384xbf16, #tpu.memory_space<vmem>>, vector<32x384xbf16>
    %c0_4 = arith.constant 0 : index
    %c0_5 = arith.constant 0 : index
    %5 = vector.load %arg4[%c0_4, %c0_5] : memref<384x256xbf16, #tpu.memory_space<vmem>>, vector<384x256xbf16>
    %cst = arith.constant dense<0.000000e+00> : vector<32x256xf32>
    %6 = tpu.matmul %4, %5, %cst {dimension_numbers = #tpu.dot_dimension_numbers<[1], [0], [0], [1], [0, 0, 1, 1], [], []>} : vector<32x384xbf16>, vector<384x256xbf16>, vector<32x256xf32> -> vector<32x256xf32>
    %7 = arith.addf %3, %6 : vector<32x256xf32>
    %c0_6 = arith.constant 0 : index
    %c0_7 = arith.constant 0 : index
    %8 = vector.load %arg8[%c0_6, %c0_7] : memref<32x256xf32, #tpu.memory_space<vmem>>, vector<32x256xf32>
    tpu.vector_store %arg8[%c0_6, %c0_7], %7 {strides = array<i32>} : memref<32x256xf32, #tpu.memory_space<vmem>>, vector<32x256xf32>,
    %c2_i32 = arith.constant 2 : i32
    %9 = arith.cmpi eq, %arg2, %c2_i32 : i32
    %10 = arith.extui %9 : i1 to i32
    %c0_i32_8 = arith.constant 0 : i32
    %11 = arith.cmpi ne, %10, %c0_i32_8 : i32
    scf.if %11 {
      %c0_9 = arith.constant 0 : index
      %c0_10 = arith.constant 0 : index
      %12 = vector.load %arg8[%c0_9, %c0_10] : memref<32x256xf32, #tpu.memory_space<vmem>>, vector<32x256xf32>
      %c0_11 = arith.constant 0 : index
      %c0_12 = arith.constant 0 : index
      %13 = vector.load %arg5[%c0_11, %c0_12] : memref<1x256xf32, #tpu.memory_space<vmem>>, vector<1x256xf32>
      %14 = vector.broadcast %13 : vector<1x256xf32> to vector<32x256xf32>
      %15 = arith.addf %12, %14 : vector<32x256xf32>
      %c0_13 = arith.constant 0 : index
      %c0_14 = arith.constant 0 : index
      %16 = vector.load %arg6[%c0_13, %c0_14] : memref<1x256xf32, #tpu.memory_space<vmem>>, vector<1x256xf32>
      %cst_15 = arith.constant 0.000000e+00 : f32
      %17 = vector.broadcast %cst_15 : f32 to vector<32x256xf32>
      %18 = arith.cmpf oge, %15, %17 : vector<32x256xf32>
      %19 = vector.broadcast %16 : vector<1x256xf32> to vector<32x256xf32>
      %20 = arith.mulf %19, %15 : vector<32x256xf32>
      %21 = arith.select %18, %15, %20 : vector<32x256xi1>, vector<32x256xf32>
      %22 = arith.truncf %21 : vector<32x256xf32> to vector<32x256xbf16>
      %c0_16 = arith.constant 0 : index
      %c0_17 = arith.constant 0 : index
      %23 = vector.load %arg7[%c0_16, %c0_17] : memref<32x256xbf16, #tpu.memory_space<vmem>>, vector<32x256xbf16>
      tpu.vector_store %arg7[%c0_16, %c0_17], %22 {strides = array<i32>} : memref<32x256xbf16, #tpu.memory_space<vmem>>, vector<32x256xbf16>,
    } else {
    }
    return
  }
  func.func @transform_0(%arg0: i32, %arg1: i32, %arg2: i32) -> (i32, i32) {
    %c0_i32 = arith.constant 0 : i32
    return %arg0, %arg2 : i32, i32
  }
  func.func @transform_1(%arg0: i32, %arg1: i32, %arg2: i32) -> (i32, i32) {
    %c0_i32 = arith.constant 0 : i32
    return %arg2, %arg1 : i32, i32
  }
  func.func @transform_2(%arg0: i32, %arg1: i32, %arg2: i32) -> (i32, i32) {
    %c0_i32 = arith.constant 0 : i32
    %c0_i32_0 = arith.constant 0 : i32
    return %c0_i32, %arg1 : i32, i32
  }
  func.func @transform_3(%arg0: i32, %arg1: i32, %arg2: i32) -> (i32, i32) {
    %c0_i32 = arith.constant 0 : i32
    %c0_i32_0 = arith.constant 0 : i32
    return %c0_i32, %arg1 : i32, i32
  }
  func.func @transform_4(%arg0: i32, %arg1: i32, %arg2: i32) -> (i32, i32) {
    %c0_i32 = arith.constant 0 : i32
    return %arg0, %arg1 : i32, i32
  }
}

module attributes {stable_mosaic.version = 11 : i64} {
  func.func @kernel(%arg0: i32, %arg1: i32, %arg2: i32, %arg3: memref<16x128xbf16, #tpu.memory_space<vmem>>, %arg4: memref<128x256xbf16, #tpu.memory_space<vmem>>, %arg5: memref<1x256xf32, #tpu.memory_space<vmem>>, %arg6: memref<16x256xbf16, #tpu.memory_space<vmem>>, %arg7: memref<16x256xf32, #tpu.memory_space<vmem>>) attributes {dimension_semantics = [#tpu.dimension_semantics<parallel>, #tpu.dimension_semantics<parallel>, #tpu.dimension_semantics<arbitrary>], iteration_bounds = array<i64: 1, 1, 1>, scalar_prefetch = 0 : i64, scratch_operands = 1 : i64, tpu.core_type = #tpu.core_type<tc>, window_params = [{transform_indices = @transform_0, window_bounds = array<i64: 16, 128>}, {transform_indices = @transform_1, window_bounds = array<i64: 128, 256>}, {transform_indices = @transform_2, window_bounds = array<i64: 1, 256>}, {transform_indices = @transform_3, window_bounds = array<i64: 16, 256>}]} {
    %c0_i32 = arith.constant 0 : i32
    %0 = arith.cmpi eq, %arg2, %c0_i32 : i32
    %1 = arith.extui %0 : i1 to i32
    %c0_i32_0 = arith.constant 0 : i32
    %2 = arith.cmpi ne, %1, %c0_i32_0 : i32
    scf.if %2 {
      %cst_10 = arith.constant 0.000000e+00 : f32
      %12 = vector.broadcast %cst_10 : f32 to vector<16x256xf32>
      %c0_11 = arith.constant 0 : index
      %c0_12 = arith.constant 0 : index
      %13 = vector.load %arg7[%c0_11, %c0_12] : memref<16x256xf32, #tpu.memory_space<vmem>>, vector<16x256xf32>
      tpu.vector_store %arg7[%c0_11, %c0_12], %12 {strides = array<i32>} : memref<16x256xf32, #tpu.memory_space<vmem>>, vector<16x256xf32>,
    } else {
    }
    %c0 = arith.constant 0 : index
    %c0_1 = arith.constant 0 : index
    %3 = vector.load %arg7[%c0, %c0_1] : memref<16x256xf32, #tpu.memory_space<vmem>>, vector<16x256xf32>
    %c0_2 = arith.constant 0 : index
    %c0_3 = arith.constant 0 : index
    %4 = vector.load %arg3[%c0_2, %c0_3] : memref<16x128xbf16, #tpu.memory_space<vmem>>, vector<16x128xbf16>
    %c0_4 = arith.constant 0 : index
    %c0_5 = arith.constant 0 : index
    %5 = vector.load %arg4[%c0_4, %c0_5] : memref<128x256xbf16, #tpu.memory_space<vmem>>, vector<128x256xbf16>
    %cst = arith.constant dense<0.000000e+00> : vector<16x256xf32>
    %6 = tpu.matmul %4, %5, %cst {dimension_numbers = #tpu.dot_dimension_numbers<[1], [0], [0], [1], [0, 0, 1, 1], [], []>} : vector<16x128xbf16>, vector<128x256xbf16>, vector<16x256xf32> -> vector<16x256xf32>
    %7 = arith.addf %3, %6 : vector<16x256xf32>
    %c0_6 = arith.constant 0 : index
    %c0_7 = arith.constant 0 : index
    %8 = vector.load %arg7[%c0_6, %c0_7] : memref<16x256xf32, #tpu.memory_space<vmem>>, vector<16x256xf32>
    tpu.vector_store %arg7[%c0_6, %c0_7], %7 {strides = array<i32>} : memref<16x256xf32, #tpu.memory_space<vmem>>, vector<16x256xf32>,
    %c0_i32_8 = arith.constant 0 : i32
    %9 = arith.cmpi eq, %arg2, %c0_i32_8 : i32
    %10 = arith.extui %9 : i1 to i32
    %c0_i32_9 = arith.constant 0 : i32
    %11 = arith.cmpi ne, %10, %c0_i32_9 : i32
    scf.if %11 {
      %c0_10 = arith.constant 0 : index
      %c0_11 = arith.constant 0 : index
      %12 = vector.load %arg7[%c0_10, %c0_11] : memref<16x256xf32, #tpu.memory_space<vmem>>, vector<16x256xf32>
      %c0_12 = arith.constant 0 : index
      %c0_13 = arith.constant 0 : index
      %13 = vector.load %arg5[%c0_12, %c0_13] : memref<1x256xf32, #tpu.memory_space<vmem>>, vector<1x256xf32>
      %14 = vector.broadcast %13 : vector<1x256xf32> to vector<16x256xf32>
      %15 = arith.addf %12, %14 : vector<16x256xf32>
      %16 = arith.truncf %15 : vector<16x256xf32> to vector<16x256xbf16>
      %c0_14 = arith.constant 0 : index
      %c0_15 = arith.constant 0 : index
      %17 = vector.load %arg6[%c0_14, %c0_15] : memref<16x256xbf16, #tpu.memory_space<vmem>>, vector<16x256xbf16>
      tpu.vector_store %arg6[%c0_14, %c0_15], %16 {strides = array<i32>} : memref<16x256xbf16, #tpu.memory_space<vmem>>, vector<16x256xbf16>,
    } else {
    }
    return
  }
  func.func @transform_0(%arg0: i32, %arg1: i32, %arg2: i32) -> (i32, i32) {
    %c0_i32 = arith.constant 0 : i32
    return %arg0, %arg2 : i32, i32
  }
  func.func @transform_1(%arg0: i32, %arg1: i32, %arg2: i32) -> (i32, i32) {
    %c0_i32 = arith.constant 0 : i32
    return %arg2, %arg1 : i32, i32
  }
  func.func @transform_2(%arg0: i32, %arg1: i32, %arg2: i32) -> (i32, i32) {
    %c0_i32 = arith.constant 0 : i32
    %c0_i32_0 = arith.constant 0 : i32
    return %c0_i32, %arg1 : i32, i32
  }
  func.func @transform_3(%arg0: i32, %arg1: i32, %arg2: i32) -> (i32, i32) {
    %c0_i32 = arith.constant 0 : i32
    return %arg0, %arg1 : i32, i32
  }
}

module attributes {stable_mosaic.version = 11 : i64} {
  func.func @kernel(%arg0: i32, %arg1: i32, %arg2: i32, %arg3: memref<16x384xbf16, #tpu.memory_space<vmem>>, %arg4: memref<384x256xbf16, #tpu.memory_space<vmem>>, %arg5: memref<1x256xf32, #tpu.memory_space<vmem>>, %arg6: memref<16x256xbf16, #tpu.memory_space<vmem>>, %arg7: memref<16x256xbf16, #tpu.memory_space<vmem>>, %arg8: memref<16x256xf32, #tpu.memory_space<vmem>>) attributes {dimension_semantics = [#tpu.dimension_semantics<parallel>, #tpu.dimension_semantics<parallel>, #tpu.dimension_semantics<arbitrary>], iteration_bounds = array<i64: 1, 1, 6>, scalar_prefetch = 0 : i64, scratch_operands = 1 : i64, tpu.core_type = #tpu.core_type<tc>, window_params = [{transform_indices = @transform_0, window_bounds = array<i64: 16, 384>}, {transform_indices = @transform_1, window_bounds = array<i64: 384, 256>}, {transform_indices = @transform_2, window_bounds = array<i64: 1, 256>}, {transform_indices = @transform_3, window_bounds = array<i64: 16, 256>}, {transform_indices = @transform_4, window_bounds = array<i64: 16, 256>}]} {
    %c0_i32 = arith.constant 0 : i32
    %0 = arith.cmpi eq, %arg2, %c0_i32 : i32
    %1 = arith.extui %0 : i1 to i32
    %c0_i32_0 = arith.constant 0 : i32
    %2 = arith.cmpi ne, %1, %c0_i32_0 : i32
    scf.if %2 {
      %cst_9 = arith.constant 0.000000e+00 : f32
      %12 = vector.broadcast %cst_9 : f32 to vector<16x256xf32>
      %c0_10 = arith.constant 0 : index
      %c0_11 = arith.constant 0 : index
      %13 = vector.load %arg8[%c0_10, %c0_11] : memref<16x256xf32, #tpu.memory_space<vmem>>, vector<16x256xf32>
      tpu.vector_store %arg8[%c0_10, %c0_11], %12 {strides = array<i32>} : memref<16x256xf32, #tpu.memory_space<vmem>>, vector<16x256xf32>,
    } else {
    }
    %c0 = arith.constant 0 : index
    %c0_1 = arith.constant 0 : index
    %3 = vector.load %arg8[%c0, %c0_1] : memref<16x256xf32, #tpu.memory_space<vmem>>, vector<16x256xf32>
    %c0_2 = arith.constant 0 : index
    %c0_3 = arith.constant 0 : index
    %4 = vector.load %arg3[%c0_2, %c0_3] : memref<16x384xbf16, #tpu.memory_space<vmem>>, vector<16x384xbf16>
    %c0_4 = arith.constant 0 : index
    %c0_5 = arith.constant 0 : index
    %5 = vector.load %arg4[%c0_4, %c0_5] : memref<384x256xbf16, #tpu.memory_space<vmem>>, vector<384x256xbf16>
    %cst = arith.constant dense<0.000000e+00> : vector<16x256xf32>
    %6 = tpu.matmul %4, %5, %cst {dimension_numbers = #tpu.dot_dimension_numbers<[1], [0], [0], [1], [0, 0, 1, 1], [], []>} : vector<16x384xbf16>, vector<384x256xbf16>, vector<16x256xf32> -> vector<16x256xf32>
    %7 = arith.addf %3, %6 : vector<16x256xf32>
    %c0_6 = arith.constant 0 : index
    %c0_7 = arith.constant 0 : index
    %8 = vector.load %arg8[%c0_6, %c0_7] : memref<16x256xf32, #tpu.memory_space<vmem>>, vector<16x256xf32>
    tpu.vector_store %arg8[%c0_6, %c0_7], %7 {strides = array<i32>} : memref<16x256xf32, #tpu.memory_space<vmem>>, vector<16x256xf32>,
    %c5_i32 = arith.constant 5 : i32
    %9 = arith.cmpi eq, %arg2, %c5_i32 : i32
    %10 = arith.extui %9 : i1 to i32
    %c0_i32_8 = arith.constant 0 : i32
    %11 = arith.cmpi ne, %10, %c0_i32_8 : i32
    scf.if %11 {
      %c0_9 = arith.constant 0 : index
      %c0_10 = arith.constant 0 : index
      %12 = vector.load %arg8[%c0_9, %c0_10] : memref<16x256xf32, #tpu.memory_space<vmem>>, vector<16x256xf32>
      %c0_11 = arith.constant 0 : index
      %c0_12 = arith.constant 0 : index
      %13 = vector.load %arg5[%c0_11, %c0_12] : memref<1x256xf32, #tpu.memory_space<vmem>>, vector<1x256xf32>
      %14 = vector.broadcast %13 : vector<1x256xf32> to vector<16x256xf32>
      %15 = arith.addf %12, %14 : vector<16x256xf32>
      %c0_13 = arith.constant 0 : index
      %c0_14 = arith.constant 0 : index
      %16 = vector.load %arg6[%c0_13, %c0_14] : memref<16x256xbf16, #tpu.memory_space<vmem>>, vector<16x256xbf16>
      %17 = arith.extf %16 : vector<16x256xbf16> to vector<16x256xf32>
      %18 = arith.addf %15, %17 : vector<16x256xf32>
      %19 = arith.truncf %18 : vector<16x256xf32> to vector<16x256xbf16>
      %c0_15 = arith.constant 0 : index
      %c0_16 = arith.constant 0 : index
      %20 = vector.load %arg7[%c0_15, %c0_16] : memref<16x256xbf16, #tpu.memory_space<vmem>>, vector<16x256xbf16>
      tpu.vector_store %arg7[%c0_15, %c0_16], %19 {strides = array<i32>} : memref<16x256xbf16, #tpu.memory_space<vmem>>, vector<16x256xbf16>,
    } else {
    }
    return
  }
  func.func @transform_0(%arg0: i32, %arg1: i32, %arg2: i32) -> (i32, i32) {
    %c0_i32 = arith.constant 0 : i32
    return %arg0, %arg2 : i32, i32
  }
  func.func @transform_1(%arg0: i32, %arg1: i32, %arg2: i32) -> (i32, i32) {
    %c0_i32 = arith.constant 0 : i32
    return %arg2, %arg1 : i32, i32
  }
  func.func @transform_2(%arg0: i32, %arg1: i32, %arg2: i32) -> (i32, i32) {
    %c0_i32 = arith.constant 0 : i32
    %c0_i32_0 = arith.constant 0 : i32
    return %c0_i32, %arg1 : i32, i32
  }
  func.func @transform_3(%arg0: i32, %arg1: i32, %arg2: i32) -> (i32, i32) {
    %c0_i32 = arith.constant 0 : i32
    return %arg0, %arg1 : i32, i32
  }
  func.func @transform_4(%arg0: i32, %arg1: i32, %arg2: i32) -> (i32, i32) {
    %c0_i32 = arith.constant 0 : i32
    return %arg0, %arg1 : i32, i32
  }
}

module attributes {stable_mosaic.version = 11 : i64} {
  func.func @kernel(%arg0: i32, %arg1: i32, %arg2: i32, %arg3: memref<16x384xbf16, #tpu.memory_space<vmem>>, %arg4: memref<384x256xbf16, #tpu.memory_space<vmem>>, %arg5: memref<1x256xf32, #tpu.memory_space<vmem>>, %arg6: memref<1x256xf32, #tpu.memory_space<vmem>>, %arg7: memref<16x256xbf16, #tpu.memory_space<vmem>>, %arg8: memref<16x256xf32, #tpu.memory_space<vmem>>) attributes {dimension_semantics = [#tpu.dimension_semantics<parallel>, #tpu.dimension_semantics<parallel>, #tpu.dimension_semantics<arbitrary>], iteration_bounds = array<i64: 1, 2, 6>, scalar_prefetch = 0 : i64, scratch_operands = 1 : i64, tpu.core_type = #tpu.core_type<tc>, window_params = [{transform_indices = @transform_0, window_bounds = array<i64: 16, 384>}, {transform_indices = @transform_1, window_bounds = array<i64: 384, 256>}, {transform_indices = @transform_2, window_bounds = array<i64: 1, 256>}, {transform_indices = @transform_3, window_bounds = array<i64: 1, 256>}, {transform_indices = @transform_4, window_bounds = array<i64: 16, 256>}]} {
    %c0_i32 = arith.constant 0 : i32
    %0 = arith.cmpi eq, %arg2, %c0_i32 : i32
    %1 = arith.extui %0 : i1 to i32
    %c0_i32_0 = arith.constant 0 : i32
    %2 = arith.cmpi ne, %1, %c0_i32_0 : i32
    scf.if %2 {
      %cst_9 = arith.constant 0.000000e+00 : f32
      %12 = vector.broadcast %cst_9 : f32 to vector<16x256xf32>
      %c0_10 = arith.constant 0 : index
      %c0_11 = arith.constant 0 : index
      %13 = vector.load %arg8[%c0_10, %c0_11] : memref<16x256xf32, #tpu.memory_space<vmem>>, vector<16x256xf32>
      tpu.vector_store %arg8[%c0_10, %c0_11], %12 {strides = array<i32>} : memref<16x256xf32, #tpu.memory_space<vmem>>, vector<16x256xf32>,
    } else {
    }
    %c0 = arith.constant 0 : index
    %c0_1 = arith.constant 0 : index
    %3 = vector.load %arg8[%c0, %c0_1] : memref<16x256xf32, #tpu.memory_space<vmem>>, vector<16x256xf32>
    %c0_2 = arith.constant 0 : index
    %c0_3 = arith.constant 0 : index
    %4 = vector.load %arg3[%c0_2, %c0_3] : memref<16x384xbf16, #tpu.memory_space<vmem>>, vector<16x384xbf16>
    %c0_4 = arith.constant 0 : index
    %c0_5 = arith.constant 0 : index
    %5 = vector.load %arg4[%c0_4, %c0_5] : memref<384x256xbf16, #tpu.memory_space<vmem>>, vector<384x256xbf16>
    %cst = arith.constant dense<0.000000e+00> : vector<16x256xf32>
    %6 = tpu.matmul %4, %5, %cst {dimension_numbers = #tpu.dot_dimension_numbers<[1], [0], [0], [1], [0, 0, 1, 1], [], []>} : vector<16x384xbf16>, vector<384x256xbf16>, vector<16x256xf32> -> vector<16x256xf32>
    %7 = arith.addf %3, %6 : vector<16x256xf32>
    %c0_6 = arith.constant 0 : index
    %c0_7 = arith.constant 0 : index
    %8 = vector.load %arg8[%c0_6, %c0_7] : memref<16x256xf32, #tpu.memory_space<vmem>>, vector<16x256xf32>
    tpu.vector_store %arg8[%c0_6, %c0_7], %7 {strides = array<i32>} : memref<16x256xf32, #tpu.memory_space<vmem>>, vector<16x256xf32>,
    %c5_i32 = arith.constant 5 : i32
    %9 = arith.cmpi eq, %arg2, %c5_i32 : i32
    %10 = arith.extui %9 : i1 to i32
    %c0_i32_8 = arith.constant 0 : i32
    %11 = arith.cmpi ne, %10, %c0_i32_8 : i32
    scf.if %11 {
      %c0_9 = arith.constant 0 : index
      %c0_10 = arith.constant 0 : index
      %12 = vector.load %arg8[%c0_9, %c0_10] : memref<16x256xf32, #tpu.memory_space<vmem>>, vector<16x256xf32>
      %c0_11 = arith.constant 0 : index
      %c0_12 = arith.constant 0 : index
      %13 = vector.load %arg5[%c0_11, %c0_12] : memref<1x256xf32, #tpu.memory_space<vmem>>, vector<1x256xf32>
      %14 = vector.broadcast %13 : vector<1x256xf32> to vector<16x256xf32>
      %15 = arith.addf %12, %14 : vector<16x256xf32>
      %c0_13 = arith.constant 0 : index
      %c0_14 = arith.constant 0 : index
      %16 = vector.load %arg6[%c0_13, %c0_14] : memref<1x256xf32, #tpu.memory_space<vmem>>, vector<1x256xf32>
      %cst_15 = arith.constant 0.000000e+00 : f32
      %17 = vector.broadcast %cst_15 : f32 to vector<16x256xf32>
      %18 = arith.cmpf oge, %15, %17 : vector<16x256xf32>
      %19 = vector.broadcast %16 : vector<1x256xf32> to vector<16x256xf32>
      %20 = arith.mulf %19, %15 : vector<16x256xf32>
      %21 = arith.select %18, %15, %20 : vector<16x256xi1>, vector<16x256xf32>
      %22 = arith.truncf %21 : vector<16x256xf32> to vector<16x256xbf16>
      %c0_16 = arith.constant 0 : index
      %c0_17 = arith.constant 0 : index
      %23 = vector.load %arg7[%c0_16, %c0_17] : memref<16x256xbf16, #tpu.memory_space<vmem>>, vector<16x256xbf16>
      tpu.vector_store %arg7[%c0_16, %c0_17], %22 {strides = array<i32>} : memref<16x256xbf16, #tpu.memory_space<vmem>>, vector<16x256xbf16>,
    } else {
    }
    return
  }
  func.func @transform_0(%arg0: i32, %arg1: i32, %arg2: i32) -> (i32, i32) {
    %c0_i32 = arith.constant 0 : i32
    return %arg0, %arg2 : i32, i32
  }
  func.func @transform_1(%arg0: i32, %arg1: i32, %arg2: i32) -> (i32, i32) {
    %c0_i32 = arith.constant 0 : i32
    return %arg2, %arg1 : i32, i32
  }
  func.func @transform_2(%arg0: i32, %arg1: i32, %arg2: i32) -> (i32, i32) {
    %c0_i32 = arith.constant 0 : i32
    %c0_i32_0 = arith.constant 0 : i32
    return %c0_i32, %arg1 : i32, i32
  }
  func.func @transform_3(%arg0: i32, %arg1: i32, %arg2: i32) -> (i32, i32) {
    %c0_i32 = arith.constant 0 : i32
    %c0_i32_0 = arith.constant 0 : i32
    return %c0_i32, %arg1 : i32, i32
  }
  func.func @transform_4(%arg0: i32, %arg1: i32, %arg2: i32) -> (i32, i32) {
    %c0_i32 = arith.constant 0 : i32
    return %arg0, %arg1 : i32, i32
  }
}

module attributes {stable_mosaic.version = 11 : i64} {
  func.func @kernel(%arg0: i32, %arg1: i32, %arg2: i32, %arg3: memref<16x256xbf16, #tpu.memory_space<vmem>>, %arg4: memref<256x256xbf16, #tpu.memory_space<vmem>>, %arg5: memref<1x256xf32, #tpu.memory_space<vmem>>, %arg6: memref<16x256xbf16, #tpu.memory_space<vmem>>, %arg7: memref<16x256xf32, #tpu.memory_space<vmem>>) attributes {dimension_semantics = [#tpu.dimension_semantics<parallel>, #tpu.dimension_semantics<parallel>, #tpu.dimension_semantics<arbitrary>], iteration_bounds = array<i64: 1, 2, 1>, scalar_prefetch = 0 : i64, scratch_operands = 1 : i64, tpu.core_type = #tpu.core_type<tc>, window_params = [{transform_indices = @transform_0, window_bounds = array<i64: 16, 256>}, {transform_indices = @transform_1, window_bounds = array<i64: 256, 256>}, {transform_indices = @transform_2, window_bounds = array<i64: 1, 256>}, {transform_indices = @transform_3, window_bounds = array<i64: 16, 256>}]} {
    %c0_i32 = arith.constant 0 : i32
    %0 = arith.cmpi eq, %arg2, %c0_i32 : i32
    %1 = arith.extui %0 : i1 to i32
    %c0_i32_0 = arith.constant 0 : i32
    %2 = arith.cmpi ne, %1, %c0_i32_0 : i32
    scf.if %2 {
      %cst_10 = arith.constant 0.000000e+00 : f32
      %12 = vector.broadcast %cst_10 : f32 to vector<16x256xf32>
      %c0_11 = arith.constant 0 : index
      %c0_12 = arith.constant 0 : index
      %13 = vector.load %arg7[%c0_11, %c0_12] : memref<16x256xf32, #tpu.memory_space<vmem>>, vector<16x256xf32>
      tpu.vector_store %arg7[%c0_11, %c0_12], %12 {strides = array<i32>} : memref<16x256xf32, #tpu.memory_space<vmem>>, vector<16x256xf32>,
    } else {
    }
    %c0 = arith.constant 0 : index
    %c0_1 = arith.constant 0 : index
    %3 = vector.load %arg7[%c0, %c0_1] : memref<16x256xf32, #tpu.memory_space<vmem>>, vector<16x256xf32>
    %c0_2 = arith.constant 0 : index
    %c0_3 = arith.constant 0 : index
    %4 = vector.load %arg3[%c0_2, %c0_3] : memref<16x256xbf16, #tpu.memory_space<vmem>>, vector<16x256xbf16>
    %c0_4 = arith.constant 0 : index
    %c0_5 = arith.constant 0 : index
    %5 = vector.load %arg4[%c0_4, %c0_5] : memref<256x256xbf16, #tpu.memory_space<vmem>>, vector<256x256xbf16>
    %cst = arith.constant dense<0.000000e+00> : vector<16x256xf32>
    %6 = tpu.matmul %4, %5, %cst {dimension_numbers = #tpu.dot_dimension_numbers<[1], [0], [0], [1], [0, 0, 1, 1], [], []>} : vector<16x256xbf16>, vector<256x256xbf16>, vector<16x256xf32> -> vector<16x256xf32>
    %7 = arith.addf %3, %6 : vector<16x256xf32>
    %c0_6 = arith.constant 0 : index
    %c0_7 = arith.constant 0 : index
    %8 = vector.load %arg7[%c0_6, %c0_7] : memref<16x256xf32, #tpu.memory_space<vmem>>, vector<16x256xf32>
    tpu.vector_store %arg7[%c0_6, %c0_7], %7 {strides = array<i32>} : memref<16x256xf32, #tpu.memory_space<vmem>>, vector<16x256xf32>,
    %c0_i32_8 = arith.constant 0 : i32
    %9 = arith.cmpi eq, %arg2, %c0_i32_8 : i32
    %10 = arith.extui %9 : i1 to i32
    %c0_i32_9 = arith.constant 0 : i32
    %11 = arith.cmpi ne, %10, %c0_i32_9 : i32
    scf.if %11 {
      %c0_10 = arith.constant 0 : index
      %c0_11 = arith.constant 0 : index
      %12 = vector.load %arg7[%c0_10, %c0_11] : memref<16x256xf32, #tpu.memory_space<vmem>>, vector<16x256xf32>
      %c0_12 = arith.constant 0 : index
      %c0_13 = arith.constant 0 : index
      %13 = vector.load %arg5[%c0_12, %c0_13] : memref<1x256xf32, #tpu.memory_space<vmem>>, vector<1x256xf32>
      %14 = vector.broadcast %13 : vector<1x256xf32> to vector<16x256xf32>
      %15 = arith.addf %12, %14 : vector<16x256xf32>
      %16 = arith.truncf %15 : vector<16x256xf32> to vector<16x256xbf16>
      %c0_14 = arith.constant 0 : index
      %c0_15 = arith.constant 0 : index
      %17 = vector.load %arg6[%c0_14, %c0_15] : memref<16x256xbf16, #tpu.memory_space<vmem>>, vector<16x256xbf16>
      tpu.vector_store %arg6[%c0_14, %c0_15], %16 {strides = array<i32>} : memref<16x256xbf16, #tpu.memory_space<vmem>>, vector<16x256xbf16>,
    } else {
    }
    return
  }
  func.func @transform_0(%arg0: i32, %arg1: i32, %arg2: i32) -> (i32, i32) {
    %c0_i32 = arith.constant 0 : i32
    return %arg0, %arg2 : i32, i32
  }
  func.func @transform_1(%arg0: i32, %arg1: i32, %arg2: i32) -> (i32, i32) {
    %c0_i32 = arith.constant 0 : i32
    return %arg2, %arg1 : i32, i32
  }
  func.func @transform_2(%arg0: i32, %arg1: i32, %arg2: i32) -> (i32, i32) {
    %c0_i32 = arith.constant 0 : i32
    %c0_i32_0 = arith.constant 0 : i32
    return %c0_i32, %arg1 : i32, i32
  }
  func.func @transform_3(%arg0: i32, %arg1: i32, %arg2: i32) -> (i32, i32) {
    %c0_i32 = arith.constant 0 : i32
    return %arg0, %arg1 : i32, i32
  }
}

module attributes {stable_mosaic.version = 11 : i64} {
  func.func @kernel(%arg0: i32, %arg1: i32, %arg2: i32, %arg3: memref<16x512xbf16, #tpu.memory_space<vmem>>, %arg4: memref<512x256xbf16, #tpu.memory_space<vmem>>, %arg5: memref<1x256xf32, #tpu.memory_space<vmem>>, %arg6: memref<16x256xbf16, #tpu.memory_space<vmem>>, %arg7: memref<16x256xbf16, #tpu.memory_space<vmem>>, %arg8: memref<16x256xf32, #tpu.memory_space<vmem>>) attributes {dimension_semantics = [#tpu.dimension_semantics<parallel>, #tpu.dimension_semantics<parallel>, #tpu.dimension_semantics<arbitrary>], iteration_bounds = array<i64: 1, 2, 9>, scalar_prefetch = 0 : i64, scratch_operands = 1 : i64, tpu.core_type = #tpu.core_type<tc>, window_params = [{transform_indices = @transform_0, window_bounds = array<i64: 16, 512>}, {transform_indices = @transform_1, window_bounds = array<i64: 512, 256>}, {transform_indices = @transform_2, window_bounds = array<i64: 1, 256>}, {transform_indices = @transform_3, window_bounds = array<i64: 16, 256>}, {transform_indices = @transform_4, window_bounds = array<i64: 16, 256>}]} {
    %c0_i32 = arith.constant 0 : i32
    %0 = arith.cmpi eq, %arg2, %c0_i32 : i32
    %1 = arith.extui %0 : i1 to i32
    %c0_i32_0 = arith.constant 0 : i32
    %2 = arith.cmpi ne, %1, %c0_i32_0 : i32
    scf.if %2 {
      %cst_9 = arith.constant 0.000000e+00 : f32
      %12 = vector.broadcast %cst_9 : f32 to vector<16x256xf32>
      %c0_10 = arith.constant 0 : index
      %c0_11 = arith.constant 0 : index
      %13 = vector.load %arg8[%c0_10, %c0_11] : memref<16x256xf32, #tpu.memory_space<vmem>>, vector<16x256xf32>
      tpu.vector_store %arg8[%c0_10, %c0_11], %12 {strides = array<i32>} : memref<16x256xf32, #tpu.memory_space<vmem>>, vector<16x256xf32>,
    } else {
    }
    %c0 = arith.constant 0 : index
    %c0_1 = arith.constant 0 : index
    %3 = vector.load %arg8[%c0, %c0_1] : memref<16x256xf32, #tpu.memory_space<vmem>>, vector<16x256xf32>
    %c0_2 = arith.constant 0 : index
    %c0_3 = arith.constant 0 : index
    %4 = vector.load %arg3[%c0_2, %c0_3] : memref<16x512xbf16, #tpu.memory_space<vmem>>, vector<16x512xbf16>
    %c0_4 = arith.constant 0 : index
    %c0_5 = arith.constant 0 : index
    %5 = vector.load %arg4[%c0_4, %c0_5] : memref<512x256xbf16, #tpu.memory_space<vmem>>, vector<512x256xbf16>
    %cst = arith.constant dense<0.000000e+00> : vector<16x256xf32>
    %6 = tpu.matmul %4, %5, %cst {dimension_numbers = #tpu.dot_dimension_numbers<[1], [0], [0], [1], [0, 0, 1, 1], [], []>} : vector<16x512xbf16>, vector<512x256xbf16>, vector<16x256xf32> -> vector<16x256xf32>
    %7 = arith.addf %3, %6 : vector<16x256xf32>
    %c0_6 = arith.constant 0 : index
    %c0_7 = arith.constant 0 : index
    %8 = vector.load %arg8[%c0_6, %c0_7] : memref<16x256xf32, #tpu.memory_space<vmem>>, vector<16x256xf32>
    tpu.vector_store %arg8[%c0_6, %c0_7], %7 {strides = array<i32>} : memref<16x256xf32, #tpu.memory_space<vmem>>, vector<16x256xf32>,
    %c8_i32 = arith.constant 8 : i32
    %9 = arith.cmpi eq, %arg2, %c8_i32 : i32
    %10 = arith.extui %9 : i1 to i32
    %c0_i32_8 = arith.constant 0 : i32
    %11 = arith.cmpi ne, %10, %c0_i32_8 : i32
    scf.if %11 {
      %c0_9 = arith.constant 0 : index
      %c0_10 = arith.constant 0 : index
      %12 = vector.load %arg8[%c0_9, %c0_10] : memref<16x256xf32, #tpu.memory_space<vmem>>, vector<16x256xf32>
      %c0_11 = arith.constant 0 : index
      %c0_12 = arith.constant 0 : index
      %13 = vector.load %arg5[%c0_11, %c0_12] : memref<1x256xf32, #tpu.memory_space<vmem>>, vector<1x256xf32>
      %14 = vector.broadcast %13 : vector<1x256xf32> to vector<16x256xf32>
      %15 = arith.addf %12, %14 : vector<16x256xf32>
      %c0_13 = arith.constant 0 : index
      %c0_14 = arith.constant 0 : index
      %16 = vector.load %arg6[%c0_13, %c0_14] : memref<16x256xbf16, #tpu.memory_space<vmem>>, vector<16x256xbf16>
      %17 = arith.extf %16 : vector<16x256xbf16> to vector<16x256xf32>
      %18 = arith.addf %15, %17 : vector<16x256xf32>
      %19 = arith.truncf %18 : vector<16x256xf32> to vector<16x256xbf16>
      %c0_15 = arith.constant 0 : index
      %c0_16 = arith.constant 0 : index
      %20 = vector.load %arg7[%c0_15, %c0_16] : memref<16x256xbf16, #tpu.memory_space<vmem>>, vector<16x256xbf16>
      tpu.vector_store %arg7[%c0_15, %c0_16], %19 {strides = array<i32>} : memref<16x256xbf16, #tpu.memory_space<vmem>>, vector<16x256xbf16>,
    } else {
    }
    return
  }
  func.func @transform_0(%arg0: i32, %arg1: i32, %arg2: i32) -> (i32, i32) {
    %c0_i32 = arith.constant 0 : i32
    return %arg0, %arg2 : i32, i32
  }
  func.func @transform_1(%arg0: i32, %arg1: i32, %arg2: i32) -> (i32, i32) {
    %c0_i32 = arith.constant 0 : i32
    return %arg2, %arg1 : i32, i32
  }
  func.func @transform_2(%arg0: i32, %arg1: i32, %arg2: i32) -> (i32, i32) {
    %c0_i32 = arith.constant 0 : i32
    %c0_i32_0 = arith.constant 0 : i32
    return %c0_i32, %arg1 : i32, i32
  }
  func.func @transform_3(%arg0: i32, %arg1: i32, %arg2: i32) -> (i32, i32) {
    %c0_i32 = arith.constant 0 : i32
    return %arg0, %arg1 : i32, i32
  }
  func.func @transform_4(%arg0: i32, %arg1: i32, %arg2: i32) -> (i32, i32) {
    %c0_i32 = arith.constant 0 : i32
    return %arg0, %arg1 : i32, i32
  }
}

</mosaic_0001>

<bundles_post_ra>
// kernel: iresnet_forward.13
= control target key start
LH: loop header
LB: loop body
LE: loop exit
PB: predicated region body
PF: predicated region fallthrough
CT: control target
= control target key end

     0   :  { %s2467_s1 = inlined_call_operand.vmem [shape: bf16[128,128], index: 1, kind: input, shape index: {}]   ;;  %s2468_s0 = inlined_call_operand.vmem [shape: bf16[512,128], index: 0, kind: input, shape index: {}]   ;;  %s2469_s2 = inlined_call_operand.vmem [shape: f32[1,128], index: 2, kind: input, shape index: {}]   ;;  %s2470_s3 = inlined_call_operand.vmem [shape: f32[1,128], index: 3, kind: input, shape index: {}]   ;;  %s2471_s4 = inlined_call_operand.vmem [shape: bf16[512,128], index: 4, kind: output, shape index: {}]  }
   0x1   :  { %v2045_v0 = vld [vmem:[%s2467_s1 + $0x38] sm:$0xff]   ;;  %v2046_v1 = vld [vmem:[%s2467_s1 + $0x30] sm:$0xff]   ;;  %v2047_v2 = vld [vmem:[%s2467_s1 + $0x28] sm:$0xff]  }
   0x2   :  { %1949 = vmatprep.subr.bf16.mxu0 %v2045_v0  ;;  %2029 = vmatprep.subr.bf16.mxu1 %v2045_v0  ;;  %v2048_v3 = vld [vmem:[%s2467_s1 + $0x20] sm:$0xff]   ;;  %v2049_v6 = vld [vmem:[%s2467_s1 + $0x18] sm:$0xff]   ;;  %v2050_v7 = vld [vmem:[%s2467_s1 + $0x10] sm:$0xff]  }
   0x3   :  { %1950 = vmatpush3.bf16.msra.mxu0 %v2045_v0  ;;  %2037 = vmatpush3.bf16.msra.mxu1 %v2045_v0  ;;  %v2053_v4 = vld [vmem:[%s2468_s0] sm:$0xff]   ;;  %v2051_v8 = vld [vmem:[%s2467_s1 + $0x8] sm:$0xff]   ;;  %v2057_v12 = vld [vmem:[%s2468_s0 + $0x10] sm:$0xff]  }
   0x4   :  { %1951 = vmatprep.subr.bf16.mxu0 %v2046_v1  ;;  %2030 = vmatprep.subr.bf16.mxu1 %v2046_v1  ;;  %v2054_v5 = vld [vmem:[%s2468_s0 + $0x80] sm:$0xff]   ;;  %v2055_v10 = vld [vmem:[%s2468_s0 + $0x8] sm:$0xff]   ;;  %v2058_v13 = vld [vmem:[%s2468_s0 + $0x90] sm:$0xff]  }
   0x5   :  { %1965 = vmatprep.mubr.bf16.mxu0 %v2053_v4  ;;  %1997 = vmatprep.mubr.bf16.mxu1 %v2054_v5  ;;  %v2052_v9 = vld [vmem:[%s2467_s1] sm:$0xff]   ;;  %v2056_v11 = vld [vmem:[%s2468_s0 + $0x88] sm:$0xff]   ;;  %v2059_v14 = vld [vmem:[%s2468_s0 + $0x18] sm:$0xff]  }
   0x6   :  { %v2060_v15 = vld [vmem:[%s2468_s0 + $0x98] sm:$0xff]   ;;  %v2061_v16 = vld [vmem:[%s2468_s0 + $0x20] sm:$0xff]   ;;  %v2063_v18 = vld [vmem:[%s2468_s0 + $0x28] sm:$0xff]  }
   0x7   :  { %1952 = vmatpush3.bf16.msra.mxu0 %v2046_v1  ;;  %2038 = vmatpush3.bf16.msra.mxu1 %v2046_v1  ;;  %v2062_v17 = vld [vmem:[%s2468_s0 + $0xa0] sm:$0xff]   ;;  %v2064_v19 = vld [vmem:[%s2468_s0 + $0xa8] sm:$0xff]   ;;  %v2065_v20 = vld [vmem:[%s2468_s0 + $0x30] sm:$0xff]  }
   0x8   :  { %1953 = vmatprep.subr.bf16.mxu0 %v2047_v2  ;;  %2031 = vmatprep.subr.bf16.mxu1 %v2047_v2  ;;  %v2066_v21 = vld [vmem:[%s2468_s0 + $0xb0] sm:$0xff]   ;;  %v2067_v22 = vld [vmem:[%s2468_s0 + $0x38] sm:$0xff]   ;;  %v2069_v24 = vld [vmem:[%s2468_s0 + $0x40] sm:$0xff]  }
   0x9   :  { %v2068_v23 = vld [vmem:[%s2468_s0 + $0xb8] sm:$0xff]   ;;  %v2070_v25 = vld [vmem:[%s2468_s0 + $0xc0] sm:$0xff]   ;;  %v2071_v26 = vld [vmem:[%s2468_s0 + $0x48] sm:$0xff]  }
   0xa   :  { %v2072_v27 = vld [vmem:[%s2468_s0 + $0xc8] sm:$0xff]   ;;  %v2073_v28 = vld [vmem:[%s2468_s0 + $0x50] sm:$0xff]   ;;  %v2075_v30 = vld [vmem:[%s2468_s0 + $0x58] sm:$0xff]  }
   0xb   :  { %1954 = vmatpush3.bf16.msra.mxu0 %v2047_v2  ;;  %2039 = vmatpush3.bf16.msra.mxu1 %v2047_v2  ;;  %v2074_v29 = vld [vmem:[%s2468_s0 + $0xd0] sm:$0xff]   ;;  %v2076_v31 = vld [vmem:[%s2468_s0 + $0xd8] sm:$0xff]   ;;  %v2077_v32 = vld [vmem:[%s2468_s0 + $0x60] sm:$0xff]  }
   0xc   :  { %1955 = vmatprep.subr.bf16.mxu0 %v2048_v3  ;;  %2032 = vmatprep.subr.bf16.mxu1 %v2048_v3  ;;  %v2078_v33 = vld [vmem:[%s2468_s0 + $0xe0] sm:$0xff]   ;;  %v2079_v34 = vld [vmem:[%s2468_s0 + $0x68] sm:$0xff]   ;;  %v2081_v36 = vld [vmem:[%s2468_s0 + $0x70] sm:$0xff]  }
   0xd   :  { %v2080_v35 = vld [vmem:[%s2468_s0 + $0xe8] sm:$0xff]   ;;  %v2082_v37 = vld [vmem:[%s2468_s0 + $0xf0] sm:$0xff]   ;;  %v2083_v38 = vld [vmem:[%s2468_s0 + $0x78] sm:$0xff]  }
   0xe   :  { %v2084_v39 = vld [vmem:[%s2468_s0 + $0xf8] sm:$0xff]   ;;  %v2233_v40 = vld [vmem:[%s2469_s2] ss:$0 sm:$0xff] }
   0xf   :  { %1956 = vmatpush3.bf16.msra.mxu0 %v2048_v3  ;;  %2040 = vmatpush3.bf16.msra.mxu1 %v2048_v3  ;;  %v2238_v42 = vld [vmem:[%s2470_s3] ss:$0 sm:$0xff] }
  0x10   :  { %1957 = vmatprep.subr.bf16.mxu0 %v2049_v6  ;;  %2033 = vmatprep.subr.bf16.mxu1 %v2049_v6 }
  0x13   :  { %1958 = vmatpush3.bf16.msra.mxu0 %v2049_v6  ;;  %2041 = vmatpush3.bf16.msra.mxu1 %v2049_v6 }
  0x14   :  { %1959 = vmatprep.subr.bf16.mxu0 %v2050_v7  ;;  %2034 = vmatprep.subr.bf16.mxu1 %v2050_v7 }
  0x17   :  { %1960 = vmatpush3.bf16.msra.mxu0 %v2050_v7  ;;  %2042 = vmatpush3.bf16.msra.mxu1 %v2050_v7 }
  0x18   :  { %1961 = vmatprep.subr.bf16.mxu0 %v2051_v8  ;;  %2035 = vmatprep.subr.bf16.mxu1 %v2051_v8 }
  0x1b   :  { %1962 = vmatpush3.bf16.msra.mxu0 %v2051_v8  ;;  %2043 = vmatpush3.bf16.msra.mxu1 %v2051_v8 }
  0x1c   :  { %1963 = vmatprep.subr.bf16.mxu0 %v2052_v9  ;;  %2036 = vmatprep.subr.bf16.mxu1 %v2052_v9 }
  0x1f   :  { %1964 = vmatpush3.bf16.msra.mxu0 %v2052_v9  ;;  %2044 = vmatpush3.bf16.msra.mxu1 %v2052_v9 }
  0x22   :  { %1966 = vmatmul.mubr.bf16.vlgmr.msra.gmra.mxu0 %v2055_v10  ;;  %1998 = vmatmul.mubr.bf16.vlgmr.msra.gmra.mxu1 %v2056_v11 }
  0x23   :  { %1969 = vmatprep.mubr.bf16.mxu0 %v2057_v12  ;;  %2001 = vmatprep.mubr.bf16.mxu1 %v2058_v13 }
  0x2a   :  { %1970 = vmatmul.mubr.bf16.gmra.mxu0 %v2059_v14  ;;  %2002 = vmatmul.mubr.bf16.gmra.mxu1 %v2060_v15 }
  0x2b   :  { %1973 = vmatprep.mubr.bf16.mxu0 %v2061_v16  ;;  %2005 = vmatprep.mubr.bf16.mxu1 %v2062_v17 }
  0x32   :  { %1974 = vmatmul.mubr.bf16.gmra.mxu0 %v2063_v18  ;;  %2006 = vmatmul.mubr.bf16.gmra.mxu1 %v2064_v19 }
  0x33   :  { %1977 = vmatprep.mubr.bf16.mxu0 %v2065_v20  ;;  %2009 = vmatprep.mubr.bf16.mxu1 %v2066_v21 }
  0x3a   :  { %1978 = vmatmul.mubr.bf16.gmra.mxu0 %v2067_v22  ;;  %2010 = vmatmul.mubr.bf16.gmra.mxu1 %v2068_v23 }
  0x3b   :  { %1981 = vmatprep.mubr.bf16.mxu0 %v2069_v24  ;;  %2013 = vmatprep.mubr.bf16.mxu1 %v2070_v25 }
  0x42   :  { %1982 = vmatmul.mubr.bf16.gmra.mxu0 %v2071_v26  ;;  %2014 = vmatmul.mubr.bf16.gmra.mxu1 %v2072_v27 }
  0x43   :  { %1985 = vmatprep.mubr.bf16.mxu0 %v2073_v28  ;;  %2017 = vmatprep.mubr.bf16.mxu1 %v2074_v29 }
  0x4a   :  { %1986 = vmatmul.mubr.bf16.gmra.mxu0 %v2075_v30  ;;  %2018 = vmatmul.mubr.bf16.gmra.mxu1 %v2076_v31 }
  0x4b   :  { %1989 = vmatprep.mubr.bf16.mxu0 %v2077_v32  ;;  %2021 = vmatprep.mubr.bf16.mxu1 %v2078_v33 }
  0x52   :  { %1990 = vmatmul.mubr.bf16.gmra.mxu0 %v2079_v34  ;;  %2022 = vmatmul.mubr.bf16.gmra.mxu1 %v2080_v35 }
  0x53   :  { %1993 = vmatprep.mubr.bf16.mxu0 %v2081_v36  ;;  %2025 = vmatprep.mubr.bf16.mxu1 %v2082_v37 }
  0x5a   :  { %1994 = vmatmul.mubr.bf16.gmra.mxu0 %v2083_v38  ;;  %2026 = vmatmul.mubr.bf16.gmra.mxu1 %v2084_v39 }
  0xe2   :  { %v1967_v41 = vpop.f32.mrf.mxu0  ;;  %v1999_v43 = vpop.f32.mrf.mxu1 }
  0xe3   :  { %v963_v44 = vadd.f32 %v1967_v41, %v2233_v40  ;;  %v995_v45 = vadd.f32 %v1999_v43, %v2233_v40 }
  0xe4   :  { %v504_v46 = vpop.f32.mrf.mxu0  ;;  %v632_v47 = vpop.f32.mrf.mxu1 }
  0xe5   :  { %vm1028_vm0 = vcmp.ge.f32.partialorder %v963_v44, 0.0  ;;  %v1098_v48 = vmul.f32 %v2238_v42, %v963_v44  ;;  %vm1060_vm1 = vcmp.ge.f32.partialorder %v995_v45, 0.0  ;;  %v1130_v49 = vmul.f32 %v2238_v42, %v995_v45 }
  0xe6   :  { %v961_v50 = vadd.f32 %v2233_v40, %v504_v46  ;;  %v993_v51 = vadd.f32 %v2233_v40, %v632_v47  ;;  %v1968_v52 = vpop.f32.mrf.mxu0  ;;  %v2000_v53 = vpop.f32.mrf.mxu1 }
  0xe7   :  { %v1162_v54 = vsel %vm1028_vm0, %v963_v44, %v1098_v48  ;;  %v964_v55 = vadd.f32 %v1968_v52, %v2233_v40  ;;  %v996_v56 = vadd.f32 %v2000_v53, %v2233_v40  ;;  %v1194_v57 = vsel %vm1060_vm1, %v995_v45, %v1130_v49 }
  0xe8   :  { %vm1026_vm2 = vcmp.ge.f32.partialorder %v961_v50, 0.0  ;;  %v1096_v58 = vmul.f32 %v2238_v42, %v961_v50  ;;  %vm1058_vm3 = vcmp.ge.f32.partialorder %v993_v51, 0.0  ;;  %v507_v59 = vpop.f32.mrf.mxu0  ;;  %v635_v60 = vpop.f32.mrf.mxu1  ;;  %v1128_v0 = vmul.f32 %v2238_v42, %v993_v51 }
  0xe9   :  { %vm1029_vm4 = vcmp.ge.f32.partialorder %v964_v55, 0.0  ;;  %v1099_v61 = vmul.f32 %v2238_v42, %v964_v55  ;;  %vm1061_vm5 = vcmp.ge.f32.partialorder %v996_v56, 0.0  ;;  %v1131_v62 = vmul.f32 %v2238_v42, %v996_v56 }
  0xea   :  { %v1160_v63 = vsel %vm1026_vm2, %v961_v50, %v1096_v58  ;;  %v962_v1 = vadd.f32 %v2233_v40, %v507_v59  ;;  %v994_v2 = vadd.f32 %v2233_v40, %v635_v60  ;;  %v1971_v3 = vpop.f32.mrf.mxu0  ;;  %v2003_v4 = vpop.f32.mrf.mxu1  ;;  %v1192_v16 = vsel %vm1058_vm3, %v993_v51, %v1128_v0 }
  0xeb   :  { %v1163_v5 = vsel %vm1029_vm4, %v964_v55, %v1099_v61  ;;  %v1195_v6 = vsel %vm1061_vm5, %v996_v56, %v1131_v62  ;;  %v967_v7 = vadd.f32 %v1971_v3, %v2233_v40  ;;  %v999_v8 = vadd.f32 %v2003_v4, %v2233_v40 }
  0xec   :  { %v1726_v9 = vpack.c.bf16 %v1163_v5, %v1162_v54  ;;  %v1806_v10 = vpack.c.bf16 %v1195_v6, %v1194_v57  ;;  %vm1027_vm6 = vcmp.ge.f32.partialorder %v962_v1, 0.0  ;;  %v1097_v11 = vmul.f32 %v2238_v42, %v962_v1  ;;  %v520_v12 = vpop.f32.mrf.mxu0  ;;  %v648_v13 = vpop.f32.mrf.mxu1 }
  0xed   :  { %vm1059_vm7 = vcmp.ge.f32.partialorder %v994_v2, 0.0  ;;  %v1129_v14 = vmul.f32 %v2238_v42, %v994_v2  ;;  %vm1032_vm8 = vcmp.ge.f32.partialorder %v967_v7, 0.0  ;;  %v1102_v15 = vmul.f32 %v2238_v42, %v967_v7 }
  0xee   :  { %1878 = vst [vmem:[%s2471_s4 + $0x8] sm:$0xff] %v1726_v9   ;;  %1894 = vst [vmem:[%s2471_s4 + $0x88] sm:$0xff] %v1806_v10   ;;  %v1161_v17 = vsel %vm1027_vm6, %v962_v1, %v1097_v11  ;;  %v1134_v18 = vmul.f32 %v2238_v42, %v999_v8  ;;  %v965_v19 = vadd.f32 %v2233_v40, %v520_v12  ;;  %v1972_v20 = vpop.f32.mrf.mxu0  ;;  %v2004_v21 = vpop.f32.mrf.mxu1  ;;  %vm1064_vm9 = vcmp.ge.f32.partialorder %v999_v8, 0.0 }
  0xef   :  { %v1721_v22 = vpack.c.bf16 %v1161_v17, %v1160_v63  ;;  %v1193_v23 = vsel %vm1059_vm7, %v994_v2, %v1129_v14  ;;  %v997_v24 = vadd.f32 %v2233_v40, %v648_v13  ;;  %v1166_v26 = vsel %vm1032_vm8, %v967_v7, %v1102_v15 }
  0xf0   :  { %v1801_v25 = vpack.c.bf16 %v1193_v23, %v1192_v16  ;;  %vm1030_vm10 = vcmp.ge.f32.partialorder %v965_v19, 0.0  ;;  %v1100_v27 = vmul.f32 %v2238_v42, %v965_v19  ;;  %v523_v28 = vpop.f32.mrf.mxu0  ;;  %v651_v29 = vpop.f32.mrf.mxu1  ;;  %v968_v31 = vadd.f32 %v1972_v20, %v2233_v40 }
  0xf1   :  { %1722 = vst [vmem:[%s2471_s4] sm:$0xff] %v1721_v22   ;;  %vm1062_vm11 = vcmp.ge.f32.partialorder %v997_v24, 0.0  ;;  %v1132_v30 = vmul.f32 %v2238_v42, %v997_v24  ;;  %v1000_v32 = vadd.f32 %v2004_v21, %v2233_v40  ;;  %v1198_v33 = vsel %vm1064_vm9, %v999_v8, %v1134_v18 }
  0xf2   :  { %1893 = vst [vmem:[%s2471_s4 + $0x80] sm:$0xff] %v1801_v25   ;;  %v1164_v34 = vsel %vm1030_vm10, %v965_v19, %v1100_v27  ;;  %v966_v35 = vadd.f32 %v2233_v40, %v523_v28  ;;  %v998_v36 = vadd.f32 %v2233_v40, %v651_v29  ;;  %v1975_v37 = vpop.f32.mrf.mxu0  ;;  %v2007_v38 = vpop.f32.mrf.mxu1  ;;  %vm1033_vm12 = vcmp.ge.f32.partialorder %v968_v31, 0.0 }
  0xf3   :  { %v1196_v39 = vsel %vm1062_vm11, %v997_v24, %v1132_v30  ;;  %v1103_v41 = vmul.f32 %v2238_v42, %v968_v31  ;;  %vm1065_vm13 = vcmp.ge.f32.partialorder %v1000_v32, 0.0  ;;  %v1135_v43 = vmul.f32 %v2238_v42, %v1000_v32 }
  0xf4   :  { %vm1031_vm14 = vcmp.ge.f32.partialorder %v966_v35, 0.0  ;;  %v1101_v44 = vmul.f32 %v2238_v42, %v966_v35  ;;  %vm1063_vm15 = vcmp.ge.f32.partialorder %v998_v36, 0.0  ;;  %v536_v45 = vpop.f32.mrf.mxu0  ;;  %v664_v46 = vpop.f32.mrf.mxu1  ;;  %v1133_v48 = vmul.f32 %v2238_v42, %v998_v36 }
  0xf5   :  { %v1167_v47 = vsel %vm1033_vm12, %v968_v31, %v1103_v41  ;;  %v971_v49 = vadd.f32 %v1975_v37, %v2233_v40  ;;  %v1003_v50 = vadd.f32 %v2007_v38, %v2233_v40  ;;  %v1199_v52 = vsel %vm1065_vm13, %v1000_v32, %v1135_v43 }
  0xf6   :  { %v1736_v51 = vpack.c.bf16 %v1167_v47, %v1166_v26  ;;  %v1165_v53 = vsel %vm1031_vm14, %v966_v35, %v1101_v44  ;;  %v969_v54 = vadd.f32 %v2233_v40, %v536_v45  ;;  %v1976_v55 = vpop.f32.mrf.mxu0  ;;  %v2008_v56 = vpop.f32.mrf.mxu1  ;;  %v1816_v57 = vpack.c.bf16 %v1199_v52, %v1198_v33 }
  0xf7   :  { %v1731_v58 = vpack.c.bf16 %v1165_v53, %v1164_v34  ;;  %v1197_v59 = vsel %vm1063_vm15, %v998_v36, %v1133_v48  ;;  %vm1036_vm0 = vcmp.ge.f32.partialorder %v971_v49, 0.0  ;;  %v1106_v61 = vmul.f32 %v2238_v42, %v971_v49 }
  0xf8   :  { %1880 = vst [vmem:[%s2471_s4 + $0x18] sm:$0xff] %v1736_v51   ;;  %v1811_v60 = vpack.c.bf16 %v1197_v59, %v1196_v39  ;;  %vm1068_vm1 = vcmp.ge.f32.partialorder %v1003_v50, 0.0  ;;  %v1138_v62 = vmul.f32 %v2238_v42, %v1003_v50  ;;  %v539_v63 = vpop.f32.mrf.mxu0  ;;  %v667_v0 = vpop.f32.mrf.mxu1  ;;  %1896 = vst [vmem:[%s2471_s4 + $0x98] sm:$0xff] %v1816_v57   ;;  %vm1034_vm2 = vcmp.ge.f32.partialorder %v969_v54, 0.0 }
  0xf9   :  { %1879 = vst [vmem:[%s2471_s4 + $0x10] sm:$0xff] %v1731_v58   ;;  %v1104_v1 = vmul.f32 %v2238_v42, %v969_v54  ;;  %v1001_v2 = vadd.f32 %v2233_v40, %v664_v46  ;;  %v972_v3 = vadd.f32 %v1976_v55, %v2233_v40  ;;  %v1170_v4 = vsel %vm1036_vm0, %v971_v49, %v1106_v61 }
  0xfa   :  { %1895 = vst [vmem:[%s2471_s4 + $0x90] sm:$0xff] %v1811_v60   ;;  %v1202_v5 = vsel %vm1068_vm1, %v1003_v50, %v1138_v62  ;;  %v1004_v6 = vadd.f32 %v2008_v56, %v2233_v40  ;;  %v970_v7 = vadd.f32 %v2233_v40, %v539_v63  ;;  %v1979_v8 = vpop.f32.mrf.mxu0  ;;  %v2011_v9 = vpop.f32.mrf.mxu1  ;;  %v1002_v18 = vadd.f32 %v2233_v40, %v667_v0 }
  0xfb   :  { %v1168_v10 = vsel %vm1034_vm2, %v969_v54, %v1104_v1  ;;  %vm1066_vm3 = vcmp.ge.f32.partialorder %v1001_v2, 0.0  ;;  %v1136_v11 = vmul.f32 %v2238_v42, %v1001_v2  ;;  %vm1037_vm4 = vcmp.ge.f32.partialorder %v972_v3, 0.0 }
  0xfc   :  { %v1107_v12 = vmul.f32 %v2238_v42, %v972_v3  ;;  %vm1069_vm5 = vcmp.ge.f32.partialorder %v1004_v6, 0.0  ;;  %v1139_v13 = vmul.f32 %v2238_v42, %v1004_v6  ;;  %vm1035_vm6 = vcmp.ge.f32.partialorder %v970_v7, 0.0  ;;  %v552_v14 = vpop.f32.mrf.mxu0  ;;  %v680_v15 = vpop.f32.mrf.mxu1 }
  0xfd   :  { %v1200_v16 = vsel %vm1066_vm3, %v1001_v2, %v1136_v11  ;;  %v1105_v17 = vmul.f32 %v2238_v42, %v970_v7  ;;  %v975_v19 = vadd.f32 %v1979_v8, %v2233_v40  ;;  %v1007_v22 = vadd.f32 %v2011_v9, %v2233_v40 }
  0xfe   :  { %v1171_v20 = vsel %vm1037_vm4, %v972_v3, %v1107_v12  ;;  %v1203_v21 = vsel %vm1069_vm5, %v1004_v6, %v1139_v13  ;;  %v973_v23 = vadd.f32 %v2233_v40, %v552_v14  ;;  %v1980_v24 = vpop.f32.mrf.mxu0  ;;  %v2012_v25 = vpop.f32.mrf.mxu1  ;;  %vm1067_vm7 = vcmp.ge.f32.partialorder %v1002_v18, 0.0 }
  0xff   :  { %v1746_v26 = vpack.c.bf16 %v1171_v20, %v1170_v4  ;;  %v1826_v27 = vpack.c.bf16 %v1203_v21, %v1202_v5  ;;  %v1169_v28 = vsel %vm1035_vm6, %v970_v7, %v1105_v17  ;;  %v1137_v30 = vmul.f32 %v2238_v42, %v1002_v18 }
 0x100   :  { %v1741_v29 = vpack.c.bf16 %v1169_v28, %v1168_v10  ;;  %vm1040_vm8 = vcmp.ge.f32.partialorder %v975_v19, 0.0  ;;  %v1110_v31 = vmul.f32 %v2238_v42, %v975_v19  ;;  %v555_v32 = vpop.f32.mrf.mxu0  ;;  %v683_v33 = vpop.f32.mrf.mxu1  ;;  %vm1072_vm9 = vcmp.ge.f32.partialorder %v1007_v22, 0.0 }
 0x101   :  { %1882 = vst [vmem:[%s2471_s4 + $0x28] sm:$0xff] %v1746_v26   ;;  %1898 = vst [vmem:[%s2471_s4 + $0xa8] sm:$0xff] %v1826_v27   ;;  %v1142_v34 = vmul.f32 %v2238_v42, %v1007_v22  ;;  %vm1038_vm10 = vcmp.ge.f32.partialorder %v973_v23, 0.0  ;;  %v1108_v35 = vmul.f32 %v2238_v42, %v973_v23  ;;  %v1201_v36 = vsel %vm1067_vm7, %v1002_v18, %v1137_v30 }
 0x102   :  { %1881 = vst [vmem:[%s2471_s4 + $0x20] sm:$0xff] %v1741_v29   ;;  %v1174_v37 = vsel %vm1040_vm8, %v975_v19, %v1110_v31  ;;  %v1005_v38 = vadd.f32 %v2233_v40, %v680_v15  ;;  %v976_v39 = vadd.f32 %v1980_v24, %v2233_v40  ;;  %v1983_v41 = vpop.f32.mrf.mxu0  ;;  %v2015_v43 = vpop.f32.mrf.mxu1  ;;  %v1821_v44 = vpack.c.bf16 %v1201_v36, %v1200_v16 }
 0x103   :  { %v1206_v45 = vsel %vm1072_vm9, %v1007_v22, %v1142_v34  ;;  %v1172_v46 = vsel %vm1038_vm10, %v973_v23, %v1108_v35  ;;  %v1008_v47 = vadd.f32 %v2012_v25, %v2233_v40  ;;  %v974_v53 = vadd.f32 %v2233_v40, %v555_v32 }
 0x104   :  { %vm1070_vm11 = vcmp.ge.f32.partialorder %v1005_v38, 0.0  ;;  %v1140_v48 = vmul.f32 %v2238_v42, %v1005_v38  ;;  %vm1041_vm12 = vcmp.ge.f32.partialorder %v976_v39, 0.0  ;;  %v1111_v49 = vmul.f32 %v2238_v42, %v976_v39  ;;  %v568_v50 = vpop.f32.mrf.mxu0  ;;  %v696_v51 = vpop.f32.mrf.mxu1  ;;  %1897 = vst [vmem:[%s2471_s4 + $0xa0] sm:$0xff] %v1821_v44  }
 0x105   :  { %vm1073_vm13 = vcmp.ge.f32.partialorder %v1008_v47, 0.0  ;;  %v1143_v52 = vmul.f32 %v2238_v42, %v1008_v47  ;;  %v1006_v54 = vadd.f32 %v2233_v40, %v683_v33  ;;  %v979_v57 = vadd.f32 %v1983_v41, %v2233_v40 }
 0x106   :  { %v1204_v55 = vsel %vm1070_vm11, %v1005_v38, %v1140_v48  ;;  %v1175_v56 = vsel %vm1041_vm12, %v976_v39, %v1111_v49  ;;  %v1011_v58 = vadd.f32 %v2015_v43, %v2233_v40  ;;  %v1984_v59 = vpop.f32.mrf.mxu0  ;;  %v2016_v60 = vpop.f32.mrf.mxu1  ;;  %vm1039_vm14 = vcmp.ge.f32.partialorder %v974_v53, 0.0 }
 0x107   :  { %v1756_v61 = vpack.c.bf16 %v1175_v56, %v1174_v37  ;;  %v1207_v62 = vsel %vm1073_vm13, %v1008_v47, %v1143_v52  ;;  %v1109_v63 = vmul.f32 %v2238_v42, %v974_v53  ;;  %vm1071_vm15 = vcmp.ge.f32.partialorder %v1006_v54, 0.0 }
 0x108   :  { %v1836_v0 = vpack.c.bf16 %v1207_v62, %v1206_v45  ;;  %v1141_v1 = vmul.f32 %v2238_v42, %v1006_v54  ;;  %vm1044_vm0 = vcmp.ge.f32.partialorder %v979_v57, 0.0  ;;  %v571_v2 = vpop.f32.mrf.mxu0  ;;  %v699_v3 = vpop.f32.mrf.mxu1  ;;  %v1114_v5 = vmul.f32 %v2238_v42, %v979_v57 }
 0x109   :  { %1884 = vst [vmem:[%s2471_s4 + $0x38] sm:$0xff] %v1756_v61   ;;  %v1173_v4 = vsel %vm1039_vm14, %v974_v53, %v1109_v63  ;;  %vm1076_vm1 = vcmp.ge.f32.partialorder %v1011_v58, 0.0  ;;  %v1146_v6 = vmul.f32 %v2238_v42, %v1011_v58  ;;  %v977_v9 = vadd.f32 %v2233_v40, %v568_v50 }
 0x10a   :  { %1900 = vst [vmem:[%s2471_s4 + $0xb8] sm:$0xff] %v1836_v0   ;;  %v1751_v7 = vpack.c.bf16 %v1173_v4, %v1172_v46  ;;  %v1205_v8 = vsel %vm1071_vm15, %v1006_v54, %v1141_v1  ;;  %v1009_v10 = vadd.f32 %v2233_v40, %v696_v51  ;;  %v1987_v11 = vpop.f32.mrf.mxu0  ;;  %v2019_v12 = vpop.f32.mrf.mxu1  ;;  %v1178_v14 = vsel %vm1044_vm0, %v979_v57, %v1114_v5 }
 0x10b   :  { %v1831_v13 = vpack.c.bf16 %v1205_v8, %v1204_v55  ;;  %v1210_v15 = vsel %vm1076_vm1, %v1011_v58, %v1146_v6  ;;  %v980_v16 = vadd.f32 %v1984_v59, %v2233_v40  ;;  %vm1042_vm2 = vcmp.ge.f32.partialorder %v977_v9, 0.0 }
 0x10c   :  { %1883 = vst [vmem:[%s2471_s4 + $0x30] sm:$0xff] %v1751_v7   ;;  %v1112_v17 = vmul.f32 %v2238_v42, %v977_v9  ;;  %vm1074_vm3 = vcmp.ge.f32.partialorder %v1009_v10, 0.0  ;;  %v1144_v18 = vmul.f32 %v2238_v42, %v1009_v10  ;;  %v584_v19 = vpop.f32.mrf.mxu0  ;;  %v712_v20 = vpop.f32.mrf.mxu1  ;;  %v1012_v22 = vadd.f32 %v2016_v60, %v2233_v40 }
 0x10d   :  { %1899 = vst [vmem:[%s2471_s4 + $0xb0] sm:$0xff] %v1831_v13   ;;  %vm1045_vm4 = vcmp.ge.f32.partialorder %v980_v16, 0.0  ;;  %v1115_v21 = vmul.f32 %v2238_v42, %v980_v16  ;;  %v978_v23 = vadd.f32 %v2233_v40, %v571_v2  ;;  %v1010_v26 = vadd.f32 %v2233_v40, %v699_v3 }
 0x10e   :  { %v1176_v24 = vsel %vm1042_vm2, %v977_v9, %v1112_v17  ;;  %v1208_v25 = vsel %vm1074_vm3, %v1009_v10, %v1144_v18  ;;  %v983_v27 = vadd.f32 %v1987_v11, %v2233_v40  ;;  %v1988_v28 = vpop.f32.mrf.mxu0  ;;  %v2020_v29 = vpop.f32.mrf.mxu1  ;;  %vm1077_vm5 = vcmp.ge.f32.partialorder %v1012_v22, 0.0 }
 0x10f   :  { %v1179_v30 = vsel %vm1045_vm4, %v980_v16, %v1115_v21  ;;  %v1147_v31 = vmul.f32 %v2238_v42, %v1012_v22  ;;  %vm1043_vm6 = vcmp.ge.f32.partialorder %v978_v23, 0.0  ;;  %v1113_v33 = vmul.f32 %v2238_v42, %v978_v23 }
 0x110   :  { %v1766_v32 = vpack.c.bf16 %v1179_v30, %v1178_v14  ;;  %vm1075_vm7 = vcmp.ge.f32.partialorder %v1010_v26, 0.0  ;;  %v1145_v34 = vmul.f32 %v2238_v42, %v1010_v26  ;;  %v587_v35 = vpop.f32.mrf.mxu0  ;;  %v715_v36 = vpop.f32.mrf.mxu1  ;;  %vm1048_vm8 = vcmp.ge.f32.partialorder %v983_v27, 0.0 }
 0x111   :  { %v1211_v37 = vsel %vm1077_vm5, %v1012_v22, %v1147_v31  ;;  %v1118_v38 = vmul.f32 %v2238_v42, %v983_v27  ;;  %v1015_v39 = vadd.f32 %v2019_v12, %v2233_v40  ;;  %v1177_v43 = vsel %vm1043_vm6, %v978_v23, %v1113_v33 }
 0x112   :  { %1886 = vst [vmem:[%s2471_s4 + $0x48] sm:$0xff] %v1766_v32   ;;  %v1846_v41 = vpack.c.bf16 %v1211_v37, %v1210_v15  ;;  %v1209_v44 = vsel %vm1075_vm7, %v1010_v26, %v1145_v34  ;;  %v981_v45 = vadd.f32 %v2233_v40, %v584_v19  ;;  %v1991_v46 = vpop.f32.mrf.mxu0  ;;  %v2023_v47 = vpop.f32.mrf.mxu1  ;;  %v1761_v48 = vpack.c.bf16 %v1177_v43, %v1176_v24 }
 0x113   :  { %v1841_v49 = vpack.c.bf16 %v1209_v44, %v1208_v25  ;;  %v1182_v50 = vsel %vm1048_vm8, %v983_v27, %v1118_v38  ;;  %vm1080_vm9 = vcmp.ge.f32.partialorder %v1015_v39, 0.0  ;;  %v1150_v51 = vmul.f32 %v2238_v42, %v1015_v39 }
 0x114   :  { %1902 = vst [vmem:[%s2471_s4 + $0xc8] sm:$0xff] %v1846_v41   ;;  %vm1046_vm10 = vcmp.ge.f32.partialorder %v981_v45, 0.0  ;;  %v1116_v52 = vmul.f32 %v2238_v42, %v981_v45  ;;  %v1013_v53 = vadd.f32 %v2233_v40, %v712_v20  ;;  %v600_v54 = vpop.f32.mrf.mxu0  ;;  %v728_v55 = vpop.f32.mrf.mxu1  ;;  %1885 = vst [vmem:[%s2471_s4 + $0x40] sm:$0xff] %v1761_v48   ;;  %v984_v56 = vadd.f32 %v1988_v28, %v2233_v40 }
 0x115   :  { %1901 = vst [vmem:[%s2471_s4 + $0xc0] sm:$0xff] %v1841_v49   ;;  %v1016_v57 = vadd.f32 %v2020_v29, %v2233_v40  ;;  %v982_v58 = vadd.f32 %v2233_v40, %v587_v35  ;;  %v1014_v59 = vadd.f32 %v2233_v40, %v715_v36  ;;  %v1214_v60 = vsel %vm1080_vm9, %v1015_v39, %v1150_v51 }
 0x116   :  { %v1180_v61 = vsel %vm1046_vm10, %v981_v45, %v1116_v52  ;;  %vm1078_vm11 = vcmp.ge.f32.partialorder %v1013_v53, 0.0  ;;  %v1148_v62 = vmul.f32 %v2238_v42, %v1013_v53  ;;  %v1992_v63 = vpop.f32.mrf.mxu0  ;;  %v2024_v0 = vpop.f32.mrf.mxu1  ;;  %vm1049_vm12 = vcmp.ge.f32.partialorder %v984_v56, 0.0 }
 0x117   :  { %v1119_v1 = vmul.f32 %v2238_v42, %v984_v56  ;;  %vm1081_vm13 = vcmp.ge.f32.partialorder %v1016_v57, 0.0  ;;  %v1151_v2 = vmul.f32 %v2238_v42, %v1016_v57  ;;  %vm1047_vm14 = vcmp.ge.f32.partialorder %v982_v58, 0.0 }
 0x118   :  { %v1212_v3 = vsel %vm1078_vm11, %v1013_v53, %v1148_v62  ;;  %v1117_v4 = vmul.f32 %v2238_v42, %v982_v58  ;;  %vm1079_vm15 = vcmp.ge.f32.partialorder %v1014_v59, 0.0  ;;  %v603_v5 = vpop.f32.mrf.mxu0  ;;  %v731_v6 = vpop.f32.mrf.mxu1  ;;  %v1149_v9 = vmul.f32 %v2238_v42, %v1014_v59 }
 0x119   :  { %v1183_v7 = vsel %vm1049_vm12, %v984_v56, %v1119_v1  ;;  %v1215_v8 = vsel %vm1081_vm13, %v1016_v57, %v1151_v2  ;;  %v987_v10 = vadd.f32 %v1991_v46, %v2233_v40  ;;  %v1019_v14 = vadd.f32 %v2023_v47, %v2233_v40 }
 0x11a   :  { %v1776_v11 = vpack.c.bf16 %v1183_v7, %v1182_v50  ;;  %v1856_v12 = vpack.c.bf16 %v1215_v8, %v1214_v60  ;;  %v1181_v13 = vsel %vm1047_vm14, %v982_v58, %v1117_v4  ;;  %v1995_v15 = vpop.f32.mrf.mxu0  ;;  %v2027_v16 = vpop.f32.mrf.mxu1  ;;  %v1213_v18 = vsel %vm1079_vm15, %v1014_v59, %v1149_v9 }
 0x11b   :  { %v1771_v17 = vpack.c.bf16 %v1181_v13, %v1180_v61  ;;  %vm1052_vm0 = vcmp.ge.f32.partialorder %v987_v10, 0.0  ;;  %v1122_v19 = vmul.f32 %v2238_v42, %v987_v10  ;;  %v1851_v20 = vpack.c.bf16 %v1213_v18, %v1212_v3 }
 0x11c   :  { %1888 = vst [vmem:[%s2471_s4 + $0x58] sm:$0xff] %v1776_v11   ;;  %1904 = vst [vmem:[%s2471_s4 + $0xd8] sm:$0xff] %v1856_v12   ;;  %vm1084_vm1 = vcmp.ge.f32.partialorder %v1019_v14, 0.0  ;;  %v1154_v21 = vmul.f32 %v2238_v42, %v1019_v14  ;;  %v985_v22 = vadd.f32 %v2233_v40, %v600_v54  ;;  %v1017_v23 = vadd.f32 %v2233_v40, %v728_v55  ;;  %v616_v29 = vpop.f32.mrf.mxu0  ;;  %v744_v30 = vpop.f32.mrf.mxu1 }
 0x11d   :  { %1887 = vst [vmem:[%s2471_s4 + $0x50] sm:$0xff] %v1771_v17   ;;  %v988_v24 = vadd.f32 %v1992_v63, %v2233_v40  ;;  %v1020_v25 = vadd.f32 %v2024_v0, %v2233_v40  ;;  %1903 = vst [vmem:[%s2471_s4 + $0xd0] sm:$0xff] %v1851_v20   ;;  %v1186_v26 = vsel %vm1052_vm0, %v987_v10, %v1122_v19 }
 0x11e   :  { %vm1050_vm2 = vcmp.ge.f32.partialorder %v985_v22, 0.0  ;;  %v1120_v27 = vmul.f32 %v2238_v42, %v985_v22  ;;  %v986_v28 = vadd.f32 %v2233_v40, %v603_v5  ;;  %v1218_v31 = vsel %vm1084_vm1, %v1019_v14, %v1154_v21  ;;  %v1996_v45 = vpop.f32.mrf.mxu0  ;;  %v2028_v46 = vpop.f32.mrf.mxu1 }
 0x11f   :  { %vm1082_vm3 = vcmp.ge.f32.partialorder %v1017_v23, 0.0  ;;  %vm1053_vm4 = vcmp.ge.f32.partialorder %v988_v24, 0.0  ;;  %v1123_v32 = vmul.f32 %v2238_v42, %v988_v24  ;;  %v1152_v33 = vmul.f32 %v2238_v42, %v1017_v23 }
 0x120   :  { %vm1085_vm5 = vcmp.ge.f32.partialorder %v1020_v25, 0.0  ;;  %v1155_v34 = vmul.f32 %v2238_v42, %v1020_v25  ;;  %vm1051_vm6 = vcmp.ge.f32.partialorder %v986_v28, 0.0  ;;  %v1184_v35 = vsel %vm1050_vm2, %v985_v22, %v1120_v27  ;;  %v619_v60 = vpop.f32.mrf.mxu0  ;;  %v747_v61 = vpop.f32.mrf.mxu1 }
 0x121   :  { %v1187_v36 = vsel %vm1053_vm4, %v988_v24, %v1123_v32  ;;  %v1121_v37 = vmul.f32 %v2238_v42, %v986_v28  ;;  %v1018_v38 = vadd.f32 %v2233_v40, %v731_v6  ;;  %v991_v43 = vadd.f32 %v1995_v15, %v2233_v40 }
 0x122   :  { %v1786_v39 = vpack.c.bf16 %v1187_v36, %v1186_v26  ;;  %v1219_v41 = vsel %vm1085_vm5, %v1020_v25, %v1155_v34  ;;  %v1023_v44 = vadd.f32 %v2027_v16, %v2233_v40  ;;  %v1216_v50 = vsel %vm1082_vm3, %v1017_v23, %v1152_v33 }
 0x123   :  { %v1866_v47 = vpack.c.bf16 %v1219_v41, %v1218_v31  ;;  %v1185_v48 = vsel %vm1051_vm6, %v986_v28, %v1121_v37  ;;  %vm1083_vm7 = vcmp.ge.f32.partialorder %v1018_v38, 0.0  ;;  %v1153_v49 = vmul.f32 %v2238_v42, %v1018_v38 }
 0x124   :  { %1890 = vst [vmem:[%s2471_s4 + $0x68] sm:$0xff] %v1786_v39   ;;  %v1781_v51 = vpack.c.bf16 %v1185_v48, %v1184_v35  ;;  %vm1056_vm8 = vcmp.ge.f32.partialorder %v991_v43, 0.0  ;;  %v1126_v52 = vmul.f32 %v2238_v42, %v991_v43  ;;  %vm1088_vm9 = vcmp.ge.f32.partialorder %v1023_v44, 0.0 }
 0x125   :  { %1906 = vst [vmem:[%s2471_s4 + $0xe8] sm:$0xff] %v1866_v47   ;;  %v1217_v53 = vsel %vm1083_vm7, %v1018_v38, %v1153_v49  ;;  %v1158_v54 = vmul.f32 %v2238_v42, %v1023_v44  ;;  %v989_v55 = vadd.f32 %v2233_v40, %v616_v29  ;;  %v1021_v57 = vadd.f32 %v2233_v40, %v744_v30 }
 0x126   :  { %1889 = vst [vmem:[%s2471_s4 + $0x60] sm:$0xff] %v1781_v51   ;;  %v1861_v56 = vpack.c.bf16 %v1217_v53, %v1216_v50  ;;  %v992_v58 = vadd.f32 %v1996_v45, %v2233_v40  ;;  %v1024_v59 = vadd.f32 %v2028_v46, %v2233_v40  ;;  %v1190_v62 = vsel %vm1056_vm8, %v991_v43, %v1126_v52 }
 0x127   :  { %v1222_v63 = vsel %vm1088_vm9, %v1023_v44, %v1158_v54  ;;  %v1124_v1 = vmul.f32 %v2238_v42, %v989_v55  ;;  %v990_v3 = vadd.f32 %v2233_v40, %v619_v60  ;;  %v1022_v4 = vadd.f32 %v2233_v40, %v747_v61 }
 0x128   :  { %1905 = vst [vmem:[%s2471_s4 + $0xe0] sm:$0xff] %v1861_v56   ;;  %vm1057_vm10 = vcmp.ge.f32.partialorder %v992_v58, 0.0  ;;  %v1127_v0 = vmul.f32 %v2238_v42, %v992_v58  ;;  %vm1089_vm11 = vcmp.ge.f32.partialorder %v1024_v59, 0.0  ;;  %v1159_v2 = vmul.f32 %v2238_v42, %v1024_v59 }
 0x129   :  { %vm1054_vm12 = vcmp.ge.f32.partialorder %v989_v55, 0.0  ;;  %vm1086_vm13 = vcmp.ge.f32.partialorder %v1021_v57, 0.0  ;;  %v1156_v5 = vmul.f32 %v2238_v42, %v1021_v57  ;;  %vm1055_vm14 = vcmp.ge.f32.partialorder %v990_v3, 0.0 }
 0x12a   :  { %v1191_v6 = vsel %vm1057_vm10, %v992_v58, %v1127_v0  ;;  %v1223_v8 = vsel %vm1089_vm11, %v1024_v59, %v1159_v2  ;;  %v1125_v9 = vmul.f32 %v2238_v42, %v990_v3  ;;  %vm1087_vm15 = vcmp.ge.f32.partialorder %v1022_v4, 0.0 }
 0x12b   :  { %v1796_v7 = vpack.c.bf16 %v1191_v6, %v1190_v62  ;;  %v1876_v10 = vpack.c.bf16 %v1223_v8, %v1222_v63  ;;  %v1157_v11 = vmul.f32 %v2238_v42, %v1022_v4  ;;  %v1188_v12 = vsel %vm1054_vm12, %v989_v55, %v1124_v1 }
 0x12c   :  { %v1189_v40 = vsel %vm1055_vm14, %v990_v3, %v1125_v9  ;;  %v1220_v13 = vsel %vm1086_vm13, %v1021_v57, %v1156_v5 }
 0x12d   :  { %1892 = vst [vmem:[%s2471_s4 + $0x78] sm:$0xff] %v1796_v7   ;;  %1908 = vst [vmem:[%s2471_s4 + $0xf8] sm:$0xff] %v1876_v10   ;;  %v1791_v14 = vpack.c.bf16 %v1189_v40, %v1188_v12  ;;  %v1221_v15 = vsel %vm1087_vm15, %v1022_v4, %v1157_v11 }
 0x12e   :  { %v1871_v16 = vpack.c.bf16 %v1221_v15, %v1220_v13 }
 0x12f   :  { %1891 = vst [vmem:[%s2471_s4 + $0x70] sm:$0xff] %v1791_v14  }
 0x130   :  { %1907 = vst [vmem:[%s2471_s4 + $0xf0] sm:$0xff] %v1871_v16  }

// kernel: iresnet_forward.15
= control target key start
LH: loop header
LB: loop body
LE: loop exit
PB: predicated region body
PF: predicated region fallthrough
CT: control target
= control target key end

     0   :  { %s2899_s15 = smov 0   ;;  %s2901_s16 = smov 0   ;;  %s3440_s0 = inlined_call_operand.vmem [shape: bf16[512,640], index: 0, kind: input, shape index: {}]   ;;  %s3441_s1 = inlined_call_operand.vmem [shape: bf16[640,128], index: 1, kind: input, shape index: {}]   ;;  %s3442_s2 = inlined_call_operand.vmem [shape: f32[1,128], index: 2, kind: input, shape index: {}]   ;;  %s3443_s3 = inlined_call_operand.vmem [shape: f32[1,128], index: 3, kind: input, shape index: {}]   ;;  %s3444_s4 = inlined_call_operand.vmem [shape: bf16[512,128], index: 4, kind: output, shape index: {}]  }
   0x1   :  { %s2903_s17 = smov 0   ;;  %s2905_s18 = smov 0  }
   0x2   :  { %s2907_s19 = smov 0  }
   0x3 LB: > { %s26_s20 = sadd.s32 1, %s2867_s18  ;;  %p49_p1 = scmp.ne.s32.totalorder %s2859_s16, %s2855_s15  ;;  %s2871_s19 = sphi %s2907_s19, %s14_s19   ;;  %s2867_s18 = sphi %s2905_s18, %s3448_s18   ;;  %s2863_s17 = sphi %s2903_s17, %s3447_s17   ;;  %s2859_s16 = sphi %s2901_s16, %s3446_s16   ;;  %s2855_s15 = sphi %s2899_s15, %s3445_s15  }
   0x4   : > { %p27_p0 = scmp.ge.s32.totalorder %s26_s20, 5  ;;  %p50_p2 = scmp.eq.s32.totalorder %s2871_s19, 0 }
   0x5   : > { %s42_s22 = sadd.s32 1, %s2859_s16  ;;  %p2242_p5 = scmp.ge.s32.totalorder %s2871_s19, 5 }
   0x6   : > { %s3450_s20 = smov (%p27_p0, %s26_s20), 0  ;;  %p51_p3 = por %p50_p2, %p49_p1 }
   0x7   : > { %s38_s21 = ssub.s32 %s2867_s18, %s3450_s20  ;;  %195 = sbr.rel (%p2242_p5) target bundleno = 58 (0x3a), region = 24 }
   0x8   : > { %p40_p4 = scmp.eq.s32.totalorder %s38_s21, 0 }
   0xa   : > { %s2934_s23 = scalar_select %p40_p4, %s2859_s16, %s42_s22  }
   0xc   : > { %198 = sbr.rel (!%p51_p3) target bundleno = 58 (0x3a), region = 28  ;;  %s200_s24 = sand.u32 (%p51_p3), 1, %s2859_s16  }
   0xd   : > { %s2244_s25 = sshll.u32 (%p51_p3), %s2867_s18, 2  ;;  %s2243_s26 = sshll.u32 (%p51_p3), %s200_s24, 8 }
   0xe   : > { %s2942_s29 = scalar_lea.vmem (%p51_p3), %s3440_s0, %s2244_s25  ;;  %s2946_s30 = scalar_lea.vmem (%p51_p3), [#allocation3], %s2243_s26 }
   0xf   : > { %v224_v0 = vld [vmem:[%s2942_s29] sm:$0xf] (%p51_p3)  ;;  %v226_v1 = vld [vmem:[%s2942_s29 + $0x14] sm:$0xf] (%p51_p3)  ;;  %v228_v2 = vld [vmem:[%s2942_s29 + $0x28] sm:$0xf] (%p51_p3) }
  0x10   : > { %225 = vst [vmem:[%s2946_s30] sm:$0xf] (%p51_p3), %v224_v0  ;;  %227 = vst [vmem:[%s2946_s30 + $0x4] sm:$0xf] (%p51_p3), %v226_v1  ;;  %v230_v3 = vld [vmem:[%s2942_s29 + $0x3c] sm:$0xf] (%p51_p3) }
  0x11   : > { %v232_v4 = vld [vmem:[%s2942_s29 + $0x50] sm:$0xf]  ;;  %229 = vst [vmem:[%s2946_s30 + $0x8] sm:$0xf] %v228_v2  ;;  %231 = vst [vmem:[%s2946_s30 + $0xc] sm:$0xf] %v230_v3 }
  0x12   : > { %233 = vst [vmem:[%s2946_s30 + $0x10] sm:$0xf] %v232_v4  ;;  %v234_v5 = vld [vmem:[%s2942_s29 + $0x64] sm:$0xf]  ;;  %v236_v6 = vld [vmem:[%s2942_s29 + $0x78] sm:$0xf] }
  0x13   : > { %v238_v7 = vld [vmem:[%s2942_s29 + $0x8c] sm:$0xf]  ;;  %235 = vst [vmem:[%s2946_s30 + $0x14] sm:$0xf] %v234_v5  ;;  %237 = vst [vmem:[%s2946_s30 + $0x18] sm:$0xf] %v236_v6 }
  0x14   : > { %239 = vst [vmem:[%s2946_s30 + $0x1c] sm:$0xf] %v238_v7  ;;  %v240_v8 = vld [vmem:[%s2942_s29 + $0xa0] sm:$0xf]  ;;  %v242_v9 = vld [vmem:[%s2942_s29 + $0xb4] sm:$0xf] }
  0x15   : > { %v244_v10 = vld [vmem:[%s2942_s29 + $0xc8] sm:$0xf]  ;;  %241 = vst [vmem:[%s2946_s30 + $0x20] sm:$0xf] %v240_v8  ;;  %243 = vst [vmem:[%s2946_s30 + $0x24] sm:$0xf] %v242_v9 }
  0x16   : > { %245 = vst [vmem:[%s2946_s30 + $0x28] sm:$0xf] %v244_v10  ;;  %v246_v11 = vld [vmem:[%s2942_s29 + $0xdc] sm:$0xf]  ;;  %v248_v12 = vld [vmem:[%s2942_s29 + $0xf0] sm:$0xf] }
  0x17   : > { %v250_v13 = vld [vmem:[%s2942_s29 + $0x104] sm:$0xf]  ;;  %247 = vst [vmem:[%s2946_s30 + $0x2c] sm:$0xf] %v246_v11  ;;  %249 = vst [vmem:[%s2946_s30 + $0x30] sm:$0xf] %v248_v12 }
  0x18   : > { %251 = vst [vmem:[%s2946_s30 + $0x34] sm:$0xf] %v250_v13  ;;  %v252_v14 = vld [vmem:[%s2942_s29 + $0x118] sm:$0xf]  ;;  %v254_v15 = vld [vmem:[%s2942_s29 + $0x12c] sm:$0xf] }
  0x19   : > { %v256_v16 = vld [vmem:[%s2942_s29 + $0x140] sm:$0xf]  ;;  %253 = vst [vmem:[%s2946_s30 + $0x38] sm:$0xf] %v252_v14  ;;  %255 = vst [vmem:[%s2946_s30 + $0x3c] sm:$0xf] %v254_v15 }
  0x1a   : > { %257 = vst [vmem:[%s2946_s30 + $0x40] sm:$0xf] %v256_v16  ;;  %v258_v17 = vld [vmem:[%s2942_s29 + $0x154] sm:$0xf]  ;;  %v260_v18 = vld [vmem:[%s2942_s29 + $0x168] sm:$0xf] }
  0x1b   : > { %v262_v19 = vld [vmem:[%s2942_s29 + $0x17c] sm:$0xf]  ;;  %259 = vst [vmem:[%s2946_s30 + $0x44] sm:$0xf] %v258_v17  ;;  %261 = vst [vmem:[%s2946_s30 + $0x48] sm:$0xf] %v260_v18 }
  0x1c   : > { %263 = vst [vmem:[%s2946_s30 + $0x4c] sm:$0xf] %v262_v19  ;;  %v264_v20 = vld [vmem:[%s2942_s29 + $0x190] sm:$0xf]  ;;  %v266_v21 = vld [vmem:[%s2942_s29 + $0x1a4] sm:$0xf] }
  0x1d   : > { %v268_v22 = vld [vmem:[%s2942_s29 + $0x1b8] sm:$0xf]  ;;  %265 = vst [vmem:[%s2946_s30 + $0x50] sm:$0xf] %v264_v20  ;;  %267 = vst [vmem:[%s2946_s30 + $0x54] sm:$0xf] %v266_v21 }
  0x1e   : > { %269 = vst [vmem:[%s2946_s30 + $0x58] sm:$0xf] %v268_v22  ;;  %v270_v23 = vld [vmem:[%s2942_s29 + $0x1cc] sm:$0xf]  ;;  %v272_v24 = vld [vmem:[%s2942_s29 + $0x1e0] sm:$0xf] }
  0x1f   : > { %v274_v25 = vld [vmem:[%s2942_s29 + $0x1f4] sm:$0xf]  ;;  %271 = vst [vmem:[%s2946_s30 + $0x5c] sm:$0xf] %v270_v23  ;;  %273 = vst [vmem:[%s2946_s30 + $0x60] sm:$0xf] %v272_v24 }
  0x20   : > { %275 = vst [vmem:[%s2946_s30 + $0x64] sm:$0xf] %v274_v25  ;;  %v276_v26 = vld [vmem:[%s2942_s29 + $0x208] sm:$0xf]  ;;  %v278_v27 = vld [vmem:[%s2942_s29 + $0x21c] sm:$0xf] }
  0x21   : > { %v280_v28 = vld [vmem:[%s2942_s29 + $0x230] sm:$0xf]  ;;  %277 = vst [vmem:[%s2946_s30 + $0x68] sm:$0xf] %v276_v26  ;;  %279 = vst [vmem:[%s2946_s30 + $0x6c] sm:$0xf] %v278_v27 }
  0x22   : > { %281 = vst [vmem:[%s2946_s30 + $0x70] sm:$0xf] %v280_v28  ;;  %v282_v29 = vld [vmem:[%s2942_s29 + $0x244] sm:$0xf]  ;;  %v284_v30 = vld [vmem:[%s2942_s29 + $0x258] sm:$0xf] }
  0x23   : > { %v286_v31 = vld [vmem:[%s2942_s29 + $0x26c] sm:$0xf]  ;;  %283 = vst [vmem:[%s2946_s30 + $0x74] sm:$0xf] %v282_v29  ;;  %285 = vst [vmem:[%s2946_s30 + $0x78] sm:$0xf] %v284_v30 }
  0x24   : > { %287 = vst [vmem:[%s2946_s30 + $0x7c] sm:$0xf] %v286_v31  ;;  %v288_v32 = vld [vmem:[%s2942_s29 + $0x280] sm:$0xf]  ;;  %v290_v33 = vld [vmem:[%s2942_s29 + $0x294] sm:$0xf] }
  0x25   : > { %v292_v34 = vld [vmem:[%s2942_s29 + $0x2a8] sm:$0xf]  ;;  %289 = vst [vmem:[%s2946_s30 + $0x80] sm:$0xf] %v288_v32  ;;  %291 = vst [vmem:[%s2946_s30 + $0x84] sm:$0xf] %v290_v33 }
  0x26   : > { %293 = vst [vmem:[%s2946_s30 + $0x88] sm:$0xf] %v292_v34  ;;  %v294_v35 = vld [vmem:[%s2942_s29 + $0x2bc] sm:$0xf]  ;;  %v296_v36 = vld [vmem:[%s2942_s29 + $0x2d0] sm:$0xf] }
  0x27   : > { %v298_v37 = vld [vmem:[%s2942_s29 + $0x2e4] sm:$0xf]  ;;  %295 = vst [vmem:[%s2946_s30 + $0x8c] sm:$0xf] %v294_v35  ;;  %297 = vst [vmem:[%s2946_s30 + $0x90] sm:$0xf] %v296_v36 }
  0x28   : > { %299 = vst [vmem:[%s2946_s30 + $0x94] sm:$0xf] %v298_v37  ;;  %v300_v38 = vld [vmem:[%s2942_s29 + $0x2f8] sm:$0xf]  ;;  %v302_v39 = vld [vmem:[%s2942_s29 + $0x30c] sm:$0xf] }
  0x29   : > { %v304_v40 = vld [vmem:[%s2942_s29 + $0x320] sm:$0xf]  ;;  %301 = vst [vmem:[%s2946_s30 + $0x98] sm:$0xf] %v300_v38  ;;  %303 = vst [vmem:[%s2946_s30 + $0x9c] sm:$0xf] %v302_v39 }
  0x2a   : > { %305 = vst [vmem:[%s2946_s30 + $0xa0] sm:$0xf] %v304_v40  ;;  %v306_v41 = vld [vmem:[%s2942_s29 + $0x334] sm:$0xf]  ;;  %v308_v42 = vld [vmem:[%s2942_s29 + $0x348] sm:$0xf] }
  0x2b   : > { %v310_v43 = vld [vmem:[%s2942_s29 + $0x35c] sm:$0xf]  ;;  %307 = vst [vmem:[%s2946_s30 + $0xa4] sm:$0xf] %v306_v41  ;;  %309 = vst [vmem:[%s2946_s30 + $0xa8] sm:$0xf] %v308_v42 }
  0x2c   : > { %311 = vst [vmem:[%s2946_s30 + $0xac] sm:$0xf] %v310_v43  ;;  %v312_v44 = vld [vmem:[%s2942_s29 + $0x370] sm:$0xf]  ;;  %v314_v45 = vld [vmem:[%s2942_s29 + $0x384] sm:$0xf] }
  0x2d   : > { %v316_v46 = vld [vmem:[%s2942_s29 + $0x398] sm:$0xf]  ;;  %313 = vst [vmem:[%s2946_s30 + $0xb0] sm:$0xf] %v312_v44  ;;  %315 = vst [vmem:[%s2946_s30 + $0xb4] sm:$0xf] %v314_v45 }
  0x2e   : > { %317 = vst [vmem:[%s2946_s30 + $0xb8] sm:$0xf] %v316_v46  ;;  %v318_v47 = vld [vmem:[%s2942_s29 + $0x3ac] sm:$0xf]  ;;  %v320_v48 = vld [vmem:[%s2942_s29 + $0x3c0] sm:$0xf] }
  0x2f   : > { %v322_v49 = vld [vmem:[%s2942_s29 + $0x3d4] sm:$0xf]  ;;  %319 = vst [vmem:[%s2946_s30 + $0xbc] sm:$0xf] %v318_v47  ;;  %321 = vst [vmem:[%s2946_s30 + $0xc0] sm:$0xf] %v320_v48 }
  0x30   : > { %323 = vst [vmem:[%s2946_s30 + $0xc4] sm:$0xf] %v322_v49  ;;  %v324_v50 = vld [vmem:[%s2942_s29 + $0x3e8] sm:$0xf]  ;;  %v326_v51 = vld [vmem:[%s2942_s29 + $0x3fc] sm:$0xf] }
  0x31   : > { %v328_v52 = vld [vmem:[%s2942_s29 + $0x410] sm:$0xf]  ;;  %325 = vst [vmem:[%s2946_s30 + $0xc8] sm:$0xf] %v324_v50  ;;  %327 = vst [vmem:[%s2946_s30 + $0xcc] sm:$0xf] %v326_v51 }
  0x32   : > { %329 = vst [vmem:[%s2946_s30 + $0xd0] sm:$0xf] %v328_v52  ;;  %v330_v53 = vld [vmem:[%s2942_s29 + $0x424] sm:$0xf]  ;;  %v332_v54 = vld [vmem:[%s2942_s29 + $0x438] sm:$0xf] }
  0x33   : > { %v334_v55 = vld [vmem:[%s2942_s29 + $0x44c] sm:$0xf]  ;;  %331 = vst [vmem:[%s2946_s30 + $0xd4] sm:$0xf] %v330_v53  ;;  %333 = vst [vmem:[%s2946_s30 + $0xd8] sm:$0xf] %v332_v54 }
  0x34   : > { %335 = vst [vmem:[%s2946_s30 + $0xdc] sm:$0xf] %v334_v55  ;;  %v336_v56 = vld [vmem:[%s2942_s29 + $0x460] sm:$0xf]  ;;  %v338_v57 = vld [vmem:[%s2942_s29 + $0x474] sm:$0xf] }
  0x35   : > { %v340_v58 = vld [vmem:[%s2942_s29 + $0x488] sm:$0xf]  ;;  %337 = vst [vmem:[%s2946_s30 + $0xe0] sm:$0xf] %v336_v56  ;;  %339 = vst [vmem:[%s2946_s30 + $0xe4] sm:$0xf] %v338_v57 }
  0x36   : > { %341 = vst [vmem:[%s2946_s30 + $0xe8] sm:$0xf] %v340_v58  ;;  %v342_v59 = vld [vmem:[%s2942_s29 + $0x49c] sm:$0xf]  ;;  %v344_v60 = vld [vmem:[%s2942_s29 + $0x4b0] sm:$0xf] }
  0x37   : > { %v346_v61 = vld [vmem:[%s2942_s29 + $0x4c4] sm:$0xf]  ;;  %343 = vst [vmem:[%s2946_s30 + $0xec] sm:$0xf] %v342_v59  ;;  %345 = vst [vmem:[%s2946_s30 + $0xf0] sm:$0xf] %v344_v60 }
  0x38   : > { %347 = vst [vmem:[%s2946_s30 + $0xf4] sm:$0xf] %v346_v61  ;;  %v348_v62 = vld [vmem:[%s2942_s29 + $0x4d8] sm:$0xf]  ;;  %v350_v63 = vld [vmem:[%s2942_s29 + $0x4ec] sm:$0xf] }
  0x39   : > { %349 = vst [vmem:[%s2946_s30 + $0xf8] sm:$0xf] %v348_v62  ;;  %351 = vst [vmem:[%s2946_s30 + $0xfc] sm:$0xf] %v350_v63 }
  0x3a PF: > { %p2245_p6 = scmp.ge.s32.totalorder %s2871_s19, 1  ;;  %p514_p7 = scmp.lt.s32.totalorder %s2871_s19, 6 }
  0x3c   : > { %p515_p8 = pnand %p2245_p6, %p514_p7 }
  0x3d   : > { %s521_s5 = sand.u32 (!%p515_p8), 1, %s2855_s15   ;;  %s2247_s6 = sshll.u32 (!%p515_p8), %s2863_s17, 4 }
  0x3e   : > { %518 = sbr.rel (%p515_p8) target bundleno = 475 (0x1db), region = 73  ;;  %s2246_s7 = sshll.u32 (!%p515_p8), %s521_s5, 8 }
  0x3f   : > { %p565_p9 = scmp.lt.s32.totalorder (!%p515_p8), %s2247_s6, 79  ;;  %s3083_s12 = scalar_lea.vmem (!%p515_p8), [#allocation3], %s2246_s7 }
  0x40   : > { %p2249_p10 = scmp.ne.s32.totalorder (!%p515_p8), %s2863_s17, 0 }
  0x43   : > { %s3452_s6 = smov (!%p565_p9, %s2247_s6), 79  ;;  %592 = sbr.rel (%p2249_p10) target bundleno = 105 (0x69), region = 81 }
  0x44   : > { %s2248_s8 = sshll.u32 %s3452_s6, 2 }
  0x45   : > { %s3081_s11 = scalar_lea.vmem %s3441_s1, %s2248_s8 }
  0x48   : > { %v2873_v0 = vmov 0.0  }
  0x49   : > { %593 = vst [vmem:[#allocation2 + $0xb0] sm:$0xff] %v2873_v0  ;;  %594 = vst [vmem:[#allocation2 + $0x1b0] sm:$0xff] %v2873_v0 }
  0x4a   : > { %595 = vst [vmem:[#allocation2 + $0xd8] sm:$0xff] %v2873_v0  ;;  %596 = vst [vmem:[#allocation2 + $0x18] sm:$0xff] %v2873_v0 }
  0x4b   : > { %597 = vst [vmem:[#allocation2 + $0x50] sm:$0xff] %v2873_v0  ;;  %598 = vst [vmem:[#allocation2 + $0x168] sm:$0xff] %v2873_v0 }
  0x4c   : > { %599 = vst [vmem:[#allocation2 + $0x130] sm:$0xff] %v2873_v0  ;;  %600 = vst [vmem:[#allocation2 + $0x48] sm:$0xff] %v2873_v0 }
  0x4d   : > { %601 = vst [vmem:[#allocation2 + $0x180] sm:$0xff] %v2873_v0  ;;  %602 = vst [vmem:[#allocation2 + $0x110] sm:$0xff] %v2873_v0 }
  0x4e   : > { %603 = vst [vmem:[#allocation2 + $0x118] sm:$0xff] %v2873_v0  ;;  %604 = vst [vmem:[#allocation2 + $0x98] sm:$0xff] %v2873_v0 }
  0x4f   : > { %605 = vst [vmem:[#allocation2 + $0x120] sm:$0xff] %v2873_v0  ;;  %606 = vst [vmem:[#allocation2 + $0x150] sm:$0xff] %v2873_v0 }
  0x50   : > { %607 = vst [vmem:[#allocation2 + $0x108] sm:$0xff] %v2873_v0  ;;  %608 = vst [vmem:[#allocation2 + $0x60] sm:$0xff] %v2873_v0 }
  0x51   : > { %609 = vst [vmem:[#allocation2 + $0xe0] sm:$0xff] %v2873_v0  ;;  %610 = vst [vmem:[#allocation2 + $0x188] sm:$0xff] %v2873_v0 }
  0x52   : > { %611 = vst [vmem:[#allocation2 + $0x138] sm:$0xff] %v2873_v0  ;;  %612 = vst [vmem:[#allocation2 + $0x140] sm:$0xff] %v2873_v0 }
  0x53   : > { %613 = vst [vmem:[#allocation2 + $0x80] sm:$0xff] %v2873_v0  ;;  %614 = vst [vmem:[#allocation2 + $0x1a8] sm:$0xff] %v2873_v0 }
  0x54   : > { %615 = vst [vmem:[#allocation2 + $0x1b8] sm:$0xff] %v2873_v0  ;;  %616 = vst [vmem:[#allocation2 + $0x28] sm:$0xff] %v2873_v0 }
  0x55   : > { %617 = vst [vmem:[#allocation2 + $0x1e8] sm:$0xff] %v2873_v0  ;;  %618 = vst [vmem:[#allocation2 + $0xf8] sm:$0xff] %v2873_v0 }
  0x56   : > { %619 = vst [vmem:[#allocation2 + $0x160] sm:$0xff] %v2873_v0  ;;  %620 = vst [vmem:[#allocation2 + $0x30] sm:$0xff] %v2873_v0 }
  0x57   : > { %621 = vst [vmem:[#allocation2 + $0x1e0] sm:$0xff] %v2873_v0  ;;  %622 = vst [vmem:[#allocation2] sm:$0xff] %v2873_v0 }
  0x58   : > { %623 = vst [vmem:[#allocation2 + $0xf0] sm:$0xff] %v2873_v0  ;;  %624 = vst [vmem:[#allocation2 + $0x8] sm:$0xff] %v2873_v0 }
  0x59   : > { %625 = vst [vmem:[#allocation2 + $0x148] sm:$0xff] %v2873_v0  ;;  %626 = vst [vmem:[#allocation2 + $0x1d0] sm:$0xff] %v2873_v0 }
  0x5a   : > { %627 = vst [vmem:[#allocation2 + $0x100] sm:$0xff] %v2873_v0  ;;  %628 = vst [vmem:[#allocation2 + $0xc8] sm:$0xff] %v2873_v0 }
  0x5b   : > { %629 = vst [vmem:[#allocation2 + $0x40] sm:$0xff] %v2873_v0  ;;  %630 = vst [vmem:[#allocation2 + $0x1f8] sm:$0xff] %v2873_v0 }
  0x5c   : > { %631 = vst [vmem:[#allocation2 + $0x20] sm:$0xff] %v2873_v0  ;;  %632 = vst [vmem:[#allocation2 + $0x128] sm:$0xff] %v2873_v0 }
  0x5d   : > { %633 = vst [vmem:[#allocation2 + $0x1a0] sm:$0xff] %v2873_v0  ;;  %634 = vst [vmem:[#allocation2 + $0x1f0] sm:$0xff] %v2873_v0 }
  0x5e   : > { %635 = vst [vmem:[#allocation2 + $0xe8] sm:$0xff] %v2873_v0  ;;  %636 = vst [vmem:[#allocation2 + $0x78] sm:$0xff] %v2873_v0 }
  0x5f   : > { %637 = vst [vmem:[#allocation2 + $0x70] sm:$0xff] %v2873_v0  ;;  %638 = vst [vmem:[#allocation2 + $0x90] sm:$0xff] %v2873_v0 }
  0x60   : > { %639 = vst [vmem:[#allocation2 + $0x1d8] sm:$0xff] %v2873_v0  ;;  %640 = vst [vmem:[#allocation2 + $0xd0] sm:$0xff] %v2873_v0 }
  0x61   : > { %641 = vst [vmem:[#allocation2 + $0xb8] sm:$0xff] %v2873_v0  ;;  %642 = vst [vmem:[#allocation2 + $0x88] sm:$0xff] %v2873_v0 }
  0x62   : > { %643 = vst [vmem:[#allocation2 + $0xa8] sm:$0xff] %v2873_v0  ;;  %644 = vst [vmem:[#allocation2 + $0x1c8] sm:$0xff] %v2873_v0 }
  0x63   : > { %645 = vst [vmem:[#allocation2 + $0x170] sm:$0xff] %v2873_v0  ;;  %646 = vst [vmem:[#allocation2 + $0x178] sm:$0xff] %v2873_v0 }
  0x64   : > { %647 = vst [vmem:[#allocation2 + $0x68] sm:$0xff] %v2873_v0  ;;  %648 = vst [vmem:[#allocation2 + $0x190] sm:$0xff] %v2873_v0 }
  0x65   : > { %649 = vst [vmem:[#allocation2 + $0x198] sm:$0xff] %v2873_v0  ;;  %650 = vst [vmem:[#allocation2 + $0x38] sm:$0xff] %v2873_v0 }
  0x66   : > { %651 = vst [vmem:[#allocation2 + $0xc0] sm:$0xff] %v2873_v0  ;;  %652 = vst [vmem:[#allocation2 + $0x1c0] sm:$0xff] %v2873_v0 }
  0x67   : > { %653 = vst [vmem:[#allocation2 + $0x158] sm:$0xff] %v2873_v0  ;;  %654 = vst [vmem:[#allocation2 + $0x10] sm:$0xff] %v2873_v0 }
  0x68   : > { %655 = vst [vmem:[#allocation2 + $0x58] sm:$0xff] %v2873_v0  ;;  %656 = vst [vmem:[#allocation2 + $0xa0] sm:$0xff] %v2873_v0 }
  0x69 PF: > { %v2793_v1 = vld [vmem:[%s3081_s11 + $0x38] sm:$0xff]   ;;  %v2794_v2 = vld [vmem:[%s3081_s11 + $0x30] sm:$0xff]   ;;  %v2795_v3 = vld [vmem:[%s3081_s11 + $0x28] sm:$0xff]   ;;  %p2290_p11 = scmp.ne.s32.totalorder %s2863_s17, 4 }
  0x6a   : > { %2656 = vmatprep.subr.bf16.mxu0 %v2793_v1  ;;  %2736 = vmatprep.subr.bf16.mxu1 %v2793_v1  ;;  %v2796_v4 = vld [vmem:[%s3081_s11 + $0x20] sm:$0xff]   ;;  %v2797_v7 = vld [vmem:[%s3081_s11 + $0x18] sm:$0xff]   ;;  %v2798_v8 = vld [vmem:[%s3081_s11 + $0x10] sm:$0xff]  }
  0x6b   : > { %2657 = vmatpush3.bf16.msra.mxu0 %v2793_v1  ;;  %2744 = vmatpush3.bf16.msra.mxu1 %v2793_v1  ;;  %v2801_v5 = vld [vmem:[%s3083_s12] sm:$0xff]   ;;  %v2799_v9 = vld [vmem:[%s3081_s11 + $0x8] sm:$0xff]   ;;  %v2805_v13 = vld [vmem:[%s3083_s12 + $0x10] sm:$0xff]  }
  0x6c   : > { %2658 = vmatprep.subr.bf16.mxu0 %v2794_v2  ;;  %2737 = vmatprep.subr.bf16.mxu1 %v2794_v2  ;;  %v2802_v6 = vld [vmem:[%s3083_s12 + $0x80] sm:$0xff]   ;;  %v2803_v11 = vld [vmem:[%s3083_s12 + $0x8] sm:$0xff]   ;;  %v2806_v14 = vld [vmem:[%s3083_s12 + $0x90] sm:$0xff]  }
  0x6d   : > { %2672 = vmatprep.mubr.bf16.mxu0 %v2801_v5  ;;  %2704 = vmatprep.mubr.bf16.mxu1 %v2802_v6  ;;  %v2800_v10 = vld [vmem:[%s3081_s11] sm:$0xff]   ;;  %v2804_v12 = vld [vmem:[%s3083_s12 + $0x88] sm:$0xff]   ;;  %v2807_v15 = vld [vmem:[%s3083_s12 + $0x18] sm:$0xff]  }
  0x6e   : > { %v2808_v16 = vld [vmem:[%s3083_s12 + $0x98] sm:$0xff]   ;;  %v2809_v17 = vld [vmem:[%s3083_s12 + $0x20] sm:$0xff]   ;;  %v2811_v19 = vld [vmem:[%s3083_s12 + $0x28] sm:$0xff]  }
  0x6f   : > { %2659 = vmatpush3.bf16.msra.mxu0 %v2794_v2  ;;  %2745 = vmatpush3.bf16.msra.mxu1 %v2794_v2  ;;  %v2810_v18 = vld [vmem:[%s3083_s12 + $0xa0] sm:$0xff]   ;;  %v2812_v20 = vld [vmem:[%s3083_s12 + $0xa8] sm:$0xff]   ;;  %v2813_v21 = vld [vmem:[%s3083_s12 + $0x30] sm:$0xff]  }
  0x70   : > { %2660 = vmatprep.subr.bf16.mxu0 %v2795_v3  ;;  %2738 = vmatprep.subr.bf16.mxu1 %v2795_v3  ;;  %v2814_v22 = vld [vmem:[%s3083_s12 + $0xb0] sm:$0xff]   ;;  %v2815_v23 = vld [vmem:[%s3083_s12 + $0x38] sm:$0xff]   ;;  %v2817_v25 = vld [vmem:[%s3083_s12 + $0x40] sm:$0xff]  }
  0x71   : > { %v2816_v24 = vld [vmem:[%s3083_s12 + $0xb8] sm:$0xff]   ;;  %v2818_v26 = vld [vmem:[%s3083_s12 + $0xc0] sm:$0xff]   ;;  %v2819_v27 = vld [vmem:[%s3083_s12 + $0x48] sm:$0xff]  }
  0x72   : > { %v2820_v28 = vld [vmem:[%s3083_s12 + $0xc8] sm:$0xff]   ;;  %v2821_v29 = vld [vmem:[%s3083_s12 + $0x50] sm:$0xff]   ;;  %v2823_v31 = vld [vmem:[%s3083_s12 + $0x58] sm:$0xff]  }
  0x73   : > { %2661 = vmatpush3.bf16.msra.mxu0 %v2795_v3  ;;  %2746 = vmatpush3.bf16.msra.mxu1 %v2795_v3  ;;  %v2822_v30 = vld [vmem:[%s3083_s12 + $0xd0] sm:$0xff]   ;;  %v2824_v32 = vld [vmem:[%s3083_s12 + $0xd8] sm:$0xff]   ;;  %v2825_v33 = vld [vmem:[%s3083_s12 + $0x60] sm:$0xff]  }
  0x74   : > { %2662 = vmatprep.subr.bf16.mxu0 %v2796_v4  ;;  %2739 = vmatprep.subr.bf16.mxu1 %v2796_v4  ;;  %v2826_v34 = vld [vmem:[%s3083_s12 + $0xe0] sm:$0xff]   ;;  %v2827_v35 = vld [vmem:[%s3083_s12 + $0x68] sm:$0xff]   ;;  %v2829_v37 = vld [vmem:[%s3083_s12 + $0x70] sm:$0xff]  }
  0x75   : > { %v2828_v36 = vld [vmem:[%s3083_s12 + $0xe8] sm:$0xff]   ;;  %v2830_v38 = vld [vmem:[%s3083_s12 + $0xf0] sm:$0xff]   ;;  %v2831_v39 = vld [vmem:[%s3083_s12 + $0x78] sm:$0xff]  }
  0x76   : > { %v2832_v40 = vld [vmem:[%s3083_s12 + $0xf8] sm:$0xff]   ;;  %v691_v42 = vld [vmem:[#allocation2 + $0x100] sm:$0xff]  ;;  %v657_v45 = vld [vmem:[#allocation2 + $0xb0] sm:$0xff] }
  0x77   : > { %2663 = vmatpush3.bf16.msra.mxu0 %v2796_v4  ;;  %2747 = vmatpush3.bf16.msra.mxu1 %v2796_v4  ;;  %v659_v41 = vld [vmem:[#allocation2 + $0xd8] sm:$0xff]  ;;  %v689_v46 = vld [vmem:[#allocation2 + $0x148] sm:$0xff]  ;;  %v658_v57 = vld [vmem:[#allocation2 + $0x1b0] sm:$0xff] }
  0x78   : > { %2664 = vmatprep.subr.bf16.mxu0 %v2797_v7  ;;  %2740 = vmatprep.subr.bf16.mxu1 %v2797_v7  ;;  %v660_v51 = vld [vmem:[#allocation2 + $0x18] sm:$0xff]  ;;  %v692_v52 = vld [vmem:[#allocation2 + $0xc8] sm:$0xff]  ;;  %v690_v58 = vld [vmem:[#allocation2 + $0x1d0] sm:$0xff] }
  0x79   : > { %v663_v63 = vld [vmem:[#allocation2 + $0x130] sm:$0xff]  ;;  %v695_v0 = vld [vmem:[#allocation2 + $0x20] sm:$0xff] }
  0x7a   : > { %v661_v5 = vld [vmem:[#allocation2 + $0x50] sm:$0xff]  ;;  %v693_v6 = vld [vmem:[#allocation2 + $0x40] sm:$0xff] }
  0x7b   : > { %2665 = vmatpush3.bf16.msra.mxu0 %v2797_v7  ;;  %2748 = vmatpush3.bf16.msra.mxu1 %v2797_v7 }
  0x7c   : > { %2666 = vmatprep.subr.bf16.mxu0 %v2798_v8  ;;  %2741 = vmatprep.subr.bf16.mxu1 %v2798_v8 }
  0x7f   : > { %2667 = vmatpush3.bf16.msra.mxu0 %v2798_v8  ;;  %2749 = vmatpush3.bf16.msra.mxu1 %v2798_v8 }
  0x80   : > { %2668 = vmatprep.subr.bf16.mxu0 %v2799_v9  ;;  %2742 = vmatprep.subr.bf16.mxu1 %v2799_v9 }
  0x83   : > { %2669 = vmatpush3.bf16.msra.mxu0 %v2799_v9  ;;  %2750 = vmatpush3.bf16.msra.mxu1 %v2799_v9 }
  0x84   : > { %2670 = vmatprep.subr.bf16.mxu0 %v2800_v10  ;;  %2743 = vmatprep.subr.bf16.mxu1 %v2800_v10 }
  0x87   : > { %2671 = vmatpush3.bf16.msra.mxu0 %v2800_v10  ;;  %2751 = vmatpush3.bf16.msra.mxu1 %v2800_v10 }
  0x8a   : > { %2673 = vmatmul.mubr.bf16.vlgmr.msra.gmra.mxu0 %v2803_v11  ;;  %2705 = vmatmul.mubr.bf16.vlgmr.msra.gmra.mxu1 %v2804_v12  ;;  %v664_v11 = vld [vmem:[#allocation2 + $0x48] sm:$0xff] }
  0x8b   : > { %2676 = vmatprep.mubr.bf16.mxu0 %v2805_v13  ;;  %2708 = vmatprep.mubr.bf16.mxu1 %v2806_v14  ;;  %v696_v12 = vld [vmem:[#allocation2 + $0x128] sm:$0xff] }
  0x92   : > { %2677 = vmatmul.mubr.bf16.gmra.mxu0 %v2807_v15  ;;  %2709 = vmatmul.mubr.bf16.gmra.mxu1 %v2808_v16 }
  0x93   : > { %2680 = vmatprep.mubr.bf16.mxu0 %v2809_v17  ;;  %2712 = vmatprep.mubr.bf16.mxu1 %v2810_v18  ;;  %v662_v17 = vld [vmem:[#allocation2 + $0x168] sm:$0xff]  ;;  %v694_v18 = vld [vmem:[#allocation2 + $0x1f8] sm:$0xff] }
  0x9a   : > { %2681 = vmatmul.mubr.bf16.gmra.mxu0 %v2811_v19  ;;  %2713 = vmatmul.mubr.bf16.gmra.mxu1 %v2812_v20 }
  0x9b   : > { %2684 = vmatprep.mubr.bf16.mxu0 %v2813_v21  ;;  %2716 = vmatprep.mubr.bf16.mxu1 %v2814_v22 }
  0xa2   : > { %2685 = vmatmul.mubr.bf16.gmra.mxu0 %v2815_v23  ;;  %2717 = vmatmul.mubr.bf16.gmra.mxu1 %v2816_v24  ;;  %v667_v23 = vld [vmem:[#allocation2 + $0x118] sm:$0xff]  ;;  %v699_v24 = vld [vmem:[#allocation2 + $0xe8] sm:$0xff] }
  0xa3   : > { %2688 = vmatprep.mubr.bf16.mxu0 %v2817_v25  ;;  %2720 = vmatprep.mubr.bf16.mxu1 %v2818_v26 }
  0xaa   : > { %2689 = vmatmul.mubr.bf16.gmra.mxu0 %v2819_v27  ;;  %2721 = vmatmul.mubr.bf16.gmra.mxu1 %v2820_v28 }
  0xab   : > { %2692 = vmatprep.mubr.bf16.mxu0 %v2821_v29  ;;  %2724 = vmatprep.mubr.bf16.mxu1 %v2822_v30  ;;  %v665_v29 = vld [vmem:[#allocation2 + $0x180] sm:$0xff] }
  0xac   : > { %v697_v30 = vld [vmem:[#allocation2 + $0x1a0] sm:$0xff] }
  0xb2   : > { %2693 = vmatmul.mubr.bf16.gmra.mxu0 %v2823_v31  ;;  %2725 = vmatmul.mubr.bf16.gmra.mxu1 %v2824_v32 }
  0xb3   : > { %2696 = vmatprep.mubr.bf16.mxu0 %v2825_v33  ;;  %2728 = vmatprep.mubr.bf16.mxu1 %v2826_v34 }
  0xba   : > { %2697 = vmatmul.mubr.bf16.gmra.mxu0 %v2827_v35  ;;  %2729 = vmatmul.mubr.bf16.gmra.mxu1 %v2828_v36  ;;  %v668_v35 = vld [vmem:[#allocation2 + $0x98] sm:$0xff] }
  0xbb   : > { %2700 = vmatprep.mubr.bf16.mxu0 %v2829_v37  ;;  %2732 = vmatprep.mubr.bf16.mxu1 %v2830_v38  ;;  %v700_v36 = vld [vmem:[#allocation2 + $0x78] sm:$0xff] }
  0xc2   : > { %2701 = vmatmul.mubr.bf16.gmra.mxu0 %v2831_v39  ;;  %2733 = vmatmul.mubr.bf16.gmra.mxu1 %v2832_v40 }
 0x14a   : > { %v2674_v43 = vpop.f32.mrf.mxu0  ;;  %v2706_v44 = vpop.f32.mrf.mxu1 }
 0x14b   : > { %v1332_v47 = vadd.f32 %v2674_v43, %v659_v41  ;;  %v1364_v48 = vadd.f32 %v2706_v44, %v691_v42  ;;  %v666_v41 = vld [vmem:[#allocation2 + $0x110] sm:$0xff] }
 0x14c   : > { %v1075_v49 = vpop.f32.mrf.mxu0  ;;  %v1203_v50 = vpop.f32.mrf.mxu1  ;;  %v698_v42 = vld [vmem:[#allocation2 + $0x1f0] sm:$0xff] }
 0x14d   : > { %1396 = vst [vmem:[#allocation2 + $0xd8] sm:$0xff] %v1332_v47  ;;  %1428 = vst [vmem:[#allocation2 + $0x100] sm:$0xff] %v1364_v48  ;;  %v1330_v53 = vadd.f32 %v1075_v49, %v657_v45  ;;  %v1362_v54 = vadd.f32 %v1203_v50, %v689_v46  ;;  %v671_v47 = vld [vmem:[#allocation2 + $0x108] sm:$0xff]  ;;  %v703_v48 = vld [vmem:[#allocation2 + $0x1d8] sm:$0xff] }
 0x14e   : > { %v2675_v55 = vpop.f32.mrf.mxu0  ;;  %v2707_v56 = vpop.f32.mrf.mxu1 }
 0x14f   : > { %1394 = vst [vmem:[#allocation2 + $0xb0] sm:$0xff] %v1330_v53  ;;  %1426 = vst [vmem:[#allocation2 + $0x148] sm:$0xff] %v1362_v54  ;;  %v1333_v59 = vadd.f32 %v2675_v55, %v660_v51  ;;  %v1365_v60 = vadd.f32 %v2707_v56, %v692_v52  ;;  %v669_v53 = vld [vmem:[#allocation2 + $0x120] sm:$0xff]  ;;  %v701_v54 = vld [vmem:[#allocation2 + $0x70] sm:$0xff] }
 0x150   : > { %v1078_v61 = vpop.f32.mrf.mxu0  ;;  %v1206_v62 = vpop.f32.mrf.mxu1 }
 0x151   : > { %1397 = vst [vmem:[#allocation2 + $0x18] sm:$0xff] %v1333_v59  ;;  %1429 = vst [vmem:[#allocation2 + $0xc8] sm:$0xff] %v1365_v60  ;;  %v1331_v1 = vadd.f32 %v1078_v61, %v658_v57  ;;  %v1363_v2 = vadd.f32 %v1206_v62, %v690_v58  ;;  %v672_v59 = vld [vmem:[#allocation2 + $0x60] sm:$0xff]  ;;  %v704_v60 = vld [vmem:[#allocation2 + $0xd0] sm:$0xff] }
 0x152   : > { %v2678_v3 = vpop.f32.mrf.mxu0  ;;  %v2710_v4 = vpop.f32.mrf.mxu1 }
 0x153   : > { %1395 = vst [vmem:[#allocation2 + $0x1b0] sm:$0xff] %v1331_v1  ;;  %1427 = vst [vmem:[#allocation2 + $0x1d0] sm:$0xff] %v1363_v2  ;;  %v1336_v7 = vadd.f32 %v2678_v3, %v663_v63  ;;  %v1368_v8 = vadd.f32 %v2710_v4, %v695_v0  ;;  %v670_v1 = vld [vmem:[#allocation2 + $0x150] sm:$0xff] }
 0x154   : > { %v1091_v9 = vpop.f32.mrf.mxu0  ;;  %v1219_v10 = vpop.f32.mrf.mxu1  ;;  %v702_v2 = vld [vmem:[#allocation2 + $0x90] sm:$0xff] }
 0x155   : > { %1400 = vst [vmem:[#allocation2 + $0x130] sm:$0xff] %v1336_v7  ;;  %1432 = vst [vmem:[#allocation2 + $0x20] sm:$0xff] %v1368_v8  ;;  %v1334_v13 = vadd.f32 %v1091_v9, %v661_v5  ;;  %v1366_v14 = vadd.f32 %v1219_v10, %v693_v6  ;;  %v675_v7 = vld [vmem:[#allocation2 + $0x138] sm:$0xff]  ;;  %v707_v8 = vld [vmem:[#allocation2 + $0xa8] sm:$0xff] }
 0x156   : > { %v2679_v15 = vpop.f32.mrf.mxu0  ;;  %v2711_v16 = vpop.f32.mrf.mxu1 }
 0x157   : > { %1398 = vst [vmem:[#allocation2 + $0x50] sm:$0xff] %v1334_v13  ;;  %1430 = vst [vmem:[#allocation2 + $0x40] sm:$0xff] %v1366_v14  ;;  %v1337_v19 = vadd.f32 %v2679_v15, %v664_v11  ;;  %v1369_v20 = vadd.f32 %v2711_v16, %v696_v12  ;;  %v673_v13 = vld [vmem:[#allocation2 + $0xe0] sm:$0xff]  ;;  %v705_v14 = vld [vmem:[#allocation2 + $0xb8] sm:$0xff] }
 0x158   : > { %v1094_v21 = vpop.f32.mrf.mxu0  ;;  %v1222_v22 = vpop.f32.mrf.mxu1 }
 0x159   : > { %1401 = vst [vmem:[#allocation2 + $0x48] sm:$0xff] %v1337_v19  ;;  %1433 = vst [vmem:[#allocation2 + $0x128] sm:$0xff] %v1369_v20  ;;  %v1335_v25 = vadd.f32 %v1094_v21, %v662_v17  ;;  %v1367_v26 = vadd.f32 %v1222_v22, %v694_v18  ;;  %v676_v19 = vld [vmem:[#allocation2 + $0x140] sm:$0xff]  ;;  %v708_v20 = vld [vmem:[#allocation2 + $0x1c8] sm:$0xff] }
 0x15a   : > { %v2682_v27 = vpop.f32.mrf.mxu0  ;;  %v2714_v28 = vpop.f32.mrf.mxu1 }
 0x15b   : > { %1399 = vst [vmem:[#allocation2 + $0x168] sm:$0xff] %v1335_v25  ;;  %1431 = vst [vmem:[#allocation2 + $0x1f8] sm:$0xff] %v1367_v26  ;;  %v1340_v31 = vadd.f32 %v2682_v27, %v667_v23  ;;  %v1372_v32 = vadd.f32 %v2714_v28, %v699_v24  ;;  %v674_v25 = vld [vmem:[#allocation2 + $0x188] sm:$0xff] }
 0x15c   : > { %v1107_v33 = vpop.f32.mrf.mxu0  ;;  %v1235_v34 = vpop.f32.mrf.mxu1  ;;  %v706_v26 = vld [vmem:[#allocation2 + $0x88] sm:$0xff] }
 0x15d   : > { %1404 = vst [vmem:[#allocation2 + $0x118] sm:$0xff] %v1340_v31  ;;  %1436 = vst [vmem:[#allocation2 + $0xe8] sm:$0xff] %v1372_v32  ;;  %v1338_v37 = vadd.f32 %v1107_v33, %v665_v29  ;;  %v1370_v38 = vadd.f32 %v1235_v34, %v697_v30  ;;  %v679_v31 = vld [vmem:[#allocation2 + $0x1b8] sm:$0xff]  ;;  %v711_v32 = vld [vmem:[#allocation2 + $0x68] sm:$0xff] }
 0x15e   : > { %v2683_v39 = vpop.f32.mrf.mxu0  ;;  %v2715_v40 = vpop.f32.mrf.mxu1 }
 0x15f   : > { %1402 = vst [vmem:[#allocation2 + $0x180] sm:$0xff] %v1338_v37  ;;  %1434 = vst [vmem:[#allocation2 + $0x1a0] sm:$0xff] %v1370_v38  ;;  %v1341_v43 = vadd.f32 %v2683_v39, %v668_v35  ;;  %v1373_v44 = vadd.f32 %v2715_v40, %v700_v36  ;;  %v677_v37 = vld [vmem:[#allocation2 + $0x80] sm:$0xff]  ;;  %v709_v38 = vld [vmem:[#allocation2 + $0x170] sm:$0xff] }
 0x160   : > { %v1110_v45 = vpop.f32.mrf.mxu0  ;;  %v1238_v46 = vpop.f32.mrf.mxu1 }
 0x161   : > { %1405 = vst [vmem:[#allocation2 + $0x98] sm:$0xff] %v1341_v43  ;;  %1437 = vst [vmem:[#allocation2 + $0x78] sm:$0xff] %v1373_v44  ;;  %v1339_v49 = vadd.f32 %v1110_v45, %v666_v41  ;;  %v1371_v50 = vadd.f32 %v1238_v46, %v698_v42  ;;  %v680_v43 = vld [vmem:[#allocation2 + $0x28] sm:$0xff]  ;;  %v712_v44 = vld [vmem:[#allocation2 + $0x190] sm:$0xff] }
 0x162   : > { %v2686_v51 = vpop.f32.mrf.mxu0  ;;  %v2718_v52 = vpop.f32.mrf.mxu1 }
 0x163   : > { %1403 = vst [vmem:[#allocation2 + $0x110] sm:$0xff] %v1339_v49  ;;  %1435 = vst [vmem:[#allocation2 + $0x1f0] sm:$0xff] %v1371_v50  ;;  %v1344_v55 = vadd.f32 %v2686_v51, %v671_v47  ;;  %v1376_v56 = vadd.f32 %v2718_v52, %v703_v48  ;;  %v678_v49 = vld [vmem:[#allocation2 + $0x1a8] sm:$0xff]  ;;  %v710_v50 = vld [vmem:[#allocation2 + $0x178] sm:$0xff] }
 0x164   : > { %v1123_v57 = vpop.f32.mrf.mxu0  ;;  %v1251_v58 = vpop.f32.mrf.mxu1 }
 0x165   : > { %1408 = vst [vmem:[#allocation2 + $0x108] sm:$0xff] %v1344_v55  ;;  %1440 = vst [vmem:[#allocation2 + $0x1d8] sm:$0xff] %v1376_v56  ;;  %v1342_v61 = vadd.f32 %v1123_v57, %v669_v53  ;;  %v1374_v62 = vadd.f32 %v1251_v58, %v701_v54  ;;  %v683_v55 = vld [vmem:[#allocation2 + $0x160] sm:$0xff] }
 0x166   : > { %v2687_v63 = vpop.f32.mrf.mxu0  ;;  %v2719_v0 = vpop.f32.mrf.mxu1  ;;  %v715_v56 = vld [vmem:[#allocation2 + $0xc0] sm:$0xff] }
 0x167   : > { %1406 = vst [vmem:[#allocation2 + $0x120] sm:$0xff] %v1342_v61  ;;  %1438 = vst [vmem:[#allocation2 + $0x70] sm:$0xff] %v1374_v62  ;;  %v1345_v3 = vadd.f32 %v2687_v63, %v672_v59  ;;  %v1377_v4 = vadd.f32 %v2719_v0, %v704_v60  ;;  %v681_v61 = vld [vmem:[#allocation2 + $0x1e8] sm:$0xff]  ;;  %v713_v62 = vld [vmem:[#allocation2 + $0x198] sm:$0xff] }
 0x168   : > { %v1126_v5 = vpop.f32.mrf.mxu0  ;;  %v1254_v6 = vpop.f32.mrf.mxu1 }
 0x169   : > { %1409 = vst [vmem:[#allocation2 + $0x60] sm:$0xff] %v1345_v3  ;;  %1441 = vst [vmem:[#allocation2 + $0xd0] sm:$0xff] %v1377_v4  ;;  %v1343_v9 = vadd.f32 %v1126_v5, %v670_v1  ;;  %v1375_v10 = vadd.f32 %v1254_v6, %v702_v2  ;;  %v684_v3 = vld [vmem:[#allocation2 + $0x30] sm:$0xff]  ;;  %v716_v4 = vld [vmem:[#allocation2 + $0x1c0] sm:$0xff] }
 0x16a   : > { %v2690_v11 = vpop.f32.mrf.mxu0  ;;  %v2722_v12 = vpop.f32.mrf.mxu1 }
 0x16b   : > { %1407 = vst [vmem:[#allocation2 + $0x150] sm:$0xff] %v1343_v9  ;;  %1439 = vst [vmem:[#allocation2 + $0x90] sm:$0xff] %v1375_v10  ;;  %v1348_v15 = vadd.f32 %v2690_v11, %v675_v7  ;;  %v1380_v16 = vadd.f32 %v2722_v12, %v707_v8  ;;  %v682_v9 = vld [vmem:[#allocation2 + $0xf8] sm:$0xff] }
 0x16c   : > { %v1139_v17 = vpop.f32.mrf.mxu0  ;;  %v1267_v18 = vpop.f32.mrf.mxu1  ;;  %v714_v10 = vld [vmem:[#allocation2 + $0x38] sm:$0xff] }
 0x16d   : > { %1412 = vst [vmem:[#allocation2 + $0x138] sm:$0xff] %v1348_v15  ;;  %1444 = vst [vmem:[#allocation2 + $0xa8] sm:$0xff] %v1380_v16  ;;  %v1346_v21 = vadd.f32 %v1139_v17, %v673_v13  ;;  %v1378_v22 = vadd.f32 %v1267_v18, %v705_v14  ;;  %v687_v15 = vld [vmem:[#allocation2 + $0xf0] sm:$0xff]  ;;  %v719_v16 = vld [vmem:[#allocation2 + $0x58] sm:$0xff] }
 0x16e   : > { %v2691_v23 = vpop.f32.mrf.mxu0  ;;  %v2723_v24 = vpop.f32.mrf.mxu1 }
 0x16f   : > { %1410 = vst [vmem:[#allocation2 + $0xe0] sm:$0xff] %v1346_v21  ;;  %1442 = vst [vmem:[#allocation2 + $0xb8] sm:$0xff] %v1378_v22  ;;  %v1349_v27 = vadd.f32 %v2691_v23, %v676_v19  ;;  %v1381_v28 = vadd.f32 %v2723_v24, %v708_v20  ;;  %v685_v21 = vld [vmem:[#allocation2 + $0x1e0] sm:$0xff]  ;;  %v717_v22 = vld [vmem:[#allocation2 + $0x158] sm:$0xff] }
 0x170   : > { %v1142_v29 = vpop.f32.mrf.mxu0  ;;  %v1270_v30 = vpop.f32.mrf.mxu1 }
 0x171   : > { %1413 = vst [vmem:[#allocation2 + $0x140] sm:$0xff] %v1349_v27  ;;  %1445 = vst [vmem:[#allocation2 + $0x1c8] sm:$0xff] %v1381_v28  ;;  %v1347_v33 = vadd.f32 %v1142_v29, %v674_v25  ;;  %v1379_v34 = vadd.f32 %v1270_v30, %v706_v26  ;;  %v688_v27 = vld [vmem:[#allocation2 + $0x8] sm:$0xff]  ;;  %v720_v28 = vld [vmem:[#allocation2 + $0xa0] sm:$0xff] }
 0x172   : > { %v2694_v35 = vpop.f32.mrf.mxu0  ;;  %v2726_v36 = vpop.f32.mrf.mxu1 }
 0x173   : > { %1411 = vst [vmem:[#allocation2 + $0x188] sm:$0xff] %v1347_v33  ;;  %1443 = vst [vmem:[#allocation2 + $0x88] sm:$0xff] %v1379_v34  ;;  %v1352_v39 = vadd.f32 %v2694_v35, %v679_v31  ;;  %v1384_v40 = vadd.f32 %v2726_v36, %v711_v32  ;;  %v686_v33 = vld [vmem:[#allocation2] sm:$0xff]  ;;  %v718_v34 = vld [vmem:[#allocation2 + $0x10] sm:$0xff] }
 0x174   : > { %v1155_v41 = vpop.f32.mrf.mxu0  ;;  %v1283_v42 = vpop.f32.mrf.mxu1 }
 0x175   : > { %1416 = vst [vmem:[#allocation2 + $0x1b8] sm:$0xff] %v1352_v39  ;;  %1448 = vst [vmem:[#allocation2 + $0x68] sm:$0xff] %v1384_v40  ;;  %v1350_v45 = vadd.f32 %v1155_v41, %v677_v37  ;;  %v1382_v46 = vadd.f32 %v1283_v42, %v709_v38 }
 0x176   : > { %v2695_v47 = vpop.f32.mrf.mxu0  ;;  %v2727_v48 = vpop.f32.mrf.mxu1 }
 0x177   : > { %1414 = vst [vmem:[#allocation2 + $0x80] sm:$0xff] %v1350_v45  ;;  %1446 = vst [vmem:[#allocation2 + $0x170] sm:$0xff] %v1382_v46  ;;  %v1353_v51 = vadd.f32 %v2695_v47, %v680_v43  ;;  %v1385_v52 = vadd.f32 %v2727_v48, %v712_v44 }
 0x178   : > { %v1158_v53 = vpop.f32.mrf.mxu0  ;;  %v1286_v54 = vpop.f32.mrf.mxu1 }
 0x179   : > { %1417 = vst [vmem:[#allocation2 + $0x28] sm:$0xff] %v1353_v51  ;;  %1449 = vst [vmem:[#allocation2 + $0x190] sm:$0xff] %v1385_v52  ;;  %v1351_v57 = vadd.f32 %v1158_v53, %v678_v49  ;;  %v1383_v58 = vadd.f32 %v1286_v54, %v710_v50 }
 0x17a   : > { %v2698_v59 = vpop.f32.mrf.mxu0  ;;  %v2730_v60 = vpop.f32.mrf.mxu1 }
 0x17b   : > { %1415 = vst [vmem:[#allocation2 + $0x1a8] sm:$0xff] %v1351_v57  ;;  %1447 = vst [vmem:[#allocation2 + $0x178] sm:$0xff] %v1383_v58  ;;  %v1356_v63 = vadd.f32 %v2698_v59, %v683_v55  ;;  %v1388_v0 = vadd.f32 %v2730_v60, %v715_v56 }
 0x17c   : > { %v1171_v1 = vpop.f32.mrf.mxu0  ;;  %v1299_v2 = vpop.f32.mrf.mxu1 }
 0x17d   : > { %1420 = vst [vmem:[#allocation2 + $0x160] sm:$0xff] %v1356_v63  ;;  %1452 = vst [vmem:[#allocation2 + $0xc0] sm:$0xff] %v1388_v0  ;;  %v1354_v5 = vadd.f32 %v1171_v1, %v681_v61  ;;  %v1386_v6 = vadd.f32 %v1299_v2, %v713_v62 }
 0x17e   : > { %v2699_v7 = vpop.f32.mrf.mxu0  ;;  %v2731_v8 = vpop.f32.mrf.mxu1 }
 0x17f   : > { %1418 = vst [vmem:[#allocation2 + $0x1e8] sm:$0xff] %v1354_v5  ;;  %1450 = vst [vmem:[#allocation2 + $0x198] sm:$0xff] %v1386_v6  ;;  %v1357_v11 = vadd.f32 %v2699_v7, %v684_v3  ;;  %v1389_v12 = vadd.f32 %v2731_v8, %v716_v4 }
 0x180   : > { %v1174_v13 = vpop.f32.mrf.mxu0  ;;  %v1302_v14 = vpop.f32.mrf.mxu1 }
 0x181   : > { %1421 = vst [vmem:[#allocation2 + $0x30] sm:$0xff] %v1357_v11  ;;  %1453 = vst [vmem:[#allocation2 + $0x1c0] sm:$0xff] %v1389_v12  ;;  %v1355_v17 = vadd.f32 %v1174_v13, %v682_v9  ;;  %v1387_v18 = vadd.f32 %v1302_v14, %v714_v10 }
 0x182   : > { %v2702_v19 = vpop.f32.mrf.mxu0  ;;  %v2734_v20 = vpop.f32.mrf.mxu1 }
 0x183   : > { %1419 = vst [vmem:[#allocation2 + $0xf8] sm:$0xff] %v1355_v17  ;;  %1451 = vst [vmem:[#allocation2 + $0x38] sm:$0xff] %v1387_v18  ;;  %v1360_v23 = vadd.f32 %v2702_v19, %v687_v15  ;;  %v1392_v24 = vadd.f32 %v2734_v20, %v719_v16 }
 0x184   : > { %v1187_v25 = vpop.f32.mrf.mxu0  ;;  %v1315_v26 = vpop.f32.mrf.mxu1 }
 0x185   : > { %1424 = vst [vmem:[#allocation2 + $0xf0] sm:$0xff] %v1360_v23  ;;  %1456 = vst [vmem:[#allocation2 + $0x58] sm:$0xff] %v1392_v24  ;;  %v1358_v29 = vadd.f32 %v1187_v25, %v685_v21  ;;  %v1390_v30 = vadd.f32 %v1315_v26, %v717_v22 }
 0x186   : > { %v2703_v31 = vpop.f32.mrf.mxu0  ;;  %v2735_v32 = vpop.f32.mrf.mxu1 }
 0x187   : > { %1422 = vst [vmem:[#allocation2 + $0x1e0] sm:$0xff] %v1358_v29  ;;  %1454 = vst [vmem:[#allocation2 + $0x158] sm:$0xff] %v1390_v30  ;;  %v1361_v35 = vadd.f32 %v2703_v31, %v688_v27  ;;  %v1393_v36 = vadd.f32 %v2735_v32, %v720_v28  ;;  %1461 = sbr.rel (%p2290_p11) target bundleno = 475 (0x1db), region = 85 }
 0x188   : > { %v1190_v37 = vpop.f32.mrf.mxu0  ;;  %v1318_v38 = vpop.f32.mrf.mxu1 }
 0x189   : > { %1425 = vst [vmem:[#allocation2 + $0x8] sm:$0xff] %v1361_v35  ;;  %1457 = vst [vmem:[#allocation2 + $0xa0] sm:$0xff] %v1393_v36  ;;  %v1359_v39 = vadd.f32 %v1190_v37, %v686_v33  ;;  %v1391_v40 = vadd.f32 %v1318_v38, %v718_v34 }
 0x18b   : > { %1423 = vst [vmem:[#allocation2] sm:$0xff] %v1359_v39  ;;  %1455 = vst [vmem:[#allocation2 + $0x10] sm:$0xff] %v1391_v40 }
 0x18c   : > { %v1462_v41 = vld [vmem:[#allocation2 + $0xb0] sm:$0xff]  ;;  %v3194_v43 = vld [vmem:[%s3442_s2] ss:$0 sm:$0xff]  ;;  %v1464_v47 = vld [vmem:[#allocation2 + $0xd8] sm:$0xff] }
 0x18d   : > { %v1463_v42 = vld [vmem:[#allocation2 + $0x1b0] sm:$0xff]  ;;  %v1533_v44 = vadd.f32 %v3194_v43, %v1462_v41  ;;  %v3201_v46 = vld [vmem:[%s3443_s3] ss:$0 sm:$0xff]  ;;  %v1465_v48 = vld [vmem:[#allocation2 + $0x18] sm:$0xff]  ;;  %v1535_v49 = vadd.f32 %v3194_v43, %v1464_v47 }
 0x18e   : > { %v1534_v45 = vadd.f32 %v3194_v43, %v1463_v42  ;;  %v1536_v50 = vadd.f32 %v3194_v43, %v1465_v48  ;;  %v1466_v51 = vld [vmem:[#allocation2 + $0x50] sm:$0xff]  ;;  %v1467_v52 = vld [vmem:[#allocation2 + $0x168] sm:$0xff]  ;;  %v1470_v3 = vld [vmem:[#allocation2 + $0x180] sm:$0xff] }
 0x18f   : > { %vm1598_vm0 = vcmp.ge.f32.partialorder %v1533_v44, 0.0  ;;  %v1668_v53 = vmul.f32 %v3201_v46, %v1533_v44  ;;  %v1468_v55 = vld [vmem:[#allocation2 + $0x130] sm:$0xff]  ;;  %vm1600_vm2 = vcmp.ge.f32.partialorder %v1535_v49, 0.0  ;;  %v1670_v56 = vmul.f32 %v3201_v46, %v1535_v49  ;;  %v1469_v62 = vld [vmem:[#allocation2 + $0x48] sm:$0xff]  ;;  %v1472_v5 = vld [vmem:[#allocation2 + $0x118] sm:$0xff] }
 0x190   : > { %vm1599_vm1 = vcmp.ge.f32.partialorder %v1534_v45, 0.0  ;;  %v1669_v54 = vmul.f32 %v3201_v46, %v1534_v45  ;;  %vm1601_vm3 = vcmp.ge.f32.partialorder %v1536_v50, 0.0  ;;  %v1671_v57 = vmul.f32 %v3201_v46, %v1536_v50  ;;  %v1471_v4 = vld [vmem:[#allocation2 + $0x110] sm:$0xff]  ;;  %v1473_v14 = vld [vmem:[#allocation2 + $0x98] sm:$0xff]  ;;  %v1474_v19 = vld [vmem:[#allocation2 + $0x120] sm:$0xff] }
 0x191   : > { %v1732_v58 = vsel %vm1598_vm0, %v1533_v44, %v1668_v53  ;;  %v1537_v60 = vadd.f32 %v3194_v43, %v1466_v51  ;;  %v1538_v61 = vadd.f32 %v3194_v43, %v1467_v52  ;;  %v1734_v0 = vsel %vm1600_vm2, %v1535_v49, %v1670_v56  ;;  %v1475_v22 = vld [vmem:[#allocation2 + $0x150] sm:$0xff]  ;;  %v1476_v30 = vld [vmem:[#allocation2 + $0x108] sm:$0xff]  ;;  %v1477_v34 = vld [vmem:[#allocation2 + $0x60] sm:$0xff] }
 0x192   : > { %v1733_v59 = vsel %vm1599_vm1, %v1534_v45, %v1669_v54  ;;  %v1735_v1 = vsel %vm1601_vm3, %v1536_v50, %v1671_v57  ;;  %v1539_v2 = vadd.f32 %v3194_v43, %v1468_v55  ;;  %v1540_v9 = vadd.f32 %v3194_v43, %v1469_v62  ;;  %v1478_v35 = vld [vmem:[#allocation2 + $0xe0] sm:$0xff]  ;;  %v1479_v39 = vld [vmem:[#allocation2 + $0x188] sm:$0xff]  ;;  %v1480_v52 = vld [vmem:[#allocation2 + $0x138] sm:$0xff] }
 0x193   : > { %v2428_v63 = vpack.c.bf16 %v1733_v59, %v1732_v58  ;;  %v2433_v6 = vpack.c.bf16 %v1735_v1, %v1734_v0  ;;  %vm1602_vm4 = vcmp.ge.f32.partialorder %v1537_v60, 0.0  ;;  %vm1603_vm5 = vcmp.ge.f32.partialorder %v1538_v61, 0.0  ;;  %v1481_v53 = vld [vmem:[#allocation2 + $0x140] sm:$0xff]  ;;  %v1483_v57 = vld [vmem:[#allocation2 + $0x1a8] sm:$0xff] }
 0x194   : > { %v1672_v7 = vmul.f32 %v3201_v46, %v1537_v60  ;;  %v1673_v8 = vmul.f32 %v3201_v46, %v1538_v61  ;;  %vm1604_vm6 = vcmp.ge.f32.partialorder %v1539_v2, 0.0  ;;  %v1674_v10 = vmul.f32 %v3201_v46, %v1539_v2  ;;  %v1482_v54 = vld [vmem:[#allocation2 + $0x80] sm:$0xff] }
 0x195   : > { %2429 = vst [vmem:[%s3444_s4] sm:$0xff] %v2428_v63   ;;  %2585 = vst [vmem:[%s3444_s4 + $0x8] sm:$0xff] %v2433_v6   ;;  %v1541_v12 = vadd.f32 %v3194_v43, %v1470_v3  ;;  %v1542_v13 = vadd.f32 %v3194_v43, %v1471_v4  ;;  %v1543_v15 = vadd.f32 %v3194_v43, %v1472_v5  ;;  %vm1605_vm7 = vcmp.ge.f32.partialorder %v1540_v9, 0.0  ;;  %v1484_v5 = vld [vmem:[#allocation2 + $0x1b8] sm:$0xff]  ;;  %v1485_v6 = vld [vmem:[#allocation2 + $0x28] sm:$0xff] }
 0x196   : > { %v1736_v11 = vsel %vm1602_vm4, %v1537_v60, %v1672_v7  ;;  %v1737_v16 = vsel %vm1603_vm5, %v1538_v61, %v1673_v8  ;;  %v1675_v17 = vmul.f32 %v3201_v46, %v1540_v9  ;;  %v1738_v18 = vsel %vm1604_vm6, %v1539_v2, %v1674_v10  ;;  %v1487_v10 = vld [vmem:[#allocation2 + $0xf8] sm:$0xff] }
 0x197   : > { %v2438_v20 = vpack.c.bf16 %v1737_v16, %v1736_v11  ;;  %vm1606_vm8 = vcmp.ge.f32.partialorder %v1541_v12, 0.0  ;;  %vm1607_vm9 = vcmp.ge.f32.partialorder %v1542_v13, 0.0  ;;  %v1676_v21 = vmul.f32 %v3201_v46, %v1541_v12 }
 0x198   : > { %v1739_v23 = vsel %vm1605_vm7, %v1540_v9, %v1675_v17  ;;  %v1677_v24 = vmul.f32 %v3201_v46, %v1542_v13  ;;  %v1544_v25 = vadd.f32 %v3194_v43, %v1473_v14  ;;  %vm1608_vm10 = vcmp.ge.f32.partialorder %v1543_v15, 0.0  ;;  %v1486_v9 = vld [vmem:[#allocation2 + $0x1e8] sm:$0xff] }
 0x199   : > { %2586 = vst [vmem:[%s3444_s4 + $0x10] sm:$0xff] %v2438_v20   ;;  %v2443_v26 = vpack.c.bf16 %v1739_v23, %v1738_v18  ;;  %v1740_v27 = vsel %vm1606_vm8, %v1541_v12, %v1676_v21  ;;  %v1678_v28 = vmul.f32 %v3201_v46, %v1543_v15  ;;  %v1545_v29 = vadd.f32 %v3194_v43, %v1474_v19  ;;  %v1488_v21 = vld [vmem:[#allocation2 + $0x160] sm:$0xff] }
 0x19a   : > { %v1741_v31 = vsel %vm1607_vm9, %v1542_v13, %v1677_v24  ;;  %vm1609_vm11 = vcmp.ge.f32.partialorder %v1544_v25, 0.0  ;;  %v1679_v32 = vmul.f32 %v3201_v46, %v1544_v25  ;;  %v1546_v33 = vadd.f32 %v3194_v43, %v1475_v22  ;;  %v1489_v24 = vld [vmem:[#allocation2 + $0x30] sm:$0xff] }
 0x19b   : > { %2587 = vst [vmem:[%s3444_s4 + $0x18] sm:$0xff] %v2443_v26   ;;  %v2448_v36 = vpack.c.bf16 %v1741_v31, %v1740_v27  ;;  %v1742_v37 = vsel %vm1608_vm10, %v1543_v15, %v1678_v28  ;;  %vm1610_vm12 = vcmp.ge.f32.partialorder %v1545_v29, 0.0  ;;  %v1680_v38 = vmul.f32 %v3201_v46, %v1545_v29 }
 0x19c   : > { %v1743_v40 = vsel %vm1609_vm11, %v1544_v25, %v1679_v32  ;;  %vm1611_vm13 = vcmp.ge.f32.partialorder %v1546_v33, 0.0  ;;  %v1681_v41 = vmul.f32 %v3201_v46, %v1546_v33  ;;  %v1547_v42 = vadd.f32 %v3194_v43, %v1476_v30  ;;  %v1490_v25 = vld [vmem:[#allocation2 + $0x1e0] sm:$0xff] }
 0x19d   : > { %2588 = vst [vmem:[%s3444_s4 + $0x20] sm:$0xff] %v2448_v36   ;;  %v2453_v44 = vpack.c.bf16 %v1743_v40, %v1742_v37  ;;  %v1744_v45 = vsel %vm1610_vm12, %v1545_v29, %v1680_v38  ;;  %v1548_v47 = vadd.f32 %v3194_v43, %v1477_v34  ;;  %v1549_v48 = vadd.f32 %v3194_v43, %v1478_v35  ;;  %v1491_v35 = vld [vmem:[#allocation2] sm:$0xff]  ;;  %v1492_v37 = vld [vmem:[#allocation2 + $0xf0] sm:$0xff] }
 0x19e   : > { %v1745_v49 = vsel %vm1611_vm13, %v1546_v33, %v1681_v41  ;;  %vm1612_vm14 = vcmp.ge.f32.partialorder %v1547_v42, 0.0  ;;  %v1682_v50 = vmul.f32 %v3201_v46, %v1547_v42  ;;  %v1550_v51 = vadd.f32 %v3194_v43, %v1479_v39  ;;  %v1493_v41 = vld [vmem:[#allocation2 + $0x8] sm:$0xff] }
 0x19f   : > { %2589 = vst [vmem:[%s3444_s4 + $0x28] sm:$0xff] %v2453_v44   ;;  %v2458_v55 = vpack.c.bf16 %v1745_v49, %v1744_v45  ;;  %vm1613_vm15 = vcmp.ge.f32.partialorder %v1548_v47, 0.0  ;;  %v1683_v56 = vmul.f32 %v3201_v46, %v1548_v47  ;;  %vm1614_vm0 = vcmp.ge.f32.partialorder %v1549_v48, 0.0 }
 0x1a0   : > { %v1746_v58 = vsel %vm1612_vm14, %v1547_v42, %v1682_v50  ;;  %vm1615_vm1 = vcmp.ge.f32.partialorder %v1550_v51, 0.0  ;;  %v1684_v59 = vmul.f32 %v3201_v46, %v1549_v48  ;;  %v1685_v60 = vmul.f32 %v3201_v46, %v1550_v51  ;;  %v1494_v42 = vld [vmem:[#allocation2 + $0x148] sm:$0xff] }
 0x1a1   : > { %2590 = vst [vmem:[%s3444_s4 + $0x30] sm:$0xff] %v2458_v55   ;;  %v1747_v61 = vsel %vm1613_vm15, %v1548_v47, %v1683_v56  ;;  %v1551_v62 = vadd.f32 %v3194_v43, %v1480_v52  ;;  %v1552_v63 = vadd.f32 %v3194_v43, %v1481_v53  ;;  %v1553_v0 = vadd.f32 %v3194_v43, %v1482_v54  ;;  %v1495_v54 = vld [vmem:[#allocation2 + $0x1d0] sm:$0xff] }
 0x1a2   : > { %v2463_v1 = vpack.c.bf16 %v1747_v61, %v1746_v58  ;;  %v1748_v2 = vsel %vm1614_vm0, %v1549_v48, %v1684_v59  ;;  %v1749_v3 = vsel %vm1615_vm1, %v1550_v51, %v1685_v60  ;;  %v1554_v4 = vadd.f32 %v3194_v43, %v1483_v57  ;;  %v1496_v59 = vld [vmem:[#allocation2 + $0x100] sm:$0xff] }
 0x1a3   : > { %v2468_v7 = vpack.c.bf16 %v1749_v3, %v1748_v2  ;;  %vm1616_vm2 = vcmp.ge.f32.partialorder %v1551_v62, 0.0  ;;  %vm1617_vm3 = vcmp.ge.f32.partialorder %v1552_v63, 0.0  ;;  %v1686_v8 = vmul.f32 %v3201_v46, %v1551_v62  ;;  %v1498_v2 = vld [vmem:[#allocation2 + $0x40] sm:$0xff] }
 0x1a4   : > { %2591 = vst [vmem:[%s3444_s4 + $0x38] sm:$0xff] %v2463_v1   ;;  %v1687_v11 = vmul.f32 %v3201_v46, %v1552_v63  ;;  %vm1618_vm4 = vcmp.ge.f32.partialorder %v1553_v0, 0.0  ;;  %vm1619_vm5 = vcmp.ge.f32.partialorder %v1554_v4, 0.0  ;;  %v1688_v12 = vmul.f32 %v3201_v46, %v1553_v0  ;;  %v1497_v1 = vld [vmem:[#allocation2 + $0xc8] sm:$0xff] }
 0x1a5   : > { %2592 = vst [vmem:[%s3444_s4 + $0x40] sm:$0xff] %v2468_v7   ;;  %v1750_v13 = vsel %vm1616_vm2, %v1551_v62, %v1686_v8  ;;  %v1689_v14 = vmul.f32 %v3201_v46, %v1554_v4  ;;  %v1555_v15 = vadd.f32 %v3194_v43, %v1484_v5  ;;  %v1556_v16 = vadd.f32 %v3194_v43, %v1485_v6  ;;  %v1499_v7 = vld [vmem:[#allocation2 + $0x1f8] sm:$0xff]  ;;  %v1500_v8 = vld [vmem:[#allocation2 + $0x20] sm:$0xff] }
 0x1a6   : > { %v1751_v17 = vsel %vm1617_vm3, %v1552_v63, %v1687_v11  ;;  %v1752_v18 = vsel %vm1618_vm4, %v1553_v0, %v1688_v12  ;;  %v1557_v19 = vadd.f32 %v3194_v43, %v1486_v9  ;;  %v1558_v20 = vadd.f32 %v3194_v43, %v1487_v10  ;;  %v1501_v9 = vld [vmem:[#allocation2 + $0x128] sm:$0xff] }
 0x1a7   : > { %v2473_v22 = vpack.c.bf16 %v1751_v17, %v1750_v13  ;;  %v1753_v23 = vsel %vm1619_vm5, %v1554_v4, %v1689_v14  ;;  %vm1620_vm6 = vcmp.ge.f32.partialorder %v1555_v15, 0.0  ;;  %vm1621_vm7 = vcmp.ge.f32.partialorder %v1556_v16, 0.0 }
 0x1a8   : > { %v2478_v26 = vpack.c.bf16 %v1753_v23, %v1752_v18  ;;  %v1690_v27 = vmul.f32 %v3201_v46, %v1555_v15  ;;  %v1691_v28 = vmul.f32 %v3201_v46, %v1556_v16  ;;  %vm1622_vm8 = vcmp.ge.f32.partialorder %v1557_v19, 0.0 }
 0x1a9   : > { %2593 = vst [vmem:[%s3444_s4 + $0x48] sm:$0xff] %v2473_v22   ;;  %vm1623_vm9 = vcmp.ge.f32.partialorder %v1558_v20, 0.0  ;;  %v1692_v29 = vmul.f32 %v3201_v46, %v1557_v19  ;;  %v1693_v30 = vmul.f32 %v3201_v46, %v1558_v20  ;;  %v1559_v31 = vadd.f32 %v3194_v43, %v1488_v21 }
 0x1aa   : > { %2594 = vst [vmem:[%s3444_s4 + $0x50] sm:$0xff] %v2478_v26   ;;  %v1754_v32 = vsel %vm1620_vm6, %v1555_v15, %v1690_v27  ;;  %v1755_v33 = vsel %vm1621_vm7, %v1556_v16, %v1691_v28  ;;  %v1560_v34 = vadd.f32 %v3194_v43, %v1489_v24  ;;  %v1561_v36 = vadd.f32 %v3194_v43, %v1490_v25  ;;  %v1502_v25 = vld [vmem:[#allocation2 + $0x1a0] sm:$0xff]  ;;  %v1503_v26 = vld [vmem:[#allocation2 + $0x1f0] sm:$0xff] }
 0x1ab   : > { %v2483_v38 = vpack.c.bf16 %v1755_v33, %v1754_v32  ;;  %v1756_v39 = vsel %vm1622_vm8, %v1557_v19, %v1692_v29  ;;  %v1757_v40 = vsel %vm1623_vm9, %v1558_v20, %v1693_v30  ;;  %vm1624_vm10 = vcmp.ge.f32.partialorder %v1559_v31, 0.0  ;;  %v1504_v29 = vld [vmem:[#allocation2 + $0xe8] sm:$0xff]  ;;  %v1505_v30 = vld [vmem:[#allocation2 + $0x78] sm:$0xff] }
 0x1ac   : > { %v2488_v44 = vpack.c.bf16 %v1757_v40, %v1756_v39  ;;  %vm1625_vm11 = vcmp.ge.f32.partialorder %v1560_v34, 0.0  ;;  %v1694_v45 = vmul.f32 %v3201_v46, %v1559_v31  ;;  %v1695_v47 = vmul.f32 %v3201_v46, %v1560_v34 }
 0x1ad   : > { %2595 = vst [vmem:[%s3444_s4 + $0x58] sm:$0xff] %v2483_v38   ;;  %v1562_v48 = vadd.f32 %v3194_v43, %v1491_v35  ;;  %vm1626_vm12 = vcmp.ge.f32.partialorder %v1561_v36, 0.0  ;;  %v1696_v49 = vmul.f32 %v3201_v46, %v1561_v36  ;;  %v1563_v50 = vadd.f32 %v3194_v43, %v1492_v37 }
 0x1ae   : > { %2596 = vst [vmem:[%s3444_s4 + $0x60] sm:$0xff] %v2488_v44   ;;  %v1758_v51 = vsel %vm1624_vm10, %v1559_v31, %v1694_v45  ;;  %v1759_v52 = vsel %vm1625_vm11, %v1560_v34, %v1695_v47  ;;  %v1564_v53 = vadd.f32 %v3194_v43, %v1493_v41  ;;  %v1565_v55 = vadd.f32 %v3194_v43, %v1494_v42  ;;  %v1506_v31 = vld [vmem:[#allocation2 + $0x70] sm:$0xff] }
 0x1af   : > { %v2493_v56 = vpack.c.bf16 %v1759_v52, %v1758_v51  ;;  %vm1627_vm13 = vcmp.ge.f32.partialorder %v1562_v48, 0.0  ;;  %v1697_v57 = vmul.f32 %v3201_v46, %v1562_v48  ;;  %v1760_v58 = vsel %vm1626_vm12, %v1561_v36, %v1696_v49  ;;  %v1507_v44 = vld [vmem:[#allocation2 + $0x90] sm:$0xff]  ;;  %v1508_v49 = vld [vmem:[#allocation2 + $0x1d8] sm:$0xff] }
 0x1b0   : > { %vm1628_vm14 = vcmp.ge.f32.partialorder %v1563_v50, 0.0  ;;  %vm1629_vm15 = vcmp.ge.f32.partialorder %v1564_v53, 0.0  ;;  %v1698_v60 = vmul.f32 %v3201_v46, %v1563_v50  ;;  %v1699_v61 = vmul.f32 %v3201_v46, %v1564_v53 }
 0x1b1   : > { %2597 = vst [vmem:[%s3444_s4 + $0x68] sm:$0xff] %v2493_v56   ;;  %v1761_v62 = vsel %vm1627_vm13, %v1562_v48, %v1697_v57  ;;  %v1566_v63 = vadd.f32 %v3194_v43, %v1495_v54  ;;  %vm1630_vm0 = vcmp.ge.f32.partialorder %v1565_v55, 0.0  ;;  %v1700_v0 = vmul.f32 %v3201_v46, %v1565_v55 }
 0x1b2   : > { %v2498_v3 = vpack.c.bf16 %v1761_v62, %v1760_v58  ;;  %v1762_v4 = vsel %vm1628_vm14, %v1563_v50, %v1698_v60  ;;  %v1763_v5 = vsel %vm1629_vm15, %v1564_v53, %v1699_v61  ;;  %v1567_v6 = vadd.f32 %v3194_v43, %v1496_v59  ;;  %v1510_v60 = vld [vmem:[#allocation2 + $0xb8] sm:$0xff]  ;;  %v1511_v61 = vld [vmem:[#allocation2 + $0x88] sm:$0xff] }
 0x1b3   : > { %v2503_v10 = vpack.c.bf16 %v1763_v5, %v1762_v4  ;;  %vm1631_vm1 = vcmp.ge.f32.partialorder %v1566_v63, 0.0  ;;  %v1701_v11 = vmul.f32 %v3201_v46, %v1566_v63  ;;  %v1764_v12 = vsel %vm1630_vm0, %v1565_v55, %v1700_v0  ;;  %v1509_v55 = vld [vmem:[#allocation2 + $0xd0] sm:$0xff] }
 0x1b4   : > { %2598 = vst [vmem:[%s3444_s4 + $0x70] sm:$0xff] %v2498_v3   ;;  %v1568_v13 = vadd.f32 %v3194_v43, %v1497_v1  ;;  %vm1632_vm2 = vcmp.ge.f32.partialorder %v1567_v6, 0.0  ;;  %v1702_v14 = vmul.f32 %v3201_v46, %v1567_v6  ;;  %v1569_v15 = vadd.f32 %v3194_v43, %v1498_v2  ;;  %v1512_v1 = vld [vmem:[#allocation2 + $0xa8] sm:$0xff] }
 0x1b5   : > { %2599 = vst [vmem:[%s3444_s4 + $0x78] sm:$0xff] %v2503_v10   ;;  %v1765_v16 = vsel %vm1631_vm1, %v1566_v63, %v1701_v11  ;;  %v1570_v17 = vadd.f32 %v3194_v43, %v1499_v7  ;;  %v1571_v18 = vadd.f32 %v3194_v43, %v1500_v8  ;;  %v1572_v19 = vadd.f32 %v3194_v43, %v1501_v9  ;;  %v1513_v9 = vld [vmem:[#allocation2 + $0x1c8] sm:$0xff] }
 0x1b6   : > { %v2508_v20 = vpack.c.bf16 %v1765_v16, %v1764_v12  ;;  %vm1633_vm3 = vcmp.ge.f32.partialorder %v1568_v13, 0.0  ;;  %v1703_v21 = vmul.f32 %v3201_v46, %v1568_v13  ;;  %v1766_v22 = vsel %vm1632_vm2, %v1567_v6, %v1702_v14  ;;  %v1515_v16 = vld [vmem:[#allocation2 + $0x178] sm:$0xff] }
 0x1b7   : > { %vm1634_vm4 = vcmp.ge.f32.partialorder %v1569_v15, 0.0  ;;  %vm1635_vm5 = vcmp.ge.f32.partialorder %v1570_v17, 0.0  ;;  %v1704_v23 = vmul.f32 %v3201_v46, %v1569_v15  ;;  %v1705_v24 = vmul.f32 %v3201_v46, %v1570_v17 }
 0x1b8   : > { %2600 = vst [vmem:[%s3444_s4 + $0x80] sm:$0xff] %v2508_v20   ;;  %v1767_v27 = vsel %vm1633_vm3, %v1568_v13, %v1703_v21  ;;  %vm1636_vm6 = vcmp.ge.f32.partialorder %v1571_v18, 0.0  ;;  %vm1637_vm7 = vcmp.ge.f32.partialorder %v1572_v19, 0.0  ;;  %v1706_v28 = vmul.f32 %v3201_v46, %v1571_v18  ;;  %v1514_v13 = vld [vmem:[#allocation2 + $0x170] sm:$0xff] }
 0x1b9   : > { %v2513_v32 = vpack.c.bf16 %v1767_v27, %v1766_v22  ;;  %v1768_v33 = vsel %vm1634_vm4, %v1569_v15, %v1704_v23  ;;  %v1769_v34 = vsel %vm1635_vm5, %v1570_v17, %v1705_v24  ;;  %v1707_v35 = vmul.f32 %v3201_v46, %v1572_v19  ;;  %v1516_v24 = vld [vmem:[#allocation2 + $0x68] sm:$0xff] }
 0x1ba   : > { %v2518_v36 = vpack.c.bf16 %v1769_v34, %v1768_v33  ;;  %v1770_v37 = vsel %vm1636_vm6, %v1571_v18, %v1706_v28  ;;  %v1573_v38 = vadd.f32 %v3194_v43, %v1502_v25  ;;  %v1574_v39 = vadd.f32 %v3194_v43, %v1503_v26  ;;  %v1517_v28 = vld [vmem:[#allocation2 + $0x190] sm:$0xff]  ;;  %v1519_v33 = vld [vmem:[#allocation2 + $0x38] sm:$0xff] }
 0x1bb   : > { %2601 = vst [vmem:[%s3444_s4 + $0x88] sm:$0xff] %v2513_v32   ;;  %v1771_v40 = vsel %vm1637_vm7, %v1572_v19, %v1707_v35  ;;  %v1575_v41 = vadd.f32 %v3194_v43, %v1504_v29  ;;  %v1576_v42 = vadd.f32 %v3194_v43, %v1505_v30  ;;  %v1577_v45 = vadd.f32 %v3194_v43, %v1506_v31  ;;  %v1518_v29 = vld [vmem:[#allocation2 + $0x198] sm:$0xff] }
 0x1bc   : > { %2602 = vst [vmem:[%s3444_s4 + $0x90] sm:$0xff] %v2518_v36   ;;  %v2523_v47 = vpack.c.bf16 %v1771_v40, %v1770_v37  ;;  %vm1638_vm8 = vcmp.ge.f32.partialorder %v1573_v38, 0.0  ;;  %vm1639_vm9 = vcmp.ge.f32.partialorder %v1574_v39, 0.0  ;;  %v1708_v48 = vmul.f32 %v3201_v46, %v1573_v38 }
 0x1bd   : > { %v1709_v50 = vmul.f32 %v3201_v46, %v1574_v39  ;;  %vm1640_vm10 = vcmp.ge.f32.partialorder %v1575_v41, 0.0  ;;  %vm1641_vm11 = vcmp.ge.f32.partialorder %v1576_v42, 0.0  ;;  %v1710_v51 = vmul.f32 %v3201_v46, %v1575_v41 }
 0x1be   : > { %2603 = vst [vmem:[%s3444_s4 + $0x98] sm:$0xff] %v2523_v47   ;;  %v1772_v52 = vsel %vm1638_vm8, %v1573_v38, %v1708_v48  ;;  %v1711_v53 = vmul.f32 %v3201_v46, %v1576_v42  ;;  %v1578_v54 = vadd.f32 %v3194_v43, %v1507_v44  ;;  %vm1642_vm12 = vcmp.ge.f32.partialorder %v1577_v45, 0.0  ;;  %v1521_v47 = vld [vmem:[#allocation2 + $0x1c0] sm:$0xff]  ;;  %v1522_v48 = vld [vmem:[#allocation2 + $0x158] sm:$0xff] }
 0x1bf   : > { %v1773_v56 = vsel %vm1639_vm9, %v1574_v39, %v1709_v50  ;;  %v1774_v57 = vsel %vm1640_vm10, %v1575_v41, %v1710_v51  ;;  %v1712_v58 = vmul.f32 %v3201_v46, %v1577_v45  ;;  %v1579_v59 = vadd.f32 %v3194_v43, %v1508_v49  ;;  %v1523_v51 = vld [vmem:[#allocation2 + $0x10] sm:$0xff] }
 0x1c0   : > { %v2528_v62 = vpack.c.bf16 %v1773_v56, %v1772_v52  ;;  %v1775_v63 = vsel %vm1641_vm11, %v1576_v42, %v1711_v53  ;;  %vm1643_vm13 = vcmp.ge.f32.partialorder %v1578_v54, 0.0  ;;  %v1713_v0 = vmul.f32 %v3201_v46, %v1578_v54 }
 0x1c1   : > { %v2533_v2 = vpack.c.bf16 %v1775_v63, %v1774_v57  ;;  %v1776_v3 = vsel %vm1642_vm12, %v1577_v45, %v1712_v58  ;;  %v1580_v4 = vadd.f32 %v3194_v43, %v1509_v55  ;;  %vm1644_vm14 = vcmp.ge.f32.partialorder %v1579_v59, 0.0  ;;  %v1520_v45 = vld [vmem:[#allocation2 + $0xc0] sm:$0xff]  ;;  %v1524_v63 = vld [vmem:[#allocation2 + $0x58] sm:$0xff] }
 0x1c2   : > { %2604 = vst [vmem:[%s3444_s4 + $0xa0] sm:$0xff] %v2528_v62   ;;  %v1777_v5 = vsel %vm1643_vm13, %v1578_v54, %v1713_v0  ;;  %v1714_v6 = vmul.f32 %v3201_v46, %v1579_v59  ;;  %v1581_v7 = vadd.f32 %v3194_v43, %v1510_v60  ;;  %v1582_v8 = vadd.f32 %v3194_v43, %v1511_v61  ;;  %v1525_v0 = vld [vmem:[#allocation2 + $0xa0] sm:$0xff] }
 0x1c3   : > { %2605 = vst [vmem:[%s3444_s4 + $0xa8] sm:$0xff] %v2533_v2   ;;  %v2538_v10 = vpack.c.bf16 %v1777_v5, %v1776_v3  ;;  %vm1645_vm15 = vcmp.ge.f32.partialorder %v1580_v4, 0.0  ;;  %v1715_v11 = vmul.f32 %v3201_v46, %v1580_v4  ;;  %v1583_v12 = vadd.f32 %v3194_v43, %v1512_v1 }
 0x1c4   : > { %v1778_v14 = vsel %vm1644_vm14, %v1579_v59, %v1714_v6  ;;  %vm1646_vm0 = vcmp.ge.f32.partialorder %v1581_v7, 0.0  ;;  %vm1647_vm1 = vcmp.ge.f32.partialorder %v1582_v8, 0.0  ;;  %v1716_v15 = vmul.f32 %v3201_v46, %v1581_v7 }
 0x1c5   : > { %2606 = vst [vmem:[%s3444_s4 + $0xb0] sm:$0xff] %v2538_v10   ;;  %v1779_v17 = vsel %vm1645_vm15, %v1580_v4, %v1715_v11  ;;  %v1717_v18 = vmul.f32 %v3201_v46, %v1582_v8  ;;  %v1584_v19 = vadd.f32 %v3194_v43, %v1513_v9  ;;  %vm1648_vm2 = vcmp.ge.f32.partialorder %v1583_v12, 0.0 }
 0x1c6   : > { %v2543_v20 = vpack.c.bf16 %v1779_v17, %v1778_v14  ;;  %v1780_v21 = vsel %vm1646_vm0, %v1581_v7, %v1716_v15  ;;  %v1718_v22 = vmul.f32 %v3201_v46, %v1583_v12  ;;  %v1585_v23 = vadd.f32 %v3194_v43, %v1514_v13 }
 0x1c7   : > { %v1781_v25 = vsel %vm1647_vm1, %v1582_v8, %v1717_v18  ;;  %vm1649_vm3 = vcmp.ge.f32.partialorder %v1584_v19, 0.0  ;;  %v1719_v26 = vmul.f32 %v3201_v46, %v1584_v19  ;;  %v1586_v27 = vadd.f32 %v3194_v43, %v1515_v16 }
 0x1c8   : > { %2607 = vst [vmem:[%s3444_s4 + $0xb8] sm:$0xff] %v2543_v20   ;;  %v2548_v30 = vpack.c.bf16 %v1781_v25, %v1780_v21  ;;  %v1782_v31 = vsel %vm1648_vm2, %v1583_v12, %v1718_v22  ;;  %vm1650_vm4 = vcmp.ge.f32.partialorder %v1585_v23, 0.0  ;;  %v1720_v32 = vmul.f32 %v3201_v46, %v1585_v23 }
 0x1c9   : > { %v1783_v34 = vsel %vm1649_vm3, %v1584_v19, %v1719_v26  ;;  %vm1651_vm5 = vcmp.ge.f32.partialorder %v1586_v27, 0.0  ;;  %v1721_v35 = vmul.f32 %v3201_v46, %v1586_v27  ;;  %v1587_v36 = vadd.f32 %v3194_v43, %v1516_v24 }
 0x1ca   : > { %2608 = vst [vmem:[%s3444_s4 + $0xc0] sm:$0xff] %v2548_v30   ;;  %v2553_v37 = vpack.c.bf16 %v1783_v34, %v1782_v31  ;;  %v1784_v38 = vsel %vm1650_vm4, %v1585_v23, %v1720_v32  ;;  %v1588_v39 = vadd.f32 %v3194_v43, %v1517_v28  ;;  %v1589_v40 = vadd.f32 %v3194_v43, %v1518_v29 }
 0x1cb   : > { %v1785_v41 = vsel %vm1651_vm5, %v1586_v27, %v1721_v35  ;;  %vm1652_vm6 = vcmp.ge.f32.partialorder %v1587_v36, 0.0  ;;  %v1722_v42 = vmul.f32 %v3201_v46, %v1587_v36  ;;  %v1590_v44 = vadd.f32 %v3194_v43, %v1519_v33 }
 0x1cc   : > { %2609 = vst [vmem:[%s3444_s4 + $0xc8] sm:$0xff] %v2553_v37   ;;  %v2558_v49 = vpack.c.bf16 %v1785_v41, %v1784_v38  ;;  %vm1653_vm7 = vcmp.ge.f32.partialorder %v1588_v39, 0.0  ;;  %v1723_v50 = vmul.f32 %v3201_v46, %v1588_v39  ;;  %vm1654_vm8 = vcmp.ge.f32.partialorder %v1589_v40, 0.0 }
 0x1cd   : > { %v1786_v52 = vsel %vm1652_vm6, %v1587_v36, %v1722_v42  ;;  %vm1655_vm9 = vcmp.ge.f32.partialorder %v1590_v44, 0.0  ;;  %v1724_v53 = vmul.f32 %v3201_v46, %v1589_v40  ;;  %v1725_v54 = vmul.f32 %v3201_v46, %v1590_v44 }
 0x1ce   : > { %2610 = vst [vmem:[%s3444_s4 + $0xd0] sm:$0xff] %v2558_v49   ;;  %v1787_v55 = vsel %vm1653_vm7, %v1588_v39, %v1723_v50  ;;  %v1591_v56 = vadd.f32 %v3194_v43, %v1520_v45  ;;  %v1592_v57 = vadd.f32 %v3194_v43, %v1521_v47  ;;  %v1593_v58 = vadd.f32 %v3194_v43, %v1522_v48 }
 0x1cf   : > { %v2563_v59 = vpack.c.bf16 %v1787_v55, %v1786_v52  ;;  %v1788_v60 = vsel %vm1654_vm8, %v1589_v40, %v1724_v53  ;;  %v1789_v61 = vsel %vm1655_vm9, %v1590_v44, %v1725_v54  ;;  %v1594_v62 = vadd.f32 %v3194_v43, %v1523_v51 }
 0x1d0   : > { %v2568_v1 = vpack.c.bf16 %v1789_v61, %v1788_v60  ;;  %vm1656_vm10 = vcmp.ge.f32.partialorder %v1591_v56, 0.0  ;;  %vm1657_vm11 = vcmp.ge.f32.partialorder %v1592_v57, 0.0  ;;  %v1726_v2 = vmul.f32 %v3201_v46, %v1591_v56 }
 0x1d1   : > { %2611 = vst [vmem:[%s3444_s4 + $0xd8] sm:$0xff] %v2563_v59   ;;  %v1727_v3 = vmul.f32 %v3201_v46, %v1592_v57  ;;  %vm1658_vm12 = vcmp.ge.f32.partialorder %v1593_v58, 0.0  ;;  %vm1659_vm13 = vcmp.ge.f32.partialorder %v1594_v62, 0.0  ;;  %v1728_v4 = vmul.f32 %v3201_v46, %v1593_v58 }
 0x1d2   : > { %2612 = vst [vmem:[%s3444_s4 + $0xe0] sm:$0xff] %v2568_v1   ;;  %v1790_v5 = vsel %vm1656_vm10, %v1591_v56, %v1726_v2  ;;  %v1729_v6 = vmul.f32 %v3201_v46, %v1594_v62  ;;  %v1595_v7 = vadd.f32 %v3194_v43, %v1524_v63  ;;  %v1596_v8 = vadd.f32 %v3194_v43, %v1525_v0 }
 0x1d3   : > { %v1791_v9 = vsel %vm1657_vm11, %v1592_v57, %v1727_v3  ;;  %v1792_v10 = vsel %vm1658_vm12, %v1593_v58, %v1728_v4 }
 0x1d4   : > { %v2573_v11 = vpack.c.bf16 %v1791_v9, %v1790_v5  ;;  %v1793_v12 = vsel %vm1659_vm13, %v1594_v62, %v1729_v6  ;;  %vm1660_vm14 = vcmp.ge.f32.partialorder %v1595_v7, 0.0  ;;  %vm1661_vm15 = vcmp.ge.f32.partialorder %v1596_v8, 0.0 }
 0x1d5   : > { %v2578_v13 = vpack.c.bf16 %v1793_v12, %v1792_v10  ;;  %v1730_v14 = vmul.f32 %v3201_v46, %v1595_v7  ;;  %v1731_v15 = vmul.f32 %v3201_v46, %v1596_v8 }
 0x1d6   : > { %2613 = vst [vmem:[%s3444_s4 + $0xe8] sm:$0xff] %v2573_v11  }
 0x1d7   : > { %2614 = vst [vmem:[%s3444_s4 + $0xf0] sm:$0xff] %v2578_v13   ;;  %v1794_v43 = vsel %vm1660_vm14, %v1595_v7, %v1730_v14  ;;  %v1795_v16 = vsel %vm1661_vm15, %v1596_v8, %v1731_v15 }
 0x1d8   : > { %v2583_v17 = vpack.c.bf16 %v1795_v16, %v1794_v43 }
 0x1da   : > { %2615 = vst [vmem:[%s3444_s4 + $0xf8] sm:$0xff] %v2583_v17  }
 0x1db PF: > { %s14_s19 = sadd.s32 1, %s2871_s19   ;;  %s3445_s15 = smov %s2859_s16 }
 0x1dc   : > { %p11_p12 = scmp.ge.s32.totalorder %s14_s19, 7   ;;  %s3446_s16 = smov %s2934_s23 }
 0x1dd   : > { %s3447_s17 = smov %s2867_s18  ;;  %s3448_s18 = smov %s3450_s20 }
 0x1de   :  { %13 = sbr.rel (!%p11_p12) target bundleno = 3 (0x3), region = 129 }

// kernel: iresnet_forward.14
= control target key start
LH: loop header
LB: loop body
LE: loop exit
PB: predicated region body
PF: predicated region fallthrough
CT: control target
= control target key end

     0   :  { %s705_s1 = inlined_call_operand.vmem [shape: bf16[128,128], index: 1, kind: input, shape index: {}]   ;;  %s706_s0 = inlined_call_operand.vmem [shape: bf16[128,128], index: 0, kind: input, shape index: {}]   ;;  %s707_s2 = inlined_call_operand.vmem [shape: f32[1,128], index: 2, kind: input, shape index: {}]   ;;  %s708_s3 = inlined_call_operand.vmem [shape: bf16[128,128], index: 3, kind: output, shape index: {}]  }
   0x1   :  { %v594_v0 = vld [vmem:[%s705_s1 + $0x38] sm:$0xff]   ;;  %v595_v1 = vld [vmem:[%s705_s1 + $0x30] sm:$0xff]   ;;  %v596_v2 = vld [vmem:[%s705_s1 + $0x28] sm:$0xff]  }
   0x2   :  { %546 = vmatprep.subr.bf16.mxu0 %v594_v0  ;;  %578 = vmatprep.subr.bf16.mxu1 %v594_v0  ;;  %v597_v3 = vld [vmem:[%s705_s1 + $0x20] sm:$0xff]   ;;  %v598_v6 = vld [vmem:[%s705_s1 + $0x18] sm:$0xff]   ;;  %v599_v7 = vld [vmem:[%s705_s1 + $0x10] sm:$0xff]  }
   0x3   :  { %547 = vmatpush3.bf16.msra.mxu0 %v594_v0  ;;  %586 = vmatpush3.bf16.msra.mxu1 %v594_v0  ;;  %v602_v4 = vld [vmem:[%s706_s0] sm:$0xff]   ;;  %v600_v8 = vld [vmem:[%s705_s1 + $0x8] sm:$0xff]   ;;  %v606_v12 = vld [vmem:[%s706_s0 + $0x10] sm:$0xff]  }
   0x4   :  { %548 = vmatprep.subr.bf16.mxu0 %v595_v1  ;;  %579 = vmatprep.subr.bf16.mxu1 %v595_v1  ;;  %v603_v5 = vld [vmem:[%s706_s0 + $0x20] sm:$0xff]   ;;  %v604_v10 = vld [vmem:[%s706_s0 + $0x8] sm:$0xff]   ;;  %v607_v13 = vld [vmem:[%s706_s0 + $0x30] sm:$0xff]  }
   0x5   :  { %562 = vmatprep.mubr.bf16.mxu0 %v602_v4  ;;  %570 = vmatprep.mubr.bf16.mxu1 %v603_v5  ;;  %v601_v9 = vld [vmem:[%s705_s1] sm:$0xff]   ;;  %v605_v11 = vld [vmem:[%s706_s0 + $0x28] sm:$0xff]   ;;  %v608_v14 = vld [vmem:[%s706_s0 + $0x18] sm:$0xff]  }
   0x6   :  { %v609_v15 = vld [vmem:[%s706_s0 + $0x38] sm:$0xff]   ;;  %v450_v18 = vld [vmem:[%s707_s2] ss:$0 sm:$0xff] }
   0x7   :  { %549 = vmatpush3.bf16.msra.mxu0 %v595_v1  ;;  %587 = vmatpush3.bf16.msra.mxu1 %v595_v1 }
   0x8   :  { %550 = vmatprep.subr.bf16.mxu0 %v596_v2  ;;  %580 = vmatprep.subr.bf16.mxu1 %v596_v2 }
   0xb   :  { %551 = vmatpush3.bf16.msra.mxu0 %v596_v2  ;;  %588 = vmatpush3.bf16.msra.mxu1 %v596_v2 }
   0xc   :  { %552 = vmatprep.subr.bf16.mxu0 %v597_v3  ;;  %581 = vmatprep.subr.bf16.mxu1 %v597_v3 }
   0xf   :  { %553 = vmatpush3.bf16.msra.mxu0 %v597_v3  ;;  %589 = vmatpush3.bf16.msra.mxu1 %v597_v3 }
  0x10   :  { %554 = vmatprep.subr.bf16.mxu0 %v598_v6  ;;  %582 = vmatprep.subr.bf16.mxu1 %v598_v6 }
  0x13   :  { %555 = vmatpush3.bf16.msra.mxu0 %v598_v6  ;;  %590 = vmatpush3.bf16.msra.mxu1 %v598_v6 }
  0x14   :  { %556 = vmatprep.subr.bf16.mxu0 %v599_v7  ;;  %583 = vmatprep.subr.bf16.mxu1 %v599_v7 }
  0x17   :  { %557 = vmatpush3.bf16.msra.mxu0 %v599_v7  ;;  %591 = vmatpush3.bf16.msra.mxu1 %v599_v7 }
  0x18   :  { %558 = vmatprep.subr.bf16.mxu0 %v600_v8  ;;  %584 = vmatprep.subr.bf16.mxu1 %v600_v8 }
  0x1b   :  { %559 = vmatpush3.bf16.msra.mxu0 %v600_v8  ;;  %592 = vmatpush3.bf16.msra.mxu1 %v600_v8 }
  0x1c   :  { %560 = vmatprep.subr.bf16.mxu0 %v601_v9  ;;  %585 = vmatprep.subr.bf16.mxu1 %v601_v9 }
  0x1f   :  { %561 = vmatpush3.bf16.msra.mxu0 %v601_v9  ;;  %593 = vmatpush3.bf16.msra.mxu1 %v601_v9 }
  0x22   :  { %563 = vmatmul.mubr.bf16.vlgmr.msra.gmra.mxu0 %v604_v10  ;;  %571 = vmatmul.mubr.bf16.vlgmr.msra.gmra.mxu1 %v605_v11 }
  0x23   :  { %566 = vmatprep.mubr.bf16.mxu0 %v606_v12  ;;  %574 = vmatprep.mubr.bf16.mxu1 %v607_v13 }
  0x2a   :  { %567 = vmatmul.mubr.bf16.gmra.mxu0 %v608_v14  ;;  %575 = vmatmul.mubr.bf16.gmra.mxu1 %v609_v15 }
  0xe2   :  { %v564_v16 = vpop.f32.mrf.mxu0  ;;  %v572_v17 = vpop.f32.mrf.mxu1 }
  0xe3   :  { %v336_v23 = vadd.f32 %v564_v16, %v450_v18  ;;  %v344_v24 = vadd.f32 %v572_v17, %v450_v18 }
  0xe4   :  { %v213_v19 = vpop.f32.mrf.mxu0  ;;  %v245_v20 = vpop.f32.mrf.mxu1 }
  0xe5   :  { %v334_v27 = vadd.f32 %v450_v18, %v213_v19  ;;  %v342_v28 = vadd.f32 %v450_v18, %v245_v20 }
  0xe6   :  { %v565_v21 = vpop.f32.mrf.mxu0  ;;  %v573_v22 = vpop.f32.mrf.mxu1 }
  0xe7   :  { %v337_v25 = vadd.f32 %v565_v21, %v450_v18  ;;  %v345_v26 = vadd.f32 %v573_v22, %v450_v18 }
  0xe8   :  { %v216_v29 = vpop.f32.mrf.mxu0  ;;  %v248_v30 = vpop.f32.mrf.mxu1 }
  0xe9   :  { %v491_v31 = vpack.c.bf16 %v337_v25, %v336_v23  ;;  %v511_v32 = vpack.c.bf16 %v345_v26, %v344_v24  ;;  %v335_v33 = vadd.f32 %v450_v18, %v216_v29  ;;  %v343_v34 = vadd.f32 %v450_v18, %v248_v30 }
  0xea   :  { %v568_v35 = vpop.f32.mrf.mxu0  ;;  %v576_v36 = vpop.f32.mrf.mxu1 }
  0xeb   :  { %523 = vst [vmem:[%s708_s3 + $0x8] sm:$0xff] %v491_v31   ;;  %527 = vst [vmem:[%s708_s3 + $0x28] sm:$0xff] %v511_v32   ;;  %v486_v37 = vpack.c.bf16 %v335_v33, %v334_v27  ;;  %v506_v38 = vpack.c.bf16 %v343_v34, %v342_v28  ;;  %v340_v43 = vadd.f32 %v568_v35, %v450_v18 }
  0xec   :  { %v229_v39 = vpop.f32.mrf.mxu0  ;;  %v261_v40 = vpop.f32.mrf.mxu1  ;;  %v348_v44 = vadd.f32 %v576_v36, %v450_v18 }
  0xed   :  { %487 = vst [vmem:[%s708_s3] sm:$0xff] %v486_v37   ;;  %526 = vst [vmem:[%s708_s3 + $0x20] sm:$0xff] %v506_v38   ;;  %v338_v47 = vadd.f32 %v450_v18, %v229_v39  ;;  %v346_v48 = vadd.f32 %v450_v18, %v261_v40 }
  0xee   :  { %v569_v41 = vpop.f32.mrf.mxu0  ;;  %v577_v42 = vpop.f32.mrf.mxu1 }
  0xef   :  { %v341_v45 = vadd.f32 %v569_v41, %v450_v18  ;;  %v349_v46 = vadd.f32 %v577_v42, %v450_v18 }
  0xf0   :  { %v232_v49 = vpop.f32.mrf.mxu0  ;;  %v264_v50 = vpop.f32.mrf.mxu1 }
  0xf1   :  { %v501_v51 = vpack.c.bf16 %v341_v45, %v340_v43  ;;  %v521_v52 = vpack.c.bf16 %v349_v46, %v348_v44  ;;  %v339_v53 = vadd.f32 %v450_v18, %v232_v49  ;;  %v347_v54 = vadd.f32 %v450_v18, %v264_v50 }
  0xf3   :  { %525 = vst [vmem:[%s708_s3 + $0x18] sm:$0xff] %v501_v51   ;;  %529 = vst [vmem:[%s708_s3 + $0x38] sm:$0xff] %v521_v52   ;;  %v496_v55 = vpack.c.bf16 %v339_v53, %v338_v47  ;;  %v516_v56 = vpack.c.bf16 %v347_v54, %v346_v48 }
  0xf5   :  { %524 = vst [vmem:[%s708_s3 + $0x10] sm:$0xff] %v496_v55   ;;  %528 = vst [vmem:[%s708_s3 + $0x30] sm:$0xff] %v516_v56  }

// kernel: iresnet_forward.16
= control target key start
LH: loop header
LB: loop body
LE: loop exit
PB: predicated region body
PF: predicated region fallthrough
CT: control target
= control target key end

     0   :  { %s1347_s15 = smov 0   ;;  %s1349_s16 = smov 0   ;;  %s1521_s0 = inlined_call_operand.vmem [shape: bf16[128,640], index: 0, kind: input, shape index: {}]   ;;  %s1522_s1 = inlined_call_operand.vmem [shape: bf16[640,128], index: 1, kind: input, shape index: {}]   ;;  %s1523_s2 = inlined_call_operand.vmem [shape: f32[1,128], index: 2, kind: input, shape index: {}]   ;;  %s1524_s3 = inlined_call_operand.vmem [shape: bf16[128,128], index: 3, kind: input, shape index: {}]   ;;  %s1525_s4 = inlined_call_operand.vmem [shape: bf16[128,128], index: 4, kind: output, shape index: {}]  }
   0x1   :  { %s1351_s17 = smov 0   ;;  %s1353_s18 = smov 0  }
   0x2   :  { %s1355_s19 = smov 0  }
   0x3 LB: > { %s26_s20 = sadd.s32 1, %s1315_s18  ;;  %p49_p1 = scmp.ne.s32.totalorder %s1307_s16, %s1303_s15  ;;  %s1319_s19 = sphi %s1355_s19, %s14_s19   ;;  %s1315_s18 = sphi %s1353_s18, %s1529_s18   ;;  %s1311_s17 = sphi %s1351_s17, %s1528_s17   ;;  %s1307_s16 = sphi %s1349_s16, %s1527_s16   ;;  %s1303_s15 = sphi %s1347_s15, %s1526_s15  }
   0x4   : > { %p27_p0 = scmp.ge.s32.totalorder %s26_s20, 5  ;;  %p50_p2 = scmp.eq.s32.totalorder %s1319_s19, 0 }
   0x5   : > { %s42_s22 = sadd.s32 1, %s1307_s16  ;;  %p1012_p5 = scmp.ge.s32.totalorder %s1319_s19, 5 }
   0x6   : > { %s1531_s20 = smov (%p27_p0, %s26_s20), 0  ;;  %p51_p3 = por %p50_p2, %p49_p1 }
   0x7   : > { %s38_s21 = ssub.s32 %s1315_s18, %s1531_s20  ;;  %203 = sbr.rel (%p1012_p5) target bundleno = 26 (0x1a), region = 24 }
   0x8   : > { %p40_p4 = scmp.eq.s32.totalorder %s38_s21, 0 }
   0xa   : > { %s1382_s23 = scalar_select %p40_p4, %s1307_s16, %s42_s22  }
   0xc   : > { %206 = sbr.rel (!%p51_p3) target bundleno = 26 (0x1a), region = 28  ;;  %s208_s24 = sand.u32 (%p51_p3), 1, %s1307_s16  }
   0xd   : > { %s1014_s25 = sshll.u32 (%p51_p3), %s1315_s18, 2  ;;  %s1013_s26 = sshll.u32 (%p51_p3), %s208_s24, 6 }
   0xe   : > { %s1390_s29 = scalar_lea.vmem (%p51_p3), %s1521_s0, %s1014_s25  ;;  %s210_s30 = scalar_lea.vmem (%p51_p3), [#allocation3], %s1013_s26 }
   0xf   : > { %v232_v0 = vld [vmem:[%s1390_s29] sm:$0xf] (%p51_p3)  ;;  %v234_v1 = vld [vmem:[%s1390_s29 + $0x14] sm:$0xf] (%p51_p3)  ;;  %v236_v2 = vld [vmem:[%s1390_s29 + $0x28] sm:$0xf] (%p51_p3) }
  0x10   : > { %233 = vst [vmem:[%s210_s30] sm:$0xf] (%p51_p3), %v232_v0  ;;  %235 = vst [vmem:[%s210_s30 + $0x4] sm:$0xf] (%p51_p3), %v234_v1  ;;  %v238_v3 = vld [vmem:[%s1390_s29 + $0x3c] sm:$0xf] (%p51_p3) }
  0x11   : > { %v240_v4 = vld [vmem:[%s1390_s29 + $0x50] sm:$0xf]  ;;  %237 = vst [vmem:[%s210_s30 + $0x8] sm:$0xf] %v236_v2  ;;  %239 = vst [vmem:[%s210_s30 + $0xc] sm:$0xf] %v238_v3 }
  0x12   : > { %241 = vst [vmem:[%s210_s30 + $0x10] sm:$0xf] %v240_v4  ;;  %v242_v5 = vld [vmem:[%s1390_s29 + $0x64] sm:$0xf]  ;;  %v244_v6 = vld [vmem:[%s1390_s29 + $0x78] sm:$0xf] }
  0x13   : > { %v246_v7 = vld [vmem:[%s1390_s29 + $0x8c] sm:$0xf]  ;;  %243 = vst [vmem:[%s210_s30 + $0x14] sm:$0xf] %v242_v5  ;;  %245 = vst [vmem:[%s210_s30 + $0x18] sm:$0xf] %v244_v6 }
  0x14   : > { %247 = vst [vmem:[%s210_s30 + $0x1c] sm:$0xf] %v246_v7  ;;  %v248_v8 = vld [vmem:[%s1390_s29 + $0xa0] sm:$0xf]  ;;  %v250_v9 = vld [vmem:[%s1390_s29 + $0xb4] sm:$0xf] }
  0x15   : > { %v252_v10 = vld [vmem:[%s1390_s29 + $0xc8] sm:$0xf]  ;;  %249 = vst [vmem:[%s210_s30 + $0x20] sm:$0xf] %v248_v8  ;;  %251 = vst [vmem:[%s210_s30 + $0x24] sm:$0xf] %v250_v9 }
  0x16   : > { %253 = vst [vmem:[%s210_s30 + $0x28] sm:$0xf] %v252_v10  ;;  %v254_v11 = vld [vmem:[%s1390_s29 + $0xdc] sm:$0xf]  ;;  %v256_v12 = vld [vmem:[%s1390_s29 + $0xf0] sm:$0xf] }
  0x17   : > { %v258_v13 = vld [vmem:[%s1390_s29 + $0x104] sm:$0xf]  ;;  %255 = vst [vmem:[%s210_s30 + $0x2c] sm:$0xf] %v254_v11  ;;  %257 = vst [vmem:[%s210_s30 + $0x30] sm:$0xf] %v256_v12 }
  0x18   : > { %259 = vst [vmem:[%s210_s30 + $0x34] sm:$0xf] %v258_v13  ;;  %v260_v14 = vld [vmem:[%s1390_s29 + $0x118] sm:$0xf]  ;;  %v262_v15 = vld [vmem:[%s1390_s29 + $0x12c] sm:$0xf] }
  0x19   : > { %261 = vst [vmem:[%s210_s30 + $0x38] sm:$0xf] %v260_v14  ;;  %263 = vst [vmem:[%s210_s30 + $0x3c] sm:$0xf] %v262_v15 }
  0x1a PF: > { %p1015_p6 = scmp.ge.s32.totalorder %s1319_s19, 1  ;;  %p330_p7 = scmp.lt.s32.totalorder %s1319_s19, 6 }
  0x1c   : > { %p331_p8 = pnand %p1015_p6, %p330_p7 }
  0x1d   : > { %s337_s5 = sand.u32 (!%p331_p8), 1, %s1303_s15   ;;  %s1017_s6 = sshll.u32 (!%p331_p8), %s1311_s17, 4 }
  0x1e   : > { %334 = sbr.rel (%p331_p8) target bundleno = 313 (0x139), region = 73  ;;  %s1016_s7 = sshll.u32 (!%p331_p8), %s337_s5, 6 }
  0x1f   : > { %p386_p9 = scmp.lt.s32.totalorder (!%p331_p8), %s1017_s6, 79  ;;  %s1417_s12 = scalar_lea.vmem (!%p331_p8), [#allocation3], %s1016_s7 }
  0x20   : > { %p1019_p10 = scmp.ne.s32.totalorder (!%p331_p8), %s1311_s17, 0 }
  0x23   : > { %s1533_s6 = smov (!%p386_p9, %s1017_s6), 79  ;;  %419 = sbr.rel (%p1019_p10) target bundleno = 49 (0x31), region = 81 }
  0x24   : > { %s1018_s8 = sshll.u32 %s1533_s6, 2 }
  0x25   : > { %s1415_s11 = scalar_lea.vmem %s1522_s1, %s1018_s8 }
  0x28   : > { %v1321_v16 = vmov 0.0  }
  0x29   : > { %420 = vst [vmem:[#allocation2 + $0x30] sm:$0xff] %v1321_v16  ;;  %421 = vst [vmem:[#allocation2] sm:$0xff] %v1321_v16 }
  0x2a   : > { %422 = vst [vmem:[#allocation2 + $0x58] sm:$0xff] %v1321_v16  ;;  %423 = vst [vmem:[#allocation2 + $0x18] sm:$0xff] %v1321_v16 }
  0x2b   : > { %424 = vst [vmem:[#allocation2 + $0x50] sm:$0xff] %v1321_v16  ;;  %425 = vst [vmem:[#allocation2 + $0x68] sm:$0xff] %v1321_v16 }
  0x2c   : > { %426 = vst [vmem:[#allocation2 + $0x8] sm:$0xff] %v1321_v16  ;;  %427 = vst [vmem:[#allocation2 + $0x48] sm:$0xff] %v1321_v16 }
  0x2d   : > { %428 = vst [vmem:[#allocation2 + $0x40] sm:$0xff] %v1321_v16  ;;  %429 = vst [vmem:[#allocation2 + $0x20] sm:$0xff] %v1321_v16 }
  0x2e   : > { %430 = vst [vmem:[#allocation2 + $0x10] sm:$0xff] %v1321_v16  ;;  %431 = vst [vmem:[#allocation2 + $0x38] sm:$0xff] %v1321_v16 }
  0x2f   : > { %432 = vst [vmem:[#allocation2 + $0x60] sm:$0xff] %v1321_v16  ;;  %433 = vst [vmem:[#allocation2 + $0x70] sm:$0xff] %v1321_v16 }
  0x30   : > { %434 = vst [vmem:[#allocation2 + $0x78] sm:$0xff] %v1321_v16  ;;  %435 = vst [vmem:[#allocation2 + $0x28] sm:$0xff] %v1321_v16 }
  0x31 PF: > { %v1265_v17 = vld [vmem:[%s1415_s11 + $0x38] sm:$0xff]   ;;  %v1266_v18 = vld [vmem:[%s1415_s11 + $0x30] sm:$0xff]   ;;  %v1267_v19 = vld [vmem:[%s1415_s11 + $0x28] sm:$0xff]   ;;  %p1036_p11 = scmp.ne.s32.totalorder %s1311_s17, 4 }
  0x32   : > { %1176 = vmatprep.subr.bf16.mxu0 %v1265_v17  ;;  %1208 = vmatprep.subr.bf16.mxu1 %v1265_v17  ;;  %v1268_v20 = vld [vmem:[%s1415_s11 + $0x20] sm:$0xff]   ;;  %v1269_v23 = vld [vmem:[%s1415_s11 + $0x18] sm:$0xff]   ;;  %v1270_v24 = vld [vmem:[%s1415_s11 + $0x10] sm:$0xff]  }
  0x33   : > { %1177 = vmatpush3.bf16.msra.mxu0 %v1265_v17  ;;  %1216 = vmatpush3.bf16.msra.mxu1 %v1265_v17  ;;  %v1273_v21 = vld [vmem:[%s1417_s12] sm:$0xff]   ;;  %v1271_v25 = vld [vmem:[%s1415_s11 + $0x8] sm:$0xff]   ;;  %v1277_v29 = vld [vmem:[%s1417_s12 + $0x10] sm:$0xff]  }
  0x34   : > { %1178 = vmatprep.subr.bf16.mxu0 %v1266_v18  ;;  %1209 = vmatprep.subr.bf16.mxu1 %v1266_v18  ;;  %v1274_v22 = vld [vmem:[%s1417_s12 + $0x20] sm:$0xff]   ;;  %v1275_v27 = vld [vmem:[%s1417_s12 + $0x8] sm:$0xff]   ;;  %v1278_v30 = vld [vmem:[%s1417_s12 + $0x30] sm:$0xff]  }
  0x35   : > { %1192 = vmatprep.mubr.bf16.mxu0 %v1273_v21  ;;  %1200 = vmatprep.mubr.bf16.mxu1 %v1274_v22  ;;  %v1272_v26 = vld [vmem:[%s1415_s11] sm:$0xff]   ;;  %v1276_v28 = vld [vmem:[%s1417_s12 + $0x28] sm:$0xff]   ;;  %v1279_v31 = vld [vmem:[%s1417_s12 + $0x18] sm:$0xff]  }
  0x36   : > { %v1280_v32 = vld [vmem:[%s1417_s12 + $0x38] sm:$0xff]   ;;  %v446_v34 = vld [vmem:[#allocation2 + $0x10] sm:$0xff]  ;;  %v444_v38 = vld [vmem:[#allocation2 + $0x40] sm:$0xff] }
  0x37   : > { %1179 = vmatpush3.bf16.msra.mxu0 %v1266_v18  ;;  %1217 = vmatpush3.bf16.msra.mxu1 %v1266_v18  ;;  %v438_v33 = vld [vmem:[#allocation2 + $0x58] sm:$0xff]  ;;  %v436_v37 = vld [vmem:[#allocation2 + $0x30] sm:$0xff]  ;;  %v437_v49 = vld [vmem:[#allocation2] sm:$0xff] }
  0x38   : > { %1180 = vmatprep.subr.bf16.mxu0 %v1267_v19  ;;  %1210 = vmatprep.subr.bf16.mxu1 %v1267_v19  ;;  %v439_v43 = vld [vmem:[#allocation2 + $0x18] sm:$0xff]  ;;  %v445_v50 = vld [vmem:[#allocation2 + $0x20] sm:$0xff]  ;;  %v442_v55 = vld [vmem:[#allocation2 + $0x8] sm:$0xff] }
  0x39   : > { %v447_v44 = vld [vmem:[#allocation2 + $0x38] sm:$0xff]  ;;  %v440_v61 = vld [vmem:[#allocation2 + $0x50] sm:$0xff]  ;;  %v448_v62 = vld [vmem:[#allocation2 + $0x60] sm:$0xff] }
  0x3a   : > { %v450_v56 = vld [vmem:[#allocation2 + $0x78] sm:$0xff]  ;;  %v443_v3 = vld [vmem:[#allocation2 + $0x48] sm:$0xff]  ;;  %v449_v10 = vld [vmem:[#allocation2 + $0x70] sm:$0xff] }
  0x3b   : > { %1181 = vmatpush3.bf16.msra.mxu0 %v1267_v19  ;;  %1218 = vmatpush3.bf16.msra.mxu1 %v1267_v19  ;;  %v451_v4 = vld [vmem:[#allocation2 + $0x28] sm:$0xff] }
  0x3c   : > { %1182 = vmatprep.subr.bf16.mxu0 %v1268_v20  ;;  %1211 = vmatprep.subr.bf16.mxu1 %v1268_v20  ;;  %v441_v9 = vld [vmem:[#allocation2 + $0x68] sm:$0xff] }
  0x3f   : > { %1183 = vmatpush3.bf16.msra.mxu0 %v1268_v20  ;;  %1219 = vmatpush3.bf16.msra.mxu1 %v1268_v20 }
  0x40   : > { %1184 = vmatprep.subr.bf16.mxu0 %v1269_v23  ;;  %1212 = vmatprep.subr.bf16.mxu1 %v1269_v23 }
  0x43   : > { %1185 = vmatpush3.bf16.msra.mxu0 %v1269_v23  ;;  %1220 = vmatpush3.bf16.msra.mxu1 %v1269_v23 }
  0x44   : > { %1186 = vmatprep.subr.bf16.mxu0 %v1270_v24  ;;  %1213 = vmatprep.subr.bf16.mxu1 %v1270_v24 }
  0x47   : > { %1187 = vmatpush3.bf16.msra.mxu0 %v1270_v24  ;;  %1221 = vmatpush3.bf16.msra.mxu1 %v1270_v24 }
  0x48   : > { %1188 = vmatprep.subr.bf16.mxu0 %v1271_v25  ;;  %1214 = vmatprep.subr.bf16.mxu1 %v1271_v25 }
  0x4b   : > { %1189 = vmatpush3.bf16.msra.mxu0 %v1271_v25  ;;  %1222 = vmatpush3.bf16.msra.mxu1 %v1271_v25 }
  0x4c   : > { %1190 = vmatprep.subr.bf16.mxu0 %v1272_v26  ;;  %1215 = vmatprep.subr.bf16.mxu1 %v1272_v26 }
  0x4f   : > { %1191 = vmatpush3.bf16.msra.mxu0 %v1272_v26  ;;  %1223 = vmatpush3.bf16.msra.mxu1 %v1272_v26 }
  0x52   : > { %1193 = vmatmul.mubr.bf16.vlgmr.msra.gmra.mxu0 %v1275_v27  ;;  %1201 = vmatmul.mubr.bf16.vlgmr.msra.gmra.mxu1 %v1276_v28 }
  0x53   : > { %1196 = vmatprep.mubr.bf16.mxu0 %v1277_v29  ;;  %1204 = vmatprep.mubr.bf16.mxu1 %v1278_v30 }
  0x5a   : > { %1197 = vmatmul.mubr.bf16.gmra.mxu0 %v1279_v31  ;;  %1205 = vmatmul.mubr.bf16.gmra.mxu1 %v1280_v32 }
 0x112   : > { %v1194_v35 = vpop.f32.mrf.mxu0  ;;  %v1202_v36 = vpop.f32.mrf.mxu1 }
 0x113   : > { %v679_v39 = vadd.f32 %v1194_v35, %v438_v33  ;;  %v687_v40 = vadd.f32 %v1202_v36, %v446_v34 }
 0x114   : > { %v614_v41 = vpop.f32.mrf.mxu0  ;;  %v646_v42 = vpop.f32.mrf.mxu1 }
 0x115   : > { %695 = vst [vmem:[#allocation2 + $0x58] sm:$0xff] %v679_v39  ;;  %703 = vst [vmem:[#allocation2 + $0x10] sm:$0xff] %v687_v40  ;;  %v677_v45 = vadd.f32 %v614_v41, %v436_v37  ;;  %v685_v46 = vadd.f32 %v646_v42, %v444_v38 }
 0x116   : > { %v1195_v47 = vpop.f32.mrf.mxu0  ;;  %v1203_v48 = vpop.f32.mrf.mxu1 }
 0x117   : > { %693 = vst [vmem:[#allocation2 + $0x30] sm:$0xff] %v677_v45  ;;  %701 = vst [vmem:[#allocation2 + $0x40] sm:$0xff] %v685_v46  ;;  %v680_v51 = vadd.f32 %v1195_v47, %v439_v43  ;;  %v688_v52 = vadd.f32 %v1203_v48, %v447_v44 }
 0x118   : > { %v617_v53 = vpop.f32.mrf.mxu0  ;;  %v649_v54 = vpop.f32.mrf.mxu1 }
 0x119   : > { %696 = vst [vmem:[#allocation2 + $0x18] sm:$0xff] %v680_v51  ;;  %704 = vst [vmem:[#allocation2 + $0x38] sm:$0xff] %v688_v52  ;;  %v678_v57 = vadd.f32 %v617_v53, %v437_v49  ;;  %v686_v58 = vadd.f32 %v649_v54, %v445_v50 }
 0x11a   : > { %v1198_v59 = vpop.f32.mrf.mxu0  ;;  %v1206_v60 = vpop.f32.mrf.mxu1 }
 0x11b   : > { %694 = vst [vmem:[#allocation2] sm:$0xff] %v678_v57  ;;  %702 = vst [vmem:[#allocation2 + $0x20] sm:$0xff] %v686_v58  ;;  %v683_v63 = vadd.f32 %v1198_v59, %v442_v55  ;;  %v691_v0 = vadd.f32 %v1206_v60, %v450_v56 }
 0x11c   : > { %v630_v1 = vpop.f32.mrf.mxu0  ;;  %v662_v2 = vpop.f32.mrf.mxu1 }
 0x11d   : > { %699 = vst [vmem:[#allocation2 + $0x8] sm:$0xff] %v683_v63  ;;  %707 = vst [vmem:[#allocation2 + $0x78] sm:$0xff] %v691_v0  ;;  %v681_v5 = vadd.f32 %v630_v1, %v440_v61  ;;  %v689_v6 = vadd.f32 %v662_v2, %v448_v62 }
 0x11e   : > { %v1199_v7 = vpop.f32.mrf.mxu0  ;;  %v1207_v8 = vpop.f32.mrf.mxu1 }
 0x11f   : > { %697 = vst [vmem:[#allocation2 + $0x50] sm:$0xff] %v681_v5  ;;  %705 = vst [vmem:[#allocation2 + $0x60] sm:$0xff] %v689_v6  ;;  %v684_v11 = vadd.f32 %v1199_v7, %v443_v3  ;;  %v692_v12 = vadd.f32 %v1207_v8, %v451_v4  ;;  %712 = sbr.rel (%p1036_p11) target bundleno = 313 (0x139), region = 85 }
 0x120   : > { %v633_v13 = vpop.f32.mrf.mxu0  ;;  %v665_v14 = vpop.f32.mrf.mxu1 }
 0x121   : > { %700 = vst [vmem:[#allocation2 + $0x48] sm:$0xff] %v684_v11  ;;  %708 = vst [vmem:[#allocation2 + $0x28] sm:$0xff] %v692_v12  ;;  %v682_v15 = vadd.f32 %v633_v13, %v441_v9  ;;  %v690_v16 = vadd.f32 %v665_v14, %v449_v10 }
 0x123   : > { %698 = vst [vmem:[#allocation2 + $0x68] sm:$0xff] %v682_v15  ;;  %706 = vst [vmem:[#allocation2 + $0x70] sm:$0xff] %v690_v16 }
 0x124   : > { %v713_v17 = vld [vmem:[#allocation2 + $0x30] sm:$0xff]  ;;  %v714_v18 = vld [vmem:[#allocation2] sm:$0xff]  ;;  %v715_v23 = vld [vmem:[#allocation2 + $0x58] sm:$0xff] }
 0x125   : > { %v1440_v19 = vld [vmem:[%s1523_s2] ss:$0 sm:$0xff]  ;;  %v716_v24 = vld [vmem:[#allocation2 + $0x18] sm:$0xff]  ;;  %v1146_v29 = vld [vmem:[%s1524_s3 + $0x8] sm:$0xff]  }
 0x126   : > { %v736_v20 = vadd.f32 %v1440_v19, %v713_v17  ;;  %v737_v21 = vadd.f32 %v1440_v19, %v714_v18  ;;  %v1075_v22 = vld [vmem:[%s1524_s3] sm:$0xff]   ;;  %v738_v27 = vadd.f32 %v1440_v19, %v715_v23  ;;  %v739_v28 = vadd.f32 %v1440_v19, %v716_v24  ;;  %v717_v30 = vld [vmem:[#allocation2 + $0x50] sm:$0xff]  ;;  %v719_v37 = vld [vmem:[#allocation2 + $0x8] sm:$0xff] }
 0x127   : > { %v1076_v25 = vunpack.c.l.bf16 %v1075_v22  ;;  %v1077_v26 = vunpack.c.h.bf16 %v1075_v22  ;;  %v1080_v32 = vunpack.c.l.bf16 %v1146_v29  ;;  %v1081_v33 = vunpack.c.h.bf16 %v1146_v29  ;;  %v1147_v36 = vld [vmem:[%s1524_s3 + $0x10] sm:$0xff]   ;;  %v1148_v43 = vld [vmem:[%s1524_s3 + $0x18] sm:$0xff]   ;;  %v721_v44 = vld [vmem:[#allocation2 + $0x40] sm:$0xff] }
 0x128   : > { %v740_v34 = vadd.f32 %v1440_v19, %v717_v30  ;;  %v720_v38 = vld [vmem:[#allocation2 + $0x48] sm:$0xff]  ;;  %v1084_v41 = vunpack.c.l.bf16 %v1147_v36  ;;  %v1085_v42 = vunpack.c.h.bf16 %v1147_v36  ;;  %v722_v45 = vld [vmem:[#allocation2 + $0x20] sm:$0xff]  ;;  %v742_v48 = vadd.f32 %v1440_v19, %v719_v37  ;;  %v723_v55 = vld [vmem:[#allocation2 + $0x10] sm:$0xff] }
 0x129   : > { %v784_v39 = vadd.f32 %v1076_v25, %v736_v20  ;;  %v785_v40 = vadd.f32 %v1077_v26, %v737_v21  ;;  %v786_v46 = vadd.f32 %v1080_v32, %v738_v27  ;;  %v787_v47 = vadd.f32 %v1081_v33, %v739_v28  ;;  %v1149_v50 = vld [vmem:[%s1524_s3 + $0x20] sm:$0xff]   ;;  %v724_v56 = vld [vmem:[#allocation2 + $0x38] sm:$0xff]  ;;  %v1150_v57 = vld [vmem:[%s1524_s3 + $0x28] sm:$0xff]  }
 0x12a   : > { %v718_v31 = vld [vmem:[#allocation2 + $0x68] sm:$0xff]  ;;  %v743_v49 = vadd.f32 %v1440_v19, %v720_v38  ;;  %v788_v52 = vadd.f32 %v1084_v41, %v740_v34  ;;  %v1088_v54 = vunpack.c.l.bf16 %v1148_v43  ;;  %v1089_v59 = vunpack.c.h.bf16 %v1148_v43  ;;  %v725_v62 = vld [vmem:[#allocation2 + $0x60] sm:$0xff]  ;;  %v726_v3 = vld [vmem:[#allocation2 + $0x70] sm:$0xff] }
 0x12b   : > { %v741_v35 = vadd.f32 %v1440_v19, %v718_v31  ;;  %v1109_v51 = vpack.c.bf16 %v785_v40, %v784_v39  ;;  %v1114_v58 = vpack.c.bf16 %v787_v47, %v786_v46  ;;  %v744_v60 = vadd.f32 %v1440_v19, %v721_v44  ;;  %v1151_v4 = vld [vmem:[%s1524_s3 + $0x30] sm:$0xff]   ;;  %v727_v9 = vld [vmem:[#allocation2 + $0x78] sm:$0xff]  ;;  %v728_v14 = vld [vmem:[#allocation2 + $0x28] sm:$0xff] }
 0x12c   : > { %v745_v61 = vadd.f32 %v1440_v19, %v722_v45  ;;  %v790_v0 = vadd.f32 %v1088_v54, %v742_v48  ;;  %v1092_v1 = vunpack.c.l.bf16 %v1149_v50  ;;  %v1093_v2 = vunpack.c.h.bf16 %v1149_v50  ;;  %v1152_v15 = vld [vmem:[%s1524_s3 + $0x38] sm:$0xff]  }
 0x12d   : > { %v789_v53 = vadd.f32 %v1085_v42, %v741_v35  ;;  %1110 = vst [vmem:[%s1525_s4] sm:$0xff] %v1109_v51   ;;  %1153 = vst [vmem:[%s1525_s4 + $0x8] sm:$0xff] %v1114_v58   ;;  %v791_v5 = vadd.f32 %v1089_v59, %v743_v49  ;;  %v746_v6 = vadd.f32 %v1440_v19, %v723_v55  ;;  %v1096_v8 = vunpack.c.l.bf16 %v1150_v57 }
 0x12e   : > { %v747_v7 = vadd.f32 %v1440_v19, %v724_v56  ;;  %v792_v10 = vadd.f32 %v1092_v1, %v744_v60  ;;  %v793_v11 = vadd.f32 %v1093_v2, %v745_v61  ;;  %v1097_v12 = vunpack.c.h.bf16 %v1150_v57 }
 0x12f   : > { %v1119_v63 = vpack.c.bf16 %v789_v53, %v788_v52  ;;  %v748_v13 = vadd.f32 %v1440_v19, %v725_v62  ;;  %v1124_v16 = vpack.c.bf16 %v791_v5, %v790_v0  ;;  %v794_v17 = vadd.f32 %v1096_v8, %v746_v6 }
 0x130   : > { %v749_v18 = vadd.f32 %v1440_v19, %v726_v3  ;;  %v1100_v20 = vunpack.c.l.bf16 %v1151_v4  ;;  %v1129_v21 = vpack.c.bf16 %v793_v11, %v792_v10  ;;  %v795_v22 = vadd.f32 %v1097_v12, %v747_v7 }
 0x131   : > { %1154 = vst [vmem:[%s1525_s4 + $0x10] sm:$0xff] %v1119_v63   ;;  %v1101_v23 = vunpack.c.h.bf16 %v1151_v4  ;;  %v750_v24 = vadd.f32 %v1440_v19, %v727_v9  ;;  %1155 = vst [vmem:[%s1525_s4 + $0x18] sm:$0xff] %v1124_v16   ;;  %v751_v26 = vadd.f32 %v1440_v19, %v728_v14  ;;  %v1104_v27 = vunpack.c.l.bf16 %v1152_v15 }
 0x132   : > { %v796_v25 = vadd.f32 %v1100_v20, %v748_v13  ;;  %v1105_v28 = vunpack.c.h.bf16 %v1152_v15  ;;  %1156 = vst [vmem:[%s1525_s4 + $0x20] sm:$0xff] %v1129_v21   ;;  %v1134_v29 = vpack.c.bf16 %v795_v22, %v794_v17 }
 0x133   : > { %v797_v30 = vadd.f32 %v1101_v23, %v749_v18  ;;  %v798_v31 = vadd.f32 %v1104_v27, %v750_v24 }
 0x134   : > { %v799_v32 = vadd.f32 %v1105_v28, %v751_v26  ;;  %1157 = vst [vmem:[%s1525_s4 + $0x28] sm:$0xff] %v1134_v29  }
 0x135   : > { %v1139_v33 = vpack.c.bf16 %v797_v30, %v796_v25 }
 0x136   : > { %v1144_v34 = vpack.c.bf16 %v799_v32, %v798_v31 }
 0x137   : > { %1158 = vst [vmem:[%s1525_s4 + $0x30] sm:$0xff] %v1139_v33  }
 0x138   : > { %1159 = vst [vmem:[%s1525_s4 + $0x38] sm:$0xff] %v1144_v34  }
 0x139 PF: > { %s14_s19 = sadd.s32 1, %s1319_s19   ;;  %s1526_s15 = smov %s1307_s16 }
 0x13a   : > { %p11_p12 = scmp.ge.s32.totalorder %s14_s19, 7   ;;  %s1527_s16 = smov %s1382_s23 }
 0x13b   : > { %s1528_s17 = smov %s1315_s18  ;;  %s1529_s18 = smov %s1531_s20 }
 0x13c   :  { %13 = sbr.rel (!%p11_p12) target bundleno = 3 (0x3), region = 129 }

// kernel: iresnet_forward.18
= control target key start
LH: loop header
LB: loop body
LE: loop exit
PB: predicated region body
PF: predicated region fallthrough
CT: control target
= control target key end

     0   :  { %s1291_s15 = smov 0   ;;  %s1293_s16 = smov 0   ;;  %s1462_s0 = inlined_call_operand.vmem [shape: bf16[128,640], index: 0, kind: input, shape index: {}]   ;;  %s1463_s1 = inlined_call_operand.vmem [shape: bf16[640,128], index: 1, kind: input, shape index: {}]   ;;  %s1464_s2 = inlined_call_operand.vmem [shape: f32[1,128], index: 2, kind: input, shape index: {}]   ;;  %s1465_s3 = inlined_call_operand.vmem [shape: f32[1,128], index: 3, kind: input, shape index: {}]   ;;  %s1466_s4 = inlined_call_operand.vmem [shape: bf16[128,128], index: 4, kind: output, shape index: {}]  }
   0x1   :  { %s1295_s17 = smov 0   ;;  %s1297_s18 = smov 0  }
   0x2   :  { %s1299_s19 = smov 0  }
   0x3 LB: > { %s26_s20 = sadd.s32 1, %s1259_s18  ;;  %p49_p1 = scmp.ne.s32.totalorder %s1251_s16, %s1247_s15  ;;  %s1263_s19 = sphi %s1299_s19, %s14_s19   ;;  %s1259_s18 = sphi %s1297_s18, %s1470_s18   ;;  %s1255_s17 = sphi %s1295_s17, %s1469_s17   ;;  %s1251_s16 = sphi %s1293_s16, %s1468_s16   ;;  %s1247_s15 = sphi %s1291_s15, %s1467_s15  }
   0x4   : > { %p27_p0 = scmp.ge.s32.totalorder %s26_s20, 5  ;;  %p50_p2 = scmp.eq.s32.totalorder %s1263_s19, 0 }
   0x5   : > { %s42_s22 = sadd.s32 1, %s1251_s16  ;;  %p994_p5 = scmp.ge.s32.totalorder %s1263_s19, 5 }
   0x6   : > { %s1472_s20 = smov (%p27_p0, %s26_s20), 0  ;;  %p51_p3 = por %p50_p2, %p49_p1 }
   0x7   : > { %s38_s21 = ssub.s32 %s1259_s18, %s1472_s20  ;;  %195 = sbr.rel (%p994_p5) target bundleno = 26 (0x1a), region = 24 }
   0x8   : > { %p40_p4 = scmp.eq.s32.totalorder %s38_s21, 0 }
   0xa   : > { %s1326_s23 = scalar_select %p40_p4, %s1251_s16, %s42_s22  }
   0xc   : > { %198 = sbr.rel (!%p51_p3) target bundleno = 26 (0x1a), region = 28  ;;  %s200_s24 = sand.u32 (%p51_p3), 1, %s1251_s16  }
   0xd   : > { %s996_s25 = sshll.u32 (%p51_p3), %s1259_s18, 2  ;;  %s995_s26 = sshll.u32 (%p51_p3), %s200_s24, 6 }
   0xe   : > { %s1334_s29 = scalar_lea.vmem (%p51_p3), %s1462_s0, %s996_s25  ;;  %s202_s30 = scalar_lea.vmem (%p51_p3), [#allocation3], %s995_s26 }
   0xf   : > { %v224_v0 = vld [vmem:[%s1334_s29] sm:$0xf] (%p51_p3)  ;;  %v226_v1 = vld [vmem:[%s1334_s29 + $0x14] sm:$0xf] (%p51_p3)  ;;  %v228_v2 = vld [vmem:[%s1334_s29 + $0x28] sm:$0xf] (%p51_p3) }
  0x10   : > { %225 = vst [vmem:[%s202_s30] sm:$0xf] (%p51_p3), %v224_v0  ;;  %227 = vst [vmem:[%s202_s30 + $0x4] sm:$0xf] (%p51_p3), %v226_v1  ;;  %v230_v3 = vld [vmem:[%s1334_s29 + $0x3c] sm:$0xf] (%p51_p3) }
  0x11   : > { %v232_v4 = vld [vmem:[%s1334_s29 + $0x50] sm:$0xf]  ;;  %229 = vst [vmem:[%s202_s30 + $0x8] sm:$0xf] %v228_v2  ;;  %231 = vst [vmem:[%s202_s30 + $0xc] sm:$0xf] %v230_v3 }
  0x12   : > { %233 = vst [vmem:[%s202_s30 + $0x10] sm:$0xf] %v232_v4  ;;  %v234_v5 = vld [vmem:[%s1334_s29 + $0x64] sm:$0xf]  ;;  %v236_v6 = vld [vmem:[%s1334_s29 + $0x78] sm:$0xf] }
  0x13   : > { %v238_v7 = vld [vmem:[%s1334_s29 + $0x8c] sm:$0xf]  ;;  %235 = vst [vmem:[%s202_s30 + $0x14] sm:$0xf] %v234_v5  ;;  %237 = vst [vmem:[%s202_s30 + $0x18] sm:$0xf] %v236_v6 }
  0x14   : > { %239 = vst [vmem:[%s202_s30 + $0x1c] sm:$0xf] %v238_v7  ;;  %v240_v8 = vld [vmem:[%s1334_s29 + $0xa0] sm:$0xf]  ;;  %v242_v9 = vld [vmem:[%s1334_s29 + $0xb4] sm:$0xf] }
  0x15   : > { %v244_v10 = vld [vmem:[%s1334_s29 + $0xc8] sm:$0xf]  ;;  %241 = vst [vmem:[%s202_s30 + $0x20] sm:$0xf] %v240_v8  ;;  %243 = vst [vmem:[%s202_s30 + $0x24] sm:$0xf] %v242_v9 }
  0x16   : > { %245 = vst [vmem:[%s202_s30 + $0x28] sm:$0xf] %v244_v10  ;;  %v246_v11 = vld [vmem:[%s1334_s29 + $0xdc] sm:$0xf]  ;;  %v248_v12 = vld [vmem:[%s1334_s29 + $0xf0] sm:$0xf] }
  0x17   : > { %v250_v13 = vld [vmem:[%s1334_s29 + $0x104] sm:$0xf]  ;;  %247 = vst [vmem:[%s202_s30 + $0x2c] sm:$0xf] %v246_v11  ;;  %249 = vst [vmem:[%s202_s30 + $0x30] sm:$0xf] %v248_v12 }
  0x18   : > { %251 = vst [vmem:[%s202_s30 + $0x34] sm:$0xf] %v250_v13  ;;  %v252_v14 = vld [vmem:[%s1334_s29 + $0x118] sm:$0xf]  ;;  %v254_v15 = vld [vmem:[%s1334_s29 + $0x12c] sm:$0xf] }
  0x19   : > { %253 = vst [vmem:[%s202_s30 + $0x38] sm:$0xf] %v252_v14  ;;  %255 = vst [vmem:[%s202_s30 + $0x3c] sm:$0xf] %v254_v15 }
  0x1a PF: > { %p997_p6 = scmp.ge.s32.totalorder %s1263_s19, 1  ;;  %p322_p7 = scmp.lt.s32.totalorder %s1263_s19, 6 }
  0x1c   : > { %p323_p8 = pnand %p997_p6, %p322_p7 }
  0x1d   : > { %s329_s5 = sand.u32 (!%p323_p8), 1, %s1247_s15   ;;  %s999_s6 = sshll.u32 (!%p323_p8), %s1255_s17, 4 }
  0x1e   : > { %326 = sbr.rel (%p323_p8) target bundleno = 316 (0x13c), region = 73  ;;  %s998_s7 = sshll.u32 (!%p323_p8), %s329_s5, 6 }
  0x1f   : > { %p373_p9 = scmp.lt.s32.totalorder (!%p323_p8), %s999_s6, 79  ;;  %s1361_s12 = scalar_lea.vmem (!%p323_p8), [#allocation3], %s998_s7 }
  0x20   : > { %p1001_p10 = scmp.ne.s32.totalorder (!%p323_p8), %s1255_s17, 0 }
  0x23   : > { %s1474_s6 = smov (!%p373_p9, %s999_s6), 79  ;;  %400 = sbr.rel (%p1001_p10) target bundleno = 49 (0x31), region = 81 }
  0x24   : > { %s1000_s8 = sshll.u32 %s1474_s6, 2 }
  0x25   : > { %s1359_s11 = scalar_lea.vmem %s1463_s1, %s1000_s8 }
  0x28   : > { %v1265_v16 = vmov 0.0  }
  0x29   : > { %401 = vst [vmem:[#allocation2 + $0x30] sm:$0xff] %v1265_v16  ;;  %402 = vst [vmem:[#allocation2] sm:$0xff] %v1265_v16 }
  0x2a   : > { %403 = vst [vmem:[#allocation2 + $0x58] sm:$0xff] %v1265_v16  ;;  %404 = vst [vmem:[#allocation2 + $0x18] sm:$0xff] %v1265_v16 }
  0x2b   : > { %405 = vst [vmem:[#allocation2 + $0x50] sm:$0xff] %v1265_v16  ;;  %406 = vst [vmem:[#allocation2 + $0x68] sm:$0xff] %v1265_v16 }
  0x2c   : > { %407 = vst [vmem:[#allocation2 + $0x8] sm:$0xff] %v1265_v16  ;;  %408 = vst [vmem:[#allocation2 + $0x48] sm:$0xff] %v1265_v16 }
  0x2d   : > { %409 = vst [vmem:[#allocation2 + $0x40] sm:$0xff] %v1265_v16  ;;  %410 = vst [vmem:[#allocation2 + $0x20] sm:$0xff] %v1265_v16 }
  0x2e   : > { %411 = vst [vmem:[#allocation2 + $0x10] sm:$0xff] %v1265_v16  ;;  %412 = vst [vmem:[#allocation2 + $0x38] sm:$0xff] %v1265_v16 }
  0x2f   : > { %413 = vst [vmem:[#allocation2 + $0x60] sm:$0xff] %v1265_v16  ;;  %414 = vst [vmem:[#allocation2 + $0x70] sm:$0xff] %v1265_v16 }
  0x30   : > { %415 = vst [vmem:[#allocation2 + $0x78] sm:$0xff] %v1265_v16  ;;  %416 = vst [vmem:[#allocation2 + $0x28] sm:$0xff] %v1265_v16 }
  0x31 PF: > { %v1209_v17 = vld [vmem:[%s1359_s11 + $0x38] sm:$0xff]   ;;  %v1210_v18 = vld [vmem:[%s1359_s11 + $0x30] sm:$0xff]   ;;  %v1211_v19 = vld [vmem:[%s1359_s11 + $0x28] sm:$0xff]   ;;  %p1018_p11 = scmp.ne.s32.totalorder %s1255_s17, 4 }
  0x32   : > { %1120 = vmatprep.subr.bf16.mxu0 %v1209_v17  ;;  %1152 = vmatprep.subr.bf16.mxu1 %v1209_v17  ;;  %v1212_v20 = vld [vmem:[%s1359_s11 + $0x20] sm:$0xff]   ;;  %v1213_v23 = vld [vmem:[%s1359_s11 + $0x18] sm:$0xff]   ;;  %v1214_v24 = vld [vmem:[%s1359_s11 + $0x10] sm:$0xff]  }
  0x33   : > { %1121 = vmatpush3.bf16.msra.mxu0 %v1209_v17  ;;  %1160 = vmatpush3.bf16.msra.mxu1 %v1209_v17  ;;  %v1217_v21 = vld [vmem:[%s1361_s12] sm:$0xff]   ;;  %v1215_v25 = vld [vmem:[%s1359_s11 + $0x8] sm:$0xff]   ;;  %v1221_v29 = vld [vmem:[%s1361_s12 + $0x10] sm:$0xff]  }
  0x34   : > { %1122 = vmatprep.subr.bf16.mxu0 %v1210_v18  ;;  %1153 = vmatprep.subr.bf16.mxu1 %v1210_v18  ;;  %v1218_v22 = vld [vmem:[%s1361_s12 + $0x20] sm:$0xff]   ;;  %v1219_v27 = vld [vmem:[%s1361_s12 + $0x8] sm:$0xff]   ;;  %v1222_v30 = vld [vmem:[%s1361_s12 + $0x30] sm:$0xff]  }
  0x35   : > { %1136 = vmatprep.mubr.bf16.mxu0 %v1217_v21  ;;  %1144 = vmatprep.mubr.bf16.mxu1 %v1218_v22  ;;  %v1216_v26 = vld [vmem:[%s1359_s11] sm:$0xff]   ;;  %v1220_v28 = vld [vmem:[%s1361_s12 + $0x28] sm:$0xff]   ;;  %v1223_v31 = vld [vmem:[%s1361_s12 + $0x18] sm:$0xff]  }
  0x36   : > { %v1224_v32 = vld [vmem:[%s1361_s12 + $0x38] sm:$0xff]   ;;  %v427_v34 = vld [vmem:[#allocation2 + $0x10] sm:$0xff]  ;;  %v425_v38 = vld [vmem:[#allocation2 + $0x40] sm:$0xff] }
  0x37   : > { %1123 = vmatpush3.bf16.msra.mxu0 %v1210_v18  ;;  %1161 = vmatpush3.bf16.msra.mxu1 %v1210_v18  ;;  %v419_v33 = vld [vmem:[#allocation2 + $0x58] sm:$0xff]  ;;  %v417_v37 = vld [vmem:[#allocation2 + $0x30] sm:$0xff]  ;;  %v418_v49 = vld [vmem:[#allocation2] sm:$0xff] }
  0x38   : > { %1124 = vmatprep.subr.bf16.mxu0 %v1211_v19  ;;  %1154 = vmatprep.subr.bf16.mxu1 %v1211_v19  ;;  %v420_v43 = vld [vmem:[#allocation2 + $0x18] sm:$0xff]  ;;  %v426_v50 = vld [vmem:[#allocation2 + $0x20] sm:$0xff]  ;;  %v423_v55 = vld [vmem:[#allocation2 + $0x8] sm:$0xff] }
  0x39   : > { %v428_v44 = vld [vmem:[#allocation2 + $0x38] sm:$0xff]  ;;  %v421_v61 = vld [vmem:[#allocation2 + $0x50] sm:$0xff]  ;;  %v429_v62 = vld [vmem:[#allocation2 + $0x60] sm:$0xff] }
  0x3a   : > { %v431_v56 = vld [vmem:[#allocation2 + $0x78] sm:$0xff]  ;;  %v424_v3 = vld [vmem:[#allocation2 + $0x48] sm:$0xff]  ;;  %v430_v10 = vld [vmem:[#allocation2 + $0x70] sm:$0xff] }
  0x3b   : > { %1125 = vmatpush3.bf16.msra.mxu0 %v1211_v19  ;;  %1162 = vmatpush3.bf16.msra.mxu1 %v1211_v19  ;;  %v432_v4 = vld [vmem:[#allocation2 + $0x28] sm:$0xff] }
  0x3c   : > { %1126 = vmatprep.subr.bf16.mxu0 %v1212_v20  ;;  %1155 = vmatprep.subr.bf16.mxu1 %v1212_v20  ;;  %v422_v9 = vld [vmem:[#allocation2 + $0x68] sm:$0xff] }
  0x3f   : > { %1127 = vmatpush3.bf16.msra.mxu0 %v1212_v20  ;;  %1163 = vmatpush3.bf16.msra.mxu1 %v1212_v20 }
  0x40   : > { %1128 = vmatprep.subr.bf16.mxu0 %v1213_v23  ;;  %1156 = vmatprep.subr.bf16.mxu1 %v1213_v23 }
  0x43   : > { %1129 = vmatpush3.bf16.msra.mxu0 %v1213_v23  ;;  %1164 = vmatpush3.bf16.msra.mxu1 %v1213_v23 }
  0x44   : > { %1130 = vmatprep.subr.bf16.mxu0 %v1214_v24  ;;  %1157 = vmatprep.subr.bf16.mxu1 %v1214_v24 }
  0x47   : > { %1131 = vmatpush3.bf16.msra.mxu0 %v1214_v24  ;;  %1165 = vmatpush3.bf16.msra.mxu1 %v1214_v24 }
  0x48   : > { %1132 = vmatprep.subr.bf16.mxu0 %v1215_v25  ;;  %1158 = vmatprep.subr.bf16.mxu1 %v1215_v25 }
  0x4b   : > { %1133 = vmatpush3.bf16.msra.mxu0 %v1215_v25  ;;  %1166 = vmatpush3.bf16.msra.mxu1 %v1215_v25 }
  0x4c   : > { %1134 = vmatprep.subr.bf16.mxu0 %v1216_v26  ;;  %1159 = vmatprep.subr.bf16.mxu1 %v1216_v26 }
  0x4f   : > { %1135 = vmatpush3.bf16.msra.mxu0 %v1216_v26  ;;  %1167 = vmatpush3.bf16.msra.mxu1 %v1216_v26 }
  0x52   : > { %1137 = vmatmul.mubr.bf16.vlgmr.msra.gmra.mxu0 %v1219_v27  ;;  %1145 = vmatmul.mubr.bf16.vlgmr.msra.gmra.mxu1 %v1220_v28 }
  0x53   : > { %1140 = vmatprep.mubr.bf16.mxu0 %v1221_v29  ;;  %1148 = vmatprep.mubr.bf16.mxu1 %v1222_v30 }
  0x5a   : > { %1141 = vmatmul.mubr.bf16.gmra.mxu0 %v1223_v31  ;;  %1149 = vmatmul.mubr.bf16.gmra.mxu1 %v1224_v32 }
 0x112   : > { %v1138_v35 = vpop.f32.mrf.mxu0  ;;  %v1146_v36 = vpop.f32.mrf.mxu1 }
 0x113   : > { %v660_v39 = vadd.f32 %v1138_v35, %v419_v33  ;;  %v668_v40 = vadd.f32 %v1146_v36, %v427_v34 }
 0x114   : > { %v595_v41 = vpop.f32.mrf.mxu0  ;;  %v627_v42 = vpop.f32.mrf.mxu1 }
 0x115   : > { %676 = vst [vmem:[#allocation2 + $0x58] sm:$0xff] %v660_v39  ;;  %684 = vst [vmem:[#allocation2 + $0x10] sm:$0xff] %v668_v40  ;;  %v658_v45 = vadd.f32 %v595_v41, %v417_v37  ;;  %v666_v46 = vadd.f32 %v627_v42, %v425_v38 }
 0x116   : > { %v1139_v47 = vpop.f32.mrf.mxu0  ;;  %v1147_v48 = vpop.f32.mrf.mxu1 }
 0x117   : > { %674 = vst [vmem:[#allocation2 + $0x30] sm:$0xff] %v658_v45  ;;  %682 = vst [vmem:[#allocation2 + $0x40] sm:$0xff] %v666_v46  ;;  %v661_v51 = vadd.f32 %v1139_v47, %v420_v43  ;;  %v669_v52 = vadd.f32 %v1147_v48, %v428_v44 }
 0x118   : > { %v598_v53 = vpop.f32.mrf.mxu0  ;;  %v630_v54 = vpop.f32.mrf.mxu1 }
 0x119   : > { %677 = vst [vmem:[#allocation2 + $0x18] sm:$0xff] %v661_v51  ;;  %685 = vst [vmem:[#allocation2 + $0x38] sm:$0xff] %v669_v52  ;;  %v659_v57 = vadd.f32 %v598_v53, %v418_v49  ;;  %v667_v58 = vadd.f32 %v630_v54, %v426_v50 }
 0x11a   : > { %v1142_v59 = vpop.f32.mrf.mxu0  ;;  %v1150_v60 = vpop.f32.mrf.mxu1 }
 0x11b   : > { %675 = vst [vmem:[#allocation2] sm:$0xff] %v659_v57  ;;  %683 = vst [vmem:[#allocation2 + $0x20] sm:$0xff] %v667_v58  ;;  %v664_v63 = vadd.f32 %v1142_v59, %v423_v55  ;;  %v672_v0 = vadd.f32 %v1150_v60, %v431_v56 }
 0x11c   : > { %v611_v1 = vpop.f32.mrf.mxu0  ;;  %v643_v2 = vpop.f32.mrf.mxu1 }
 0x11d   : > { %680 = vst [vmem:[#allocation2 + $0x8] sm:$0xff] %v664_v63  ;;  %688 = vst [vmem:[#allocation2 + $0x78] sm:$0xff] %v672_v0  ;;  %v662_v5 = vadd.f32 %v611_v1, %v421_v61  ;;  %v670_v6 = vadd.f32 %v643_v2, %v429_v62 }
 0x11e   : > { %v1143_v7 = vpop.f32.mrf.mxu0  ;;  %v1151_v8 = vpop.f32.mrf.mxu1 }
 0x11f   : > { %678 = vst [vmem:[#allocation2 + $0x50] sm:$0xff] %v662_v5  ;;  %686 = vst [vmem:[#allocation2 + $0x60] sm:$0xff] %v670_v6  ;;  %v665_v11 = vadd.f32 %v1143_v7, %v424_v3  ;;  %v673_v12 = vadd.f32 %v1151_v8, %v432_v4  ;;  %693 = sbr.rel (%p1018_p11) target bundleno = 316 (0x13c), region = 85 }
 0x120   : > { %v614_v13 = vpop.f32.mrf.mxu0  ;;  %v646_v14 = vpop.f32.mrf.mxu1 }
 0x121   : > { %681 = vst [vmem:[#allocation2 + $0x48] sm:$0xff] %v665_v11  ;;  %689 = vst [vmem:[#allocation2 + $0x28] sm:$0xff] %v673_v12  ;;  %v663_v15 = vadd.f32 %v614_v13, %v422_v9  ;;  %v671_v16 = vadd.f32 %v646_v14, %v430_v10 }
 0x123   : > { %679 = vst [vmem:[#allocation2 + $0x68] sm:$0xff] %v663_v15  ;;  %687 = vst [vmem:[#allocation2 + $0x70] sm:$0xff] %v671_v16 }
 0x124   : > { %v694_v17 = vld [vmem:[#allocation2 + $0x30] sm:$0xff]  ;;  %v695_v18 = vld [vmem:[#allocation2] sm:$0xff]  ;;  %v696_v23 = vld [vmem:[#allocation2 + $0x58] sm:$0xff] }
 0x125   : > { %v1384_v19 = vld [vmem:[%s1464_s2] ss:$0 sm:$0xff]  ;;  %v697_v24 = vld [vmem:[#allocation2 + $0x18] sm:$0xff]  ;;  %v700_v31 = vld [vmem:[#allocation2 + $0x8] sm:$0xff] }
 0x126   : > { %v717_v20 = vadd.f32 %v1384_v19, %v694_v17  ;;  %v718_v21 = vadd.f32 %v1384_v19, %v695_v18  ;;  %v1391_v22 = vld [vmem:[%s1465_s3] ss:$0 sm:$0xff]  ;;  %v719_v25 = vadd.f32 %v1384_v19, %v696_v23  ;;  %v720_v26 = vadd.f32 %v1384_v19, %v697_v24  ;;  %v698_v27 = vld [vmem:[#allocation2 + $0x50] sm:$0xff]  ;;  %v705_v54 = vld [vmem:[#allocation2 + $0x38] sm:$0xff] }
 0x127   : > { %v721_v36 = vadd.f32 %v1384_v19, %v698_v27  ;;  %v723_v42 = vadd.f32 %v1384_v19, %v700_v31  ;;  %v702_v43 = vld [vmem:[#allocation2 + $0x40] sm:$0xff]  ;;  %v704_v45 = vld [vmem:[#allocation2 + $0x10] sm:$0xff]  ;;  %v728_v1 = vadd.f32 %v1384_v19, %v705_v54  ;;  %v708_v6 = vld [vmem:[#allocation2 + $0x78] sm:$0xff] }
 0x128   : > { %vm734_vm0 = vcmp.ge.f32.partialorder %v717_v20, 0.0  ;;  %vm735_vm1 = vcmp.ge.f32.partialorder %v718_v21, 0.0  ;;  %v756_v29 = vmul.f32 %v1391_v22, %v717_v20  ;;  %v757_v30 = vmul.f32 %v1391_v22, %v718_v21  ;;  %v701_v38 = vld [vmem:[#allocation2 + $0x48] sm:$0xff]  ;;  %v703_v44 = vld [vmem:[#allocation2 + $0x20] sm:$0xff] }
 0x129   : > { %vm736_vm2 = vcmp.ge.f32.partialorder %v719_v25, 0.0  ;;  %vm737_vm3 = vcmp.ge.f32.partialorder %v720_v26, 0.0  ;;  %v758_v32 = vmul.f32 %v1391_v22, %v719_v25  ;;  %v759_v33 = vmul.f32 %v1391_v22, %v720_v26  ;;  %v706_v59 = vld [vmem:[#allocation2 + $0x60] sm:$0xff]  ;;  %v709_v10 = vld [vmem:[#allocation2 + $0x28] sm:$0xff] }
 0x12a   : > { %v699_v28 = vld [vmem:[#allocation2 + $0x68] sm:$0xff]  ;;  %v772_v34 = vsel %vm734_vm0, %v717_v20, %v756_v29  ;;  %v773_v35 = vsel %vm735_vm1, %v718_v21, %v757_v30  ;;  %vm738_vm4 = vcmp.ge.f32.partialorder %v721_v36, 0.0  ;;  %v760_v47 = vmul.f32 %v1391_v22, %v721_v36  ;;  %v707_v62 = vld [vmem:[#allocation2 + $0x70] sm:$0xff] }
 0x12b   : > { %v722_v37 = vadd.f32 %v1384_v19, %v699_v28  ;;  %v1060_v39 = vpack.c.bf16 %v773_v35, %v772_v34  ;;  %v774_v40 = vsel %vm736_vm2, %v719_v25, %v758_v32  ;;  %v775_v41 = vsel %vm737_vm3, %v720_v26, %v759_v33 }
 0x12c   : > { %v1065_v46 = vpack.c.bf16 %v775_v41, %v774_v40  ;;  %v724_v49 = vadd.f32 %v1384_v19, %v701_v38  ;;  %vm740_vm6 = vcmp.ge.f32.partialorder %v723_v42, 0.0  ;;  %v762_v50 = vmul.f32 %v1391_v22, %v723_v42 }
 0x12d   : > { %vm739_vm5 = vcmp.ge.f32.partialorder %v722_v37, 0.0  ;;  %1061 = vst [vmem:[%s1466_s4] sm:$0xff] %v1060_v39   ;;  %v761_v48 = vmul.f32 %v1391_v22, %v722_v37  ;;  %v776_v51 = vsel %vm738_vm4, %v721_v36, %v760_v47  ;;  %v725_v52 = vadd.f32 %v1384_v19, %v702_v43 }
 0x12e   : > { %1097 = vst [vmem:[%s1466_s4 + $0x8] sm:$0xff] %v1065_v46   ;;  %v726_v53 = vadd.f32 %v1384_v19, %v703_v44  ;;  %v727_v55 = vadd.f32 %v1384_v19, %v704_v45  ;;  %vm741_vm7 = vcmp.ge.f32.partialorder %v724_v49, 0.0  ;;  %v763_v57 = vmul.f32 %v1391_v22, %v724_v49 }
 0x12f   : > { %v777_v56 = vsel %vm739_vm5, %v722_v37, %v761_v48  ;;  %v778_v58 = vsel %vm740_vm6, %v723_v42, %v762_v50  ;;  %vm742_vm8 = vcmp.ge.f32.partialorder %v725_v52, 0.0  ;;  %v764_v61 = vmul.f32 %v1391_v22, %v725_v52 }
 0x130   : > { %v1070_v60 = vpack.c.bf16 %v777_v56, %v776_v51  ;;  %vm743_vm9 = vcmp.ge.f32.partialorder %v726_v53, 0.0  ;;  %v779_v63 = vsel %vm741_vm7, %v724_v49, %v763_v57  ;;  %v765_v0 = vmul.f32 %v1391_v22, %v726_v53 }
 0x131   : > { %vm744_vm10 = vcmp.ge.f32.partialorder %v727_v55, 0.0  ;;  %v1075_v2 = vpack.c.bf16 %v779_v63, %v778_v58  ;;  %v780_v3 = vsel %vm742_vm8, %v725_v52, %v764_v61  ;;  %v766_v4 = vmul.f32 %v1391_v22, %v727_v55 }
 0x132   : > { %1098 = vst [vmem:[%s1466_s4 + $0x10] sm:$0xff] %v1070_v60   ;;  %v729_v5 = vadd.f32 %v1384_v19, %v706_v59  ;;  %v781_v7 = vsel %vm743_vm9, %v726_v53, %v765_v0  ;;  %vm745_vm11 = vcmp.ge.f32.partialorder %v728_v1, 0.0  ;;  %v767_v8 = vmul.f32 %v1391_v22, %v728_v1 }
 0x133   : > { %v730_v9 = vadd.f32 %v1384_v19, %v707_v62  ;;  %1099 = vst [vmem:[%s1466_s4 + $0x18] sm:$0xff] %v1075_v2   ;;  %v1080_v11 = vpack.c.bf16 %v781_v7, %v780_v3  ;;  %v782_v12 = vsel %vm744_vm10, %v727_v55, %v766_v4  ;;  %v731_v16 = vadd.f32 %v1384_v19, %v708_v6 }
 0x134   : > { %vm746_vm12 = vcmp.ge.f32.partialorder %v729_v5, 0.0  ;;  %v768_v13 = vmul.f32 %v1391_v22, %v729_v5  ;;  %v783_v14 = vsel %vm745_vm11, %v728_v1, %v767_v8  ;;  %v732_v20 = vadd.f32 %v1384_v19, %v709_v10 }
 0x135   : > { %vm747_vm13 = vcmp.ge.f32.partialorder %v730_v9, 0.0  ;;  %v769_v15 = vmul.f32 %v1391_v22, %v730_v9  ;;  %1100 = vst [vmem:[%s1466_s4 + $0x20] sm:$0xff] %v1080_v11   ;;  %v1085_v17 = vpack.c.bf16 %v783_v14, %v782_v12  ;;  %vm748_vm14 = vcmp.ge.f32.partialorder %v731_v16, 0.0 }
 0x136   : > { %v784_v18 = vsel %vm746_vm12, %v729_v5, %v768_v13  ;;  %v770_v23 = vmul.f32 %v1391_v22, %v731_v16  ;;  %vm749_vm15 = vcmp.ge.f32.partialorder %v732_v20, 0.0  ;;  %v771_v25 = vmul.f32 %v1391_v22, %v732_v20 }
 0x137   : > { %v785_v21 = vsel %vm747_vm13, %v730_v9, %v769_v15  ;;  %1101 = vst [vmem:[%s1466_s4 + $0x28] sm:$0xff] %v1085_v17  }
 0x138   : > { %v1090_v24 = vpack.c.bf16 %v785_v21, %v784_v18  ;;  %v786_v26 = vsel %vm748_vm14, %v731_v16, %v770_v23  ;;  %v787_v27 = vsel %vm749_vm15, %v732_v20, %v771_v25 }
 0x139   : > { %v1095_v28 = vpack.c.bf16 %v787_v27, %v786_v26 }
 0x13a   : > { %1102 = vst [vmem:[%s1466_s4 + $0x30] sm:$0xff] %v1090_v24  }
 0x13b   : > { %1103 = vst [vmem:[%s1466_s4 + $0x38] sm:$0xff] %v1095_v28  }
 0x13c PF: > { %s14_s19 = sadd.s32 1, %s1263_s19   ;;  %s1467_s15 = smov %s1251_s16 }
 0x13d   : > { %p11_p12 = scmp.ge.s32.totalorder %s14_s19, 7   ;;  %s1468_s16 = smov %s1326_s23 }
 0x13e   : > { %s1469_s17 = smov %s1259_s18  ;;  %s1470_s18 = smov %s1472_s20 }
 0x13f   :  { %13 = sbr.rel (!%p11_p12) target bundleno = 3 (0x3), region = 129 }

// kernel: iresnet_forward.17
= control target key start
LH: loop header
LB: loop body
LE: loop exit
PB: predicated region body
PF: predicated region fallthrough
CT: control target
= control target key end

     0   :  { %s335_s1 = inlined_call_operand.vmem [shape: bf16[128,128], index: 1, kind: input, shape index: {}]   ;;  %s336_s0 = inlined_call_operand.vmem [shape: bf16[32,128], index: 0, kind: input, shape index: {}]   ;;  %s337_s2 = inlined_call_operand.vmem [shape: f32[1,128], index: 2, kind: input, shape index: {}]   ;;  %s338_s3 = inlined_call_operand.vmem [shape: bf16[32,128], index: 3, kind: output, shape index: {}]  }
   0x1   :  { %v266_v0 = vld [vmem:[%s335_s1 + $0x38] sm:$0xff]   ;;  %v267_v1 = vld [vmem:[%s335_s1 + $0x30] sm:$0xff]   ;;  %v268_v2 = vld [vmem:[%s335_s1 + $0x28] sm:$0xff]  }
   0x2   :  { %246 = vmatprep.subr.bf16.mxu0 %v266_v0  ;;  %v269_v3 = vld [vmem:[%s335_s1 + $0x20] sm:$0xff]   ;;  %v270_v5 = vld [vmem:[%s335_s1 + $0x18] sm:$0xff]   ;;  %v271_v6 = vld [vmem:[%s335_s1 + $0x10] sm:$0xff]  }
   0x3   :  { %247 = vmatpush3.bf16.msra.mxu0 %v266_v0  ;;  %v274_v4 = vld [vmem:[%s336_s0] sm:$0xff]   ;;  %v272_v7 = vld [vmem:[%s335_s1 + $0x8] sm:$0xff]  }
   0x4   :  { %248 = vmatprep.subr.bf16.mxu0 %v267_v1  ;;  %262 = vmatprep.mubr.bf16.mxu0 %v274_v4  ;;  %v273_v8 = vld [vmem:[%s335_s1] sm:$0xff]   ;;  %v275_v9 = vld [vmem:[%s336_s0 + $0x8] sm:$0xff]  }
   0x5   :  { %v216_v11 = vld [vmem:[%s337_s2] ss:$0 sm:$0xff] }
   0x7   :  { %249 = vmatpush3.bf16.msra.mxu0 %v267_v1 }
   0x8   :  { %250 = vmatprep.subr.bf16.mxu0 %v268_v2 }
   0xb   :  { %251 = vmatpush3.bf16.msra.mxu0 %v268_v2 }
   0xc   :  { %252 = vmatprep.subr.bf16.mxu0 %v269_v3 }
   0xf   :  { %253 = vmatpush3.bf16.msra.mxu0 %v269_v3 }
  0x10   :  { %254 = vmatprep.subr.bf16.mxu0 %v270_v5 }
  0x13   :  { %255 = vmatpush3.bf16.msra.mxu0 %v270_v5 }
  0x14   :  { %256 = vmatprep.subr.bf16.mxu0 %v271_v6 }
  0x17   :  { %257 = vmatpush3.bf16.msra.mxu0 %v271_v6 }
  0x18   :  { %258 = vmatprep.subr.bf16.mxu0 %v272_v7 }
  0x1b   :  { %259 = vmatpush3.bf16.msra.mxu0 %v272_v7 }
  0x1c   :  { %260 = vmatprep.subr.bf16.mxu0 %v273_v8 }
  0x1f   :  { %261 = vmatpush3.bf16.msra.mxu0 %v273_v8 }
  0x22   :  { %263 = vmatmul.mubr.bf16.vlgmr.msra.gmra.mxu0 %v275_v9 }
  0xe2   :  { %v264_v10 = vpop.f32.mrf.mxu0 }
  0xe3   :  { %v180_v14 = vadd.f32 %v264_v10, %v216_v11 }
  0xe4   :  { %v141_v12 = vpop.f32.mrf.mxu0 }
  0xe5   :  { %v178_v17 = vadd.f32 %v216_v11, %v141_v12 }
  0xe6   :  { %v265_v13 = vpop.f32.mrf.mxu0 }
  0xe7   :  { %v181_v15 = vadd.f32 %v265_v13, %v216_v11 }
  0xe8   :  { %v144_v16 = vpop.f32.mrf.mxu0 }
  0xe9   :  { %v233_v18 = vpack.c.bf16 %v181_v15, %v180_v14  ;;  %v179_v19 = vadd.f32 %v216_v11, %v144_v16 }
  0xeb   :  { %235 = vst [vmem:[%s338_s3 + $0x8] sm:$0xff] %v233_v18   ;;  %v228_v20 = vpack.c.bf16 %v179_v19, %v178_v17 }
  0xed   :  { %229 = vst [vmem:[%s338_s3] sm:$0xff] %v228_v20  }

// kernel: iresnet_forward.19
= control target key start
LH: loop header
LB: loop body
LE: loop exit
PB: predicated region body
PF: predicated region fallthrough
CT: control target
= control target key end

     0   :  { %s1173_s15 = smov 0   ;;  %s1175_s16 = smov 0   ;;  %s1289_s0 = inlined_call_operand.vmem [shape: bf16[32,1152], index: 0, kind: input, shape index: {}]   ;;  %s1290_s1 = inlined_call_operand.vmem [shape: bf16[1152,128], index: 1, kind: input, shape index: {}]   ;;  %s1291_s2 = inlined_call_operand.vmem [shape: f32[1,128], index: 2, kind: input, shape index: {}]   ;;  %s1292_s3 = inlined_call_operand.vmem [shape: bf16[32,128], index: 3, kind: input, shape index: {}]   ;;  %s1293_s4 = inlined_call_operand.vmem [shape: bf16[32,128], index: 4, kind: output, shape index: {}]  }
   0x1   :  { %s1177_s17 = smov 0   ;;  %s1179_s18 = smov 0  }
   0x2   :  { %s1181_s19 = smov 0  }
   0x3 LB: > { %s26_s20 = sadd.s32 1, %s1141_s18  ;;  %p49_p1 = scmp.ne.s32.totalorder %s1133_s16, %s1129_s15  ;;  %s1145_s19 = sphi %s1181_s19, %s14_s19   ;;  %s1141_s18 = sphi %s1179_s18, %s1297_s18   ;;  %s1137_s17 = sphi %s1177_s17, %s1296_s17   ;;  %s1133_s16 = sphi %s1175_s16, %s1295_s16   ;;  %s1129_s15 = sphi %s1173_s15, %s1294_s15  }
   0x4   : > { %p27_p0 = scmp.ge.s32.totalorder %s26_s20, 3  ;;  %p50_p2 = scmp.eq.s32.totalorder %s1145_s19, 0 }
   0x5   : > { %s42_s22 = sadd.s32 1, %s1133_s16  ;;  %p896_p5 = scmp.ge.s32.totalorder %s1145_s19, 3 }
   0x6   : > { %s1299_s20 = smov (%p27_p0, %s26_s20), 0  ;;  %p51_p3 = por %p50_p2, %p49_p1 }
   0x7   : > { %s38_s21 = ssub.s32 %s1141_s18, %s1299_s20  ;;  %203 = sbr.rel (%p896_p5) target bundleno = 21 (0x15), region = 24 }
   0x8   : > { %p40_p4 = scmp.eq.s32.totalorder %s38_s21, 0 }
   0xa   : > { %s1208_s23 = scalar_select %p40_p4, %s1133_s16, %s42_s22  }
   0xc   : > { %206 = sbr.rel (!%p51_p3) target bundleno = 21 (0x15), region = 28  ;;  %s208_s24 = sand.u32 (%p51_p3), 1, %s1133_s16  }
   0xd   : > { %s949_s25 = smul.u32 (%p51_p3), 12, %s1141_s18 }
   0xe   : > { %s1032_s26 = smul.u32 (%p51_p3), 48, %s208_s24 }
   0xf   : > { %s216_s29 = scalar_lea.vmem (%p51_p3), %s1289_s0, %s949_s25 }
  0x10   : > { %v231_v0 = vld [vmem:[%s216_s29] sm:$0xff] (%p51_p3)  ;;  %v235_v2 = vld [vmem:[%s216_s29 + $0x48] sm:$0xff] (%p51_p3)  ;;  %s210_s30 = scalar_lea.vmem (%p51_p3), [#allocation3], %s1032_s26  ;;  %v902_v6 = vld [vmem:[%s216_s29 + $0x50] sm:$0xf] (%p51_p3) }
  0x11   : > { %v233_v1 = vld [vmem:[%s216_s29 + $0x24] sm:$0xff]  ;;  %232 = vst [vmem:[%s210_s30] sm:$0xff] %v231_v0  ;;  %236 = vst [vmem:[%s210_s30 + $0x18] sm:$0xff] %v235_v2  ;;  %v237_v3 = vld [vmem:[%s216_s29 + $0x6c] sm:$0xff] }
  0x12   : > { %234 = vst [vmem:[%s210_s30 + $0xc] sm:$0xff] %v233_v1  ;;  %v898_v4 = vld [vmem:[%s216_s29 + $0x8] sm:$0xf]  ;;  %v900_v5 = vld [vmem:[%s216_s29 + $0x2c] sm:$0xf]  ;;  %238 = vst [vmem:[%s210_s30 + $0x24] sm:$0xff] %v237_v3 }
  0x13   : > { %899 = vst [vmem:[%s210_s30 + $0x8] sm:$0xf] %v898_v4  ;;  %901 = vst [vmem:[%s210_s30 + $0x14] sm:$0xf] %v900_v5  ;;  %v904_v7 = vld [vmem:[%s216_s29 + $0x74] sm:$0xf] }
  0x14   : > { %903 = vst [vmem:[%s210_s30 + $0x20] sm:$0xf] %v902_v6  ;;  %905 = vst [vmem:[%s210_s30 + $0x2c] sm:$0xf] %v904_v7 }
  0x15 PF: > { %p906_p6 = scmp.ge.s32.totalorder %s1145_s19, 1  ;;  %p271_p7 = scmp.lt.s32.totalorder %s1145_s19, 4 }
  0x17   : > { %p272_p8 = pnand %p906_p6, %p271_p7 }
  0x18   : > { %s278_s5 = sand.u32 (!%p272_p8), 1, %s1129_s15   ;;  %s327_s6 = smul.u32 (!%p272_p8), 48, %s1137_s17 }
  0x19   : > { %275 = sbr.rel (%p272_p8) target bundleno = 299 (0x12b), region = 58  ;;  %p908_p10 = scmp.ne.s32.totalorder (!%p272_p8), %s1137_s17, 0 }
  0x1a   : > { %s1033_s7 = smul.u32 (!%p272_p8), 48, %s278_s5  ;;  %p328_p9 = scmp.lt.s32.totalorder (!%p272_p8), %s327_s6, 143 }
  0x1c   : > { %s1225_s12 = scalar_lea.vmem (!%p272_p8), [#allocation3], %s1033_s7 }
  0x1e   : > { %s1301_s6 = smov (!%p328_p9, %s327_s6), 143  ;;  %361 = sbr.rel (%p908_p10) target bundleno = 38 (0x26), region = 66 }
  0x1f   : > { %s907_s8 = sshll.u32 %s1301_s6, 2 }
  0x20   : > { %s1223_s11 = scalar_lea.vmem %s1290_s1, %s907_s8 }
  0x23   : > { %v1147_v8 = vmov 0.0  }
  0x24   : > { %362 = vst [vmem:[#allocation2 + $0x10] sm:$0xff] %v1147_v8  ;;  %363 = vst [vmem:[#allocation2] sm:$0xff] %v1147_v8 }
  0x25   : > { %364 = vst [vmem:[#allocation2 + $0x18] sm:$0xff] %v1147_v8  ;;  %365 = vst [vmem:[#allocation2 + $0x8] sm:$0xff] %v1147_v8 }
  0x26 PF: > { %v1075_v9 = vld [vmem:[%s1223_s11 + $0x78] sm:$0xff]   ;;  %v1078_v12 = vld [vmem:[%s1223_s11 + $0x70] sm:$0xff]   ;;  %v1081_v15 = vld [vmem:[%s1223_s11 + $0x68] sm:$0xff]   ;;  %p939_p11 = scmp.ne.s32.totalorder %s1137_s17, 2 }
  0x27   : > { %v1076_v10 = vld [vmem:[%s1223_s11 + $0x38] sm:$0xff]   ;;  %974 = vmatprep.subr.bf16.mxu0 %v1075_v9  ;;  %v1079_v13 = vld [vmem:[%s1223_s11 + $0x30] sm:$0xff]   ;;  %v1082_v16 = vld [vmem:[%s1223_s11 + $0x28] sm:$0xff]  }
  0x28   : > { %v1077_v11 = vld [vmem:[%s1223_s11 + $0xb8] sm:$0xff]   ;;  %975 = vmatpush3.bf16.msra.mxu0 %v1076_v10  ;;  %v1080_v14 = vld [vmem:[%s1223_s11 + $0xb0] sm:$0xff]   ;;  %v1083_v17 = vld [vmem:[%s1223_s11 + $0xa8] sm:$0xff]  }
  0x29   : > { %1012 = vmatprep.subr.bf16.mxu1 %v1077_v11  ;;  %976 = vmatprep.subr.bf16.mxu0 %v1078_v12  ;;  %v1084_v18 = vld [vmem:[%s1223_s11 + $0x60] sm:$0xff]   ;;  %v1087_v21 = vld [vmem:[%s1223_s11 + $0x58] sm:$0xff]   ;;  %v1090_v24 = vld [vmem:[%s1223_s11 + $0x50] sm:$0xff]  }
  0x2a   : > { %1013 = vmatpush3.bf16.msra.mxu1 %v1077_v11  ;;  %v1085_v19 = vld [vmem:[%s1223_s11 + $0x20] sm:$0xff]   ;;  %v1089_v22 = vld [vmem:[%s1223_s11 + $0x98] sm:$0xff]   ;;  %v1092_v25 = vld [vmem:[%s1223_s11 + $0x90] sm:$0xff]  }
  0x2b   : > { %1014 = vmatprep.subr.bf16.mxu1 %v1080_v14  ;;  %v1086_v20 = vld [vmem:[%s1223_s11 + $0xa0] sm:$0xff]   ;;  %v1088_v23 = vld [vmem:[%s1223_s11 + $0x18] sm:$0xff]   ;;  %v1091_v26 = vld [vmem:[%s1223_s11 + $0x10] sm:$0xff]  }
  0x2c   : > { %977 = vmatpush3.bf16.msra.mxu0 %v1079_v13  ;;  %v1093_v27 = vld [vmem:[%s1223_s11 + $0x48] sm:$0xff]   ;;  %v1096_v30 = vld [vmem:[%s1223_s11 + $0x40] sm:$0xff]   ;;  %v366_v44 = vld [vmem:[#allocation2 + $0x10] sm:$0xff] }
  0x2d   : > { %978 = vmatprep.subr.bf16.mxu0 %v1081_v15  ;;  %v1094_v28 = vld [vmem:[%s1223_s11 + $0x8] sm:$0xff]   ;;  %v1098_v31 = vld [vmem:[%s1223_s11 + $0x80] sm:$0xff]   ;;  %v368_v58 = vld [vmem:[#allocation2 + $0x18] sm:$0xff] }
  0x2e   : > { %1015 = vmatpush3.bf16.msra.mxu1 %v1080_v14  ;;  %v1095_v29 = vld [vmem:[%s1223_s11 + $0x88] sm:$0xff]   ;;  %v1101_v32 = vld [vmem:[%s1225_s12 + $0x4] ss:$12 sps:$4 sm:$0xff]  }
  0x2f   : > { %1016 = vmatprep.subr.bf16.mxu1 %v1083_v17  ;;  %v1102_v33 = vld [vmem:[%s1225_s12 + $0x8] ss:$12 sps:$4 sm:$0xff]   ;;  %634 = vmatprep.mubr.bf16.mxu0 %v1101_v32  ;;  %v1099_v35 = vld [vmem:[%s1225_s12] ss:$12 sps:$4 sm:$0xff]   ;;  %v1106_v38 = vld [vmem:[%s1225_s12 + $0x18] ss:$12 sps:$4 sm:$0xff]  }
  0x30   : > { %979 = vmatpush3.bf16.msra.mxu0 %v1082_v16  ;;  %v1097_v34 = vld [vmem:[%s1223_s11] sm:$0xff]   ;;  %1028 = vmatprep.mubr.bf16.mxu1 %v1102_v33  ;;  %v1104_v36 = vld [vmem:[%s1225_s12 + $0x1c] ss:$12 sps:$4 sm:$0xff]  }
  0x31   : > { %980 = vmatprep.subr.bf16.mxu0 %v1084_v18  ;;  %v1103_v37 = vld [vmem:[%s1225_s12 + $0x20] ss:$12 sps:$4 sm:$0xff]  }
  0x32   : > { %1017 = vmatpush3.bf16.msra.mxu1 %v1083_v17  ;;  %v367_v52 = vld [vmem:[#allocation2] sm:$0xff]  ;;  %v369_v0 = vld [vmem:[#allocation2 + $0x8] sm:$0xff] }
  0x33   : > { %1018 = vmatprep.subr.bf16.mxu1 %v1086_v20 }
  0x34   : > { %981 = vmatpush3.bf16.msra.mxu0 %v1085_v19 }
  0x35   : > { %982 = vmatprep.subr.bf16.mxu0 %v1087_v21 }
  0x36   : > { %1019 = vmatpush3.bf16.msra.mxu1 %v1086_v20 }
  0x37   : > { %1020 = vmatprep.subr.bf16.mxu1 %v1089_v22 }
  0x38   : > { %983 = vmatpush3.bf16.msra.mxu0 %v1088_v23 }
  0x39   : > { %984 = vmatprep.subr.bf16.mxu0 %v1090_v24 }
  0x3a   : > { %1021 = vmatpush3.bf16.msra.mxu1 %v1089_v22 }
  0x3b   : > { %1022 = vmatprep.subr.bf16.mxu1 %v1092_v25 }
  0x3c   : > { %985 = vmatpush3.bf16.msra.mxu0 %v1091_v26 }
  0x3d   : > { %986 = vmatprep.subr.bf16.mxu0 %v1093_v27 }
  0x3e   : > { %1023 = vmatpush3.bf16.msra.mxu1 %v1092_v25 }
  0x3f   : > { %1024 = vmatprep.subr.bf16.mxu1 %v1095_v29 }
  0x40   : > { %987 = vmatpush3.bf16.msra.mxu0 %v1094_v28 }
  0x41   : > { %988 = vmatprep.subr.bf16.mxu0 %v1096_v30 }
  0x42   : > { %1025 = vmatpush3.bf16.msra.mxu1 %v1095_v29 }
  0x43   : > { %1026 = vmatprep.subr.bf16.mxu1 %v1098_v31 }
  0x44   : > { %989 = vmatpush3.bf16.msra.mxu0 %v1097_v34 }
  0x46   : > { %1027 = vmatpush3.bf16.msra.mxu1 %v1098_v31 }
  0x47   : > { %635 = vmatmul.mubr.bf16.vlgmr.msra.gmra.mxu0 %v1099_v35 }
  0x48   : > { %642 = vmatprep.mubr.bf16.mxu0 %v1104_v36 }
  0x49   : > { %1029 = vmatmul.mubr.bf16.vlgmr.msra.gmra.mxu1 %v1103_v37 }
  0x4f   : > { %643 = vmatmul.mubr.bf16.gmra.mxu0 %v1106_v38 }
 0x107   : > { %v990_v39 = vpop.f32.mrf.mxu0 }
 0x109   : > { %v991_v40 = vpop.f32.mrf.mxu0  ;;  %v1030_v41 = vpop.f32.mrf.mxu1 }
 0x10a   : > { %v992_v42 = vadd.f32 %v991_v40, %v990_v39 }
 0x10b   : > { %v993_v43 = vpop.f32.mrf.mxu0  ;;  %v685_v45 = vpop.f32.mrf.mxu1 }
 0x10c   : > { %v686_v46 = vadd.f32 %v992_v42, %v685_v45 }
 0x10d   : > { %v994_v47 = vpop.f32.mrf.mxu0  ;;  %v1031_v48 = vpop.f32.mrf.mxu1 }
 0x10e   : > { %v700_v49 = vadd.f32 %v686_v46, %v366_v44  ;;  %v995_v50 = vadd.f32 %v994_v47, %v993_v43 }
 0x10f   : > { %v996_v51 = vpop.f32.mrf.mxu0  ;;  %v688_v53 = vpop.f32.mrf.mxu1 }
 0x110   : > { %704 = vst [vmem:[#allocation2 + $0x10] sm:$0xff] %v700_v49  ;;  %v689_v54 = vadd.f32 %v995_v50, %v688_v53 }
 0x111   : > { %v997_v55 = vpop.f32.mrf.mxu0 }
 0x112   : > { %v701_v56 = vadd.f32 %v689_v54, %v367_v52  ;;  %v998_v57 = vadd.f32 %v997_v55, %v996_v51 }
 0x113   : > { %v999_v59 = vpop.f32.mrf.mxu0 }
 0x114   : > { %705 = vst [vmem:[#allocation2] sm:$0xff] %v701_v56  ;;  %v694_v60 = vadd.f32 %v1030_v41, %v998_v57 }
 0x115   : > { %v1000_v61 = vpop.f32.mrf.mxu0 }
 0x116   : > { %v702_v62 = vadd.f32 %v694_v60, %v368_v58  ;;  %v1001_v63 = vadd.f32 %v1000_v61, %v999_v59 }
 0x118   : > { %706 = vst [vmem:[#allocation2 + $0x18] sm:$0xff] %v702_v62  ;;  %v697_v1 = vadd.f32 %v1031_v48, %v1001_v63  ;;  %711 = sbr.rel (%p939_p11) target bundleno = 299 (0x12b), region = 70 }
 0x11a   : > { %v703_v2 = vadd.f32 %v697_v1, %v369_v0 }
 0x11c   : > { %707 = vst [vmem:[#allocation2 + $0x8] sm:$0xff] %v703_v2 }
 0x11d   : > { %v712_v3 = vld [vmem:[#allocation2 + $0x10] sm:$0xff]  ;;  %v713_v4 = vld [vmem:[#allocation2] sm:$0xff]  ;;  %v972_v15 = vld [vmem:[%s1292_s3 + $0x8] sm:$0xff]  }
 0x11e   : > { %v940_v5 = vld [vmem:[%s1291_s2] ss:$0 sm:$0xff]  ;;  %v960_v16 = vunpack.c.l.bf16 %v972_v15  ;;  %v961_v17 = vunpack.c.h.bf16 %v972_v15 }
 0x11f   : > { %v723_v6 = vadd.f32 %v940_v5, %v712_v3  ;;  %v724_v7 = vadd.f32 %v940_v5, %v713_v4  ;;  %v955_v8 = vld [vmem:[%s1292_s3] sm:$0xff]   ;;  %v714_v9 = vld [vmem:[#allocation2 + $0x18] sm:$0xff] }
 0x120   : > { %v956_v11 = vunpack.c.l.bf16 %v955_v8  ;;  %v957_v12 = vunpack.c.h.bf16 %v955_v8  ;;  %v725_v13 = vadd.f32 %v940_v5, %v714_v9 }
 0x122   : > { %v735_v18 = vadd.f32 %v956_v11, %v723_v6  ;;  %v736_v19 = vadd.f32 %v957_v12, %v724_v7  ;;  %v737_v20 = vadd.f32 %v960_v16, %v725_v13 }
 0x123   : > { %v715_v10 = vld [vmem:[#allocation2 + $0x8] sm:$0xff] }
 0x124   : > { %v726_v14 = vadd.f32 %v940_v5, %v715_v10  ;;  %v965_v22 = vpack.c.bf16 %v736_v19, %v735_v18 }
 0x126   : > { %v738_v21 = vadd.f32 %v961_v17, %v726_v14  ;;  %966 = vst [vmem:[%s1293_s4] sm:$0xff] %v965_v22  }
 0x128   : > { %v970_v23 = vpack.c.bf16 %v738_v21, %v737_v20 }
 0x12a   : > { %973 = vst [vmem:[%s1293_s4 + $0x8] sm:$0xff] %v970_v23  }
 0x12b PF: > { %s14_s19 = sadd.s32 1, %s1145_s19   ;;  %s1294_s15 = smov %s1133_s16 }
 0x12c   : > { %p11_p12 = scmp.ge.s32.totalorder %s14_s19, 5   ;;  %s1295_s16 = smov %s1208_s23 }
 0x12d   : > { %s1296_s17 = smov %s1141_s18  ;;  %s1297_s18 = smov %s1299_s20 }
 0x12e   :  { %13 = sbr.rel (!%p11_p12) target bundleno = 3 (0x3), region = 120 }

// kernel: iresnet_forward.21
= control target key start
LH: loop header
LB: loop body
LE: loop exit
PB: predicated region body
PF: predicated region fallthrough
CT: control target
= control target key end

     0   :  { %s1345_s15 = smov 0   ;;  %s1347_s16 = smov 0   ;;  %s1490_s0 = inlined_call_operand.vmem [shape: bf16[32,1152], index: 0, kind: input, shape index: {}]   ;;  %s1491_s1 = inlined_call_operand.vmem [shape: bf16[1152,256], index: 1, kind: input, shape index: {}]   ;;  %s1492_s2 = inlined_call_operand.vmem [shape: f32[1,256], index: 2, kind: input, shape index: {}]   ;;  %s1493_s3 = inlined_call_operand.vmem [shape: f32[1,256], index: 3, kind: input, shape index: {}]   ;;  %s1494_s4 = inlined_call_operand.vmem [shape: bf16[32,256], index: 4, kind: output, shape index: {}]  }
   0x1   :  { %s1349_s17 = smov 0   ;;  %s1351_s18 = smov 0  }
   0x2   :  { %s1353_s19 = smov 0  }
   0x3 LB: > { %s26_s20 = sadd.s32 1, %s1312_s18  ;;  %p49_p1 = scmp.ne.s32.totalorder %s1304_s16, %s1300_s15  ;;  %s1316_s19 = sphi %s1353_s19, %s14_s19   ;;  %s1312_s18 = sphi %s1351_s18, %s1498_s18   ;;  %s1308_s17 = sphi %s1349_s17, %s1497_s17   ;;  %s1304_s16 = sphi %s1347_s16, %s1496_s16   ;;  %s1300_s15 = sphi %s1345_s15, %s1495_s15  }
   0x4   : > { %p27_p0 = scmp.ge.s32.totalorder %s26_s20, 3  ;;  %p50_p2 = scmp.eq.s32.totalorder %s1316_s19, 0 }
   0x5   : > { %s42_s22 = sadd.s32 1, %s1304_s16  ;;  %p1071_p5 = scmp.ge.s32.totalorder %s1316_s19, 3 }
   0x6   : > { %s1500_s20 = smov (%p27_p0, %s26_s20), 0  ;;  %p51_p3 = por %p50_p2, %p49_p1 }
   0x7   : > { %s38_s21 = ssub.s32 %s1312_s18, %s1500_s20  ;;  %199 = sbr.rel (%p1071_p5) target bundleno = 21 (0x15), region = 24 }
   0x8   : > { %p40_p4 = scmp.eq.s32.totalorder %s38_s21, 0 }
   0xa   : > { %s1380_s23 = scalar_select %p40_p4, %s1304_s16, %s42_s22  }
   0xc   : > { %202 = sbr.rel (!%p51_p3) target bundleno = 21 (0x15), region = 28  ;;  %s204_s24 = sand.u32 (%p51_p3), 1, %s1304_s16  }
   0xd   : > { %s1148_s25 = smul.u32 (%p51_p3), 12, %s1312_s18 }
   0xe   : > { %s1154_s26 = smul.u32 (%p51_p3), 48, %s204_s24 }
   0xf   : > { %s212_s29 = scalar_lea.vmem (%p51_p3), %s1490_s0, %s1148_s25 }
  0x10   : > { %v227_v0 = vld [vmem:[%s212_s29] sm:$0xff] (%p51_p3)  ;;  %v231_v2 = vld [vmem:[%s212_s29 + $0x48] sm:$0xff] (%p51_p3)  ;;  %s206_s30 = scalar_lea.vmem (%p51_p3), [#allocation3], %s1154_s26  ;;  %v1077_v6 = vld [vmem:[%s212_s29 + $0x50] sm:$0xf] (%p51_p3) }
  0x11   : > { %v229_v1 = vld [vmem:[%s212_s29 + $0x24] sm:$0xff]  ;;  %228 = vst [vmem:[%s206_s30] sm:$0xff] %v227_v0  ;;  %232 = vst [vmem:[%s206_s30 + $0x18] sm:$0xff] %v231_v2  ;;  %v233_v3 = vld [vmem:[%s212_s29 + $0x6c] sm:$0xff] }
  0x12   : > { %230 = vst [vmem:[%s206_s30 + $0xc] sm:$0xff] %v229_v1  ;;  %v1073_v4 = vld [vmem:[%s212_s29 + $0x8] sm:$0xf]  ;;  %v1075_v5 = vld [vmem:[%s212_s29 + $0x2c] sm:$0xf]  ;;  %234 = vst [vmem:[%s206_s30 + $0x24] sm:$0xff] %v233_v3 }
  0x13   : > { %1074 = vst [vmem:[%s206_s30 + $0x8] sm:$0xf] %v1073_v4  ;;  %1076 = vst [vmem:[%s206_s30 + $0x14] sm:$0xf] %v1075_v5  ;;  %v1079_v7 = vld [vmem:[%s212_s29 + $0x74] sm:$0xf] }
  0x14   : > { %1078 = vst [vmem:[%s206_s30 + $0x20] sm:$0xf] %v1077_v6  ;;  %1080 = vst [vmem:[%s206_s30 + $0x2c] sm:$0xf] %v1079_v7 }
  0x15 PF: > { %p1081_p6 = scmp.ge.s32.totalorder %s1316_s19, 1  ;;  %p270_p7 = scmp.lt.s32.totalorder %s1316_s19, 4 }
  0x17   : > { %p271_p8 = pnand %p1081_p6, %p270_p7 }
  0x18   : > { %s277_s5 = sand.u32 (!%p271_p8), 1, %s1300_s15   ;;  %s327_s6 = smul.u32 (!%p271_p8), 48, %s1308_s17 }
  0x19   : > { %274 = sbr.rel (%p271_p8) target bundleno = 338 (0x152), region = 58  ;;  %p1084_p10 = scmp.ne.s32.totalorder (!%p271_p8), %s1308_s17, 0 }
  0x1a   : > { %s1155_s7 = smul.u32 (!%p271_p8), 48, %s277_s5  ;;  %p329_p9 = scmp.lt.s32.totalorder (!%p271_p8), %s327_s6, 143 }
  0x1c   : > { %s1397_s12 = scalar_lea.vmem (!%p271_p8), [#allocation3], %s1155_s7 }
  0x1e   : > { %s1502_s6 = smov (!%p329_p9, %s327_s6), 143  ;;  %365 = sbr.rel (%p1084_p10) target bundleno = 40 (0x28), region = 66 }
  0x1f   : > { %s1149_s8 = sshll.u32 %s1502_s6, 3 }
  0x20   : > { %s1395_s11 = scalar_lea.vmem %s1491_s1, %s1149_s8 }
  0x23   : > { %v1318_v8 = vmov 0.0  }
  0x24   : > { %366 = vst [vmem:[#allocation2 + $0x30] sm:$0xff] %v1318_v8  ;;  %367 = vst [vmem:[#allocation2] sm:$0xff] %v1318_v8 }
  0x25   : > { %368 = vst [vmem:[#allocation2 + $0x18] sm:$0xff] %v1318_v8  ;;  %369 = vst [vmem:[#allocation2 + $0x10] sm:$0xff] %v1318_v8 }
  0x26   : > { %370 = vst [vmem:[#allocation2 + $0x8] sm:$0xff] %v1318_v8  ;;  %371 = vst [vmem:[#allocation2 + $0x20] sm:$0xff] %v1318_v8 }
  0x27   : > { %372 = vst [vmem:[#allocation2 + $0x28] sm:$0xff] %v1318_v8  ;;  %373 = vst [vmem:[#allocation2 + $0x38] sm:$0xff] %v1318_v8 }
  0x28 PF: > { %v1198_v9 = vld [vmem:[%s1395_s11 + $0x74] ss:$8 sps:$4 sm:$0xff]   ;;  %v1200_v10 = vld [vmem:[%s1395_s11 + $0x70] ss:$8 sps:$4 sm:$0xff]   ;;  %v1319_v11 = vmov 0   ;;  %p1139_p11 = scmp.ne.s32.totalorder %s1308_s17, 2 }
  0x29   : > { %795 = vmatprep.mubr.bf16.mxu1 %v1319_v11  ;;  %710 = vmatprep.subr.bf16.mxu0 %v1198_v9  ;;  %v1201_v12 = vld [vmem:[%s1395_s11 + $0x64] ss:$8 sps:$4 sm:$0xff]   ;;  %v1203_v13 = vld [vmem:[%s1395_s11 + $0x60] ss:$8 sps:$4 sm:$0xff]   ;;  %v1204_v14 = vld [vmem:[%s1395_s11 + $0x54] ss:$8 sps:$4 sm:$0xff]  }
  0x2a   : > { %711 = vmatpush1.bf16.msra.mxu0 %v1200_v10  ;;  %v1206_v15 = vld [vmem:[%s1395_s11 + $0x50] ss:$8 sps:$4 sm:$0xff]   ;;  %v1207_v16 = vld [vmem:[%s1395_s11 + $0x44] ss:$8 sps:$4 sm:$0xff]   ;;  %v1219_v17 = vld [vmem:[%s1395_s11 + $0x174] ss:$8 sps:$4 sm:$0xff]  }
  0x2b   : > { %712 = vmatprep.subr.bf16.mxu0 %v1201_v12  ;;  %v1221_v18 = vld [vmem:[%s1395_s11 + $0x170] ss:$8 sps:$4 sm:$0xff]   ;;  %v1209_v19 = vld [vmem:[%s1395_s11 + $0x40] ss:$8 sps:$4 sm:$0xff]   ;;  %v1210_v20 = vld [vmem:[%s1395_s11 + $0x34] ss:$8 sps:$4 sm:$0xff]   ;;  %763 = vmatprep.subr.bf16.mxu1 %v1219_v17 }
  0x2c   : > { %v1225_v21 = vld [vmem:[%s1395_s11 + $0x164] ss:$8 sps:$4 sm:$0xff]   ;;  %764 = vmatpush1.bf16.msra.mxu1 %v1221_v18  ;;  %v1227_v22 = vld [vmem:[%s1395_s11 + $0x160] ss:$8 sps:$4 sm:$0xff]   ;;  %v1212_v23 = vld [vmem:[%s1395_s11 + $0x30] ss:$8 sps:$4 sm:$0xff]  }
  0x2d   : > { %765 = vmatprep.subr.bf16.mxu1 %v1225_v21  ;;  %v1231_v24 = vld [vmem:[%s1395_s11 + $0x154] ss:$8 sps:$4 sm:$0xff]   ;;  %v1213_v25 = vld [vmem:[%s1395_s11 + $0x24] ss:$8 sps:$4 sm:$0xff]   ;;  %v1233_v26 = vld [vmem:[%s1395_s11 + $0x150] ss:$8 sps:$4 sm:$0xff]  }
  0x2e   : > { %713 = vmatpush1.bf16.msra.mxu0 %v1203_v13  ;;  %v1237_v27 = vld [vmem:[%s1395_s11 + $0x144] ss:$8 sps:$4 sm:$0xff]   ;;  %v1215_v28 = vld [vmem:[%s1395_s11 + $0x20] ss:$8 sps:$4 sm:$0xff]   ;;  %v1216_v29 = vld [vmem:[%s1395_s11 + $0x14] ss:$8 sps:$4 sm:$0xff]  }
  0x2f   : > { %714 = vmatprep.subr.bf16.mxu0 %v1204_v14  ;;  %v1239_v30 = vld [vmem:[%s1395_s11 + $0x140] ss:$8 sps:$4 sm:$0xff]   ;;  %v1243_v31 = vld [vmem:[%s1395_s11 + $0x134] ss:$8 sps:$4 sm:$0xff]   ;;  %v1218_v32 = vld [vmem:[%s1395_s11 + $0x10] ss:$8 sps:$4 sm:$0xff]  }
  0x30   : > { %766 = vmatpush1.bf16.msra.mxu1 %v1227_v22  ;;  %v1222_v33 = vld [vmem:[%s1395_s11 + $0x4] ss:$8 sps:$4 sm:$0xff]   ;;  %v1245_v34 = vld [vmem:[%s1395_s11 + $0x130] ss:$8 sps:$4 sm:$0xff]   ;;  %v1224_v36 = vld [vmem:[%s1395_s11] ss:$8 sps:$4 sm:$0xff]  }
  0x31   : > { %767 = vmatprep.subr.bf16.mxu1 %v1231_v24  ;;  %v1249_v35 = vld [vmem:[%s1395_s11 + $0x124] ss:$8 sps:$4 sm:$0xff]   ;;  %v1228_v37 = vld [vmem:[%s1395_s11 + $0xf4] ss:$8 sps:$4 sm:$0xff]   ;;  %v1251_v38 = vld [vmem:[%s1395_s11 + $0x120] ss:$8 sps:$4 sm:$0xff]  }
  0x32   : > { %715 = vmatpush1.bf16.msra.mxu0 %v1206_v15  ;;  %v1255_v39 = vld [vmem:[%s1395_s11 + $0x114] ss:$8 sps:$4 sm:$0xff]   ;;  %v1230_v40 = vld [vmem:[%s1395_s11 + $0xf0] ss:$8 sps:$4 sm:$0xff]   ;;  %v1234_v41 = vld [vmem:[%s1395_s11 + $0xe4] ss:$8 sps:$4 sm:$0xff]  }
  0x33   : > { %716 = vmatprep.subr.bf16.mxu0 %v1207_v16  ;;  %v1257_v42 = vld [vmem:[%s1395_s11 + $0x110] ss:$8 sps:$4 sm:$0xff]   ;;  %v1261_v43 = vld [vmem:[%s1395_s11 + $0x104] ss:$8 sps:$4 sm:$0xff]   ;;  %v1236_v45 = vld [vmem:[%s1395_s11 + $0xe0] ss:$8 sps:$4 sm:$0xff]  }
  0x34   : > { %768 = vmatpush1.bf16.msra.mxu1 %v1233_v26  ;;  %v1273_v44 = vld [vmem:[%s1397_s12 + $0x4] ss:$12 sps:$4 sm:$0xff]   ;;  %v1267_v50 = vld [vmem:[%s1397_s12 + $0x8] ss:$12 sps:$4 sm:$0xff]   ;;  %v1274_v55 = vld [vmem:[%s1397_s12 + $0x20] ss:$12 sps:$4 sm:$0xff]  }
  0x35   : > { %769 = vmatprep.subr.bf16.mxu1 %v1237_v27  ;;  %v1240_v46 = vld [vmem:[%s1395_s11 + $0xd4] ss:$8 sps:$4 sm:$0xff]   ;;  %742 = vmatprep.mubr.bf16.mxu0 %v1273_v44  ;;  %v1263_v47 = vld [vmem:[%s1395_s11 + $0x100] ss:$8 sps:$4 sm:$0xff]   ;;  %v1242_v48 = vld [vmem:[%s1395_s11 + $0xd0] ss:$8 sps:$4 sm:$0xff]  }
  0x36   : > { %717 = vmatpush1.bf16.msra.mxu0 %v1209_v19  ;;  %v1246_v49 = vld [vmem:[%s1395_s11 + $0xc4] ss:$8 sps:$4 sm:$0xff]   ;;  %v1248_v51 = vld [vmem:[%s1395_s11 + $0xc0] ss:$8 sps:$4 sm:$0xff]   ;;  %v1252_v52 = vld [vmem:[%s1395_s11 + $0xb4] ss:$8 sps:$4 sm:$0xff]  }
  0x37   : > { %718 = vmatprep.subr.bf16.mxu0 %v1210_v20  ;;  %v1254_v53 = vld [vmem:[%s1395_s11 + $0xb0] ss:$8 sps:$4 sm:$0xff]   ;;  %v1258_v54 = vld [vmem:[%s1395_s11 + $0xa4] ss:$8 sps:$4 sm:$0xff]   ;;  %v1260_v56 = vld [vmem:[%s1395_s11 + $0xa0] ss:$8 sps:$4 sm:$0xff]  }
  0x38   : > { %770 = vmatpush1.bf16.msra.mxu1 %v1239_v30  ;;  %v1264_v57 = vld [vmem:[%s1395_s11 + $0x94] ss:$8 sps:$4 sm:$0xff]   ;;  %v1266_v58 = vld [vmem:[%s1395_s11 + $0x90] ss:$8 sps:$4 sm:$0xff]   ;;  %v1268_v59 = vld [vmem:[%s1395_s11 + $0x84] ss:$8 sps:$4 sm:$0xff]  }
  0x39   : > { %771 = vmatprep.subr.bf16.mxu1 %v1243_v31  ;;  %v1270_v60 = vld [vmem:[%s1395_s11 + $0x80] ss:$8 sps:$4 sm:$0xff]   ;;  %v374_v4 = vld [vmem:[#allocation2 + $0x30] sm:$0xff]  ;;  %v376_v12 = vld [vmem:[#allocation2 + $0x18] sm:$0xff] }
  0x3a   : > { %719 = vmatpush1.bf16.msra.mxu0 %v1212_v23  ;;  %v1271_v61 = vld [vmem:[%s1397_s12] ss:$12 sps:$4 sm:$0xff]   ;;  %v1275_v62 = vld [vmem:[%s1397_s12 + $0x1c] ss:$12 sps:$4 sm:$0xff]   ;;  %v1277_v63 = vld [vmem:[%s1397_s12 + $0x18] ss:$12 sps:$4 sm:$0xff]  }
  0x3b   : > { %720 = vmatprep.subr.bf16.mxu0 %v1213_v25  ;;  %v375_v7 = vld [vmem:[#allocation2] sm:$0xff]  ;;  %v377_v17 = vld [vmem:[#allocation2 + $0x10] sm:$0xff]  ;;  %v378_v21 = vld [vmem:[#allocation2 + $0x8] sm:$0xff] }
  0x3c   : > { %772 = vmatpush1.bf16.msra.mxu1 %v1245_v34  ;;  %v379_v26 = vld [vmem:[#allocation2 + $0x20] sm:$0xff]  ;;  %v380_v30 = vld [vmem:[#allocation2 + $0x28] sm:$0xff] }
  0x3d   : > { %773 = vmatprep.subr.bf16.mxu1 %v1249_v35  ;;  %v381_v35 = vld [vmem:[#allocation2 + $0x38] sm:$0xff] }
  0x3e   : > { %721 = vmatpush1.bf16.msra.mxu0 %v1215_v28 }
  0x3f   : > { %722 = vmatprep.subr.bf16.mxu0 %v1216_v29 }
  0x40   : > { %774 = vmatpush1.bf16.msra.mxu1 %v1251_v38 }
  0x41   : > { %775 = vmatprep.subr.bf16.mxu1 %v1255_v39 }
  0x42   : > { %723 = vmatpush1.bf16.msra.mxu0 %v1218_v32 }
  0x43   : > { %724 = vmatprep.subr.bf16.mxu0 %v1222_v33 }
  0x44   : > { %776 = vmatpush1.bf16.msra.mxu1 %v1257_v42 }
  0x45   : > { %777 = vmatprep.subr.bf16.mxu1 %v1261_v43 }
  0x46   : > { %725 = vmatpush1.bf16.msra.mxu0 %v1224_v36 }
  0x47   : > { %726 = vmatprep.subr.bf16.mxu0 %v1228_v37 }
  0x48   : > { %778 = vmatpush1.bf16.msra.mxu1 %v1263_v47 }
  0x4a   : > { %727 = vmatpush2.bf16.msra.mxu0 %v1230_v40 }
  0x4b   : > { %728 = vmatprep.subr.bf16.mxu0 %v1234_v41  ;;  %796 = vmatmul.mubr.bf16.vlgmr.msra.gmra.mxu1 %v1267_v50 }
  0x4c   : > { %805 = vmatprep.mubr.bf16.mxu1 %v1319_v11 }
  0x4e   : > { %729 = vmatpush2.bf16.msra.mxu0 %v1236_v45 }
  0x4f   : > { %730 = vmatprep.subr.bf16.mxu0 %v1240_v46 }
  0x52   : > { %731 = vmatpush2.bf16.msra.mxu0 %v1242_v48 }
  0x53   : > { %732 = vmatprep.subr.bf16.mxu0 %v1246_v49  ;;  %806 = vmatmul.mubr.bf16.gmra.mxu1 %v1274_v55 }
  0x56   : > { %733 = vmatpush2.bf16.msra.mxu0 %v1248_v51 }
  0x57   : > { %734 = vmatprep.subr.bf16.mxu0 %v1252_v52 }
  0x5a   : > { %735 = vmatpush2.bf16.msra.mxu0 %v1254_v53 }
  0x5b   : > { %736 = vmatprep.subr.bf16.mxu0 %v1258_v54 }
  0x5e   : > { %737 = vmatpush2.bf16.msra.mxu0 %v1260_v56 }
  0x5f   : > { %738 = vmatprep.subr.bf16.mxu0 %v1264_v57 }
  0x62   : > { %739 = vmatpush2.bf16.msra.mxu0 %v1266_v58 }
  0x63   : > { %740 = vmatprep.subr.bf16.mxu0 %v1268_v59 }
  0x66   : > { %741 = vmatpush2.bf16.msra.mxu0 %v1270_v60 }
  0x69   : > { %743 = vmatmul.mubr.bf16.vlgmr.msra.gmra.mxu0 %v1271_v61 }
  0x6a   : > { %752 = vmatprep.mubr.bf16.mxu0 %v1275_v62 }
  0x71   : > { %753 = vmatmul.mubr.bf16.gmra.mxu0 %v1277_v63 }
 0x10b   : > { %v797_v0 = vpop.f32.mrf.mxu1 }
 0x10d   : > { %v799_v1 = vpop.f32.mrf.mxu1 }
 0x10f   : > { %v801_v2 = vpop.f32.mrf.mxu1 }
 0x111   : > { %v803_v3 = vpop.f32.mrf.mxu1 }
 0x113   : > { %v807_v9 = vpop.f32.mrf.mxu1 }
 0x115   : > { %v809_v16 = vpop.f32.mrf.mxu1 }
 0x117   : > { %v811_v25 = vpop.f32.mrf.mxu1 }
 0x119   : > { %v813_v34 = vpop.f32.mrf.mxu1 }
 0x129   : > { %v744_v5 = vpop.f32.mrf.mxu0 }
 0x12a   : > { %v798_v6 = vadd.f32 %v797_v0, %v744_v5 }
 0x12b   : > { %v746_v8 = vpop.f32.mrf.mxu0 }
 0x12c   : > { %v816_v10 = vadd.f32 %v798_v6, %v374_v4  ;;  %v800_v11 = vadd.f32 %v799_v1, %v746_v8 }
 0x12d   : > { %v748_v13 = vpop.f32.mrf.mxu0 }
 0x12e   : > { %824 = vst [vmem:[#allocation2 + $0x30] sm:$0xff] %v816_v10  ;;  %v817_v14 = vadd.f32 %v800_v11, %v375_v7  ;;  %v802_v15 = vadd.f32 %v801_v2, %v748_v13 }
 0x12f   : > { %v750_v18 = vpop.f32.mrf.mxu0 }
 0x130   : > { %825 = vst [vmem:[#allocation2] sm:$0xff] %v817_v14  ;;  %v818_v19 = vadd.f32 %v802_v15, %v376_v12  ;;  %v804_v20 = vadd.f32 %v803_v3, %v750_v18 }
 0x131   : > { %v754_v22 = vpop.f32.mrf.mxu0 }
 0x132   : > { %826 = vst [vmem:[#allocation2 + $0x18] sm:$0xff] %v818_v19  ;;  %v819_v23 = vadd.f32 %v804_v20, %v377_v17  ;;  %v808_v24 = vadd.f32 %v807_v9, %v754_v22 }
 0x133   : > { %v756_v27 = vpop.f32.mrf.mxu0 }
 0x134   : > { %827 = vst [vmem:[#allocation2 + $0x10] sm:$0xff] %v819_v23  ;;  %v820_v28 = vadd.f32 %v808_v24, %v378_v21  ;;  %v810_v29 = vadd.f32 %v809_v16, %v756_v27 }
 0x135   : > { %v758_v31 = vpop.f32.mrf.mxu0 }
 0x136   : > { %828 = vst [vmem:[#allocation2 + $0x8] sm:$0xff] %v820_v28  ;;  %v821_v32 = vadd.f32 %v810_v29, %v379_v26  ;;  %v812_v33 = vadd.f32 %v811_v25, %v758_v31 }
 0x137   : > { %v760_v36 = vpop.f32.mrf.mxu0 }
 0x138   : > { %829 = vst [vmem:[#allocation2 + $0x20] sm:$0xff] %v821_v32  ;;  %v822_v37 = vadd.f32 %v812_v33, %v380_v30  ;;  %v814_v38 = vadd.f32 %v813_v34, %v760_v36  ;;  %835 = sbr.rel (%p1139_p11) target bundleno = 338 (0x152), region = 70 }
 0x13a   : > { %830 = vst [vmem:[#allocation2 + $0x28] sm:$0xff] %v822_v37  ;;  %v823_v39 = vadd.f32 %v814_v38, %v381_v35 }
 0x13c   : > { %831 = vst [vmem:[#allocation2 + $0x38] sm:$0xff] %v823_v39 }
 0x13d   : > { %v846_v40 = vlaneseq  ;;  %v844_v42 = vld [vmem:[%s1492_s2] sm:$0x3]  ;;  %v836_v44 = vld [vmem:[#allocation2 + $0x30] sm:$0xff]  ;;  %v838_v48 = vld [vmem:[#allocation2 + $0x18] sm:$0xff] }
 0x13e   : > { %v864_v43 = vld [vmem:[%s1493_s3] sm:$0x3]  ;;  %v839_v49 = vld [vmem:[#allocation2 + $0x10] sm:$0xff]  ;;  %v840_v50 = vld [vmem:[#allocation2 + $0x8] sm:$0xff] }
 0x13f   : > { %v847_v41 = vshrl.u32 %v846_v40, 7  ;;  %v837_v45 = vld [vmem:[#allocation2] sm:$0xff] }
 0x140   : > { %v841_v55 = vld [vmem:[#allocation2 + $0x20] sm:$0xff] }
 0x141   : > { %v848_v46 = vsub.s32 0, %v847_v41  ;;  %v852_v47 = vsub.s32 1, %v847_v41  ;;  %v842_v56 = vld [vmem:[#allocation2 + $0x28] sm:$0xff] }
 0x143   : > { %v849_v51 = vrot.slane %v844_v42, %v848_v46  ;;  %v853_v52 = vrot.slane %v844_v42, %v852_v47  ;;  %v877_v53 = vrot.slane %v864_v43, %v848_v46  ;;  %v881_v54 = vrot.slane %v864_v43, %v852_v47  ;;  %v843_v57 = vld [vmem:[#allocation2 + $0x38] sm:$0xff] }
 0x145   : > { %v856_v58 = vadd.f32 %v849_v51, %v836_v44  ;;  %v857_v59 = vadd.f32 %v853_v52, %v837_v45  ;;  %v858_v60 = vadd.f32 %v849_v51, %v838_v48  ;;  %v859_v61 = vadd.f32 %v853_v52, %v839_v49 }
 0x146   : > { %v860_v62 = vadd.f32 %v849_v51, %v840_v50  ;;  %v861_v63 = vadd.f32 %v853_v52, %v841_v55  ;;  %v862_v0 = vadd.f32 %v849_v51, %v842_v56  ;;  %v863_v1 = vadd.f32 %v853_v52, %v843_v57 }
 0x147   : > { %vm865_vm0 = vcmp.ge.f32.partialorder %v856_v58, 0.0  ;;  %vm866_vm1 = vcmp.ge.f32.partialorder %v857_v59, 0.0  ;;  %v884_v2 = vmul.f32 %v877_v53, %v856_v58  ;;  %v885_v3 = vmul.f32 %v881_v54, %v857_v59 }
 0x148   : > { %vm867_vm2 = vcmp.ge.f32.partialorder %v858_v60, 0.0  ;;  %vm868_vm3 = vcmp.ge.f32.partialorder %v859_v61, 0.0  ;;  %v886_v4 = vmul.f32 %v877_v53, %v858_v60  ;;  %v887_v5 = vmul.f32 %v881_v54, %v859_v61 }
 0x149   : > { %v892_v6 = vsel %vm865_vm0, %v856_v58, %v884_v2  ;;  %v893_v7 = vsel %vm866_vm1, %v857_v59, %v885_v3  ;;  %vm869_vm4 = vcmp.ge.f32.partialorder %v860_v62, 0.0  ;;  %vm870_vm5 = vcmp.ge.f32.partialorder %v861_v63, 0.0 }
 0x14a   : > { %v1150_v8 = vpack.c.bf16 %v893_v7, %v892_v6  ;;  %v894_v9 = vsel %vm867_vm2, %v858_v60, %v886_v4  ;;  %v895_v10 = vsel %vm868_vm3, %v859_v61, %v887_v5  ;;  %v888_v11 = vmul.f32 %v877_v53, %v860_v62 }
 0x14b   : > { %v1151_v12 = vpack.c.bf16 %v895_v10, %v894_v9  ;;  %v889_v13 = vmul.f32 %v881_v54, %v861_v63  ;;  %vm871_vm6 = vcmp.ge.f32.partialorder %v862_v0, 0.0  ;;  %vm872_vm7 = vcmp.ge.f32.partialorder %v863_v1, 0.0 }
 0x14c   : > { %924 = vst [vmem:[%s1494_s4] sm:$0xff] %v1150_v8  ;;  %v896_v14 = vsel %vm869_vm4, %v860_v62, %v888_v11  ;;  %v890_v15 = vmul.f32 %v877_v53, %v862_v0  ;;  %v891_v16 = vmul.f32 %v881_v54, %v863_v1 }
 0x14d   : > { %925 = vst [vmem:[%s1494_s4 + $0x8] sm:$0xff] %v1151_v12  ;;  %v897_v17 = vsel %vm870_vm5, %v861_v63, %v889_v13 }
 0x14e   : > { %v1152_v18 = vpack.c.bf16 %v897_v17, %v896_v14  ;;  %v898_v19 = vsel %vm871_vm6, %v862_v0, %v890_v15  ;;  %v899_v20 = vsel %vm872_vm7, %v863_v1, %v891_v16 }
 0x14f   : > { %v1153_v21 = vpack.c.bf16 %v899_v20, %v898_v19 }
 0x150   : > { %926 = vst [vmem:[%s1494_s4 + $0x10] sm:$0xff] %v1152_v18 }
 0x151   : > { %927 = vst [vmem:[%s1494_s4 + $0x18] sm:$0xff] %v1153_v21 }
 0x152 PF: > { %s14_s19 = sadd.s32 1, %s1316_s19   ;;  %s1495_s15 = smov %s1304_s16 }
 0x153   : > { %p11_p12 = scmp.ge.s32.totalorder %s14_s19, 5   ;;  %s1496_s16 = smov %s1380_s23 }
 0x154   : > { %s1497_s17 = smov %s1312_s18  ;;  %s1498_s18 = smov %s1500_s20 }
 0x155   :  { %13 = sbr.rel (!%p11_p12) target bundleno = 3 (0x3), region = 120 }

// kernel: iresnet_forward.20
= control target key start
LH: loop header
LB: loop body
LE: loop exit
PB: predicated region body
PF: predicated region fallthrough
CT: control target
= control target key end

     0   :  { %v270_v1 = vmov 0   ;;  %v191_v18 = vlaneseq  ;;  %s351_s1 = inlined_call_operand.vmem [shape: bf16[128,256], index: 1, kind: input, shape index: {}]   ;;  %s352_s0 = inlined_call_operand.vmem [shape: bf16[16,128], index: 0, kind: input, shape index: {}]   ;;  %s353_s2 = inlined_call_operand.vmem [shape: f32[1,256], index: 2, kind: input, shape index: {}]   ;;  %s354_s3 = inlined_call_operand.vmem [shape: bf16[16,256], index: 3, kind: output, shape index: {}]  }
   0x1   :  { %v245_v0 = vld [vmem:[%s351_s1 + $0x74] ss:$8 sps:$4 sm:$0xff]   ;;  %163 = vmatprep.mubr.bf16.mxu0 %v270_v1  ;;  %v247_v2 = vld [vmem:[%s351_s1 + $0x70] ss:$8 sps:$4 sm:$0xff]   ;;  %v248_v3 = vld [vmem:[%s351_s1 + $0x64] ss:$8 sps:$4 sm:$0xff]  }
   0x2   :  { %131 = vmatprep.subr.bf16.mxu0 %v245_v0  ;;  %v250_v4 = vld [vmem:[%s351_s1 + $0x60] ss:$8 sps:$4 sm:$0xff]   ;;  %v251_v5 = vld [vmem:[%s351_s1 + $0x54] ss:$8 sps:$4 sm:$0xff]   ;;  %v253_v6 = vld [vmem:[%s351_s1 + $0x50] ss:$8 sps:$4 sm:$0xff]  }
   0x3   :  { %132 = vmatpush1.bf16.msra.mxu0 %v247_v2  ;;  %v254_v7 = vld [vmem:[%s351_s1 + $0x44] ss:$8 sps:$4 sm:$0xff]   ;;  %v256_v8 = vld [vmem:[%s351_s1 + $0x40] ss:$8 sps:$4 sm:$0xff]   ;;  %v257_v9 = vld [vmem:[%s351_s1 + $0x34] ss:$8 sps:$4 sm:$0xff]  }
   0x4   :  { %133 = vmatprep.subr.bf16.mxu0 %v248_v3  ;;  %v259_v10 = vld [vmem:[%s351_s1 + $0x30] ss:$8 sps:$4 sm:$0xff]   ;;  %v260_v11 = vld [vmem:[%s351_s1 + $0x24] ss:$8 sps:$4 sm:$0xff]   ;;  %v262_v12 = vld [vmem:[%s351_s1 + $0x20] ss:$8 sps:$4 sm:$0xff]  }
   0x5   :  { %v263_v13 = vld [vmem:[%s351_s1 + $0x14] ss:$8 sps:$4 sm:$0xff]   ;;  %v265_v14 = vld [vmem:[%s351_s1 + $0x10] ss:$8 sps:$4 sm:$0xff]   ;;  %v266_v15 = vld [vmem:[%s351_s1 + $0x4] ss:$8 sps:$4 sm:$0xff]  }
   0x6   :  { %v268_v16 = vld [vmem:[%s351_s1] ss:$8 sps:$4 sm:$0xff]   ;;  %v192_v19 = vshrl.u32 %v191_v18, 7 }
   0x7   :  { %134 = vmatpush1.bf16.msra.mxu0 %v250_v4  ;;  %v269_v17 = vld [vmem:[%s352_s0] sm:$0xff]  }
   0x8   :  { %135 = vmatprep.subr.bf16.mxu0 %v251_v5  ;;  %v193_v20 = vsub.s32 0, %v192_v19  ;;  %v197_v21 = vsub.s32 1, %v192_v19  ;;  %v189_v22 = vld [vmem:[%s353_s2] sm:$0x3] }
   0xa   :  { %v194_v23 = vrot.slane %v189_v22, %v193_v20  ;;  %v198_v24 = vrot.slane %v189_v22, %v197_v21 }
   0xb   :  { %136 = vmatpush1.bf16.msra.mxu0 %v253_v6 }
   0xc   :  { %137 = vmatprep.subr.bf16.mxu0 %v254_v7 }
   0xf   :  { %138 = vmatpush1.bf16.msra.mxu0 %v256_v8 }
  0x10   :  { %139 = vmatprep.subr.bf16.mxu0 %v257_v9 }
  0x13   :  { %140 = vmatpush1.bf16.msra.mxu0 %v259_v10 }
  0x14   :  { %141 = vmatprep.subr.bf16.mxu0 %v260_v11 }
  0x17   :  { %142 = vmatpush1.bf16.msra.mxu0 %v262_v12 }
  0x18   :  { %143 = vmatprep.subr.bf16.mxu0 %v263_v13 }
  0x1b   :  { %144 = vmatpush1.bf16.msra.mxu0 %v265_v14 }
  0x1c   :  { %145 = vmatprep.subr.bf16.mxu0 %v266_v15 }
  0x1f   :  { %146 = vmatpush1.bf16.msra.mxu0 %v268_v16 }
  0x22   :  { %164 = vmatmul.mubr.bf16.vlgmr.msra.gmra.mxu0 %v269_v17 }
  0xe2   :  { %v165_v25 = vpop.f32.mrf.mxu0 }
  0xe3   :  { %v201_v27 = vadd.f32 %v194_v23, %v165_v25 }
  0xe4   :  { %v167_v26 = vpop.f32.mrf.mxu0 }
  0xe5   :  { %v202_v28 = vadd.f32 %v198_v24, %v167_v26 }
  0xe6   :  { %v169_v29 = vpop.f32.mrf.mxu0 }
  0xe7   :  { %v242_v30 = vpack.c.bf16 %v202_v28, %v201_v27  ;;  %v203_v32 = vadd.f32 %v194_v23, %v169_v29 }
  0xe8   :  { %v171_v31 = vpop.f32.mrf.mxu0 }
  0xe9   :  { %217 = vst [vmem:[%s354_s3] sm:$0xff] %v242_v30  ;;  %v204_v33 = vadd.f32 %v198_v24, %v171_v31 }
  0xeb   :  { %v243_v34 = vpack.c.bf16 %v204_v33, %v203_v32 }
  0xed   :  { %218 = vst [vmem:[%s354_s3 + $0x8] sm:$0xff] %v243_v34 }

// kernel: iresnet_forward.22
= control target key start
LH: loop header
LB: loop body
LE: loop exit
PB: predicated region body
PF: predicated region fallthrough
CT: control target
= control target key end

     0   :  { %s1249_s15 = smov 0   ;;  %s1251_s16 = smov 0   ;;  %s1386_s0 = inlined_call_operand.vmem [shape: bf16[16,2304], index: 0, kind: input, shape index: {}]   ;;  %s1387_s1 = inlined_call_operand.vmem [shape: bf16[2304,256], index: 1, kind: input, shape index: {}]   ;;  %s1388_s2 = inlined_call_operand.vmem [shape: f32[1,256], index: 2, kind: input, shape index: {}]   ;;  %s1389_s3 = inlined_call_operand.vmem [shape: bf16[16,256], index: 3, kind: input, shape index: {}]   ;;  %s1390_s4 = inlined_call_operand.vmem [shape: bf16[16,256], index: 4, kind: output, shape index: {}]  }
   0x1   :  { %s1253_s17 = smov 0   ;;  %s1255_s18 = smov 0  }
   0x2   :  { %s1257_s19 = smov 0  }
   0x3 LB: > { %s26_s20 = sadd.s32 1, %s1216_s18  ;;  %p49_p1 = scmp.ne.s32.totalorder %s1208_s16, %s1204_s15  ;;  %s1220_s19 = sphi %s1257_s19, %s14_s19   ;;  %s1216_s18 = sphi %s1255_s18, %s1394_s18   ;;  %s1212_s17 = sphi %s1253_s17, %s1393_s17   ;;  %s1208_s16 = sphi %s1251_s16, %s1392_s16   ;;  %s1204_s15 = sphi %s1249_s15, %s1391_s15  }
   0x4   : > { %p27_p0 = scmp.ge.s32.totalorder %s26_s20, 6  ;;  %p50_p2 = scmp.eq.s32.totalorder %s1220_s19, 0 }
   0x5   : > { %s42_s22 = sadd.s32 1, %s1208_s16  ;;  %p990_p5 = scmp.ge.s32.totalorder %s1220_s19, 6 }
   0x6   : > { %s1396_s20 = smov (%p27_p0, %s26_s20), 0  ;;  %p51_p3 = por %p50_p2, %p49_p1 }
   0x7   : > { %s38_s21 = ssub.s32 %s1216_s18, %s1396_s20  ;;  %208 = sbr.rel (%p990_p5) target bundleno = 19 (0x13), region = 24 }
   0x8   : > { %p40_p4 = scmp.eq.s32.totalorder %s38_s21, 0 }
   0xa   : > { %s1284_s23 = scalar_select %p40_p4, %s1208_s16, %s42_s22  }
   0xc   : > { %211 = sbr.rel (!%p51_p3) target bundleno = 19 (0x13), region = 28  ;;  %s213_s24 = sand.u32 (%p51_p3), 1, %s1208_s16  }
   0xd   : > { %s1058_s25 = smul.u32 (%p51_p3), 12, %s1216_s18 }
   0xe   : > { %s1062_s26 = smul.u32 (%p51_p3), 24, %s213_s24 }
   0xf   : > { %s221_s29 = scalar_lea.vmem (%p51_p3), %s1386_s0, %s1058_s25 }
  0x10   : > { %v236_v0 = vld [vmem:[%s221_s29] sm:$0xff] (%p51_p3)  ;;  %v238_v1 = vld [vmem:[%s221_s29 + $0x48] sm:$0xff] (%p51_p3)  ;;  %s215_s30 = scalar_lea.vmem (%p51_p3), [#allocation3], %s1062_s26  ;;  %v994_v3 = vld [vmem:[%s221_s29 + $0x50] sm:$0xf] (%p51_p3) }
  0x11   : > { %v992_v2 = vld [vmem:[%s221_s29 + $0x8] sm:$0xf]  ;;  %237 = vst [vmem:[%s215_s30] sm:$0xff] %v236_v0  ;;  %239 = vst [vmem:[%s215_s30 + $0xc] sm:$0xff] %v238_v1 }
  0x12   : > { %993 = vst [vmem:[%s215_s30 + $0x8] sm:$0xf] %v992_v2  ;;  %995 = vst [vmem:[%s215_s30 + $0x14] sm:$0xf] %v994_v3 }
  0x13 PF: > { %p996_p6 = scmp.ge.s32.totalorder %s1220_s19, 1  ;;  %p271_p7 = scmp.lt.s32.totalorder %s1220_s19, 7 }
  0x15   : > { %p272_p8 = pnand %p996_p6, %p271_p7 }
  0x16   : > { %s278_s5 = sand.u32 (!%p272_p8), 1, %s1204_s15   ;;  %s334_s6 = smul.u32 (!%p272_p8), 48, %s1212_s17 }
  0x17   : > { %275 = sbr.rel (%p272_p8) target bundleno = 320 (0x140), region = 58  ;;  %p999_p10 = scmp.ne.s32.totalorder (!%p272_p8), %s1212_s17, 0 }
  0x18   : > { %s1063_s7 = smul.u32 (!%p272_p8), 24, %s278_s5  ;;  %p336_p9 = scmp.lt.s32.totalorder (!%p272_p8), %s334_s6, 287 }
  0x1a   : > { %s1301_s12 = scalar_lea.vmem (!%p272_p8), [#allocation3], %s1063_s7 }
  0x1c   : > { %s1398_s6 = smov (!%p336_p9, %s334_s6), 287  ;;  %379 = sbr.rel (%p999_p10) target bundleno = 36 (0x24), region = 66 }
  0x1d   : > { %s1059_s8 = sshll.u32 %s1398_s6, 3 }
  0x1e   : > { %s1299_s11 = scalar_lea.vmem %s1387_s1, %s1059_s8 }
  0x21   : > { %v1222_v4 = vmov 0.0  }
  0x22   : > { %380 = vst [vmem:[#allocation2 + $0x10] sm:$0xff] %v1222_v4  ;;  %381 = vst [vmem:[#allocation2] sm:$0xff] %v1222_v4 }
  0x23   : > { %382 = vst [vmem:[#allocation2 + $0x18] sm:$0xff] %v1222_v4  ;;  %383 = vst [vmem:[#allocation2 + $0x8] sm:$0xff] %v1222_v4 }
  0x24 PF: > { %v1106_v5 = vld [vmem:[%s1299_s11 + $0x74] ss:$8 sps:$4 sm:$0xff]   ;;  %v1108_v6 = vld [vmem:[%s1299_s11 + $0x70] ss:$8 sps:$4 sm:$0xff]   ;;  %v1223_v7 = vmov 0   ;;  %p1051_p11 = scmp.ne.s32.totalorder %s1212_s17, 5 }
  0x25   : > { %771 = vmatprep.mubr.bf16.mxu1 %v1223_v7  ;;  %696 = vmatprep.subr.bf16.mxu0 %v1106_v5  ;;  %v1109_v8 = vld [vmem:[%s1299_s11 + $0x64] ss:$8 sps:$4 sm:$0xff]   ;;  %v1111_v9 = vld [vmem:[%s1299_s11 + $0x60] ss:$8 sps:$4 sm:$0xff]   ;;  %v1112_v10 = vld [vmem:[%s1299_s11 + $0x54] ss:$8 sps:$4 sm:$0xff]  }
  0x26   : > { %697 = vmatpush1.bf16.msra.mxu0 %v1108_v6  ;;  %v1114_v11 = vld [vmem:[%s1299_s11 + $0x50] ss:$8 sps:$4 sm:$0xff]   ;;  %v1115_v12 = vld [vmem:[%s1299_s11 + $0x44] ss:$8 sps:$4 sm:$0xff]   ;;  %v1127_v13 = vld [vmem:[%s1299_s11 + $0x174] ss:$8 sps:$4 sm:$0xff]  }
  0x27   : > { %698 = vmatprep.subr.bf16.mxu0 %v1109_v8  ;;  %v1129_v14 = vld [vmem:[%s1299_s11 + $0x170] ss:$8 sps:$4 sm:$0xff]   ;;  %v1117_v15 = vld [vmem:[%s1299_s11 + $0x40] ss:$8 sps:$4 sm:$0xff]   ;;  %v1118_v16 = vld [vmem:[%s1299_s11 + $0x34] ss:$8 sps:$4 sm:$0xff]   ;;  %739 = vmatprep.subr.bf16.mxu1 %v1127_v13 }
  0x28   : > { %v1133_v17 = vld [vmem:[%s1299_s11 + $0x164] ss:$8 sps:$4 sm:$0xff]   ;;  %740 = vmatpush1.bf16.msra.mxu1 %v1129_v14  ;;  %v1135_v18 = vld [vmem:[%s1299_s11 + $0x160] ss:$8 sps:$4 sm:$0xff]   ;;  %v1120_v19 = vld [vmem:[%s1299_s11 + $0x30] ss:$8 sps:$4 sm:$0xff]  }
  0x29   : > { %741 = vmatprep.subr.bf16.mxu1 %v1133_v17  ;;  %v1139_v20 = vld [vmem:[%s1299_s11 + $0x154] ss:$8 sps:$4 sm:$0xff]   ;;  %v1121_v21 = vld [vmem:[%s1299_s11 + $0x24] ss:$8 sps:$4 sm:$0xff]   ;;  %v1141_v22 = vld [vmem:[%s1299_s11 + $0x150] ss:$8 sps:$4 sm:$0xff]  }
  0x2a   : > { %699 = vmatpush1.bf16.msra.mxu0 %v1111_v9  ;;  %v1145_v23 = vld [vmem:[%s1299_s11 + $0x144] ss:$8 sps:$4 sm:$0xff]   ;;  %v1123_v24 = vld [vmem:[%s1299_s11 + $0x20] ss:$8 sps:$4 sm:$0xff]   ;;  %v1124_v25 = vld [vmem:[%s1299_s11 + $0x14] ss:$8 sps:$4 sm:$0xff]  }
  0x2b   : > { %700 = vmatprep.subr.bf16.mxu0 %v1112_v10  ;;  %v1147_v26 = vld [vmem:[%s1299_s11 + $0x140] ss:$8 sps:$4 sm:$0xff]   ;;  %v1151_v27 = vld [vmem:[%s1299_s11 + $0x134] ss:$8 sps:$4 sm:$0xff]   ;;  %v1126_v28 = vld [vmem:[%s1299_s11 + $0x10] ss:$8 sps:$4 sm:$0xff]  }
  0x2c   : > { %742 = vmatpush1.bf16.msra.mxu1 %v1135_v18  ;;  %v1130_v29 = vld [vmem:[%s1299_s11 + $0x4] ss:$8 sps:$4 sm:$0xff]   ;;  %v1153_v30 = vld [vmem:[%s1299_s11 + $0x130] ss:$8 sps:$4 sm:$0xff]   ;;  %v1132_v32 = vld [vmem:[%s1299_s11] ss:$8 sps:$4 sm:$0xff]  }
  0x2d   : > { %743 = vmatprep.subr.bf16.mxu1 %v1139_v20  ;;  %v1157_v31 = vld [vmem:[%s1299_s11 + $0x124] ss:$8 sps:$4 sm:$0xff]   ;;  %v1136_v33 = vld [vmem:[%s1299_s11 + $0xf4] ss:$8 sps:$4 sm:$0xff]   ;;  %v1159_v34 = vld [vmem:[%s1299_s11 + $0x120] ss:$8 sps:$4 sm:$0xff]  }
  0x2e   : > { %701 = vmatpush1.bf16.msra.mxu0 %v1114_v11  ;;  %v1163_v35 = vld [vmem:[%s1299_s11 + $0x114] ss:$8 sps:$4 sm:$0xff]   ;;  %v1138_v36 = vld [vmem:[%s1299_s11 + $0xf0] ss:$8 sps:$4 sm:$0xff]   ;;  %v1142_v37 = vld [vmem:[%s1299_s11 + $0xe4] ss:$8 sps:$4 sm:$0xff]  }
  0x2f   : > { %702 = vmatprep.subr.bf16.mxu0 %v1115_v12  ;;  %v1165_v38 = vld [vmem:[%s1299_s11 + $0x110] ss:$8 sps:$4 sm:$0xff]   ;;  %v1169_v39 = vld [vmem:[%s1299_s11 + $0x104] ss:$8 sps:$4 sm:$0xff]   ;;  %v1144_v41 = vld [vmem:[%s1299_s11 + $0xe0] ss:$8 sps:$4 sm:$0xff]  }
  0x30   : > { %744 = vmatpush1.bf16.msra.mxu1 %v1141_v22  ;;  %v1181_v40 = vld [vmem:[%s1301_s12 + $0x4] ss:$12 sps:$4 sm:$0xff]   ;;  %v1175_v46 = vld [vmem:[%s1301_s12 + $0x8] ss:$12 sps:$4 sm:$0xff]   ;;  %v1179_v56 = vld [vmem:[%s1301_s12] ss:$12 sps:$4 sm:$0xff]  }
  0x31   : > { %745 = vmatprep.subr.bf16.mxu1 %v1145_v23  ;;  %v1148_v42 = vld [vmem:[%s1299_s11 + $0xd4] ss:$8 sps:$4 sm:$0xff]   ;;  %728 = vmatprep.mubr.bf16.mxu0 %v1181_v40  ;;  %v1171_v43 = vld [vmem:[%s1299_s11 + $0x100] ss:$8 sps:$4 sm:$0xff]   ;;  %v1150_v44 = vld [vmem:[%s1299_s11 + $0xd0] ss:$8 sps:$4 sm:$0xff]  }
  0x32   : > { %703 = vmatpush1.bf16.msra.mxu0 %v1117_v15  ;;  %v1154_v45 = vld [vmem:[%s1299_s11 + $0xc4] ss:$8 sps:$4 sm:$0xff]   ;;  %v1156_v47 = vld [vmem:[%s1299_s11 + $0xc0] ss:$8 sps:$4 sm:$0xff]   ;;  %v1160_v48 = vld [vmem:[%s1299_s11 + $0xb4] ss:$8 sps:$4 sm:$0xff]  }
  0x33   : > { %704 = vmatprep.subr.bf16.mxu0 %v1118_v16  ;;  %v1162_v49 = vld [vmem:[%s1299_s11 + $0xb0] ss:$8 sps:$4 sm:$0xff]   ;;  %v1166_v50 = vld [vmem:[%s1299_s11 + $0xa4] ss:$8 sps:$4 sm:$0xff]   ;;  %v1168_v51 = vld [vmem:[%s1299_s11 + $0xa0] ss:$8 sps:$4 sm:$0xff]  }
  0x34   : > { %746 = vmatpush1.bf16.msra.mxu1 %v1147_v26  ;;  %v1172_v52 = vld [vmem:[%s1299_s11 + $0x94] ss:$8 sps:$4 sm:$0xff]   ;;  %v1174_v53 = vld [vmem:[%s1299_s11 + $0x90] ss:$8 sps:$4 sm:$0xff]   ;;  %v1176_v54 = vld [vmem:[%s1299_s11 + $0x84] ss:$8 sps:$4 sm:$0xff]  }
  0x35   : > { %747 = vmatprep.subr.bf16.mxu1 %v1151_v27  ;;  %v1178_v55 = vld [vmem:[%s1299_s11 + $0x80] ss:$8 sps:$4 sm:$0xff]   ;;  %v384_v59 = vld [vmem:[#allocation2 + $0x10] sm:$0xff]  ;;  %v386_v3 = vld [vmem:[#allocation2 + $0x18] sm:$0xff] }
  0x36   : > { %705 = vmatpush1.bf16.msra.mxu0 %v1120_v19  ;;  %v385_v63 = vld [vmem:[#allocation2] sm:$0xff]  ;;  %v387_v8 = vld [vmem:[#allocation2 + $0x8] sm:$0xff] }
  0x37   : > { %706 = vmatprep.subr.bf16.mxu0 %v1121_v21 }
  0x38   : > { %748 = vmatpush1.bf16.msra.mxu1 %v1153_v30 }
  0x39   : > { %749 = vmatprep.subr.bf16.mxu1 %v1157_v31 }
  0x3a   : > { %707 = vmatpush1.bf16.msra.mxu0 %v1123_v24 }
  0x3b   : > { %708 = vmatprep.subr.bf16.mxu0 %v1124_v25 }
  0x3c   : > { %750 = vmatpush1.bf16.msra.mxu1 %v1159_v34 }
  0x3d   : > { %751 = vmatprep.subr.bf16.mxu1 %v1163_v35 }
  0x3e   : > { %709 = vmatpush1.bf16.msra.mxu0 %v1126_v28 }
  0x3f   : > { %710 = vmatprep.subr.bf16.mxu0 %v1130_v29 }
  0x40   : > { %752 = vmatpush1.bf16.msra.mxu1 %v1165_v38 }
  0x41   : > { %753 = vmatprep.subr.bf16.mxu1 %v1169_v39 }
  0x42   : > { %711 = vmatpush1.bf16.msra.mxu0 %v1132_v32 }
  0x43   : > { %712 = vmatprep.subr.bf16.mxu0 %v1136_v33 }
  0x44   : > { %754 = vmatpush1.bf16.msra.mxu1 %v1171_v43 }
  0x46   : > { %713 = vmatpush2.bf16.msra.mxu0 %v1138_v36 }
  0x47   : > { %714 = vmatprep.subr.bf16.mxu0 %v1142_v37  ;;  %772 = vmatmul.mubr.bf16.vlgmr.msra.gmra.mxu1 %v1175_v46 }
  0x4a   : > { %715 = vmatpush2.bf16.msra.mxu0 %v1144_v41 }
  0x4b   : > { %716 = vmatprep.subr.bf16.mxu0 %v1148_v42 }
  0x4e   : > { %717 = vmatpush2.bf16.msra.mxu0 %v1150_v44 }
  0x4f   : > { %718 = vmatprep.subr.bf16.mxu0 %v1154_v45 }
  0x52   : > { %719 = vmatpush2.bf16.msra.mxu0 %v1156_v47 }
  0x53   : > { %720 = vmatprep.subr.bf16.mxu0 %v1160_v48 }
  0x56   : > { %721 = vmatpush2.bf16.msra.mxu0 %v1162_v49 }
  0x57   : > { %722 = vmatprep.subr.bf16.mxu0 %v1166_v50 }
  0x5a   : > { %723 = vmatpush2.bf16.msra.mxu0 %v1168_v51 }
  0x5b   : > { %724 = vmatprep.subr.bf16.mxu0 %v1172_v52 }
  0x5e   : > { %725 = vmatpush2.bf16.msra.mxu0 %v1174_v53 }
  0x5f   : > { %726 = vmatprep.subr.bf16.mxu0 %v1176_v54 }
  0x62   : > { %727 = vmatpush2.bf16.msra.mxu0 %v1178_v55 }
  0x65   : > { %729 = vmatmul.mubr.bf16.vlgmr.msra.gmra.mxu0 %v1179_v56 }
 0x107   : > { %v773_v57 = vpop.f32.mrf.mxu1 }
 0x109   : > { %v775_v58 = vpop.f32.mrf.mxu1 }
 0x10b   : > { %v777_v62 = vpop.f32.mrf.mxu1 }
 0x10d   : > { %v779_v7 = vpop.f32.mrf.mxu1 }
 0x125   : > { %v730_v60 = vpop.f32.mrf.mxu0 }
 0x126   : > { %v774_v61 = vadd.f32 %v773_v57, %v730_v60 }
 0x127   : > { %v732_v0 = vpop.f32.mrf.mxu0 }
 0x128   : > { %v782_v1 = vadd.f32 %v774_v61, %v384_v59  ;;  %v776_v2 = vadd.f32 %v775_v58, %v732_v0 }
 0x129   : > { %v734_v4 = vpop.f32.mrf.mxu0 }
 0x12a   : > { %786 = vst [vmem:[#allocation2 + $0x10] sm:$0xff] %v782_v1  ;;  %v783_v5 = vadd.f32 %v776_v2, %v385_v63  ;;  %v778_v6 = vadd.f32 %v777_v62, %v734_v4 }
 0x12b   : > { %v736_v9 = vpop.f32.mrf.mxu0 }
 0x12c   : > { %787 = vst [vmem:[#allocation2] sm:$0xff] %v783_v5  ;;  %v784_v10 = vadd.f32 %v778_v6, %v386_v3  ;;  %v780_v11 = vadd.f32 %v779_v7, %v736_v9  ;;  %793 = sbr.rel (%p1051_p11) target bundleno = 320 (0x140), region = 70 }
 0x12e   : > { %788 = vst [vmem:[#allocation2 + $0x18] sm:$0xff] %v784_v10  ;;  %v785_v12 = vadd.f32 %v780_v11, %v387_v8 }
 0x130   : > { %789 = vst [vmem:[#allocation2 + $0x8] sm:$0xff] %v785_v12 }
 0x131   : > { %v800_v13 = vlaneseq  ;;  %v814_v15 = vld [vmem:[%s1389_s3] sm:$0xff]  ;;  %v815_v17 = vld [vmem:[%s1389_s3 + $0x8] sm:$0xff]  ;;  %v794_v18 = vld [vmem:[#allocation2 + $0x10] sm:$0xff] }
 0x132   : > { %v798_v16 = vld [vmem:[%s1388_s2] sm:$0x3]  ;;  %v816_v22 = vunpack.c.l.bf16 %v814_v15  ;;  %v817_v23 = vunpack.c.h.bf16 %v814_v15  ;;  %v818_v28 = vunpack.c.l.bf16 %v815_v17  ;;  %v819_v29 = vunpack.c.h.bf16 %v815_v17 }
 0x133   : > { %v801_v14 = vshrl.u32 %v800_v13, 7  ;;  %v795_v21 = vld [vmem:[#allocation2] sm:$0xff] }
 0x135   : > { %v802_v19 = vsub.s32 0, %v801_v14  ;;  %v806_v20 = vsub.s32 1, %v801_v14  ;;  %v796_v24 = vld [vmem:[#allocation2 + $0x18] sm:$0xff] }
 0x137   : > { %v797_v25 = vld [vmem:[#allocation2 + $0x8] sm:$0xff]  ;;  %v803_v26 = vrot.slane %v798_v16, %v802_v19  ;;  %v807_v27 = vrot.slane %v798_v16, %v806_v20 }
 0x139   : > { %v810_v30 = vadd.f32 %v803_v26, %v794_v18  ;;  %v811_v31 = vadd.f32 %v807_v27, %v795_v21  ;;  %v812_v32 = vadd.f32 %v803_v26, %v796_v24  ;;  %v813_v33 = vadd.f32 %v807_v27, %v797_v25 }
 0x13b   : > { %v820_v34 = vadd.f32 %v816_v22, %v810_v30  ;;  %v821_v35 = vadd.f32 %v817_v23, %v811_v31  ;;  %v822_v36 = vadd.f32 %v818_v28, %v812_v32  ;;  %v823_v37 = vadd.f32 %v819_v29, %v813_v33 }
 0x13d   : > { %v1060_v38 = vpack.c.bf16 %v821_v35, %v820_v34  ;;  %v1061_v39 = vpack.c.bf16 %v823_v37, %v822_v36 }
 0x13f   : > { %836 = vst [vmem:[%s1390_s4] sm:$0xff] %v1060_v38  ;;  %837 = vst [vmem:[%s1390_s4 + $0x8] sm:$0xff] %v1061_v39 }
 0x140 PF: > { %s14_s19 = sadd.s32 1, %s1220_s19   ;;  %s1391_s15 = smov %s1208_s16 }
 0x141   : > { %p11_p12 = scmp.ge.s32.totalorder %s14_s19, 8   ;;  %s1392_s16 = smov %s1284_s23 }
 0x142   : > { %s1393_s17 = smov %s1216_s18  ;;  %s1394_s18 = smov %s1396_s20 }
 0x143   :  { %13 = sbr.rel (!%p11_p12) target bundleno = 3 (0x3), region = 120 }

// kernel: iresnet_forward.24
= control target key start
LH: loop header
LB: loop body
LE: loop exit
PB: predicated region body
PF: predicated region fallthrough
CT: control target
= control target key end

     0   :  { %s1902_s0 = inlined_call_operand.vmem [shape: bf16[16,2304], index: 0, kind: input, shape index: {}]   ;;  %s1903_s1 = inlined_call_operand.vmem [shape: bf16[2304,512], index: 1, kind: input, shape index: {}]   ;;  %s1904_s2 = inlined_call_operand.vmem [shape: f32[1,512], index: 2, kind: input, shape index: {}]   ;;  %s1905_s3 = inlined_call_operand.vmem [shape: f32[1,512], index: 3, kind: input, shape index: {}]   ;;  %s1906_s4 = inlined_call_operand.vmem [shape: bf16[16,512], index: 4, kind: output, shape index: {}]  }
   0x1   :  { %1909 = sst [smem:[#allocation8_spill]] %s1902_s0 }
   0x2   :  { %1910 = sst [smem:[#allocation9_spill]] %s1903_s1 }
   0x3   :  { %s1560_s15 = smov 0   ;;  %s1562_s16 = smov 0  }
   0x4   :  { %s1564_s17 = smov 0   ;;  %s1566_s18 = smov 0  }
   0x5   :  { %s1568_s19 = smov 0   ;;  %s1570_s20 = smov 0  }
   0x6   :  { %s1572_s21 = smov 0   ;;  %s1574_s22 = smov 0  }
   0x7   :  { %s1576_s23 = smov 0   ;;  %s1578_s24 = smov 0  }
   0x8   :  { %s1580_s25 = smov 0  }
   0x9 LB: > { %s1194_s26 = sadd.s32 4294967295, %s1531_s25   ;;  %s26_s27 = sadd.s32 1, %s1523_s23  ;;  %s1531_s25 = sphi %s1580_s25, %s14_s25   ;;  %s1527_s24 = sphi %s1578_s24, %s1929_s24   ;;  %s1523_s23 = sphi %s1576_s23, %s1928_s23   ;;  %s1519_s22 = sphi %s1574_s22, %s1927_s22   ;;  %s1515_s21 = sphi %s1572_s21, %s1926_s21   ;;  %s1511_s20 = sphi %s1570_s20, %s1925_s20   ;;  %s1507_s19 = sphi %s1568_s19, %s1924_s19   ;;  %s1503_s18 = sphi %s1566_s18, %s1923_s18   ;;  %s1499_s17 = sphi %s1564_s17, %s1922_s17   ;;  %s1495_s16 = sphi %s1562_s16, %s1921_s16   ;;  %s1491_s15 = sphi %s1560_s15, %s1920_s15  }
   0xa   : > { %p27_p0 = scmp.ge.s32.totalorder %s26_s27, 6  ;;  %s29_s28 = sadd.s32 1, %s1527_s24 }
   0xb   : > { %s42_s29 = sadd.s32 1, %s1511_s20  ;;  %p49_p1 = scmp.ne.s32.totalorder %s1511_s20, %s1507_s19 }
   0xc   : > { %s1931_s27 = smov (%p27_p0, %s26_s27), 0  ;;  %s1933_s28 = smov (!%p27_p0, %s29_s28), %s1527_s24 }
   0xd   : > { %1911 = sst [smem:[#allocation6_spill]] %s1931_s27  ;;  %s38_s30 = ssub.s32 %s1523_s23, %s1931_s27 }
   0xe   : > { %p50_p2 = scmp.eq.s32.totalorder %s1531_s25, 0  ;;  %p31_p3 = scmp.ge.s32.totalorder %s1933_s28, 2 }
   0xf   : > { %p40_p4 = scmp.eq.s32.totalorder %s38_s30, 0  ;;  %s70_s6 = sadd.s32 1, %s1503_s18 }
  0x10   : > { %p1627_p5 = por %p50_p2, %p49_p1  ;;  %s1935_s28 = smov (%p31_p3, %s1933_s28), 0 }
  0x11   : > { %1913 = sst [smem:[#allocation7_spill]] %s1935_s28  ;;  %s66_s8 = ssub.s32 %s1527_s24, %s1935_s28 }
  0x12   : > { %s1635_s7 = scalar_select %p40_p4, %s1511_s20, %s42_s29  }
  0x13   : > { %p77_p6 = scmp.ne.s32.totalorder %s1503_s18, %s1499_s17  ;;  %s67_s9 = sor.u32 %s66_s8, %s38_s30 }
  0x14   : > { %p148_p7 = scmp.eq.s32.totalorder %s66_s8, 0  ;;  %p68_p8 = scmp.eq.s32.totalorder %s67_s9, 0 }
  0x15   : > { %p1641_p9 = por %p77_p6, %p50_p2  ;;  %s150_s11 = sadd.s32 1, %s1495_s16 }
  0x16   : > { %p160_p10 = scmp.ne.s32.totalorder %s1495_s16, %s1491_s15  ;;  %p161_p11 = scmp.eq.s32.totalorder %s1194_s26, 11 }
  0x17   : > { %s1649_s12 = scalar_select %p68_p8, %s1503_s18, %s70_s6  }
  0x18   : > { %s1652_s13 = scalar_select %p148_p7, %s1495_s16, %s150_s11  }
  0x19   : > { %p1654_p12 = por %p161_p11, %p160_p10  ;;  %p1197_p13 = scmp.ge.s32.totalorder %s1531_s25, 12 }
  0x1b   : > { %183 = sbr.rel (%p1197_p13) target bundleno = 77 (0x4d), region = 16 }
  0x20   : > { %186 = sbr.rel (!%p1627_p5) target bundleno = 43 (0x2b), region = 20  ;;  %s188_s29 = sand.u32 (%p1627_p5), 1, %s1511_s20  }
  0x21   : > { %s1270_s30 = smul.u32 (%p1627_p5), 12, %s1523_s23  ;;  %s1916_s0 = sld [smem:[#allocation8_spill]] (%p1627_p5) }
  0x22   : > { %s1275_s8 = smul.u32 (%p1627_p5), 24, %s188_s29 }
  0x24   : > { %s190_s26 = scalar_lea.vmem (%p1627_p5), [#allocation3], %s1275_s8 }
  0x27   : > { %s196_s11 = scalar_lea.vmem %s1916_s0, %s1270_s30 }
  0x28   : > { %v211_v0 = vld [vmem:[%s196_s11] sm:$0xff]  ;;  %v213_v1 = vld [vmem:[%s196_s11 + $0x48] sm:$0xff]  ;;  %v1201_v3 = vld [vmem:[%s196_s11 + $0x50] sm:$0xf] }
  0x29   : > { %v1199_v2 = vld [vmem:[%s196_s11 + $0x8] sm:$0xf]  ;;  %212 = vst [vmem:[%s190_s26] sm:$0xff] %v211_v0  ;;  %214 = vst [vmem:[%s190_s26 + $0xc] sm:$0xff] %v213_v1 }
  0x2a   : > { %1200 = vst [vmem:[%s190_s26 + $0x8] sm:$0xf] %v1199_v2  ;;  %1202 = vst [vmem:[%s190_s26 + $0x14] sm:$0xf] %v1201_v3 }
  0x2b PF: > { %232 = sbr.rel (!%p1641_p9) target bundleno = 77 (0x4d), region = 46  ;;  %s234_s5 = sand.u32 (%p1641_p9), 1, %s1503_s18  }
  0x2c   : > { %s1276_s29 = smul.u32 (%p1641_p9), 384, %s234_s5  ;;  %s1203_s6 = sshll.u32 (%p1641_p9), %s1527_s24, 1 }
  0x2d   : > { %s1271_s30 = smul.u32 (%p1641_p9), 192, %s1523_s23  ;;  %s1917_s1 = sld [smem:[#allocation9_spill]] (%p1641_p9) }
  0x2e   : > { %s1679_s10 = scalar_lea.vmem (%p1641_p9), [#allocation4], %s1276_s29 }
  0x2f   : > { %s240_s9 = sadd.s32 (%p1641_p9), %s1271_s30, %s1203_s6 }
  0x30   : > { %s1205_s0 = sshll.u32 %s240_s9, 2 }
  0x33   : > { %s1674_s27 = scalar_lea.vmem %s1917_s1, %s1205_s0 }
  0x34   : > { %v365_v4 = vld [vmem:[%s1674_s27] sm:$0xff]  ;;  %v367_v5 = vld [vmem:[%s1674_s27 + $0x10] sm:$0xff] }
  0x35   : > { %v369_v6 = vld [vmem:[%s1674_s27 + $0x20] sm:$0xff]  ;;  %366 = vst [vmem:[%s1679_s10] sm:$0xff] %v365_v4  ;;  %368 = vst [vmem:[%s1679_s10 + $0x8] sm:$0xff] %v367_v5  ;;  %v371_v7 = vld [vmem:[%s1674_s27 + $0x30] sm:$0xff] }
  0x36   : > { %370 = vst [vmem:[%s1679_s10 + $0x10] sm:$0xff] %v369_v6  ;;  %v373_v8 = vld [vmem:[%s1674_s27 + $0x40] sm:$0xff]  ;;  %v375_v9 = vld [vmem:[%s1674_s27 + $0x50] sm:$0xff]  ;;  %372 = vst [vmem:[%s1679_s10 + $0x18] sm:$0xff] %v371_v7 }
  0x37   : > { %374 = vst [vmem:[%s1679_s10 + $0x20] sm:$0xff] %v373_v8  ;;  %376 = vst [vmem:[%s1679_s10 + $0x28] sm:$0xff] %v375_v9  ;;  %v377_v10 = vld [vmem:[%s1674_s27 + $0x60] sm:$0xff]  ;;  %v379_v11 = vld [vmem:[%s1674_s27 + $0x70] sm:$0xff] }
  0x38   : > { %v381_v12 = vld [vmem:[%s1674_s27 + $0x80] sm:$0xff]  ;;  %378 = vst [vmem:[%s1679_s10 + $0x30] sm:$0xff] %v377_v10  ;;  %380 = vst [vmem:[%s1679_s10 + $0x38] sm:$0xff] %v379_v11  ;;  %v383_v13 = vld [vmem:[%s1674_s27 + $0x90] sm:$0xff] }
  0x39   : > { %382 = vst [vmem:[%s1679_s10 + $0x40] sm:$0xff] %v381_v12  ;;  %v385_v14 = vld [vmem:[%s1674_s27 + $0xa0] sm:$0xff]  ;;  %v387_v15 = vld [vmem:[%s1674_s27 + $0xb0] sm:$0xff]  ;;  %384 = vst [vmem:[%s1679_s10 + $0x48] sm:$0xff] %v383_v13 }
  0x3a   : > { %386 = vst [vmem:[%s1679_s10 + $0x50] sm:$0xff] %v385_v14  ;;  %388 = vst [vmem:[%s1679_s10 + $0x58] sm:$0xff] %v387_v15  ;;  %v389_v16 = vld [vmem:[%s1674_s27 + $0xc0] sm:$0xff]  ;;  %v391_v17 = vld [vmem:[%s1674_s27 + $0xd0] sm:$0xff] }
  0x3b   : > { %v393_v18 = vld [vmem:[%s1674_s27 + $0xe0] sm:$0xff]  ;;  %390 = vst [vmem:[%s1679_s10 + $0x60] sm:$0xff] %v389_v16  ;;  %392 = vst [vmem:[%s1679_s10 + $0x68] sm:$0xff] %v391_v17  ;;  %v395_v19 = vld [vmem:[%s1674_s27 + $0xf0] sm:$0xff] }
  0x3c   : > { %394 = vst [vmem:[%s1679_s10 + $0x70] sm:$0xff] %v393_v18  ;;  %v397_v20 = vld [vmem:[%s1674_s27 + $0x100] sm:$0xff]  ;;  %v399_v21 = vld [vmem:[%s1674_s27 + $0x110] sm:$0xff]  ;;  %396 = vst [vmem:[%s1679_s10 + $0x78] sm:$0xff] %v395_v19 }
  0x3d   : > { %398 = vst [vmem:[%s1679_s10 + $0x80] sm:$0xff] %v397_v20  ;;  %400 = vst [vmem:[%s1679_s10 + $0x88] sm:$0xff] %v399_v21  ;;  %v401_v22 = vld [vmem:[%s1674_s27 + $0x120] sm:$0xff]  ;;  %v403_v23 = vld [vmem:[%s1674_s27 + $0x130] sm:$0xff] }
  0x3e   : > { %v405_v24 = vld [vmem:[%s1674_s27 + $0x140] sm:$0xff]  ;;  %402 = vst [vmem:[%s1679_s10 + $0x90] sm:$0xff] %v401_v22  ;;  %404 = vst [vmem:[%s1679_s10 + $0x98] sm:$0xff] %v403_v23  ;;  %v407_v25 = vld [vmem:[%s1674_s27 + $0x150] sm:$0xff] }
  0x3f   : > { %406 = vst [vmem:[%s1679_s10 + $0xa0] sm:$0xff] %v405_v24  ;;  %v409_v26 = vld [vmem:[%s1674_s27 + $0x160] sm:$0xff]  ;;  %v411_v27 = vld [vmem:[%s1674_s27 + $0x170] sm:$0xff]  ;;  %408 = vst [vmem:[%s1679_s10 + $0xa8] sm:$0xff] %v407_v25 }
  0x40   : > { %410 = vst [vmem:[%s1679_s10 + $0xb0] sm:$0xff] %v409_v26  ;;  %412 = vst [vmem:[%s1679_s10 + $0xb8] sm:$0xff] %v411_v27  ;;  %v413_v28 = vld [vmem:[%s1674_s27 + $0x180] sm:$0xff]  ;;  %v415_v29 = vld [vmem:[%s1674_s27 + $0x190] sm:$0xff] }
  0x41   : > { %v417_v30 = vld [vmem:[%s1674_s27 + $0x1a0] sm:$0xff]  ;;  %414 = vst [vmem:[%s1679_s10 + $0xc0] sm:$0xff] %v413_v28  ;;  %416 = vst [vmem:[%s1679_s10 + $0xc8] sm:$0xff] %v415_v29  ;;  %v419_v31 = vld [vmem:[%s1674_s27 + $0x1b0] sm:$0xff] }
  0x42   : > { %418 = vst [vmem:[%s1679_s10 + $0xd0] sm:$0xff] %v417_v30  ;;  %v421_v32 = vld [vmem:[%s1674_s27 + $0x1c0] sm:$0xff]  ;;  %v423_v33 = vld [vmem:[%s1674_s27 + $0x1d0] sm:$0xff]  ;;  %420 = vst [vmem:[%s1679_s10 + $0xd8] sm:$0xff] %v419_v31 }
  0x43   : > { %422 = vst [vmem:[%s1679_s10 + $0xe0] sm:$0xff] %v421_v32  ;;  %424 = vst [vmem:[%s1679_s10 + $0xe8] sm:$0xff] %v423_v33  ;;  %v425_v34 = vld [vmem:[%s1674_s27 + $0x1e0] sm:$0xff]  ;;  %v427_v35 = vld [vmem:[%s1674_s27 + $0x1f0] sm:$0xff] }
  0x44   : > { %v429_v36 = vld [vmem:[%s1674_s27 + $0x200] sm:$0xff]  ;;  %426 = vst [vmem:[%s1679_s10 + $0xf0] sm:$0xff] %v425_v34  ;;  %428 = vst [vmem:[%s1679_s10 + $0xf8] sm:$0xff] %v427_v35  ;;  %v431_v37 = vld [vmem:[%s1674_s27 + $0x210] sm:$0xff] }
  0x45   : > { %430 = vst [vmem:[%s1679_s10 + $0x100] sm:$0xff] %v429_v36  ;;  %v433_v38 = vld [vmem:[%s1674_s27 + $0x220] sm:$0xff]  ;;  %v435_v39 = vld [vmem:[%s1674_s27 + $0x230] sm:$0xff]  ;;  %432 = vst [vmem:[%s1679_s10 + $0x108] sm:$0xff] %v431_v37 }
  0x46   : > { %434 = vst [vmem:[%s1679_s10 + $0x110] sm:$0xff] %v433_v38  ;;  %436 = vst [vmem:[%s1679_s10 + $0x118] sm:$0xff] %v435_v39  ;;  %v437_v40 = vld [vmem:[%s1674_s27 + $0x240] sm:$0xff]  ;;  %v439_v41 = vld [vmem:[%s1674_s27 + $0x250] sm:$0xff] }
  0x47   : > { %v441_v42 = vld [vmem:[%s1674_s27 + $0x260] sm:$0xff]  ;;  %438 = vst [vmem:[%s1679_s10 + $0x120] sm:$0xff] %v437_v40  ;;  %440 = vst [vmem:[%s1679_s10 + $0x128] sm:$0xff] %v439_v41  ;;  %v443_v43 = vld [vmem:[%s1674_s27 + $0x270] sm:$0xff] }
  0x48   : > { %442 = vst [vmem:[%s1679_s10 + $0x130] sm:$0xff] %v441_v42  ;;  %v445_v44 = vld [vmem:[%s1674_s27 + $0x280] sm:$0xff]  ;;  %v447_v45 = vld [vmem:[%s1674_s27 + $0x290] sm:$0xff]  ;;  %444 = vst [vmem:[%s1679_s10 + $0x138] sm:$0xff] %v443_v43 }
  0x49   : > { %446 = vst [vmem:[%s1679_s10 + $0x140] sm:$0xff] %v445_v44  ;;  %448 = vst [vmem:[%s1679_s10 + $0x148] sm:$0xff] %v447_v45  ;;  %v449_v46 = vld [vmem:[%s1674_s27 + $0x2a0] sm:$0xff]  ;;  %v451_v47 = vld [vmem:[%s1674_s27 + $0x2b0] sm:$0xff] }
  0x4a   : > { %v453_v48 = vld [vmem:[%s1674_s27 + $0x2c0] sm:$0xff]  ;;  %450 = vst [vmem:[%s1679_s10 + $0x150] sm:$0xff] %v449_v46  ;;  %452 = vst [vmem:[%s1679_s10 + $0x158] sm:$0xff] %v451_v47  ;;  %v455_v49 = vld [vmem:[%s1674_s27 + $0x2d0] sm:$0xff] }
  0x4b   : > { %454 = vst [vmem:[%s1679_s10 + $0x160] sm:$0xff] %v453_v48  ;;  %v457_v50 = vld [vmem:[%s1674_s27 + $0x2e0] sm:$0xff]  ;;  %v459_v51 = vld [vmem:[%s1674_s27 + $0x2f0] sm:$0xff]  ;;  %456 = vst [vmem:[%s1679_s10 + $0x168] sm:$0xff] %v455_v49 }
  0x4c   : > { %458 = vst [vmem:[%s1679_s10 + $0x170] sm:$0xff] %v457_v50  ;;  %460 = vst [vmem:[%s1679_s10 + $0x178] sm:$0xff] %v459_v51 }
  0x4d PF: > { %p1206_p0 = scmp.ge.s32.totalorder %s1531_s25, 1  ;;  %p481_p1 = scmp.lt.s32.totalorder %s1531_s25, 13 }
  0x4f   : > { %p482_p2 = pnand %p1206_p0, %p481_p1 }
  0x50   : > { %s488_s0 = sand.u32 (!%p482_p2), 1, %s1507_s19   ;;  %s495_s28 = sand.u32 (!%p482_p2), 1, %s1499_s17  }
  0x51   : > { %485 = sbr.rel (%p482_p2) target bundleno = 390 (0x186), region = 92  ;;  %s528_s26 = sand.u32 (!%p482_p2), 1, %s1491_s15  }
  0x52   : > { %s1277_s11 = smul.u32 (!%p482_p2), 24, %s488_s0  ;;  %s1207_s5 = sshll.u32 (!%p482_p2), %s528_s26, 4 }
  0x53   : > { %s1278_s27 = smul.u32 (!%p482_p2), 384, %s495_s28  ;;  %s1208_s29 = sshll.u32 (!%p482_p2), %s1519_s22, 1 }
  0x54   : > { %p536_p3 = scmp.lt.s32.totalorder (!%p482_p2), %s1208_s29, 3  ;;  %s1790_s19 = scalar_lea.vmem (!%p482_p2), [#allocation3], %s1277_s11 }
  0x55   : > { %s1792_s17 = scalar_lea.vmem (!%p482_p2), [#allocation4], %s1278_s27  ;;  %s1794_s15 = scalar_lea.vmem (!%p482_p2), [#allocation5], %s1207_s5 }
  0x56   : > { %s1937_s29 = smov (!%p536_p3, %s1208_s29), 3  ;;  %p1210_p4 = scmp.ne.s32.totalorder %s1515_s21, 0 }
  0x57   : > { %s538_s9 = scalar_lea.vmem %s1904_s2, %s1937_s29  ;;  %s543_s1 = scalar_lea.vmem %s1905_s3, %s1937_s29 }
  0x58   : > { %551 = sbr.rel (%p1210_p4) target bundleno = 96 (0x60), region = 104 }
  0x5d   : > { %v1533_v52 = vmov 0.0  }
  0x5e   : > { %552 = vst [vmem:[#allocation2 + $0x10] sm:$0xff] %v1533_v52  ;;  %553 = vst [vmem:[#allocation2] sm:$0xff] %v1533_v52 }
  0x5f   : > { %554 = vst [vmem:[#allocation2 + $0x18] sm:$0xff] %v1533_v52  ;;  %555 = vst [vmem:[#allocation2 + $0x8] sm:$0xff] %v1533_v52 }
  0x60 PF: > { %v1369_v53 = vld [vmem:[%s1792_s17 + $0x74] ss:$8 sps:$4 sm:$0xff]   ;;  %v1371_v54 = vld [vmem:[%s1792_s17 + $0x70] ss:$8 sps:$4 sm:$0xff]   ;;  %v1534_v55 = vmov 0   ;;  %p1262_p5 = scmp.ne.s32.totalorder %s1515_s21, 5 }
  0x61   : > { %943 = vmatprep.mubr.bf16.mxu1 %v1534_v55  ;;  %868 = vmatprep.subr.bf16.mxu0 %v1369_v53  ;;  %v1372_v56 = vld [vmem:[%s1792_s17 + $0x64] ss:$8 sps:$4 sm:$0xff]   ;;  %v1374_v57 = vld [vmem:[%s1792_s17 + $0x60] ss:$8 sps:$4 sm:$0xff]   ;;  %v1375_v58 = vld [vmem:[%s1792_s17 + $0x54] ss:$8 sps:$4 sm:$0xff]  }
  0x62   : > { %869 = vmatpush1.bf16.msra.mxu0 %v1371_v54  ;;  %v1377_v59 = vld [vmem:[%s1792_s17 + $0x50] ss:$8 sps:$4 sm:$0xff]   ;;  %v1378_v60 = vld [vmem:[%s1792_s17 + $0x44] ss:$8 sps:$4 sm:$0xff]   ;;  %v1390_v61 = vld [vmem:[%s1792_s17 + $0x174] ss:$8 sps:$4 sm:$0xff]  }
  0x63   : > { %870 = vmatprep.subr.bf16.mxu0 %v1372_v56  ;;  %v1392_v62 = vld [vmem:[%s1792_s17 + $0x170] ss:$8 sps:$4 sm:$0xff]   ;;  %v1380_v63 = vld [vmem:[%s1792_s17 + $0x40] ss:$8 sps:$4 sm:$0xff]   ;;  %v1381_v0 = vld [vmem:[%s1792_s17 + $0x34] ss:$8 sps:$4 sm:$0xff]   ;;  %911 = vmatprep.subr.bf16.mxu1 %v1390_v61 }
  0x64   : > { %v1396_v1 = vld [vmem:[%s1792_s17 + $0x164] ss:$8 sps:$4 sm:$0xff]   ;;  %912 = vmatpush1.bf16.msra.mxu1 %v1392_v62  ;;  %v1398_v2 = vld [vmem:[%s1792_s17 + $0x160] ss:$8 sps:$4 sm:$0xff]   ;;  %v1383_v3 = vld [vmem:[%s1792_s17 + $0x30] ss:$8 sps:$4 sm:$0xff]  }
  0x65   : > { %913 = vmatprep.subr.bf16.mxu1 %v1396_v1  ;;  %v1402_v4 = vld [vmem:[%s1792_s17 + $0x154] ss:$8 sps:$4 sm:$0xff]   ;;  %v1384_v5 = vld [vmem:[%s1792_s17 + $0x24] ss:$8 sps:$4 sm:$0xff]   ;;  %v1404_v6 = vld [vmem:[%s1792_s17 + $0x150] ss:$8 sps:$4 sm:$0xff]  }
  0x66   : > { %871 = vmatpush1.bf16.msra.mxu0 %v1374_v57  ;;  %v1408_v7 = vld [vmem:[%s1792_s17 + $0x144] ss:$8 sps:$4 sm:$0xff]   ;;  %v1386_v8 = vld [vmem:[%s1792_s17 + $0x20] ss:$8 sps:$4 sm:$0xff]   ;;  %v1387_v9 = vld [vmem:[%s1792_s17 + $0x14] ss:$8 sps:$4 sm:$0xff]  }
  0x67   : > { %872 = vmatprep.subr.bf16.mxu0 %v1375_v58  ;;  %v1410_v10 = vld [vmem:[%s1792_s17 + $0x140] ss:$8 sps:$4 sm:$0xff]   ;;  %v1414_v11 = vld [vmem:[%s1792_s17 + $0x134] ss:$8 sps:$4 sm:$0xff]   ;;  %v1389_v12 = vld [vmem:[%s1792_s17 + $0x10] ss:$8 sps:$4 sm:$0xff]  }
  0x68   : > { %914 = vmatpush1.bf16.msra.mxu1 %v1398_v2  ;;  %v1393_v13 = vld [vmem:[%s1792_s17 + $0x4] ss:$8 sps:$4 sm:$0xff]   ;;  %v1416_v14 = vld [vmem:[%s1792_s17 + $0x130] ss:$8 sps:$4 sm:$0xff]   ;;  %v1395_v16 = vld [vmem:[%s1792_s17] ss:$8 sps:$4 sm:$0xff]  }
  0x69   : > { %915 = vmatprep.subr.bf16.mxu1 %v1402_v4  ;;  %v1420_v15 = vld [vmem:[%s1792_s17 + $0x124] ss:$8 sps:$4 sm:$0xff]   ;;  %v1399_v17 = vld [vmem:[%s1792_s17 + $0xf4] ss:$8 sps:$4 sm:$0xff]   ;;  %v1422_v18 = vld [vmem:[%s1792_s17 + $0x120] ss:$8 sps:$4 sm:$0xff]  }
  0x6a   : > { %873 = vmatpush1.bf16.msra.mxu0 %v1377_v59  ;;  %v1426_v19 = vld [vmem:[%s1792_s17 + $0x114] ss:$8 sps:$4 sm:$0xff]   ;;  %v1401_v20 = vld [vmem:[%s1792_s17 + $0xf0] ss:$8 sps:$4 sm:$0xff]   ;;  %v1405_v21 = vld [vmem:[%s1792_s17 + $0xe4] ss:$8 sps:$4 sm:$0xff]  }
  0x6b   : > { %874 = vmatprep.subr.bf16.mxu0 %v1378_v60  ;;  %v1428_v22 = vld [vmem:[%s1792_s17 + $0x110] ss:$8 sps:$4 sm:$0xff]   ;;  %v1432_v23 = vld [vmem:[%s1792_s17 + $0x104] ss:$8 sps:$4 sm:$0xff]   ;;  %v1407_v25 = vld [vmem:[%s1792_s17 + $0xe0] ss:$8 sps:$4 sm:$0xff]  }
  0x6c   : > { %916 = vmatpush1.bf16.msra.mxu1 %v1404_v6  ;;  %v1444_v24 = vld [vmem:[%s1790_s19 + $0x4] ss:$12 sps:$4 sm:$0xff]   ;;  %v1438_v30 = vld [vmem:[%s1790_s19 + $0x8] ss:$12 sps:$4 sm:$0xff]   ;;  %v1442_v40 = vld [vmem:[%s1790_s19] ss:$12 sps:$4 sm:$0xff]  }
  0x6d   : > { %917 = vmatprep.subr.bf16.mxu1 %v1408_v7  ;;  %v1411_v26 = vld [vmem:[%s1792_s17 + $0xd4] ss:$8 sps:$4 sm:$0xff]   ;;  %900 = vmatprep.mubr.bf16.mxu0 %v1444_v24  ;;  %v1434_v27 = vld [vmem:[%s1792_s17 + $0x100] ss:$8 sps:$4 sm:$0xff]   ;;  %v1413_v28 = vld [vmem:[%s1792_s17 + $0xd0] ss:$8 sps:$4 sm:$0xff]  }
  0x6e   : > { %875 = vmatpush1.bf16.msra.mxu0 %v1380_v63  ;;  %v1417_v29 = vld [vmem:[%s1792_s17 + $0xc4] ss:$8 sps:$4 sm:$0xff]   ;;  %v1419_v31 = vld [vmem:[%s1792_s17 + $0xc0] ss:$8 sps:$4 sm:$0xff]   ;;  %v1423_v32 = vld [vmem:[%s1792_s17 + $0xb4] ss:$8 sps:$4 sm:$0xff]  }
  0x6f   : > { %876 = vmatprep.subr.bf16.mxu0 %v1381_v0  ;;  %v1425_v33 = vld [vmem:[%s1792_s17 + $0xb0] ss:$8 sps:$4 sm:$0xff]   ;;  %v1429_v34 = vld [vmem:[%s1792_s17 + $0xa4] ss:$8 sps:$4 sm:$0xff]   ;;  %v1431_v35 = vld [vmem:[%s1792_s17 + $0xa0] ss:$8 sps:$4 sm:$0xff]  }
  0x70   : > { %918 = vmatpush1.bf16.msra.mxu1 %v1410_v10  ;;  %v1435_v36 = vld [vmem:[%s1792_s17 + $0x94] ss:$8 sps:$4 sm:$0xff]   ;;  %v1437_v37 = vld [vmem:[%s1792_s17 + $0x90] ss:$8 sps:$4 sm:$0xff]   ;;  %v1439_v38 = vld [vmem:[%s1792_s17 + $0x84] ss:$8 sps:$4 sm:$0xff]  }
  0x71   : > { %919 = vmatprep.subr.bf16.mxu1 %v1414_v11  ;;  %v1441_v39 = vld [vmem:[%s1792_s17 + $0x80] ss:$8 sps:$4 sm:$0xff]   ;;  %v557_v47 = vld [vmem:[#allocation2] sm:$0xff]  ;;  %v559_v56 = vld [vmem:[#allocation2 + $0x8] sm:$0xff] }
  0x72   : > { %877 = vmatpush1.bf16.msra.mxu0 %v1383_v3  ;;  %v556_v43 = vld [vmem:[#allocation2 + $0x10] sm:$0xff]  ;;  %v558_v51 = vld [vmem:[#allocation2 + $0x18] sm:$0xff] }
  0x73   : > { %878 = vmatprep.subr.bf16.mxu0 %v1384_v5 }
  0x74   : > { %920 = vmatpush1.bf16.msra.mxu1 %v1416_v14 }
  0x75   : > { %921 = vmatprep.subr.bf16.mxu1 %v1420_v15 }
  0x76   : > { %879 = vmatpush1.bf16.msra.mxu0 %v1386_v8 }
  0x77   : > { %880 = vmatprep.subr.bf16.mxu0 %v1387_v9 }
  0x78   : > { %922 = vmatpush1.bf16.msra.mxu1 %v1422_v18 }
  0x79   : > { %923 = vmatprep.subr.bf16.mxu1 %v1426_v19 }
  0x7a   : > { %881 = vmatpush1.bf16.msra.mxu0 %v1389_v12 }
  0x7b   : > { %882 = vmatprep.subr.bf16.mxu0 %v1393_v13 }
  0x7c   : > { %924 = vmatpush1.bf16.msra.mxu1 %v1428_v22 }
  0x7d   : > { %925 = vmatprep.subr.bf16.mxu1 %v1432_v23 }
  0x7e   : > { %883 = vmatpush1.bf16.msra.mxu0 %v1395_v16 }
  0x7f   : > { %884 = vmatprep.subr.bf16.mxu0 %v1399_v17 }
  0x80   : > { %926 = vmatpush1.bf16.msra.mxu1 %v1434_v27 }
  0x82   : > { %885 = vmatpush2.bf16.msra.mxu0 %v1401_v20 }
  0x83   : > { %886 = vmatprep.subr.bf16.mxu0 %v1405_v21  ;;  %944 = vmatmul.mubr.bf16.vlgmr.msra.gmra.mxu1 %v1438_v30 }
  0x86   : > { %887 = vmatpush2.bf16.msra.mxu0 %v1407_v25 }
  0x87   : > { %888 = vmatprep.subr.bf16.mxu0 %v1411_v26 }
  0x8a   : > { %889 = vmatpush2.bf16.msra.mxu0 %v1413_v28 }
  0x8b   : > { %890 = vmatprep.subr.bf16.mxu0 %v1417_v29 }
  0x8e   : > { %891 = vmatpush2.bf16.msra.mxu0 %v1419_v31 }
  0x8f   : > { %892 = vmatprep.subr.bf16.mxu0 %v1423_v32 }
  0x92   : > { %893 = vmatpush2.bf16.msra.mxu0 %v1425_v33 }
  0x93   : > { %894 = vmatprep.subr.bf16.mxu0 %v1429_v34 }
  0x96   : > { %895 = vmatpush2.bf16.msra.mxu0 %v1431_v35 }
  0x97   : > { %896 = vmatprep.subr.bf16.mxu0 %v1435_v36 }
  0x9a   : > { %897 = vmatpush2.bf16.msra.mxu0 %v1437_v37 }
  0x9b   : > { %898 = vmatprep.subr.bf16.mxu0 %v1439_v38 }
  0x9e   : > { %899 = vmatpush2.bf16.msra.mxu0 %v1441_v39 }
  0xa1   : > { %901 = vmatmul.mubr.bf16.vlgmr.msra.gmra.mxu0 %v1442_v40 }
 0x143   : > { %v945_v41 = vpop.f32.mrf.mxu1 }
 0x145   : > { %v947_v42 = vpop.f32.mrf.mxu1 }
 0x147   : > { %v949_v46 = vpop.f32.mrf.mxu1 }
 0x149   : > { %v951_v55 = vpop.f32.mrf.mxu1 }
 0x161   : > { %v902_v44 = vpop.f32.mrf.mxu0 }
 0x162   : > { %v946_v45 = vadd.f32 %v945_v41, %v902_v44 }
 0x163   : > { %v904_v48 = vpop.f32.mrf.mxu0 }
 0x164   : > { %v954_v49 = vadd.f32 %v946_v45, %v556_v43  ;;  %v948_v50 = vadd.f32 %v947_v42, %v904_v48 }
 0x165   : > { %v906_v52 = vpop.f32.mrf.mxu0 }
 0x166   : > { %958 = vst [vmem:[#allocation2 + $0x10] sm:$0xff] %v954_v49  ;;  %v955_v53 = vadd.f32 %v948_v50, %v557_v47  ;;  %v950_v54 = vadd.f32 %v949_v46, %v906_v52 }
 0x167   : > { %v908_v57 = vpop.f32.mrf.mxu0 }
 0x168   : > { %959 = vst [vmem:[#allocation2] sm:$0xff] %v955_v53  ;;  %v956_v58 = vadd.f32 %v950_v54, %v558_v51  ;;  %v952_v59 = vadd.f32 %v951_v55, %v908_v57  ;;  %965 = sbr.rel (%p1262_p5) target bundleno = 382 (0x17e), region = 108 }
 0x16a   : > { %960 = vst [vmem:[#allocation2 + $0x18] sm:$0xff] %v956_v58  ;;  %v957_v60 = vadd.f32 %v952_v59, %v559_v56 }
 0x16c   : > { %961 = vst [vmem:[#allocation2 + $0x8] sm:$0xff] %v957_v60 }
 0x16d   : > { %v972_v61 = vlaneseq  ;;  %v970_v63 = vld [vmem:[%s538_s9] sm:$0x3]  ;;  %v966_v1 = vld [vmem:[#allocation2 + $0x10] sm:$0xff] }
 0x16e   : > { %v986_v0 = vld [vmem:[%s543_s1] sm:$0x3] }
 0x16f   : > { %v973_v62 = vshrl.u32 %v972_v61, 7  ;;  %v967_v4 = vld [vmem:[#allocation2] sm:$0xff] }
 0x171   : > { %v974_v2 = vsub.s32 0, %v973_v62  ;;  %v978_v3 = vsub.s32 1, %v973_v62  ;;  %v968_v5 = vld [vmem:[#allocation2 + $0x18] sm:$0xff] }
 0x173   : > { %v969_v6 = vld [vmem:[#allocation2 + $0x8] sm:$0xff]  ;;  %v975_v7 = vrot.slane %v970_v63, %v974_v2  ;;  %v979_v8 = vrot.slane %v970_v63, %v978_v3  ;;  %v995_v9 = vrot.slane %v986_v0, %v974_v2  ;;  %v999_v10 = vrot.slane %v986_v0, %v978_v3 }
 0x175   : > { %v982_v11 = vadd.f32 %v975_v7, %v966_v1  ;;  %v983_v12 = vadd.f32 %v979_v8, %v967_v4  ;;  %v984_v13 = vadd.f32 %v975_v7, %v968_v5  ;;  %v985_v14 = vadd.f32 %v979_v8, %v969_v6 }
 0x177   : > { %vm987_vm0 = vcmp.ge.f32.partialorder %v982_v11, 0.0  ;;  %vm988_vm1 = vcmp.ge.f32.partialorder %v983_v12, 0.0  ;;  %v1002_v15 = vmul.f32 %v995_v9, %v982_v11  ;;  %v1003_v16 = vmul.f32 %v999_v10, %v983_v12 }
 0x178   : > { %vm989_vm2 = vcmp.ge.f32.partialorder %v984_v13, 0.0  ;;  %vm990_vm3 = vcmp.ge.f32.partialorder %v985_v14, 0.0  ;;  %v1004_v17 = vmul.f32 %v995_v9, %v984_v13  ;;  %v1005_v18 = vmul.f32 %v999_v10, %v985_v14 }
 0x179   : > { %v1006_v19 = vsel %vm987_vm0, %v982_v11, %v1002_v15  ;;  %v1007_v20 = vsel %vm988_vm1, %v983_v12, %v1003_v16 }
 0x17a   : > { %v1272_v21 = vpack.c.bf16 %v1007_v20, %v1006_v19  ;;  %v1008_v22 = vsel %vm989_vm2, %v984_v13, %v1004_v17  ;;  %v1009_v23 = vsel %vm990_vm3, %v985_v14, %v1005_v18 }
 0x17b   : > { %v1273_v24 = vpack.c.bf16 %v1009_v23, %v1008_v22 }
 0x17c   : > { %1022 = vst [vmem:[%s1794_s15] sm:$0xff] %v1272_v21 }
 0x17d   : > { %1023 = vst [vmem:[%s1794_s15 + $0x8] sm:$0xff] %v1273_v24 }
 0x17e PF: > { %1030 = sbr.rel (!%p1654_p12) target bundleno = 390 (0x186), region = 112  ;;  %s1274_s1 = sshll.u32 (%p1654_p12), %s1519_s22, 3 }
 0x17f   : > { %s1036_s5 = scalar_lea.vmem (%p1654_p12), %s1906_s4, %s1274_s1 }
 0x183   : > { %v1067_v25 = vld [vmem:[%s1794_s15] sm:$0xff] }
 0x184   : > { %v1069_v26 = vld [vmem:[%s1794_s15 + $0x8] sm:$0xff]  ;;  %1068 = vst [vmem:[%s1036_s5] sm:$0xff] %v1067_v25 }
 0x185   : > { %1070 = vst [vmem:[%s1036_s5 + $0x10] sm:$0xff] %v1069_v26 }
 0x186 PF: > { %s14_s25 = sadd.s32 1, %s1531_s25   ;;  %s1918_s14 = sld [smem:[#allocation6_spill]] }
 0x187   : > { %p11_p6 = scmp.ge.s32.totalorder %s14_s25, 14   ;;  %s1919_s29 = sld [smem:[#allocation7_spill]] }
 0x188   : > { %s1920_s15 = smov %s1495_s16  ;;  %s1921_s16 = smov %s1652_s13 }
 0x189   : > { %s1922_s17 = smov %s1503_s18  ;;  %s1923_s18 = smov %s1649_s12 }
 0x18a   : > { %s1924_s19 = smov %s1511_s20  ;;  %s1925_s20 = smov %s1635_s7 }
 0x18b   : > { %s1926_s21 = smov %s1523_s23  ;;  %s1927_s22 = smov %s1527_s24 }
 0x18c   : > { %s1928_s23 = smov %s1918_s14  ;;  %13 = sbr.rel (!%p11_p6) target bundleno = 9 (0x9), region = 201 }
 0x18d   : > { %s1929_s24 = smov %s1919_s29 }

// kernel: iresnet_forward.23
= control target key start
LH: loop header
LB: loop body
LE: loop exit
PB: predicated region body
PF: predicated region fallthrough
CT: control target
= control target key end

     0   :  { %s1081_s12 = smov 0   ;;  %s1083_s13 = smov 0   ;;  %s1269_s0 = inlined_call_operand.vmem [shape: bf16[16,256], index: 0, kind: input, shape index: {}]   ;;  %s1270_s1 = inlined_call_operand.vmem [shape: bf16[256,512], index: 1, kind: input, shape index: {}]   ;;  %s1271_s2 = inlined_call_operand.vmem [shape: f32[1,512], index: 2, kind: input, shape index: {}]   ;;  %s1272_s3 = inlined_call_operand.vmem [shape: bf16[16,512], index: 3, kind: output, shape index: {}]  }
   0x1   :  { %s1085_s14 = smov 0   ;;  %s1087_s15 = smov 0  }
   0x2   :  { %s1089_s16 = smov 0  }
   0x3 LB: > { %s28_s17 = sadd.s32 1, %s1055_s15  ;;  %s873_s18 = sadd.s32 4294967295, %s1059_s16   ;;  %s1059_s16 = sphi %s1089_s16, %s13_s16   ;;  %s1055_s15 = sphi %s1087_s15, %s1277_s15   ;;  %s1051_s14 = sphi %s1085_s14, %s1276_s14   ;;  %s1047_s13 = sphi %s1083_s13, %s1275_s13   ;;  %s1043_s12 = sphi %s1081_s12, %s1274_s12  }
   0x4   : > { %p30_p0 = scmp.ge.s32.totalorder %s28_s17, 2  ;;  %p76_p1 = scmp.ne.s32.totalorder %s1047_s13, %s1043_s12 }
   0x5   : > { %p77_p2 = scmp.eq.s32.totalorder %s1059_s16, 0  ;;  %p134_p4 = scmp.eq.s32.totalorder %s873_s18, 1 }
   0x6   : > { %s1279_s17 = smov (%p30_p0, %s28_s17), 0  ;;  %s69_s20 = sadd.s32 1, %s1047_s13 }
   0x7   : > { %p78_p3 = por %p77_p2, %p76_p1  ;;  %s65_s19 = ssub.s32 %s1055_s15, %s1279_s17 }
   0x8   : > { %p67_p5 = scmp.eq.s32.totalorder %s65_s19, 0  ;;  %p1116_p6 = por %p134_p4, %p76_p1 }
   0x9   : > { %p877_p7 = scmp.ge.s32.totalorder %s1059_s16, 2 }
   0xa   : > { %s1121_s22 = scalar_select %p67_p5, %s1047_s13, %s69_s20  }
   0xb   : > { %171 = sbr.rel (%p877_p7) target bundleno = 36 (0x24), region = 20 }
  0x10   : > { %174 = sbr.rel (!%p78_p3) target bundleno = 36 (0x24), region = 24  ;;  %s176_s23 = sand.u32 (%p78_p3), 1, %s1047_s13  }
  0x11   : > { %s926_s24 = sshll.u32 (%p78_p3), %s1055_s15, 3  ;;  %s878_s25 = sshll.u32 (%p78_p3), %s176_s23, 8 }
  0x12   : > { %s1129_s28 = scalar_lea.vmem (%p78_p3), %s1270_s1, %s926_s24  ;;  %s1134_s29 = scalar_lea.vmem (%p78_p3), [#allocation3], %s878_s25 }
  0x13   : > { %v275_v0 = vld [vmem:[%s1129_s28] sm:$0xff] (%p78_p3)  ;;  %v277_v1 = vld [vmem:[%s1129_s28 + $0x10] sm:$0xff] (%p78_p3) }
  0x14   : > { %v279_v2 = vld [vmem:[%s1129_s28 + $0x20] sm:$0xff] (%p78_p3)  ;;  %276 = vst [vmem:[%s1134_s29] sm:$0xff] (%p78_p3), %v275_v0  ;;  %278 = vst [vmem:[%s1134_s29 + $0x8] sm:$0xff] (%p78_p3), %v277_v1  ;;  %v281_v3 = vld [vmem:[%s1129_s28 + $0x30] sm:$0xff] (%p78_p3) }
  0x15   : > { %280 = vst [vmem:[%s1134_s29 + $0x10] sm:$0xff] %v279_v2  ;;  %v283_v4 = vld [vmem:[%s1129_s28 + $0x40] sm:$0xff]  ;;  %v285_v5 = vld [vmem:[%s1129_s28 + $0x50] sm:$0xff]  ;;  %282 = vst [vmem:[%s1134_s29 + $0x18] sm:$0xff] %v281_v3 }
  0x16   : > { %284 = vst [vmem:[%s1134_s29 + $0x20] sm:$0xff] %v283_v4  ;;  %286 = vst [vmem:[%s1134_s29 + $0x28] sm:$0xff] %v285_v5  ;;  %v287_v6 = vld [vmem:[%s1129_s28 + $0x60] sm:$0xff]  ;;  %v289_v7 = vld [vmem:[%s1129_s28 + $0x70] sm:$0xff] }
  0x17   : > { %v291_v8 = vld [vmem:[%s1129_s28 + $0x80] sm:$0xff]  ;;  %288 = vst [vmem:[%s1134_s29 + $0x30] sm:$0xff] %v287_v6  ;;  %290 = vst [vmem:[%s1134_s29 + $0x38] sm:$0xff] %v289_v7  ;;  %v293_v9 = vld [vmem:[%s1129_s28 + $0x90] sm:$0xff] }
  0x18   : > { %292 = vst [vmem:[%s1134_s29 + $0x40] sm:$0xff] %v291_v8  ;;  %v295_v10 = vld [vmem:[%s1129_s28 + $0xa0] sm:$0xff]  ;;  %v297_v11 = vld [vmem:[%s1129_s28 + $0xb0] sm:$0xff]  ;;  %294 = vst [vmem:[%s1134_s29 + $0x48] sm:$0xff] %v293_v9 }
  0x19   : > { %296 = vst [vmem:[%s1134_s29 + $0x50] sm:$0xff] %v295_v10  ;;  %298 = vst [vmem:[%s1134_s29 + $0x58] sm:$0xff] %v297_v11  ;;  %v299_v12 = vld [vmem:[%s1129_s28 + $0xc0] sm:$0xff]  ;;  %v301_v13 = vld [vmem:[%s1129_s28 + $0xd0] sm:$0xff] }
  0x1a   : > { %v303_v14 = vld [vmem:[%s1129_s28 + $0xe0] sm:$0xff]  ;;  %300 = vst [vmem:[%s1134_s29 + $0x60] sm:$0xff] %v299_v12  ;;  %302 = vst [vmem:[%s1134_s29 + $0x68] sm:$0xff] %v301_v13  ;;  %v305_v15 = vld [vmem:[%s1129_s28 + $0xf0] sm:$0xff] }
  0x1b   : > { %304 = vst [vmem:[%s1134_s29 + $0x70] sm:$0xff] %v303_v14  ;;  %v307_v16 = vld [vmem:[%s1129_s28 + $0x100] sm:$0xff]  ;;  %v309_v17 = vld [vmem:[%s1129_s28 + $0x110] sm:$0xff]  ;;  %306 = vst [vmem:[%s1134_s29 + $0x78] sm:$0xff] %v305_v15 }
  0x1c   : > { %308 = vst [vmem:[%s1134_s29 + $0x80] sm:$0xff] %v307_v16  ;;  %310 = vst [vmem:[%s1134_s29 + $0x88] sm:$0xff] %v309_v17  ;;  %v311_v18 = vld [vmem:[%s1129_s28 + $0x120] sm:$0xff]  ;;  %v313_v19 = vld [vmem:[%s1129_s28 + $0x130] sm:$0xff] }
  0x1d   : > { %v315_v20 = vld [vmem:[%s1129_s28 + $0x140] sm:$0xff]  ;;  %312 = vst [vmem:[%s1134_s29 + $0x90] sm:$0xff] %v311_v18  ;;  %314 = vst [vmem:[%s1134_s29 + $0x98] sm:$0xff] %v313_v19  ;;  %v317_v21 = vld [vmem:[%s1129_s28 + $0x150] sm:$0xff] }
  0x1e   : > { %316 = vst [vmem:[%s1134_s29 + $0xa0] sm:$0xff] %v315_v20  ;;  %v319_v22 = vld [vmem:[%s1129_s28 + $0x160] sm:$0xff]  ;;  %v321_v23 = vld [vmem:[%s1129_s28 + $0x170] sm:$0xff]  ;;  %318 = vst [vmem:[%s1134_s29 + $0xa8] sm:$0xff] %v317_v21 }
  0x1f   : > { %320 = vst [vmem:[%s1134_s29 + $0xb0] sm:$0xff] %v319_v22  ;;  %322 = vst [vmem:[%s1134_s29 + $0xb8] sm:$0xff] %v321_v23  ;;  %v323_v24 = vld [vmem:[%s1129_s28 + $0x180] sm:$0xff]  ;;  %v325_v25 = vld [vmem:[%s1129_s28 + $0x190] sm:$0xff] }
  0x20   : > { %v327_v26 = vld [vmem:[%s1129_s28 + $0x1a0] sm:$0xff]  ;;  %324 = vst [vmem:[%s1134_s29 + $0xc0] sm:$0xff] %v323_v24  ;;  %326 = vst [vmem:[%s1134_s29 + $0xc8] sm:$0xff] %v325_v25  ;;  %v329_v27 = vld [vmem:[%s1129_s28 + $0x1b0] sm:$0xff] }
  0x21   : > { %328 = vst [vmem:[%s1134_s29 + $0xd0] sm:$0xff] %v327_v26  ;;  %v331_v28 = vld [vmem:[%s1129_s28 + $0x1c0] sm:$0xff]  ;;  %v333_v29 = vld [vmem:[%s1129_s28 + $0x1d0] sm:$0xff]  ;;  %330 = vst [vmem:[%s1134_s29 + $0xd8] sm:$0xff] %v329_v27 }
  0x22   : > { %332 = vst [vmem:[%s1134_s29 + $0xe0] sm:$0xff] %v331_v28  ;;  %334 = vst [vmem:[%s1134_s29 + $0xe8] sm:$0xff] %v333_v29  ;;  %v335_v30 = vld [vmem:[%s1129_s28 + $0x1e0] sm:$0xff]  ;;  %v337_v31 = vld [vmem:[%s1129_s28 + $0x1f0] sm:$0xff] }
  0x23   : > { %336 = vst [vmem:[%s1134_s29 + $0xf0] sm:$0xff] %v335_v30  ;;  %338 = vst [vmem:[%s1134_s29 + $0xf8] sm:$0xff] %v337_v31 }
  0x24 PF: > { %p881_p8 = scmp.ge.s32.totalorder %s1059_s16, 1  ;;  %p351_p9 = scmp.lt.s32.totalorder %s1059_s16, 3 }
  0x26   : > { %p352_p10 = pnand %p881_p8, %p351_p9 }
  0x27   : > { %s358_s30 = sand.u32 (!%p352_p10), 1, %s1043_s12   ;;  %s884_s10 = sshll.u32 (!%p352_p10), %s1051_s14, 1 }
  0x28   : > { %355 = sbr.rel (%p352_p10) target bundleno = 322 (0x142), region = 66  ;;  %s882_s4 = sshll.u32 (!%p352_p10), %s358_s30, 8 }
  0x29   : > { %s1205_s7 = scalar_lea.vmem (!%p352_p10), [#allocation3], %s882_s4  ;;  %p409_p11 = scmp.lt.s32.totalorder (!%p352_p10), %s884_s10, 3 }
  0x2a   : > { %s883_s20 = sshll.u32 (!%p352_p10), %s358_s30, 4 }
  0x2b   : > { %s393_s23 = scalar_lea.vmem (!%p352_p10), [#allocation4], %s883_s20 }
  0x2d   : > { %v1020_v32 = vld [vmem:[%s1269_s0 + $0x4] ss:$8 sps:$4 sm:$0xff]   ;;  %v970_v33 = vld [vmem:[%s1205_s7 + $0x74] ss:$8 sps:$4 sm:$0xff]   ;;  %v972_v34 = vld [vmem:[%s1205_s7 + $0x70] ss:$8 sps:$4 sm:$0xff]   ;;  %v691_v2 = vlaneseq }
  0x2e   : > { %663 = vmatprep.mubr.bf16.mxu0 %v1020_v32  ;;  %631 = vmatprep.subr.bf16.mxu0 %v970_v33  ;;  %v973_v35 = vld [vmem:[%s1205_s7 + $0x64] ss:$8 sps:$4 sm:$0xff]   ;;  %v975_v36 = vld [vmem:[%s1205_s7 + $0x60] ss:$8 sps:$4 sm:$0xff]   ;;  %v976_v37 = vld [vmem:[%s1205_s7 + $0x54] ss:$8 sps:$4 sm:$0xff]  }
  0x2f   : > { %632 = vmatpush1.bf16.msra.mxu0 %v972_v34  ;;  %v978_v38 = vld [vmem:[%s1205_s7 + $0x50] ss:$8 sps:$4 sm:$0xff]   ;;  %v979_v39 = vld [vmem:[%s1205_s7 + $0x44] ss:$8 sps:$4 sm:$0xff]   ;;  %v981_v40 = vld [vmem:[%s1205_s7 + $0x40] ss:$8 sps:$4 sm:$0xff]  }
  0x30   : > { %633 = vmatprep.subr.bf16.mxu0 %v973_v35  ;;  %v982_v41 = vld [vmem:[%s1205_s7 + $0x34] ss:$8 sps:$4 sm:$0xff]   ;;  %v984_v42 = vld [vmem:[%s1205_s7 + $0x30] ss:$8 sps:$4 sm:$0xff]   ;;  %v985_v43 = vld [vmem:[%s1205_s7 + $0x24] ss:$8 sps:$4 sm:$0xff]  }
  0x31   : > { %v987_v44 = vld [vmem:[%s1205_s7 + $0x20] ss:$8 sps:$4 sm:$0xff]   ;;  %v988_v45 = vld [vmem:[%s1205_s7 + $0x14] ss:$8 sps:$4 sm:$0xff]   ;;  %v990_v46 = vld [vmem:[%s1205_s7 + $0x10] ss:$8 sps:$4 sm:$0xff]  }
  0x32   : > { %v991_v47 = vld [vmem:[%s1205_s7 + $0x4] ss:$8 sps:$4 sm:$0xff]   ;;  %v993_v48 = vld [vmem:[%s1205_s7] ss:$8 sps:$4 sm:$0xff]   ;;  %v994_v49 = vld [vmem:[%s1205_s7 + $0xf4] ss:$8 sps:$4 sm:$0xff]  }
  0x33   : > { %634 = vmatpush1.bf16.msra.mxu0 %v975_v36  ;;  %v996_v50 = vld [vmem:[%s1205_s7 + $0xf0] ss:$8 sps:$4 sm:$0xff]   ;;  %v997_v51 = vld [vmem:[%s1205_s7 + $0xe4] ss:$8 sps:$4 sm:$0xff]   ;;  %v999_v52 = vld [vmem:[%s1205_s7 + $0xe0] ss:$8 sps:$4 sm:$0xff]  }
  0x34   : > { %635 = vmatprep.subr.bf16.mxu0 %v976_v37  ;;  %v1000_v53 = vld [vmem:[%s1205_s7 + $0xd4] ss:$8 sps:$4 sm:$0xff]   ;;  %v1002_v54 = vld [vmem:[%s1205_s7 + $0xd0] ss:$8 sps:$4 sm:$0xff]   ;;  %v1003_v55 = vld [vmem:[%s1205_s7 + $0xc4] ss:$8 sps:$4 sm:$0xff]  }
  0x35   : > { %v1005_v56 = vld [vmem:[%s1205_s7 + $0xc0] ss:$8 sps:$4 sm:$0xff]   ;;  %v1006_v57 = vld [vmem:[%s1205_s7 + $0xb4] ss:$8 sps:$4 sm:$0xff]   ;;  %v1008_v58 = vld [vmem:[%s1205_s7 + $0xb0] ss:$8 sps:$4 sm:$0xff]  }
  0x36   : > { %v1009_v59 = vld [vmem:[%s1205_s7 + $0xa4] ss:$8 sps:$4 sm:$0xff]   ;;  %v1011_v60 = vld [vmem:[%s1205_s7 + $0xa0] ss:$8 sps:$4 sm:$0xff]   ;;  %v1012_v61 = vld [vmem:[%s1205_s7 + $0x94] ss:$8 sps:$4 sm:$0xff]  }
  0x37   : > { %636 = vmatpush1.bf16.msra.mxu0 %v978_v38  ;;  %v1014_v62 = vld [vmem:[%s1205_s7 + $0x90] ss:$8 sps:$4 sm:$0xff]   ;;  %v1015_v63 = vld [vmem:[%s1205_s7 + $0x84] ss:$8 sps:$4 sm:$0xff]   ;;  %v1017_v0 = vld [vmem:[%s1205_s7 + $0x80] ss:$8 sps:$4 sm:$0xff]  }
  0x38   : > { %637 = vmatprep.subr.bf16.mxu0 %v979_v39  ;;  %v1018_v1 = vld [vmem:[%s1269_s0] ss:$8 sps:$4 sm:$0xff]   ;;  %s1281_s10 = smov (!%p409_p11, %s884_s10), 3  ;;  %v692_v3 = vshrl.u32 %v691_v2, 7  ;;  %s929_s24 = sshll.u32 (%p1116_p6), %s1051_s14, 3 }
  0x39   : > { %s411_s19 = scalar_lea.vmem %s1271_s2, %s1281_s10  ;;  %s731_s26 = scalar_lea.vmem (%p1116_p6), %s1272_s3, %s929_s24 }
  0x3a   : > { %v693_v4 = vsub.s32 0, %v692_v3  ;;  %v697_v5 = vsub.s32 1, %v692_v3  ;;  %v689_v6 = vld [vmem:[%s411_s19] sm:$0x3] }
  0x3b   : > { %638 = vmatpush1.bf16.msra.mxu0 %v981_v40 }
  0x3c   : > { %639 = vmatprep.subr.bf16.mxu0 %v982_v41  ;;  %v694_v7 = vrot.slane %v689_v6, %v693_v4  ;;  %v698_v8 = vrot.slane %v689_v6, %v697_v5 }
  0x3f   : > { %640 = vmatpush1.bf16.msra.mxu0 %v984_v42 }
  0x40   : > { %641 = vmatprep.subr.bf16.mxu0 %v985_v43 }
  0x43   : > { %642 = vmatpush1.bf16.msra.mxu0 %v987_v44 }
  0x44   : > { %643 = vmatprep.subr.bf16.mxu0 %v988_v45 }
  0x47   : > { %644 = vmatpush1.bf16.msra.mxu0 %v990_v46 }
  0x48   : > { %645 = vmatprep.subr.bf16.mxu0 %v991_v47 }
  0x4b   : > { %646 = vmatpush1.bf16.msra.mxu0 %v993_v48 }
  0x4c   : > { %647 = vmatprep.subr.bf16.mxu0 %v994_v49 }
  0x4f   : > { %648 = vmatpush2.bf16.msra.mxu0 %v996_v50 }
  0x50   : > { %649 = vmatprep.subr.bf16.mxu0 %v997_v51 }
  0x53   : > { %650 = vmatpush2.bf16.msra.mxu0 %v999_v52 }
  0x54   : > { %651 = vmatprep.subr.bf16.mxu0 %v1000_v53 }
  0x57   : > { %652 = vmatpush2.bf16.msra.mxu0 %v1002_v54 }
  0x58   : > { %653 = vmatprep.subr.bf16.mxu0 %v1003_v55 }
  0x5b   : > { %654 = vmatpush2.bf16.msra.mxu0 %v1005_v56 }
  0x5c   : > { %655 = vmatprep.subr.bf16.mxu0 %v1006_v57 }
  0x5f   : > { %656 = vmatpush2.bf16.msra.mxu0 %v1008_v58 }
  0x60   : > { %657 = vmatprep.subr.bf16.mxu0 %v1009_v59 }
  0x63   : > { %658 = vmatpush2.bf16.msra.mxu0 %v1011_v60 }
  0x64   : > { %659 = vmatprep.subr.bf16.mxu0 %v1012_v61 }
  0x67   : > { %660 = vmatpush2.bf16.msra.mxu0 %v1014_v62 }
  0x68   : > { %661 = vmatprep.subr.bf16.mxu0 %v1015_v63 }
  0x6b   : > { %662 = vmatpush2.bf16.msra.mxu0 %v1017_v0 }
  0x6e   : > { %664 = vmatmul.mubr.bf16.vlgmr.msra.gmra.mxu0 %v1018_v1 }
 0x12e   : > { %v665_v9 = vpop.f32.mrf.mxu0 }
 0x12f   : > { %v701_v11 = vadd.f32 %v694_v7, %v665_v9 }
 0x130   : > { %v667_v10 = vpop.f32.mrf.mxu0 }
 0x131   : > { %v702_v12 = vadd.f32 %v698_v8, %v667_v10 }
 0x132   : > { %v669_v13 = vpop.f32.mrf.mxu0 }
 0x133   : > { %v927_v14 = vpack.c.bf16 %v702_v12, %v701_v11  ;;  %v703_v16 = vadd.f32 %v694_v7, %v669_v13 }
 0x134   : > { %v671_v15 = vpop.f32.mrf.mxu0 }
 0x135   : > { %717 = vst [vmem:[%s393_s23] sm:$0xff] %v927_v14  ;;  %v704_v17 = vadd.f32 %v698_v8, %v671_v15  ;;  %725 = sbr.rel (!%p1116_p6) target bundleno = 322 (0x142), region = 82 }
 0x137   : > { %v928_v18 = vpack.c.bf16 %v704_v17, %v703_v16 }
 0x139   : > { %718 = vst [vmem:[%s393_s23 + $0x8] sm:$0xff] %v928_v18 }
 0x13c   : > { %v762_v19 = vld [vmem:[%s393_s23] sm:$0xff] }
 0x13d   : > { %763 = vst [vmem:[%s731_s26] sm:$0xff] %v762_v19 }
 0x140   : > { %v764_v20 = vld [vmem:[%s393_s23 + $0x8] sm:$0xff] }
 0x141   : > { %765 = vst [vmem:[%s731_s26 + $0x10] sm:$0xff] %v764_v20 }
 0x142 PF: > { %s13_s16 = sadd.s32 1, %s1059_s16   ;;  %s1274_s12 = smov %s1047_s13 }
 0x143   : > { %p10_p12 = scmp.ge.s32.totalorder %s13_s16, 4   ;;  %s1275_s13 = smov %s1121_s22 }
 0x144   : > { %s1276_s14 = smov %s1055_s15  ;;  %s1277_s15 = smov %s1279_s17 }
 0x145   :  { %12 = sbr.rel (!%p10_p12) target bundleno = 3 (0x3), region = 157 }

// kernel: iresnet_forward.25
= control target key start
LH: loop header
LB: loop body
LE: loop exit
PB: predicated region body
PF: predicated region fallthrough
CT: control target
= control target key end

     0   :  { %s2205_s0 = inlined_call_operand.vmem [shape: bf16[16,4608], index: 0, kind: input, shape index: {}]   ;;  %s2206_s1 = inlined_call_operand.vmem [shape: bf16[4608,512], index: 1, kind: input, shape index: {}]   ;;  %s2207_s2 = inlined_call_operand.vmem [shape: f32[1,512], index: 2, kind: input, shape index: {}]   ;;  %s2208_s3 = inlined_call_operand.vmem [shape: bf16[16,512], index: 3, kind: input, shape index: {}]   ;;  %s2209_s4 = inlined_call_operand.vmem [shape: bf16[16,512], index: 4, kind: output, shape index: {}]  }
   0x1   :  { %2212 = sst [smem:[#allocation10_spill]] %s2205_s0 }
   0x2   :  { %s1798_s15 = smov 0   ;;  %s1800_s16 = smov 0  }
   0x3   :  { %s1802_s17 = smov 0   ;;  %s1804_s18 = smov 0  }
   0x4   :  { %s1806_s19 = smov 0   ;;  %s1808_s20 = smov 0  }
   0x5   :  { %s1810_s21 = smov 0   ;;  %s1812_s22 = smov 0  }
   0x6   :  { %s1814_s23 = smov 0   ;;  %s1816_s24 = smov 0  }
   0x7   :  { %s1818_s25 = smov 0  }
   0x8 LB: > { %s1389_s26 = sadd.s32 4294967295, %s1770_s25   ;;  %s26_s27 = sadd.s32 1, %s1762_s23  ;;  %s1770_s25 = sphi %s1818_s25, %s14_s25   ;;  %s1766_s24 = sphi %s1816_s24, %s2233_s24   ;;  %s1762_s23 = sphi %s1814_s23, %s2232_s23   ;;  %s1758_s22 = sphi %s1812_s22, %s2231_s22   ;;  %s1754_s21 = sphi %s1810_s21, %s2230_s21   ;;  %s1750_s20 = sphi %s1808_s20, %s2229_s20   ;;  %s1746_s19 = sphi %s1806_s19, %s2228_s19   ;;  %s1742_s18 = sphi %s1804_s18, %s2227_s18   ;;  %s1738_s17 = sphi %s1802_s17, %s2226_s17   ;;  %s1734_s16 = sphi %s1800_s16, %s2225_s16   ;;  %s1730_s15 = sphi %s1798_s15, %s2224_s15  }
   0x9   : > { %p27_p0 = scmp.ge.s32.totalorder %s26_s27, 9  ;;  %s29_s28 = sadd.s32 1, %s1766_s24 }
   0xa   : > { %s42_s29 = sadd.s32 1, %s1750_s20  ;;  %p49_p1 = scmp.ne.s32.totalorder %s1750_s20, %s1746_s19 }
   0xb   : > { %s2235_s27 = smov (%p27_p0, %s26_s27), 0  ;;  %s2237_s28 = smov (!%p27_p0, %s29_s28), %s1766_s24 }
   0xc   : > { %2213 = sst [smem:[#allocation7_spill]] %s2235_s27  ;;  %s38_s30 = ssub.s32 %s1762_s23, %s2235_s27 }
   0xd   : > { %p50_p2 = scmp.eq.s32.totalorder %s1770_s25, 0  ;;  %p31_p3 = scmp.ge.s32.totalorder %s2237_s28, 2 }
   0xe   : > { %p40_p4 = scmp.eq.s32.totalorder %s38_s30, 0  ;;  %s70_s6 = sadd.s32 1, %s1742_s18 }
   0xf   : > { %p1867_p5 = por %p50_p2, %p49_p1  ;;  %s2239_s28 = smov (%p31_p3, %s2237_s28), 0 }
  0x10   : > { %2215 = sst [smem:[#allocation8_spill]] %s2239_s28  ;;  %s66_s8 = ssub.s32 %s1766_s24, %s2239_s28 }
  0x11   : > { %s1875_s7 = scalar_select %p40_p4, %s1750_s20, %s42_s29  }
  0x12   : > { %p77_p6 = scmp.ne.s32.totalorder %s1742_s18, %s1738_s17  ;;  %s67_s9 = sor.u32 %s66_s8, %s38_s30 }
  0x13   : > { %2216 = sst [smem:[#allocation9_spill]] %s1875_s7  ;;  %p122_p7 = scmp.eq.s32.totalorder %s66_s8, 0 }
  0x14   : > { %p68_p8 = scmp.eq.s32.totalorder %s67_s9, 0  ;;  %p1883_p9 = por %p77_p6, %p50_p2 }
  0x15   : > { %s124_s11 = sadd.s32 1, %s1734_s16  ;;  %p131_p10 = scmp.ne.s32.totalorder %s1734_s16, %s1730_s15 }
  0x16   : > { %s1891_s12 = scalar_select %p68_p8, %s1742_s18, %s70_s6  }
  0x17   : > { %s1894_s13 = scalar_select %p122_p7, %s1734_s16, %s124_s11  }
  0x18   : > { %p1898_p11 = por %p131_p10, %p50_p2  ;;  %p163_p12 = scmp.eq.s32.totalorder %s1389_s26, 17 }
  0x19   : > { %p1392_p0 = scmp.ge.s32.totalorder %s1770_s25, 18 }
  0x1a   : > { %p1902_p13 = por %p163_p12, %p131_p10 }
  0x1b   : > { %185 = sbr.rel (%p1392_p0) target bundleno = 88 (0x58), region = 16 }
  0x20   : > { %188 = sbr.rel (!%p1867_p5) target bundleno = 44 (0x2c), region = 20  ;;  %s190_s30 = sand.u32 (%p1867_p5), 1, %s1750_s20  }
  0x21   : > { %s1487_s6 = sshll.u32 (%p1867_p5), %s1762_s23, 4  ;;  %s1393_s8 = sshll.u32 (%p1867_p5), %s190_s30, 5 }
  0x22   : > { %s2220_s0 = sld [smem:[#allocation10_spill]] (%p1867_p5)  ;;  %s192_s26 = scalar_lea.vmem (%p1867_p5), [#allocation3], %s1393_s8 }
  0x28   : > { %s198_s28 = scalar_lea.vmem %s2220_s0, %s1487_s6 }
  0x29   : > { %v211_v0 = vld [vmem:[%s198_s28] sm:$0xff]  ;;  %v213_v1 = vld [vmem:[%s198_s28 + $0x8] sm:$0xff]  ;;  %v215_v2 = vld [vmem:[%s198_s28 + $0x90] sm:$0xff] }
  0x2a   : > { %212 = vst [vmem:[%s192_s26] sm:$0xff] %v211_v0  ;;  %214 = vst [vmem:[%s192_s26 + $0x8] sm:$0xff] %v213_v1  ;;  %v217_v3 = vld [vmem:[%s198_s28 + $0x98] sm:$0xff] }
  0x2b   : > { %216 = vst [vmem:[%s192_s26 + $0x10] sm:$0xff] %v215_v2  ;;  %218 = vst [vmem:[%s192_s26 + $0x18] sm:$0xff] %v217_v3 }
  0x2c PF: > { %224 = sbr.rel (!%p1883_p9) target bundleno = 83 (0x53), region = 43  ;;  %s226_s5 = sand.u32 (%p1883_p9), 1, %s1742_s18  }
  0x2d   : > { %s1398_s30 = sshll.u32 (%p1883_p9), %s1766_s24, 1  ;;  %s1396_s9 = sshll.u32 (%p1883_p9), %s226_s5, 9 }
  0x2e   : > { %s1488_s6 = sshll.u32 (%p1883_p9), %s1762_s23, 8  ;;  %s1927_s28 = scalar_lea.vmem (%p1883_p9), [#allocation4], %s1396_s9 }
  0x2f   : > { %s232_s11 = sadd.s32 (%p1883_p9), %s1488_s6, %s1398_s30 }
  0x30   : > { %s1400_s0 = sshll.u32 (%p1883_p9), %s232_s11, 2 }
  0x31   : > { %s1922_s7 = scalar_lea.vmem %s2206_s1, %s1400_s0 }
  0x32   : > { %v389_v4 = vld [vmem:[%s1922_s7] sm:$0xff]  ;;  %v391_v5 = vld [vmem:[%s1922_s7 + $0x10] sm:$0xff] }
  0x33   : > { %v393_v6 = vld [vmem:[%s1922_s7 + $0x20] sm:$0xff]  ;;  %390 = vst [vmem:[%s1927_s28] sm:$0xff] %v389_v4  ;;  %392 = vst [vmem:[%s1927_s28 + $0x8] sm:$0xff] %v391_v5  ;;  %v395_v7 = vld [vmem:[%s1922_s7 + $0x30] sm:$0xff] }
  0x34   : > { %394 = vst [vmem:[%s1927_s28 + $0x10] sm:$0xff] %v393_v6  ;;  %v397_v8 = vld [vmem:[%s1922_s7 + $0x40] sm:$0xff]  ;;  %v399_v9 = vld [vmem:[%s1922_s7 + $0x50] sm:$0xff]  ;;  %396 = vst [vmem:[%s1927_s28 + $0x18] sm:$0xff] %v395_v7 }
  0x35   : > { %398 = vst [vmem:[%s1927_s28 + $0x20] sm:$0xff] %v397_v8  ;;  %400 = vst [vmem:[%s1927_s28 + $0x28] sm:$0xff] %v399_v9  ;;  %v401_v10 = vld [vmem:[%s1922_s7 + $0x60] sm:$0xff]  ;;  %v403_v11 = vld [vmem:[%s1922_s7 + $0x70] sm:$0xff] }
  0x36   : > { %v405_v12 = vld [vmem:[%s1922_s7 + $0x80] sm:$0xff]  ;;  %402 = vst [vmem:[%s1927_s28 + $0x30] sm:$0xff] %v401_v10  ;;  %404 = vst [vmem:[%s1927_s28 + $0x38] sm:$0xff] %v403_v11  ;;  %v407_v13 = vld [vmem:[%s1922_s7 + $0x90] sm:$0xff] }
  0x37   : > { %406 = vst [vmem:[%s1927_s28 + $0x40] sm:$0xff] %v405_v12  ;;  %v409_v14 = vld [vmem:[%s1922_s7 + $0xa0] sm:$0xff]  ;;  %v411_v15 = vld [vmem:[%s1922_s7 + $0xb0] sm:$0xff]  ;;  %408 = vst [vmem:[%s1927_s28 + $0x48] sm:$0xff] %v407_v13 }
  0x38   : > { %410 = vst [vmem:[%s1927_s28 + $0x50] sm:$0xff] %v409_v14  ;;  %412 = vst [vmem:[%s1927_s28 + $0x58] sm:$0xff] %v411_v15  ;;  %v413_v16 = vld [vmem:[%s1922_s7 + $0xc0] sm:$0xff]  ;;  %v415_v17 = vld [vmem:[%s1922_s7 + $0xd0] sm:$0xff] }
  0x39   : > { %v417_v18 = vld [vmem:[%s1922_s7 + $0xe0] sm:$0xff]  ;;  %414 = vst [vmem:[%s1927_s28 + $0x60] sm:$0xff] %v413_v16  ;;  %416 = vst [vmem:[%s1927_s28 + $0x68] sm:$0xff] %v415_v17  ;;  %v419_v19 = vld [vmem:[%s1922_s7 + $0xf0] sm:$0xff] }
  0x3a   : > { %418 = vst [vmem:[%s1927_s28 + $0x70] sm:$0xff] %v417_v18  ;;  %v421_v20 = vld [vmem:[%s1922_s7 + $0x100] sm:$0xff]  ;;  %v423_v21 = vld [vmem:[%s1922_s7 + $0x110] sm:$0xff]  ;;  %420 = vst [vmem:[%s1927_s28 + $0x78] sm:$0xff] %v419_v19 }
  0x3b   : > { %422 = vst [vmem:[%s1927_s28 + $0x80] sm:$0xff] %v421_v20  ;;  %424 = vst [vmem:[%s1927_s28 + $0x88] sm:$0xff] %v423_v21  ;;  %v425_v22 = vld [vmem:[%s1922_s7 + $0x120] sm:$0xff]  ;;  %v427_v23 = vld [vmem:[%s1922_s7 + $0x130] sm:$0xff] }
  0x3c   : > { %v429_v24 = vld [vmem:[%s1922_s7 + $0x140] sm:$0xff]  ;;  %426 = vst [vmem:[%s1927_s28 + $0x90] sm:$0xff] %v425_v22  ;;  %428 = vst [vmem:[%s1927_s28 + $0x98] sm:$0xff] %v427_v23  ;;  %v431_v25 = vld [vmem:[%s1922_s7 + $0x150] sm:$0xff] }
  0x3d   : > { %430 = vst [vmem:[%s1927_s28 + $0xa0] sm:$0xff] %v429_v24  ;;  %v433_v26 = vld [vmem:[%s1922_s7 + $0x160] sm:$0xff]  ;;  %v435_v27 = vld [vmem:[%s1922_s7 + $0x170] sm:$0xff]  ;;  %432 = vst [vmem:[%s1927_s28 + $0xa8] sm:$0xff] %v431_v25 }
  0x3e   : > { %434 = vst [vmem:[%s1927_s28 + $0xb0] sm:$0xff] %v433_v26  ;;  %436 = vst [vmem:[%s1927_s28 + $0xb8] sm:$0xff] %v435_v27  ;;  %v437_v28 = vld [vmem:[%s1922_s7 + $0x180] sm:$0xff]  ;;  %v439_v29 = vld [vmem:[%s1922_s7 + $0x190] sm:$0xff] }
  0x3f   : > { %v441_v30 = vld [vmem:[%s1922_s7 + $0x1a0] sm:$0xff]  ;;  %438 = vst [vmem:[%s1927_s28 + $0xc0] sm:$0xff] %v437_v28  ;;  %440 = vst [vmem:[%s1927_s28 + $0xc8] sm:$0xff] %v439_v29  ;;  %v443_v31 = vld [vmem:[%s1922_s7 + $0x1b0] sm:$0xff] }
  0x40   : > { %442 = vst [vmem:[%s1927_s28 + $0xd0] sm:$0xff] %v441_v30  ;;  %v445_v32 = vld [vmem:[%s1922_s7 + $0x1c0] sm:$0xff]  ;;  %v447_v33 = vld [vmem:[%s1922_s7 + $0x1d0] sm:$0xff]  ;;  %444 = vst [vmem:[%s1927_s28 + $0xd8] sm:$0xff] %v443_v31 }
  0x41   : > { %446 = vst [vmem:[%s1927_s28 + $0xe0] sm:$0xff] %v445_v32  ;;  %448 = vst [vmem:[%s1927_s28 + $0xe8] sm:$0xff] %v447_v33  ;;  %v449_v34 = vld [vmem:[%s1922_s7 + $0x1e0] sm:$0xff]  ;;  %v451_v35 = vld [vmem:[%s1922_s7 + $0x1f0] sm:$0xff] }
  0x42   : > { %v453_v36 = vld [vmem:[%s1922_s7 + $0x200] sm:$0xff]  ;;  %450 = vst [vmem:[%s1927_s28 + $0xf0] sm:$0xff] %v449_v34  ;;  %452 = vst [vmem:[%s1927_s28 + $0xf8] sm:$0xff] %v451_v35  ;;  %v455_v37 = vld [vmem:[%s1922_s7 + $0x210] sm:$0xff] }
  0x43   : > { %454 = vst [vmem:[%s1927_s28 + $0x100] sm:$0xff] %v453_v36  ;;  %v457_v38 = vld [vmem:[%s1922_s7 + $0x220] sm:$0xff]  ;;  %v459_v39 = vld [vmem:[%s1922_s7 + $0x230] sm:$0xff]  ;;  %456 = vst [vmem:[%s1927_s28 + $0x108] sm:$0xff] %v455_v37 }
  0x44   : > { %458 = vst [vmem:[%s1927_s28 + $0x110] sm:$0xff] %v457_v38  ;;  %460 = vst [vmem:[%s1927_s28 + $0x118] sm:$0xff] %v459_v39  ;;  %v461_v40 = vld [vmem:[%s1922_s7 + $0x240] sm:$0xff]  ;;  %v463_v41 = vld [vmem:[%s1922_s7 + $0x250] sm:$0xff] }
  0x45   : > { %v465_v42 = vld [vmem:[%s1922_s7 + $0x260] sm:$0xff]  ;;  %462 = vst [vmem:[%s1927_s28 + $0x120] sm:$0xff] %v461_v40  ;;  %464 = vst [vmem:[%s1927_s28 + $0x128] sm:$0xff] %v463_v41  ;;  %v467_v43 = vld [vmem:[%s1922_s7 + $0x270] sm:$0xff] }
  0x46   : > { %466 = vst [vmem:[%s1927_s28 + $0x130] sm:$0xff] %v465_v42  ;;  %v469_v44 = vld [vmem:[%s1922_s7 + $0x280] sm:$0xff]  ;;  %v471_v45 = vld [vmem:[%s1922_s7 + $0x290] sm:$0xff]  ;;  %468 = vst [vmem:[%s1927_s28 + $0x138] sm:$0xff] %v467_v43 }
  0x47   : > { %470 = vst [vmem:[%s1927_s28 + $0x140] sm:$0xff] %v469_v44  ;;  %472 = vst [vmem:[%s1927_s28 + $0x148] sm:$0xff] %v471_v45  ;;  %v473_v46 = vld [vmem:[%s1922_s7 + $0x2a0] sm:$0xff]  ;;  %v475_v47 = vld [vmem:[%s1922_s7 + $0x2b0] sm:$0xff] }
  0x48   : > { %v477_v48 = vld [vmem:[%s1922_s7 + $0x2c0] sm:$0xff]  ;;  %474 = vst [vmem:[%s1927_s28 + $0x150] sm:$0xff] %v473_v46  ;;  %476 = vst [vmem:[%s1927_s28 + $0x158] sm:$0xff] %v475_v47  ;;  %v479_v49 = vld [vmem:[%s1922_s7 + $0x2d0] sm:$0xff] }
  0x49   : > { %478 = vst [vmem:[%s1927_s28 + $0x160] sm:$0xff] %v477_v48  ;;  %v481_v50 = vld [vmem:[%s1922_s7 + $0x2e0] sm:$0xff]  ;;  %v483_v51 = vld [vmem:[%s1922_s7 + $0x2f0] sm:$0xff]  ;;  %480 = vst [vmem:[%s1927_s28 + $0x168] sm:$0xff] %v479_v49 }
  0x4a   : > { %482 = vst [vmem:[%s1927_s28 + $0x170] sm:$0xff] %v481_v50  ;;  %484 = vst [vmem:[%s1927_s28 + $0x178] sm:$0xff] %v483_v51  ;;  %v485_v52 = vld [vmem:[%s1922_s7 + $0x300] sm:$0xff]  ;;  %v487_v53 = vld [vmem:[%s1922_s7 + $0x310] sm:$0xff] }
  0x4b   : > { %v489_v54 = vld [vmem:[%s1922_s7 + $0x320] sm:$0xff]  ;;  %486 = vst [vmem:[%s1927_s28 + $0x180] sm:$0xff] %v485_v52  ;;  %488 = vst [vmem:[%s1927_s28 + $0x188] sm:$0xff] %v487_v53  ;;  %v491_v55 = vld [vmem:[%s1922_s7 + $0x330] sm:$0xff] }
  0x4c   : > { %490 = vst [vmem:[%s1927_s28 + $0x190] sm:$0xff] %v489_v54  ;;  %v493_v56 = vld [vmem:[%s1922_s7 + $0x340] sm:$0xff]  ;;  %v495_v57 = vld [vmem:[%s1922_s7 + $0x350] sm:$0xff]  ;;  %492 = vst [vmem:[%s1927_s28 + $0x198] sm:$0xff] %v491_v55 }
  0x4d   : > { %494 = vst [vmem:[%s1927_s28 + $0x1a0] sm:$0xff] %v493_v56  ;;  %496 = vst [vmem:[%s1927_s28 + $0x1a8] sm:$0xff] %v495_v57  ;;  %v497_v58 = vld [vmem:[%s1922_s7 + $0x360] sm:$0xff]  ;;  %v499_v59 = vld [vmem:[%s1922_s7 + $0x370] sm:$0xff] }
  0x4e   : > { %v501_v60 = vld [vmem:[%s1922_s7 + $0x380] sm:$0xff]  ;;  %498 = vst [vmem:[%s1927_s28 + $0x1b0] sm:$0xff] %v497_v58  ;;  %500 = vst [vmem:[%s1927_s28 + $0x1b8] sm:$0xff] %v499_v59  ;;  %v503_v61 = vld [vmem:[%s1922_s7 + $0x390] sm:$0xff] }
  0x4f   : > { %502 = vst [vmem:[%s1927_s28 + $0x1c0] sm:$0xff] %v501_v60  ;;  %v505_v62 = vld [vmem:[%s1922_s7 + $0x3a0] sm:$0xff]  ;;  %v507_v63 = vld [vmem:[%s1922_s7 + $0x3b0] sm:$0xff]  ;;  %504 = vst [vmem:[%s1927_s28 + $0x1c8] sm:$0xff] %v503_v61 }
  0x50   : > { %506 = vst [vmem:[%s1927_s28 + $0x1d0] sm:$0xff] %v505_v62  ;;  %508 = vst [vmem:[%s1927_s28 + $0x1d8] sm:$0xff] %v507_v63  ;;  %v509_v0 = vld [vmem:[%s1922_s7 + $0x3c0] sm:$0xff]  ;;  %v511_v1 = vld [vmem:[%s1922_s7 + $0x3d0] sm:$0xff] }
  0x51   : > { %v513_v2 = vld [vmem:[%s1922_s7 + $0x3e0] sm:$0xff]  ;;  %510 = vst [vmem:[%s1927_s28 + $0x1e0] sm:$0xff] %v509_v0  ;;  %512 = vst [vmem:[%s1927_s28 + $0x1e8] sm:$0xff] %v511_v1  ;;  %v515_v3 = vld [vmem:[%s1922_s7 + $0x3f0] sm:$0xff] }
  0x52   : > { %514 = vst [vmem:[%s1927_s28 + $0x1f0] sm:$0xff] %v513_v2  ;;  %516 = vst [vmem:[%s1927_s28 + $0x1f8] sm:$0xff] %v515_v3 }
  0x53 PF: > { %530 = sbr.rel (!%p1898_p11) target bundleno = 88 (0x58), region = 85  ;;  %s532_s0 = sand.u32 (%p1898_p11), 1, %s1734_s16  }
  0x54   : > { %s1489_s27 = sshll.u32 (%p1898_p11), %s1766_s24, 3  ;;  %s1401_s10 = sshll.u32 (%p1898_p11), %s532_s0, 4 }
  0x55   : > { %s540_s30 = scalar_lea.vmem (%p1898_p11), %s2208_s3, %s1489_s27  ;;  %s534_s9 = scalar_lea.vmem (%p1898_p11), [#allocation5], %s1401_s10 }
  0x56   : > { %v571_v4 = vld [vmem:[%s540_s30] sm:$0xff] (%p1898_p11)  ;;  %v573_v5 = vld [vmem:[%s540_s30 + $0x10] sm:$0xff] (%p1898_p11) }
  0x57   : > { %572 = vst [vmem:[%s534_s9] sm:$0xff] (%p1898_p11), %v571_v4  ;;  %574 = vst [vmem:[%s534_s9 + $0x8] sm:$0xff] (%p1898_p11), %v573_v5 }
  0x58 PF: > { %p1404_p1 = scmp.ge.s32.totalorder %s1770_s25, 1  ;;  %p579_p2 = scmp.lt.s32.totalorder %s1770_s25, 19 }
  0x5a   : > { %p580_p3 = pnand %p1404_p1, %p579_p2 }
  0x5b   : > { %s586_s7 = sand.u32 (!%p580_p3), 1, %s1746_s19   ;;  %s593_s14 = sand.u32 (!%p580_p3), 1, %s1738_s17  }
  0x5c   : > { %583 = sbr.rel (%p580_p3) target bundleno = 401 (0x191), region = 123  ;;  %s1405_s6 = sshll.u32 (!%p580_p3), %s586_s7, 5 }
  0x5d   : > { %s1406_s11 = sshll.u32 (!%p580_p3), %s593_s14, 9  ;;  %s600_s8 = sand.u32 (!%p580_p3), 1, %s1730_s15  }
  0x5e   : > { %s1409_s28 = sshll.u32 (!%p580_p3), %s1758_s22, 1  ;;  %s2067_s0 = sshll.u32 (!%p580_p3), %s600_s8, 4 }
  0x5f   : > { %p641_p4 = scmp.lt.s32.totalorder (!%p580_p3), %s1409_s28, 3  ;;  %s2075_s5 = scalar_lea.vmem (!%p580_p3), [#allocation3], %s1405_s6 }
  0x60   : > { %s2077_s19 = scalar_lea.vmem (!%p580_p3), [#allocation4], %s1406_s11  ;;  %s602_s17 = scalar_lea.vmem (!%p580_p3), [#allocation5], %s2067_s0 }
  0x61   : > { %s2241_s28 = smov (!%p641_p4, %s1409_s28), 3  ;;  %s2081_s30 = scalar_lea.vmem [#allocation6], %s2067_s0 }
  0x62   : > { %s643_s26 = scalar_lea.vmem %s2207_s2, %s2241_s28  ;;  %p1410_p5 = scmp.ne.s32.totalorder %s1754_s21, 0 }
  0x64   : > { %652 = sbr.rel (%p1410_p5) target bundleno = 108 (0x6c), region = 139 }
  0x69   : > { %v1772_v6 = vmov 0.0  }
  0x6a   : > { %653 = vst [vmem:[#allocation2 + $0x10] sm:$0xff] %v1772_v6  ;;  %654 = vst [vmem:[#allocation2] sm:$0xff] %v1772_v6 }
  0x6b   : > { %655 = vst [vmem:[#allocation2 + $0x18] sm:$0xff] %v1772_v6  ;;  %656 = vst [vmem:[#allocation2 + $0x8] sm:$0xff] %v1772_v6 }
  0x6c PF: > { %v1582_v7 = vld [vmem:[%s2077_s19 + $0x74] ss:$8 sps:$4 sm:$0xff]   ;;  %v1586_v9 = vld [vmem:[%s2077_s19 + $0x70] ss:$8 sps:$4 sm:$0xff]   ;;  %v1588_v11 = vld [vmem:[%s2077_s19 + $0x64] ss:$8 sps:$4 sm:$0xff]  }
  0x6d   : > { %v1584_v8 = vld [vmem:[%s2077_s19 + $0x174] ss:$8 sps:$4 sm:$0xff]   ;;  %1069 = vmatprep.subr.bf16.mxu0 %v1582_v7  ;;  %v1587_v10 = vld [vmem:[%s2077_s19 + $0x170] ss:$8 sps:$4 sm:$0xff]   ;;  %v1590_v12 = vld [vmem:[%s2077_s19 + $0x164] ss:$8 sps:$4 sm:$0xff]  }
  0x6e   : > { %1112 = vmatprep.subr.bf16.mxu1 %v1584_v8  ;;  %1070 = vmatpush1.bf16.msra.mxu0 %v1586_v9  ;;  %v1592_v13 = vld [vmem:[%s2077_s19 + $0x60] ss:$8 sps:$4 sm:$0xff]   ;;  %v1594_v15 = vld [vmem:[%s2077_s19 + $0x54] ss:$8 sps:$4 sm:$0xff]   ;;  %v1598_v17 = vld [vmem:[%s2077_s19 + $0x50] ss:$8 sps:$4 sm:$0xff]  }
  0x6f   : > { %1113 = vmatpush1.bf16.msra.mxu1 %v1587_v10  ;;  %1071 = vmatprep.subr.bf16.mxu0 %v1588_v11  ;;  %v1593_v14 = vld [vmem:[%s2077_s19 + $0x160] ss:$8 sps:$4 sm:$0xff]   ;;  %v1596_v16 = vld [vmem:[%s2077_s19 + $0x154] ss:$8 sps:$4 sm:$0xff]   ;;  %v1599_v18 = vld [vmem:[%s2077_s19 + $0x150] ss:$8 sps:$4 sm:$0xff]  }
  0x70   : > { %1114 = vmatprep.subr.bf16.mxu1 %v1590_v12  ;;  %v1600_v19 = vld [vmem:[%s2077_s19 + $0x44] ss:$8 sps:$4 sm:$0xff]   ;;  %v1604_v21 = vld [vmem:[%s2077_s19 + $0x40] ss:$8 sps:$4 sm:$0xff]   ;;  %v1606_v23 = vld [vmem:[%s2077_s19 + $0x34] ss:$8 sps:$4 sm:$0xff]  }
  0x71   : > { %v1602_v20 = vld [vmem:[%s2077_s19 + $0x144] ss:$8 sps:$4 sm:$0xff]   ;;  %v1605_v22 = vld [vmem:[%s2077_s19 + $0x140] ss:$8 sps:$4 sm:$0xff]   ;;  %v1608_v24 = vld [vmem:[%s2077_s19 + $0x134] ss:$8 sps:$4 sm:$0xff]  }
  0x72   : > { %1072 = vmatpush1.bf16.msra.mxu0 %v1592_v13  ;;  %v1610_v25 = vld [vmem:[%s2077_s19 + $0x30] ss:$8 sps:$4 sm:$0xff]   ;;  %v1612_v27 = vld [vmem:[%s2077_s19 + $0x24] ss:$8 sps:$4 sm:$0xff]   ;;  %v1616_v29 = vld [vmem:[%s2077_s19 + $0x20] ss:$8 sps:$4 sm:$0xff]  }
  0x73   : > { %1115 = vmatpush1.bf16.msra.mxu1 %v1593_v14  ;;  %1073 = vmatprep.subr.bf16.mxu0 %v1594_v15  ;;  %v1611_v26 = vld [vmem:[%s2077_s19 + $0x130] ss:$8 sps:$4 sm:$0xff]   ;;  %v1614_v28 = vld [vmem:[%s2077_s19 + $0x124] ss:$8 sps:$4 sm:$0xff]   ;;  %v1617_v30 = vld [vmem:[%s2077_s19 + $0x120] ss:$8 sps:$4 sm:$0xff]  }
  0x74   : > { %1116 = vmatprep.subr.bf16.mxu1 %v1596_v16  ;;  %v1618_v31 = vld [vmem:[%s2077_s19 + $0x14] ss:$8 sps:$4 sm:$0xff]   ;;  %v1622_v33 = vld [vmem:[%s2077_s19 + $0x10] ss:$8 sps:$4 sm:$0xff]   ;;  %v1624_v35 = vld [vmem:[%s2077_s19 + $0x4] ss:$8 sps:$4 sm:$0xff]  }
  0x75   : > { %v1620_v32 = vld [vmem:[%s2077_s19 + $0x114] ss:$8 sps:$4 sm:$0xff]   ;;  %v1623_v34 = vld [vmem:[%s2077_s19 + $0x110] ss:$8 sps:$4 sm:$0xff]   ;;  %v1626_v36 = vld [vmem:[%s2077_s19 + $0x104] ss:$8 sps:$4 sm:$0xff]  }
  0x76   : > { %1074 = vmatpush1.bf16.msra.mxu0 %v1598_v17  ;;  %v1628_v37 = vld [vmem:[%s2077_s19] ss:$8 sps:$4 sm:$0xff]   ;;  %v1630_v39 = vld [vmem:[%s2077_s19 + $0xf4] ss:$8 sps:$4 sm:$0xff]   ;;  %v1634_v41 = vld [vmem:[%s2077_s19 + $0xf0] ss:$8 sps:$4 sm:$0xff]  }
  0x77   : > { %1117 = vmatpush1.bf16.msra.mxu1 %v1599_v18  ;;  %1075 = vmatprep.subr.bf16.mxu0 %v1600_v19  ;;  %v1629_v38 = vld [vmem:[%s2077_s19 + $0x100] ss:$8 sps:$4 sm:$0xff]   ;;  %v1632_v40 = vld [vmem:[%s2077_s19 + $0x1f4] ss:$8 sps:$4 sm:$0xff]   ;;  %v1635_v42 = vld [vmem:[%s2077_s19 + $0x1f0] ss:$8 sps:$4 sm:$0xff]  }
  0x78   : > { %1118 = vmatprep.subr.bf16.mxu1 %v1602_v20  ;;  %v1636_v43 = vld [vmem:[%s2077_s19 + $0xe4] ss:$8 sps:$4 sm:$0xff]   ;;  %v1640_v45 = vld [vmem:[%s2077_s19 + $0xe0] ss:$8 sps:$4 sm:$0xff]   ;;  %v1642_v47 = vld [vmem:[%s2077_s19 + $0xd4] ss:$8 sps:$4 sm:$0xff]  }
  0x79   : > { %v1638_v44 = vld [vmem:[%s2077_s19 + $0x1e4] ss:$8 sps:$4 sm:$0xff]   ;;  %v1641_v46 = vld [vmem:[%s2077_s19 + $0x1e0] ss:$8 sps:$4 sm:$0xff]   ;;  %v1644_v48 = vld [vmem:[%s2077_s19 + $0x1d4] ss:$8 sps:$4 sm:$0xff]  }
  0x7a   : > { %1076 = vmatpush1.bf16.msra.mxu0 %v1604_v21  ;;  %v1646_v49 = vld [vmem:[%s2077_s19 + $0xd0] ss:$8 sps:$4 sm:$0xff]   ;;  %v1648_v51 = vld [vmem:[%s2077_s19 + $0xc4] ss:$8 sps:$4 sm:$0xff]   ;;  %v1652_v53 = vld [vmem:[%s2077_s19 + $0xc0] ss:$8 sps:$4 sm:$0xff]  }
  0x7b   : > { %1119 = vmatpush1.bf16.msra.mxu1 %v1605_v22  ;;  %1077 = vmatprep.subr.bf16.mxu0 %v1606_v23  ;;  %v1647_v50 = vld [vmem:[%s2077_s19 + $0x1d0] ss:$8 sps:$4 sm:$0xff]   ;;  %v1650_v52 = vld [vmem:[%s2077_s19 + $0x1c4] ss:$8 sps:$4 sm:$0xff]   ;;  %v1653_v55 = vld [vmem:[%s2077_s19 + $0x1c0] ss:$8 sps:$4 sm:$0xff]  }
  0x7c   : > { %1120 = vmatprep.subr.bf16.mxu1 %v1608_v24  ;;  %v1680_v54 = vld [vmem:[%s2075_s5 + $0x4] ss:$16 sps:$4 sm:$0xff]   ;;  %v1683_v58 = vld [vmem:[%s2075_s5 + $0xc] ss:$16 sps:$4 sm:$0xff]   ;;  %v1658_v59 = vld [vmem:[%s2077_s19 + $0xb0] ss:$8 sps:$4 sm:$0xff]  }
  0x7d   : > { %v1654_v56 = vld [vmem:[%s2077_s19 + $0xb4] ss:$8 sps:$4 sm:$0xff]   ;;  %1101 = vmatprep.mubr.bf16.mxu0 %v1680_v54  ;;  %1144 = vmatprep.mubr.bf16.mxu1 %v1683_v58  ;;  %v1659_v60 = vld [vmem:[%s2077_s19 + $0x1b0] ss:$8 sps:$4 sm:$0xff]   ;;  %v1660_v61 = vld [vmem:[%s2077_s19 + $0xa4] ss:$8 sps:$4 sm:$0xff]  }
  0x7e   : > { %1078 = vmatpush1.bf16.msra.mxu0 %v1610_v25  ;;  %v1656_v57 = vld [vmem:[%s2077_s19 + $0x1b4] ss:$8 sps:$4 sm:$0xff]   ;;  %v1662_v62 = vld [vmem:[%s2077_s19 + $0x1a4] ss:$8 sps:$4 sm:$0xff]   ;;  %v1664_v63 = vld [vmem:[%s2077_s19 + $0xa0] ss:$8 sps:$4 sm:$0xff]  }
  0x7f   : > { %1121 = vmatpush1.bf16.msra.mxu1 %v1611_v26  ;;  %1079 = vmatprep.subr.bf16.mxu0 %v1612_v27  ;;  %v1665_v0 = vld [vmem:[%s2077_s19 + $0x1a0] ss:$8 sps:$4 sm:$0xff]   ;;  %v1666_v1 = vld [vmem:[%s2077_s19 + $0x94] ss:$8 sps:$4 sm:$0xff]   ;;  %v1670_v3 = vld [vmem:[%s2077_s19 + $0x90] ss:$8 sps:$4 sm:$0xff]  }
  0x80   : > { %1122 = vmatprep.subr.bf16.mxu1 %v1614_v28  ;;  %v1668_v2 = vld [vmem:[%s2077_s19 + $0x194] ss:$8 sps:$4 sm:$0xff]   ;;  %v1671_v4 = vld [vmem:[%s2077_s19 + $0x190] ss:$8 sps:$4 sm:$0xff]   ;;  %v1672_v5 = vld [vmem:[%s2077_s19 + $0x84] ss:$8 sps:$4 sm:$0xff]  }
  0x81   : > { %v1674_v6 = vld [vmem:[%s2077_s19 + $0x184] ss:$8 sps:$4 sm:$0xff]   ;;  %v1676_v7 = vld [vmem:[%s2077_s19 + $0x80] ss:$8 sps:$4 sm:$0xff]   ;;  %v657_v12 = vld [vmem:[#allocation2 + $0x10] sm:$0xff]  ;;  %p1479_p6 = scmp.ne.s32.totalorder %s1754_s21, 8 }
  0x82   : > { %1080 = vmatpush1.bf16.msra.mxu0 %v1616_v29  ;;  %v1677_v8 = vld [vmem:[%s2077_s19 + $0x180] ss:$8 sps:$4 sm:$0xff]   ;;  %v659_v21 = vld [vmem:[#allocation2 + $0x18] sm:$0xff] }
  0x83   : > { %1123 = vmatpush1.bf16.msra.mxu1 %v1617_v30  ;;  %1081 = vmatprep.subr.bf16.mxu0 %v1618_v31  ;;  %v1678_v9 = vld [vmem:[%s2075_s5] ss:$16 sps:$4 sm:$0xff]   ;;  %v1681_v10 = vld [vmem:[%s2075_s5 + $0x8] ss:$16 sps:$4 sm:$0xff]  }
  0x84   : > { %1124 = vmatprep.subr.bf16.mxu1 %v1620_v32  ;;  %v658_v16 = vld [vmem:[#allocation2] sm:$0xff]  ;;  %v660_v26 = vld [vmem:[#allocation2 + $0x8] sm:$0xff] }
  0x86   : > { %1082 = vmatpush1.bf16.msra.mxu0 %v1622_v33 }
  0x87   : > { %1125 = vmatpush1.bf16.msra.mxu1 %v1623_v34  ;;  %1083 = vmatprep.subr.bf16.mxu0 %v1624_v35 }
  0x88   : > { %1126 = vmatprep.subr.bf16.mxu1 %v1626_v36 }
  0x8a   : > { %1084 = vmatpush1.bf16.msra.mxu0 %v1628_v37 }
  0x8b   : > { %1127 = vmatpush1.bf16.msra.mxu1 %v1629_v38  ;;  %1085 = vmatprep.subr.bf16.mxu0 %v1630_v39 }
  0x8c   : > { %1128 = vmatprep.subr.bf16.mxu1 %v1632_v40 }
  0x8e   : > { %1086 = vmatpush2.bf16.msra.mxu0 %v1634_v41 }
  0x8f   : > { %1129 = vmatpush2.bf16.msra.mxu1 %v1635_v42  ;;  %1087 = vmatprep.subr.bf16.mxu0 %v1636_v43 }
  0x90   : > { %1130 = vmatprep.subr.bf16.mxu1 %v1638_v44 }
  0x92   : > { %1088 = vmatpush2.bf16.msra.mxu0 %v1640_v45 }
  0x93   : > { %1131 = vmatpush2.bf16.msra.mxu1 %v1641_v46  ;;  %1089 = vmatprep.subr.bf16.mxu0 %v1642_v47 }
  0x94   : > { %1132 = vmatprep.subr.bf16.mxu1 %v1644_v48 }
  0x96   : > { %1090 = vmatpush2.bf16.msra.mxu0 %v1646_v49 }
  0x97   : > { %1133 = vmatpush2.bf16.msra.mxu1 %v1647_v50  ;;  %1091 = vmatprep.subr.bf16.mxu0 %v1648_v51 }
  0x98   : > { %1134 = vmatprep.subr.bf16.mxu1 %v1650_v52 }
  0x9a   : > { %1092 = vmatpush2.bf16.msra.mxu0 %v1652_v53 }
  0x9b   : > { %1135 = vmatpush2.bf16.msra.mxu1 %v1653_v55  ;;  %1093 = vmatprep.subr.bf16.mxu0 %v1654_v56 }
  0x9c   : > { %1136 = vmatprep.subr.bf16.mxu1 %v1656_v57 }
  0x9e   : > { %1094 = vmatpush2.bf16.msra.mxu0 %v1658_v59 }
  0x9f   : > { %1137 = vmatpush2.bf16.msra.mxu1 %v1659_v60  ;;  %1095 = vmatprep.subr.bf16.mxu0 %v1660_v61 }
  0xa0   : > { %1138 = vmatprep.subr.bf16.mxu1 %v1662_v62 }
  0xa2   : > { %1096 = vmatpush2.bf16.msra.mxu0 %v1664_v63 }
  0xa3   : > { %1139 = vmatpush2.bf16.msra.mxu1 %v1665_v0  ;;  %1097 = vmatprep.subr.bf16.mxu0 %v1666_v1 }
  0xa4   : > { %1140 = vmatprep.subr.bf16.mxu1 %v1668_v2 }
  0xa6   : > { %1098 = vmatpush2.bf16.msra.mxu0 %v1670_v3 }
  0xa7   : > { %1141 = vmatpush2.bf16.msra.mxu1 %v1671_v4  ;;  %1099 = vmatprep.subr.bf16.mxu0 %v1672_v5 }
  0xa8   : > { %1142 = vmatprep.subr.bf16.mxu1 %v1674_v6 }
  0xaa   : > { %1100 = vmatpush2.bf16.msra.mxu0 %v1676_v7 }
  0xab   : > { %1143 = vmatpush2.bf16.msra.mxu1 %v1677_v8 }
  0xad   : > { %1102 = vmatmul.mubr.bf16.vlgmr.msra.gmra.mxu0 %v1678_v9 }
  0xae   : > { %1145 = vmatmul.mubr.bf16.vlgmr.msra.gmra.mxu1 %v1681_v10 }
 0x16d   : > { %v1103_v11 = vpop.f32.mrf.mxu0 }
 0x16e   : > { %v1146_v13 = vpop.f32.mrf.mxu1 }
 0x16f   : > { %v1147_v14 = vadd.f32 %v1146_v13, %v1103_v11  ;;  %v1105_v15 = vpop.f32.mrf.mxu0 }
 0x170   : > { %v1148_v17 = vpop.f32.mrf.mxu1 }
 0x171   : > { %v1155_v18 = vadd.f32 %v1147_v14, %v657_v12  ;;  %v1149_v19 = vadd.f32 %v1148_v17, %v1105_v15  ;;  %v1107_v20 = vpop.f32.mrf.mxu0 }
 0x172   : > { %v1150_v22 = vpop.f32.mrf.mxu1 }
 0x173   : > { %1159 = vst [vmem:[#allocation2 + $0x10] sm:$0xff] %v1155_v18  ;;  %v1156_v23 = vadd.f32 %v1149_v19, %v658_v16  ;;  %v1151_v24 = vadd.f32 %v1150_v22, %v1107_v20  ;;  %v1109_v25 = vpop.f32.mrf.mxu0 }
 0x174   : > { %v1152_v27 = vpop.f32.mrf.mxu1 }
 0x175   : > { %1160 = vst [vmem:[#allocation2] sm:$0xff] %v1156_v23  ;;  %v1157_v28 = vadd.f32 %v1151_v24, %v659_v21  ;;  %v1153_v29 = vadd.f32 %v1152_v27, %v1109_v25  ;;  %1166 = sbr.rel (%p1479_p6) target bundleno = 393 (0x189), region = 143 }
 0x177   : > { %1161 = vst [vmem:[#allocation2 + $0x18] sm:$0xff] %v1157_v28  ;;  %v1158_v30 = vadd.f32 %v1153_v29, %v660_v26 }
 0x179   : > { %1162 = vst [vmem:[#allocation2 + $0x8] sm:$0xff] %v1158_v30 }
 0x17a   : > { %v1173_v31 = vlaneseq  ;;  %v1187_v33 = vld [vmem:[%s602_s17] sm:$0xff]  ;;  %v1188_v35 = vld [vmem:[%s602_s17 + $0x8] sm:$0xff] }
 0x17b   : > { %v1171_v34 = vld [vmem:[%s643_s26] sm:$0x3]  ;;  %v1167_v36 = vld [vmem:[#allocation2 + $0x10] sm:$0xff]  ;;  %v1189_v40 = vunpack.c.l.bf16 %v1187_v33  ;;  %v1190_v41 = vunpack.c.h.bf16 %v1187_v33  ;;  %v1191_v46 = vunpack.c.l.bf16 %v1188_v35  ;;  %v1192_v47 = vunpack.c.h.bf16 %v1188_v35 }
 0x17c   : > { %v1174_v32 = vshrl.u32 %v1173_v31, 7  ;;  %v1168_v39 = vld [vmem:[#allocation2] sm:$0xff] }
 0x17e   : > { %v1175_v37 = vsub.s32 0, %v1174_v32  ;;  %v1179_v38 = vsub.s32 1, %v1174_v32  ;;  %v1169_v42 = vld [vmem:[#allocation2 + $0x18] sm:$0xff] }
 0x180   : > { %v1170_v43 = vld [vmem:[#allocation2 + $0x8] sm:$0xff]  ;;  %v1176_v44 = vrot.slane %v1171_v34, %v1175_v37  ;;  %v1180_v45 = vrot.slane %v1171_v34, %v1179_v38 }
 0x182   : > { %v1183_v48 = vadd.f32 %v1176_v44, %v1167_v36  ;;  %v1184_v49 = vadd.f32 %v1180_v45, %v1168_v39  ;;  %v1185_v50 = vadd.f32 %v1176_v44, %v1169_v42  ;;  %v1186_v51 = vadd.f32 %v1180_v45, %v1170_v43 }
 0x184   : > { %v1193_v52 = vadd.f32 %v1189_v40, %v1183_v48  ;;  %v1194_v53 = vadd.f32 %v1190_v41, %v1184_v49  ;;  %v1195_v54 = vadd.f32 %v1191_v46, %v1185_v50  ;;  %v1196_v55 = vadd.f32 %v1192_v47, %v1186_v51 }
 0x186   : > { %v1490_v56 = vpack.c.bf16 %v1194_v53, %v1193_v52  ;;  %v1491_v57 = vpack.c.bf16 %v1196_v55, %v1195_v54 }
 0x188   : > { %1209 = vst [vmem:[%s2081_s30] sm:$0xff] %v1490_v56  ;;  %1210 = vst [vmem:[%s2081_s30 + $0x8] sm:$0xff] %v1491_v57 }
 0x189 PF: > { %1217 = sbr.rel (!%p1902_p13) target bundleno = 401 (0x191), region = 147  ;;  %s1492_s21 = sshll.u32 (%p1902_p13), %s1758_s22, 3 }
 0x18a   : > { %s1223_s6 = scalar_lea.vmem (%p1902_p13), %s2209_s4, %s1492_s21 }
 0x18f   : > { %v1254_v58 = vld [vmem:[%s2081_s30] sm:$0xff]  ;;  %v1256_v59 = vld [vmem:[%s2081_s30 + $0x8] sm:$0xff] }
 0x190   : > { %1255 = vst [vmem:[%s1223_s6] sm:$0xff] %v1254_v58  ;;  %1257 = vst [vmem:[%s1223_s6 + $0x10] sm:$0xff] %v1256_v59 }
 0x191 PF: > { %s14_s25 = sadd.s32 1, %s1770_s25   ;;  %s2221_s29 = sld [smem:[#allocation9_spill]] }
 0x192   : > { %p11_p7 = scmp.ge.s32.totalorder %s14_s25, 20   ;;  %s2222_s11 = sld [smem:[#allocation7_spill]] }
 0x193   : > { %s2223_s8 = sld [smem:[#allocation8_spill]]  ;;  %s2224_s15 = smov %s1734_s16 }
 0x194   : > { %s2225_s16 = smov %s1894_s13  ;;  %s2226_s17 = smov %s1742_s18 }
 0x195   : > { %s2227_s18 = smov %s1891_s12  ;;  %s2228_s19 = smov %s1750_s20 }
 0x196   : > { %s2230_s21 = smov %s1762_s23  ;;  %s2231_s22 = smov %s1766_s24 }
 0x197   : > { %s2229_s20 = smov %s2221_s29  ;;  %13 = sbr.rel (!%p11_p7) target bundleno = 8 (0x8), region = 235 }
 0x198   : > { %s2232_s23 = smov %s2222_s11 }
 0x199   : > { %s2233_s24 = smov %s2223_s8 }

</bundles_post_ra>
